<compile_context>
chip_gen: v7x
topology: tpu7x:2x2x1
jax: 0.10.0
libtpu: 0.0.40
codegen_flags: <defaults>
</compile_context>

<pallas_src>
import jax
import jax.numpy as jnp
from jax.experimental import pallas as pl
from jax.experimental.pallas import tpu as pltpu

EFF_C = 1280          # efficientnet_b0.features[-1][0].out_channels
RES_C = 2048          # resnet152.layer4[-1].conv3.out_channels
HID1, HID2 = 1024, 512
LEAKY_SLOPE = 0.01    # nn.LeakyReLU() default
BN_EPS = 1e-5
LANE = 128


def _fusion_kernel(eff_ref, res_ref,
                   w1e_ref, w1r_ref, b1_ref,
                   w2_ref, b2_ref,
                   w3_ref, b3_ref,
                   out_ref,
                   eff_acc, res_acc):
    k = pl.program_id(1)

    @pl.when(k == 0)
    def _():
        eff_acc[...] = jnp.zeros_like(eff_acc)
        res_acc[...] = jnp.zeros_like(res_acc)

    # Streaming spatial sum (AdaptiveAvgPool2d(1); the 1/HW divisor is folded
    # into w1 host-side).  Maps arrive bf16; accumulate in fp32 scratch.
    eff_acc[...] += jnp.sum(eff_ref[...].astype(jnp.float32), axis=1)
    res_acc[...] += jnp.sum(res_ref[...].astype(jnp.float32), axis=1)

    @pl.when(k == pl.num_programs(1) - 1)
    def _():
        xe = eff_acc[...].astype(jnp.bfloat16)
        xr = res_acc[...].astype(jnp.bfloat16)

        # Linear(3328,1024) split per branch (no lane-axis concat); BN1 + bias
        # + pool divisor already folded into w1e/w1r/b1.
        h = (jnp.dot(xe, w1e_ref[...], preferred_element_type=jnp.float32)
             + jnp.dot(xr, w1r_ref[...], preferred_element_type=jnp.float32)
             + b1_ref[...])
        h = jnp.where(h > 0, h, LEAKY_SLOPE * h)   # LeakyReLU; Dropout(0.5)=id (eval)

        # Linear(1024,512) with BN2 + bias folded in.
        h = jnp.dot(h.astype(jnp.bfloat16), w2_ref[...],
                    preferred_element_type=jnp.float32) + b2_ref[...]
        h = jnp.where(h > 0, h, LEAKY_SLOPE * h)   # LeakyReLU; Dropout(0.3)=id (eval)

        # Linear(512, num_classes), columns zero-padded to a full 128-lane slab.
        out = jnp.dot(h.astype(jnp.bfloat16), w3_ref[...],
                      preferred_element_type=jnp.float32) + b3_ref[...]
        out_ref[...] = out.astype(out_ref.dtype)


def _const_spec(shape):
    nd = len(shape)
    return pl.BlockSpec(shape, lambda i, k, _nd=nd: (0,) * _nd)


def _pick_tile(dim, cap, align=8):
    """Largest tile <= cap that divides dim and is a multiple of `align`
    (or the full dim when dim <= cap / no aligned divisor exists)."""
    if dim <= cap:
        return dim
    start = cap - (cap % align)
    for t in range(start, 0, -align):
        if dim % t == 0:
            return t
    return dim


def _vmem_limit_bytes():
    cap = 128 * 1024 * 1024
    try:
        info = pltpu.get_tpu_info()
        cap = int(getattr(info, "vmem_capacity_bytes", cap))
    except Exception:
        pass
    # 3/4 of physical VMEM (48 MiB on v7x, 96 MiB on v5e/v6e), capped at 96 MiB.
    return int(min(3 * cap // 4, 96 * 1024 * 1024))


def fusion_forward(eff_map, res_map, folded, num_classes,
                   *, batch_tile_cap=128, hw_tile_cap=64):
    """eff_map: [B, HW, 1280], res_map: [B, HW, 2048] -> logits [B, num_classes]."""
    B, HW, _ = eff_map.shape
    assert res_map.shape[0] == B and res_map.shape[1] == HW
    out_pad = folded["w3"].shape[1]

    bm = _pick_tile(B, batch_tile_cap, 8)
    hw_tile = _pick_tile(HW, hw_tile_cap, 8)
    nb, nk = B // bm, HW // hw_tile

    # bf16 feature maps halve HBM traffic on the mem-bound pooling phase.
    eff_bf = eff_map.astype(jnp.bfloat16)
    res_bf = res_map.astype(jnp.bfloat16)

    operands = (eff_bf, res_bf,
                folded["w1e"], folded["w1r"], folded["b1"],
                folded["w2"], folded["b2"],
                folded["w3"], folded["b3"])

    in_specs = [
        pl.BlockSpec((bm, hw_tile, EFF_C), lambda i, k: (i, k, 0)),
        pl.BlockSpec((bm, hw_tile, RES_C), lambda i, k: (i, k, 0)),
    ] + [_const_spec(op.shape) for op in operands[2:]]   # grid-invariant weights

    out = pl.pallas_call(
        _fusion_kernel,
        out_shape=jax.ShapeDtypeStruct((B, out_pad), jnp.float32),
        grid=(nb, nk),
        in_specs=in_specs,
        out_specs=pl.BlockSpec((bm, out_pad), lambda i, k: (i, 0)),
        scratch_shapes=[pltpu.VMEM((bm, EFF_C), jnp.float32),
                        pltpu.VMEM((bm, RES_C), jnp.float32)],
        compiler_params=pltpu.CompilerParams(
            dimension_semantics=("parallel", "arbitrary"),
            vmem_limit_bytes=_vmem_limit_bytes(),
        ),
    )(*operands)
    return out[:, :num_classes]


# ----------------------------- host-side params ------------------------------

def _make_raw_params(key, num_classes):
    ks = jax.random.split(key, 16)

    def linear_w(k, fan_in, fan_out):
        bound = (1.0 / fan_in) ** 0.5
        return jax.random.uniform(k, (fan_in, fan_out), jnp.float32, -bound, bound)

    def linear_b(k, fan_in, fan_out):
        bound = (1.0 / fan_in) ** 0.5
        return jax.random.uniform(k, (fan_out,), jnp.float32, -bound, bound)

    def bn_stats(kg, kb, km, kv, n):
        gamma = 1.0 + 0.1 * jax.random.normal(kg, (n,), jnp.float32)
        beta = 0.1 * jax.random.normal(kb, (n,), jnp.float32)
        mean = 0.05 * jax.random.normal(km, (n,), jnp.float32)
        var = 1.0 + 0.1 * jax.random.uniform(kv, (n,), jnp.float32)
        return gamma, beta, mean, var

    p = {}
    p["w1"] = linear_w(ks[0], EFF_C + RES_C, HID1)
    p["b1"] = linear_b(ks[1], EFF_C + RES_C, HID1)
    p["g1"], p["be1"], p["m1"], p["v1"] = bn_stats(ks[2], ks[3], ks[4], ks[5], HID1)
    p["w2"] = linear_w(ks[6], HID1, HID2)
    p["b2"] = linear_b(ks[7], HID1, HID2)
    p["g2"], p["be2"], p["m2"], p["v2"] = bn_stats(ks[8], ks[9], ks[10], ks[11], HID2)
    p["w3"] = linear_w(ks[12], HID2, num_classes)
    p["b3"] = linear_b(ks[13], HID2, num_classes)
    return p


def _fold_params(p, hw, num_classes):
    """Fold BN (eval), Linear biases and the 1/HW pooling divisor into the weights."""
    out_pad = ((num_classes + LANE - 1) // LANE) * LANE

    s1 = p["g1"] * jax.lax.rsqrt(p["v1"] + BN_EPS)
    t1 = p["be1"] - p["m1"] * s1
    w1 = p["w1"] * s1[None, :]
    b1 = p["b1"] * s1 + t1
    w1e = w1[:EFF_C, :] * (1.0 / hw)
    w1r = w1[EFF_C:, :] * (1.0 / hw)

    s2 = p["g2"] * jax.lax.rsqrt(p["v2"] + BN_EPS)
    t2 = p["be2"] - p["m2"] * s2
    w2 = p["w2"] * s2[None, :]
    b2 = p["b2"] * s2 + t2

    w3 = jnp.zeros((HID2, out_pad), jnp.float32).at[:, :num_classes].set(p["w3"])
    b3 = jnp.zeros((out_pad,), jnp.float32).at[:num_classes].set(p["b3"])

    return dict(
        w1e=w1e.astype(jnp.bfloat16),
        w1r=w1r.astype(jnp.bfloat16),
        b1=b1.reshape(1, HID1).astype(jnp.float32),
        w2=w2.astype(jnp.bfloat16),
        b2=b2.reshape(1, HID2).astype(jnp.float32),
        w3=w3.astype(jnp.bfloat16),
        b3=b3.reshape(1, out_pad).astype(jnp.float32),
    )


def _reference_forward(eff_map, res_map, p):
    """Plain-JAX fp32 reference of the PyTorch eval-mode forward (post-backbone)."""
    def bn(h, g, b, m, v):
        return (h - m) * jax.lax.rsqrt(v + BN_EPS) * g + b

    def leaky(h):
        return jnp.where(h > 0, h, LEAKY_SLOPE * h)

    eff = eff_map.mean(axis=1)
    res = res_map.mean(axis=1)
    x = jnp.concatenate([eff, res], axis=-1)
    h = leaky(bn(x @ p["w1"] + p["b1"], p["g1"], p["be1"], p["m1"], p["v1"]))
    h = leaky(bn(h @ p["w2"] + p["b2"], p["g2"], p["be2"], p["m2"], p["v2"]))
    return h @ p["w3"] + p["b3"]


if __name__ == "__main__":
    key = jax.random.PRNGKey(0)
    k_eff, k_res, k_par = jax.random.split(key, 3)

    B = 2
    HW = 16          # e.g. a 4x4 spatial backbone output, flattened
    NUM_CLASSES = 10

    # Synthetic backbone outputs (stand-ins for the pretrained feature extractors).
    eff_map = jax.random.normal(k_eff, (B, HW, EFF_C), jnp.float32)
    res_map = jax.random.normal(k_res, (B, HW, RES_C), jnp.float32)

    raw = _make_raw_params(k_par, NUM_CLASSES)
    folded = _fold_params(raw, HW, NUM_CLASSES)

    # hw_tile_cap=8 -> 2 reduction steps over HW, exercising the streaming
    # accumulator path even at this tiny demo shape.
    out = fusion_forward(eff_map, res_map, folded, NUM_CLASSES, hw_tile_cap=8)
    out = jax.block_until_ready(out)

    ref = _reference_forward(eff_map, res_map, raw)
    assert out.shape == (B, NUM_CLASSES)
    max_err = float(jnp.max(jnp.abs(out - ref)))
    assert jnp.allclose(out, ref, rtol=1e-2, atol=1e-2), \
        f"mismatch vs JAX reference (max abs err {max_err})"

    print("KERNEL_OK")
</pallas_src>

<mosaic_0001>
module attributes {stable_mosaic.version = 11 : i64} {
  func.func @_fusion_kernel(%arg0: i32, %arg1: i32, %arg2: memref<2x8x1280xbf16, #tpu.memory_space<vmem>>, %arg3: memref<2x8x2048xbf16, #tpu.memory_space<vmem>>, %arg4: memref<1280x1024xbf16, #tpu.memory_space<vmem>>, %arg5: memref<2048x1024xbf16, #tpu.memory_space<vmem>>, %arg6: memref<1x1024xf32, #tpu.memory_space<vmem>>, %arg7: memref<1024x512xbf16, #tpu.memory_space<vmem>>, %arg8: memref<1x512xf32, #tpu.memory_space<vmem>>, %arg9: memref<512x128xbf16, #tpu.memory_space<vmem>>, %arg10: memref<1x128xf32, #tpu.memory_space<vmem>>, %arg11: memref<2x128xf32, #tpu.memory_space<vmem>>, %arg12: memref<2x1280xf32, #tpu.memory_space<vmem>>, %arg13: memref<2x2048xf32, #tpu.memory_space<vmem>>) attributes {dimension_semantics = [#tpu.dimension_semantics<parallel>, #tpu.dimension_semantics<arbitrary>], iteration_bounds = array<i64: 1, 2>, scalar_prefetch = 0 : i64, scratch_operands = 2 : i64, tpu.core_type = #tpu.core_type<tc>, window_params = [{transform_indices = @transform_0, window_bounds = array<i64: 2, 8, 1280>}, {transform_indices = @transform_1, window_bounds = array<i64: 2, 8, 2048>}, {pipeline_mode = #tpu.pipeline_mode<synchronous>, transform_indices = @transform_2, window_bounds = array<i64: 1280, 1024>}, {pipeline_mode = #tpu.pipeline_mode<synchronous>, transform_indices = @transform_3, window_bounds = array<i64: 2048, 1024>}, {pipeline_mode = #tpu.pipeline_mode<synchronous>, transform_indices = @transform_4, window_bounds = array<i64: 1, 1024>}, {pipeline_mode = #tpu.pipeline_mode<synchronous>, transform_indices = @transform_5, window_bounds = array<i64: 1024, 512>}, {pipeline_mode = #tpu.pipeline_mode<synchronous>, transform_indices = @transform_6, window_bounds = array<i64: 1, 512>}, {pipeline_mode = #tpu.pipeline_mode<synchronous>, transform_indices = @transform_7, window_bounds = array<i64: 512, 128>}, {pipeline_mode = #tpu.pipeline_mode<synchronous>, transform_indices = @transform_8, window_bounds = array<i64: 1, 128>}, {transform_indices = @transform_9, window_bounds = array<i64: 2, 128>}]} {
    %c0_i32 = arith.constant 0 : i32
    %0 = arith.cmpi eq, %arg1, %c0_i32 : i32
    %1 = arith.extui %0 : i1 to i32
    %c0_i32_0 = arith.constant 0 : i32
    %2 = arith.cmpi ne, %1, %c0_i32_0 : i32
    scf.if %2 {
      %cst_16 = arith.constant 0.000000e+00 : f32
      %18 = vector.broadcast %cst_16 : f32 to vector<2x1280xf32>
      %c0_17 = arith.constant 0 : index
      %c0_18 = arith.constant 0 : index
      %19 = vector.load %arg12[%c0_17, %c0_18] : memref<2x1280xf32, #tpu.memory_space<vmem>>, vector<2x1280xf32>
      tpu.vector_store %arg12[%c0_17, %c0_18], %18 {strides = array<i32>} : memref<2x1280xf32, #tpu.memory_space<vmem>>, vector<2x1280xf32>,
      %cst_19 = arith.constant 0.000000e+00 : f32
      %20 = vector.broadcast %cst_19 : f32 to vector<2x2048xf32>
      %c0_20 = arith.constant 0 : index
      %c0_21 = arith.constant 0 : index
      %21 = vector.load %arg13[%c0_20, %c0_21] : memref<2x2048xf32, #tpu.memory_space<vmem>>, vector<2x2048xf32>
      tpu.vector_store %arg13[%c0_20, %c0_21], %20 {strides = array<i32>} : memref<2x2048xf32, #tpu.memory_space<vmem>>, vector<2x2048xf32>,
    } else {
    }
    %c0 = arith.constant 0 : index
    %c0_1 = arith.constant 0 : index
    %3 = vector.load %arg12[%c0, %c0_1] : memref<2x1280xf32, #tpu.memory_space<vmem>>, vector<2x1280xf32>
    %c0_2 = arith.constant 0 : index
    %c0_3 = arith.constant 0 : index
    %c0_4 = arith.constant 0 : index
    %4 = vector.load %arg2[%c0_2, %c0_3, %c0_4] : memref<2x8x1280xbf16, #tpu.memory_space<vmem>>, vector<2x8x1280xbf16>
    %5 = arith.extf %4 : vector<2x8x1280xbf16> to vector<2x8x1280xf32>
    %cst = arith.constant dense<0.000000e+00> : vector<2x1280xf32>
    %6 = vector.multi_reduction <add>, %5, %cst [1] : vector<2x8x1280xf32> to vector<2x1280xf32>
    %7 = arith.addf %3, %6 : vector<2x1280xf32>
    %c0_5 = arith.constant 0 : index
    %c0_6 = arith.constant 0 : index
    %8 = vector.load %arg12[%c0_5, %c0_6] : memref<2x1280xf32, #tpu.memory_space<vmem>>, vector<2x1280xf32>
    tpu.vector_store %arg12[%c0_5, %c0_6], %7 {strides = array<i32>} : memref<2x1280xf32, #tpu.memory_space<vmem>>, vector<2x1280xf32>,
    %c0_7 = arith.constant 0 : index
    %c0_8 = arith.constant 0 : index
    %9 = vector.load %arg13[%c0_7, %c0_8] : memref<2x2048xf32, #tpu.memory_space<vmem>>, vector<2x2048xf32>
    %c0_9 = arith.constant 0 : index
    %c0_10 = arith.constant 0 : index
    %c0_11 = arith.constant 0 : index
    %10 = vector.load %arg3[%c0_9, %c0_10, %c0_11] : memref<2x8x2048xbf16, #tpu.memory_space<vmem>>, vector<2x8x2048xbf16>
    %11 = arith.extf %10 : vector<2x8x2048xbf16> to vector<2x8x2048xf32>
    %cst_12 = arith.constant dense<0.000000e+00> : vector<2x2048xf32>
    %12 = vector.multi_reduction <add>, %11, %cst_12 [1] : vector<2x8x2048xf32> to vector<2x2048xf32>
    %13 = arith.addf %9, %12 : vector<2x2048xf32>
    %c0_13 = arith.constant 0 : index
    %c0_14 = arith.constant 0 : index
    %14 = vector.load %arg13[%c0_13, %c0_14] : memref<2x2048xf32, #tpu.memory_space<vmem>>, vector<2x2048xf32>
    tpu.vector_store %arg13[%c0_13, %c0_14], %13 {strides = array<i32>} : memref<2x2048xf32, #tpu.memory_space<vmem>>, vector<2x2048xf32>,
    %c1_i32 = arith.constant 1 : i32
    %15 = arith.cmpi eq, %arg1, %c1_i32 : i32
    %16 = arith.extui %15 : i1 to i32
    %c0_i32_15 = arith.constant 0 : i32
    %17 = arith.cmpi ne, %16, %c0_i32_15 : i32
    scf.if %17 {
      %c0_16 = arith.constant 0 : index
      %c0_17 = arith.constant 0 : index
      %18 = vector.load %arg12[%c0_16, %c0_17] : memref<2x1280xf32, #tpu.memory_space<vmem>>, vector<2x1280xf32>
      %19 = arith.truncf %18 : vector<2x1280xf32> to vector<2x1280xbf16>
      %c0_18 = arith.constant 0 : index
      %c0_19 = arith.constant 0 : index
      %20 = vector.load %arg13[%c0_18, %c0_19] : memref<2x2048xf32, #tpu.memory_space<vmem>>, vector<2x2048xf32>
      %21 = arith.truncf %20 : vector<2x2048xf32> to vector<2x2048xbf16>
      %c0_20 = arith.constant 0 : index
      %c0_21 = arith.constant 0 : index
      %22 = vector.load %arg4[%c0_20, %c0_21] : memref<1280x1024xbf16, #tpu.memory_space<vmem>>, vector<1280x1024xbf16>
      %cst_22 = arith.constant dense<0.000000e+00> : vector<2x1024xf32>
      %23 = tpu.matmul %19, %22, %cst_22 {dimension_numbers = #tpu.dot_dimension_numbers<[1], [0], [0], [1], [0, 0, 1, 1], [], []>} : vector<2x1280xbf16>, vector<1280x1024xbf16>, vector<2x1024xf32> -> vector<2x1024xf32>
      %c0_23 = arith.constant 0 : index
      %c0_24 = arith.constant 0 : index
      %24 = vector.load %arg5[%c0_23, %c0_24] : memref<2048x1024xbf16, #tpu.memory_space<vmem>>, vector<2048x1024xbf16>
      %cst_25 = arith.constant dense<0.000000e+00> : vector<2x1024xf32>
      %25 = tpu.matmul %21, %24, %cst_25 {dimension_numbers = #tpu.dot_dimension_numbers<[1], [0], [0], [1], [0, 0, 1, 1], [], []>} : vector<2x2048xbf16>, vector<2048x1024xbf16>, vector<2x1024xf32> -> vector<2x1024xf32>
      %26 = arith.addf %23, %25 : vector<2x1024xf32>
      %c0_26 = arith.constant 0 : index
      %c0_27 = arith.constant 0 : index
      %27 = vector.load %arg6[%c0_26, %c0_27] : memref<1x1024xf32, #tpu.memory_space<vmem>>, vector<1x1024xf32>
      %28 = vector.broadcast %27 : vector<1x1024xf32> to vector<2x1024xf32>
      %29 = arith.addf %26, %28 : vector<2x1024xf32>
      %cst_28 = arith.constant 0.000000e+00 : f32
      %30 = vector.broadcast %cst_28 : f32 to vector<2x1024xf32>
      %31 = arith.cmpf ogt, %29, %30 : vector<2x1024xf32>
      %cst_29 = arith.constant 0.00999999977 : f32
      %32 = vector.broadcast %cst_29 : f32 to vector<2x1024xf32>
      %33 = arith.mulf %32, %29 : vector<2x1024xf32>
      %34 = arith.select %31, %29, %33 : vector<2x1024xi1>, vector<2x1024xf32>
      %35 = arith.truncf %34 : vector<2x1024xf32> to vector<2x1024xbf16>
      %c0_30 = arith.constant 0 : index
      %c0_31 = arith.constant 0 : index
      %36 = vector.load %arg7[%c0_30, %c0_31] : memref<1024x512xbf16, #tpu.memory_space<vmem>>, vector<1024x512xbf16>
      %cst_32 = arith.constant dense<0.000000e+00> : vector<2x512xf32>
      %37 = tpu.matmul %35, %36, %cst_32 {dimension_numbers = #tpu.dot_dimension_numbers<[1], [0], [0], [1], [0, 0, 1, 1], [], []>} : vector<2x1024xbf16>, vector<1024x512xbf16>, vector<2x512xf32> -> vector<2x512xf32>
      %c0_33 = arith.constant 0 : index
      %c0_34 = arith.constant 0 : index
      %38 = vector.load %arg8[%c0_33, %c0_34] : memref<1x512xf32, #tpu.memory_space<vmem>>, vector<1x512xf32>
      %39 = vector.broadcast %38 : vector<1x512xf32> to vector<2x512xf32>
      %40 = arith.addf %37, %39 : vector<2x512xf32>
      %cst_35 = arith.constant 0.000000e+00 : f32
      %41 = vector.broadcast %cst_35 : f32 to vector<2x512xf32>
      %42 = arith.cmpf ogt, %40, %41 : vector<2x512xf32>
      %cst_36 = arith.constant 0.00999999977 : f32
      %43 = vector.broadcast %cst_36 : f32 to vector<2x512xf32>
      %44 = arith.mulf %43, %40 : vector<2x512xf32>
      %45 = arith.select %42, %40, %44 : vector<2x512xi1>, vector<2x512xf32>
      %46 = arith.truncf %45 : vector<2x512xf32> to vector<2x512xbf16>
      %c0_37 = arith.constant 0 : index
      %c0_38 = arith.constant 0 : index
      %47 = vector.load %arg9[%c0_37, %c0_38] : memref<512x128xbf16, #tpu.memory_space<vmem>>, vector<512x128xbf16>
      %cst_39 = arith.constant dense<0.000000e+00> : vector<2x128xf32>
      %48 = tpu.matmul %46, %47, %cst_39 {dimension_numbers = #tpu.dot_dimension_numbers<[1], [0], [0], [1], [0, 0, 1, 1], [], []>} : vector<2x512xbf16>, vector<512x128xbf16>, vector<2x128xf32> -> vector<2x128xf32>
      %c0_40 = arith.constant 0 : index
      %c0_41 = arith.constant 0 : index
      %49 = vector.load %arg10[%c0_40, %c0_41] : memref<1x128xf32, #tpu.memory_space<vmem>>, vector<1x128xf32>
      %50 = vector.broadcast %49 : vector<1x128xf32> to vector<2x128xf32>
      %51 = arith.addf %48, %50 : vector<2x128xf32>
      %c0_42 = arith.constant 0 : index
      %c0_43 = arith.constant 0 : index
      %52 = vector.load %arg11[%c0_42, %c0_43] : memref<2x128xf32, #tpu.memory_space<vmem>>, vector<2x128xf32>
      tpu.vector_store %arg11[%c0_42, %c0_43], %51 {strides = array<i32>} : memref<2x128xf32, #tpu.memory_space<vmem>>, vector<2x128xf32>,
    } else {
    }
    return
  }
  func.func @transform_0(%arg0: i32, %arg1: i32) -> (i32, i32, i32) {
    %c0_i32 = arith.constant 0 : i32
    %c0_i32_0 = arith.constant 0 : i32
    return %arg0, %arg1, %c0_i32 : i32, i32, i32
  }
  func.func @transform_1(%arg0: i32, %arg1: i32) -> (i32, i32, i32) {
    %c0_i32 = arith.constant 0 : i32
    %c0_i32_0 = arith.constant 0 : i32
    return %arg0, %arg1, %c0_i32 : i32, i32, i32
  }
  func.func @transform_2(%arg0: i32, %arg1: i32) -> (i32, i32) {
    %c0_i32 = arith.constant 0 : i32
    %c0_i32_0 = arith.constant 0 : i32
    %c0_i32_1 = arith.constant 0 : i32
    return %c0_i32, %c0_i32_0 : i32, i32
  }
  func.func @transform_3(%arg0: i32, %arg1: i32) -> (i32, i32) {
    %c0_i32 = arith.constant 0 : i32
    %c0_i32_0 = arith.constant 0 : i32
    %c0_i32_1 = arith.constant 0 : i32
    return %c0_i32, %c0_i32_0 : i32, i32
  }
  func.func @transform_4(%arg0: i32, %arg1: i32) -> (i32, i32) {
    %c0_i32 = arith.constant 0 : i32
    %c0_i32_0 = arith.constant 0 : i32
    %c0_i32_1 = arith.constant 0 : i32
    return %c0_i32, %c0_i32_0 : i32, i32
  }
  func.func @transform_5(%arg0: i32, %arg1: i32) -> (i32, i32) {
    %c0_i32 = arith.constant 0 : i32
    %c0_i32_0 = arith.constant 0 : i32
    %c0_i32_1 = arith.constant 0 : i32
    return %c0_i32, %c0_i32_0 : i32, i32
  }
  func.func @transform_6(%arg0: i32, %arg1: i32) -> (i32, i32) {
    %c0_i32 = arith.constant 0 : i32
    %c0_i32_0 = arith.constant 0 : i32
    %c0_i32_1 = arith.constant 0 : i32
    return %c0_i32, %c0_i32_0 : i32, i32
  }
  func.func @transform_7(%arg0: i32, %arg1: i32) -> (i32, i32) {
    %c0_i32 = arith.constant 0 : i32
    %c0_i32_0 = arith.constant 0 : i32
    %c0_i32_1 = arith.constant 0 : i32
    return %c0_i32, %c0_i32_0 : i32, i32
  }
  func.func @transform_8(%arg0: i32, %arg1: i32) -> (i32, i32) {
    %c0_i32 = arith.constant 0 : i32
    %c0_i32_0 = arith.constant 0 : i32
    %c0_i32_1 = arith.constant 0 : i32
    return %c0_i32, %c0_i32_0 : i32, i32
  }
  func.func @transform_9(%arg0: i32, %arg1: i32) -> (i32, i32) {
    %c0_i32 = arith.constant 0 : i32
    %c0_i32_0 = arith.constant 0 : i32
    return %arg0, %c0_i32 : i32, i32
  }
}

</mosaic_0001>

<bundles_post_ra>
// kernel: tpu_custom_call.1
= control target key start
LH: loop header
LB: loop body
LE: loop exit
PB: predicated region body
PF: predicated region fallthrough
CT: control target
= control target key end

     0   :  { %s20376_s0 = inlined_call_operand.hbm [shape: bf16[2,16,1280], index: 0, kind: input, shape index: {}]   ;;  %s20377_s1 = inlined_call_operand.hbm [shape: bf16[2,16,2048], index: 1, kind: input, shape index: {}]   ;;  %s20378_s2 = inlined_call_operand.hbm [shape: bf16[1280,1024], index: 2, kind: input, shape index: {}]   ;;  %s20379_s3 = inlined_call_operand.hbm [shape: bf16[2048,1024], index: 3, kind: input, shape index: {}]   ;;  %s20380_s4 = inlined_call_operand.hbm [shape: f32[1,1024], index: 4, kind: input, shape index: {}]   ;;  %s20381_s5 = inlined_call_operand.hbm [shape: bf16[1024,512], index: 5, kind: input, shape index: {}]   ;;  %s20382_s6 = inlined_call_operand.hbm [shape: f32[1,512], index: 6, kind: input, shape index: {}]   ;;  %s20383_s7 = inlined_call_operand.hbm [shape: bf16[512,128], index: 7, kind: input, shape index: {}]   ;;  %s20384_s8 = inlined_call_operand.hbm [shape: f32[1,128], index: 8, kind: input, shape index: {}]   ;;  %s20385_s9 = inlined_call_operand.hbm [shape: f32[2,128], index: 9, kind: output, shape index: {}]  }
   0x1   :  { %20393 = sst [smem:[#allocation30_spill]] %s20376_s0 }
   0x2   :  { %20394 = sst [smem:[#allocation31_spill]] %s20378_s2 }
   0x3   :  { %20395 = sst [smem:[#allocation32_spill]] %s20379_s3 }
   0x4   :  { %20396 = sst [smem:[#allocation33_spill]] %s20380_s4 }
   0x5   :  { %20397 = sst [smem:[#allocation34_spill]] %s20385_s9 }
   0x6   :  { %14 = vsyncpa [#allocation5], 0 }
   0x7   :  { %16 = vsyncpa [#allocation5 + $0x1], 0 }
   0x8   :  { %17 = vsyncpa [#allocation8], 0 }
   0x9   :  { %19 = vsyncpa [#allocation8 + $0x1], 0 }
   0xa   :  { %20 = vsyncpa [#allocation11], 0 }
   0xb   :  { %21 = vsyncpa [#allocation14], 0 }
   0xc   :  { %22 = vsyncpa [#allocation17], 0 }
   0xd   :  { %23 = vsyncpa [#allocation6], 0  ;;  %s19113_s30 = smov 0   ;;  %s19115_s10 = smov 0  }
   0xe   :  { %s19117_s11 = smov 0   ;;  %s19119_s12 = smov 0  }
   0xf   :  { %s19121_s13 = smov 0   ;;  %s19123_s14 = smov 0  }
  0x10 LB: > { %20398 = sst [smem:[#allocation27_spill]] %s19030_s12  ;;  %s19144_s15 = sadd.s32 4294967295, %s19038_s14   ;;  %s19038_s14 = sphi %s19123_s14, %s29_s14   ;;  %s19034_s13 = sphi %s19121_s13, %s20443_s13   ;;  %s19030_s12 = sphi %s19119_s12, %s20442_s12   ;;  %s19026_s11 = sphi %s19117_s11, %s20441_s11   ;;  %s19022_s10 = sphi %s19115_s10, %s20440_s10   ;;  %s19018_s30 = sphi %s19113_s30, %s20439_s30  }
  0x11   : > { %p16050_p0 = scmp.ge.s32.totalorder %s19038_s14, 1  ;;  %p20388_p1 = scmp.eq.s32.totalorder %s19144_s15, 0 }
  0x12   : > { %p275_p2 = scmp.lt.s32.totalorder %s19038_s14, 3  ;;  %s19040_s17 = smov [#allocation9]  }
  0x13   : > { %s287_s18 = sshll.u32 %s19040_s17, 4  ;;  %s19041_s20 = smov [#allocation10]   ;;  %s19153_s18 = int_to_ptr.vmem [resolvable:$true] %s287_s18 }
  0x14   : > { %p19149_p3 = pnand %p16050_p0, %p275_p2  ;;  %s300_s21 = sshll.u32 %s19041_s20, 4  ;;  %s19163_s21 = int_to_ptr.vmem [resolvable:$true] %s300_s21 }
  0x15   : > { %s19042_s22 = smov [#allocation13]   ;;  %s20402_s2 = sld [smem:[#allocation31_spill]] }
  0x16   : > { %s20399_s16 = scalar_select %p19149_p3, 1, 0 }
  0x17   : > { %p18144_p4 = pneg %p19149_p3  ;;  %s19165_s23 = sshll.u32 %s19042_s22, 4  ;;  %s325_s23 = int_to_ptr.vmem [resolvable:$true] %s19165_s23 }
  0x18   : > { %20400 = sst [smem:[#allocation28_spill]] %s20399_s16 }
  0x19   : > { %p19159_p5 = pnand %p18144_p4, %p20388_p1 }
  0x1b   : > { %s18682_s26 = scalar_lea.hbm %s20402_s2, 81920  ;;  %p19175_p7 = pneg %p19159_p5 }
  0x1c   : > { %p18683_p6 = scmp.ne.s32.totalorder %s20402_s2, %s18682_s26  ;;  %p18689_p10 = scmp.lt.u32.totalorder %s18682_s26, %s20402_s2 }
  0x1e   : > { %p18685_p8 = pnand %p19175_p7, %p18683_p6 }
  0x20   : > { %p18686_p9 = pneg %p18685_p8 }
  0x22   : > { %p18691_p11 = pnand %p18689_p10, %p18686_p9 }
  0x24   : > { %18694 = shalt.err (!%p18691_p11)
}
  0x25   : > { %s18695_s22 = scalar_lea.vmem %s19153_s18, 81920  ;;  %p18703_p2 = scmp.lt.s32.totalorder %s19153_s18, %s19153_s18 }
  0x26   : > { %p18696_p12 = scmp.ne.s32.totalorder %s19153_s18, %s18695_s22  ;;  %p18704_p4 = scmp.lt.s32.totalorder %s18695_s22, %s18695_s22 }
  0x28   : > { %p18698_p13 = pnand %p18696_p12, %p19175_p7  ;;  %p18705_p6 = por %p18704_p4, %p18703_p2 }
  0x2a   : > { %p18699_p0 = pneg %p18698_p13 }
  0x2c   : > { %p18706_p8 = pnand %p18705_p6, %p18699_p0 }
  0x2e   : > { %18709 = shalt.err (!%p18706_p8)
}
  0x2f   : > { %s19043_s24 = smov 512   ;;  %s19044_s25 = smov 32  }
  0x30   : > { %18147 = dma.hbm_to_vmem [thread:$0]  (!%p19159_p5), %s20402_s2, 81920, %s19153_s18, [#allocation8], %s19043_s24, %s19043_s24, %s19044_s25  }
  0x31   : > { %s20404_s3 = sld [smem:[#allocation32_spill]] }
  0x37   : > { %s18710_s20 = scalar_lea.hbm %s20404_s3, 131072 }
  0x38   : > { %p18711_p9 = scmp.ne.s32.totalorder %s20404_s3, %s18710_s20  ;;  %p18717_p12 = scmp.lt.u32.totalorder %s18710_s20, %s20404_s3 }
  0x3a   : > { %p18713_p10 = pnand %p18711_p9, %p19175_p7 }
  0x3c   : > { %p18714_p11 = pneg %p18713_p10 }
  0x3e   : > { %p18719_p13 = pnand %p18717_p12, %p18714_p11 }
  0x40   : > { %18722 = shalt.err (!%p18719_p13)
}
  0x41   : > { %s18723_s18 = scalar_lea.vmem %s19163_s21, 131072  ;;  %p18731_p6 = scmp.lt.s32.totalorder %s19163_s21, %s19163_s21 }
  0x42   : > { %p18724_p0 = scmp.ne.s32.totalorder %s19163_s21, %s18723_s18  ;;  %p18732_p8 = scmp.lt.s32.totalorder %s18723_s18, %s18723_s18 }
  0x44   : > { %p18726_p2 = pnand %p18724_p0, %p19175_p7  ;;  %p18733_p9 = por %p18732_p8, %p18731_p6 }
  0x46   : > { %p18727_p4 = pneg %p18726_p2 }
  0x48   : > { %p18734_p10 = pnand %p18733_p9, %p18727_p4 }
  0x4a   : > { %18737 = shalt.err (!%p18734_p10)
}
  0x4b   : > { %18150 = dma.hbm_to_vmem [thread:$0]  (!%p19159_p5), %s20404_s3, 131072, %s19163_s21, [#allocation11], %s19043_s24, %s19043_s24, %s19044_s25  }
  0x4c   : > { %s18738_s27 = scalar_lea.hbm %s20381_s5, 32768 }
  0x4d   : > { %p18739_p11 = scmp.ne.s32.totalorder %s20381_s5, %s18738_s27  ;;  %p18745_p0 = scmp.lt.u32.totalorder %s18738_s27, %s20381_s5 }
  0x4f   : > { %p18741_p12 = pnand %p18739_p11, %p19175_p7 }
  0x51   : > { %p18742_p13 = pneg %p18741_p12 }
  0x53   : > { %p18747_p2 = pnand %p18745_p0, %p18742_p13 }
  0x55   : > { %18750 = shalt.err (!%p18747_p2)
}
  0x56   : > { %s18751_s18 = scalar_lea.vmem %s325_s23, 32768  ;;  %p18759_p9 = scmp.lt.s32.totalorder %s325_s23, %s325_s23 }
  0x57   : > { %p18752_p4 = scmp.ne.s32.totalorder %s325_s23, %s18751_s18  ;;  %p18760_p10 = scmp.lt.s32.totalorder %s18751_s18, %s18751_s18 }
  0x59   : > { %p18754_p6 = pnand %p18752_p4, %p19175_p7  ;;  %p18761_p1 = por %p18760_p10, %p18759_p9 }
  0x5b   : > { %p18755_p8 = pneg %p18754_p6 }
  0x5d   : > { %p18762_p3 = pnand %p18761_p1, %p18755_p8 }
  0x5f   : > { %18765 = shalt.err (!%p18762_p3)
}
  0x60   : > { %s19045_s21 = smov 256   ;;  %s19046_s24 = smov 16  }
  0x61   : > { %18156 = dma.hbm_to_vmem [thread:$0]  (!%p19159_p5), %s20381_s5, 32768, %s325_s23, [#allocation14], %s19045_s21, %s19045_s21, %s19046_s24  }
  0x62   : > { %s19047_s12 = smov [#allocation16]   ;;  %s18766_s28 = scalar_lea.hbm %s20383_s7, 4096 }
  0x63   : > { %s348_s16 = sshll.u32 %s19047_s12, 4  ;;  %p18767_p1 = scmp.ne.s32.totalorder %s20383_s7, %s18766_s28  ;;  %s349_s16 = int_to_ptr.vmem [resolvable:$true] %s348_s16 }
  0x64   : > { %p18773_p12 = scmp.lt.u32.totalorder %s18766_s28, %s20383_s7 }
  0x65   : > { %p18769_p3 = pnand %p18767_p1, %p19175_p7 }
  0x67   : > { %p18770_p11 = pneg %p18769_p3 }
  0x69   : > { %p18775_p13 = pnand %p18773_p12, %p18770_p11 }
  0x6b   : > { %18778 = shalt.err (!%p18775_p13)
}
  0x6c   : > { %s18779_s23 = scalar_lea.vmem %s349_s16, 4096  ;;  %p18787_p6 = scmp.lt.s32.totalorder %s349_s16, %s349_s16 }
  0x6d   : > { %p18780_p0 = scmp.ne.s32.totalorder %s349_s16, %s18779_s23  ;;  %p18788_p8 = scmp.lt.s32.totalorder %s18779_s23, %s18779_s23 }
  0x6f   : > { %p18782_p2 = pnand %p18780_p0, %p19175_p7  ;;  %p18789_p9 = por %p18788_p8, %p18787_p6 }
  0x71   : > { %p18783_p4 = pneg %p18782_p2 }
  0x73   : > { %p18790_p10 = pnand %p18789_p9, %p18783_p4 }
  0x75   : > { %18793 = shalt.err (!%p18790_p10)
}
  0x76   : > { %s20390_s21 = smov 64   ;;  %s19049_s24 = smov 4  }
  0x77   : > { %18162 = dma.hbm_to_vmem [thread:$0]  (!%p19159_p5), %s20383_s7, 4096, %s349_s16, [#allocation17], %s20390_s21, %s20390_s21, %s19049_s24  }
  0x78   : > { %s19050_s12 = smov [#allocation12]   ;;  %s19051_s27 = smov [#allocation15]  }
  0x79   : > { %s314_s26 = sshll.u32 %s19050_s12, 4  ;;  %s338_s28 = sshll.u32 %s19051_s27, 4  ;;  %s315_s26 = int_to_ptr.vmem [resolvable:$true] %s314_s26  ;;  %s19258_s28 = int_to_ptr.vmem [resolvable:$true] %s338_s28 }
  0x7a   : > { %s20405_s4 = sld [smem:[#allocation33_spill]] }
  0x80   : > { %s18794_s22 = scalar_lea.hbm %s20405_s4, 128 }
  0x81   : > { %p18795_p1 = scmp.ne.s32.totalorder %s20405_s4, %s18794_s22  ;;  %p18801_p12 = scmp.lt.u32.totalorder %s18794_s22, %s20405_s4 }
  0x83   : > { %p18797_p3 = pnand %p18795_p1, %p19175_p7 }
  0x85   : > { %p18798_p11 = pneg %p18797_p3 }
  0x87   : > { %p18803_p13 = pnand %p18801_p12, %p18798_p11 }
  0x89   : > { %18806 = shalt.err (!%p18803_p13)
}
  0x8a   : > { %s18807_s24 = scalar_lea.vmem %s315_s26, 128  ;;  %p18815_p6 = scmp.lt.s32.totalorder %s315_s26, %s315_s26 }
  0x8b   : > { %p18808_p0 = scmp.ne.s32.totalorder %s315_s26, %s18807_s24  ;;  %p18816_p8 = scmp.lt.s32.totalorder %s18807_s24, %s18807_s24 }
  0x8d   : > { %p18810_p2 = pnand %p18808_p0, %p19175_p7  ;;  %p18817_p9 = por %p18816_p8, %p18815_p6 }
  0x8f   : > { %p18811_p4 = pneg %p18810_p2 }
  0x91   : > { %p18818_p10 = pnand %p18817_p9, %p18811_p4 }
  0x93   : > { %18821 = shalt.err (!%p18818_p10)
}
  0x94   : > { %18153 = dma.hbm_to_vmem [thread:$0]  (!%p19159_p5), %s20405_s4, 128, %s315_s26, [#allocation11]  }
  0x95   : > { %s18822_s20 = scalar_lea.hbm %s20382_s6, 64 }
  0x96   : > { %p18823_p1 = scmp.ne.s32.totalorder %s20382_s6, %s18822_s20  ;;  %p18829_p12 = scmp.lt.u32.totalorder %s18822_s20, %s20382_s6 }
  0x98   : > { %p18825_p3 = pnand %p18823_p1, %p19175_p7 }
  0x9a   : > { %p18826_p11 = pneg %p18825_p3 }
  0x9c   : > { %p18831_p13 = pnand %p18829_p12, %p18826_p11 }
  0x9e   : > { %18834 = shalt.err (!%p18831_p13)
}
  0x9f   : > { %s18835_s26 = scalar_lea.vmem %s19258_s28, 64  ;;  %p18843_p6 = scmp.lt.s32.totalorder %s19258_s28, %s19258_s28 }
  0xa0   : > { %p18836_p0 = scmp.ne.s32.totalorder %s19258_s28, %s18835_s26  ;;  %p18844_p8 = scmp.lt.s32.totalorder %s18835_s26, %s18835_s26 }
  0xa2   : > { %p18838_p2 = pnand %p18836_p0, %p19175_p7  ;;  %p18845_p9 = por %p18844_p8, %p18843_p6 }
  0xa4   : > { %p18839_p4 = pneg %p18838_p2 }
  0xa6   : > { %p18846_p10 = pnand %p18845_p9, %p18839_p4 }
  0xa8   : > { %18849 = shalt.err (!%p18846_p10)
}
  0xa9   : > { %18159 = dma.hbm_to_vmem [thread:$0]  (!%p19159_p5), %s20382_s6, 64, %s19258_s28, [#allocation14]  }
  0xaa   : > { %s19052_s9 = smov [#allocation18]   ;;  %s18850_s20 = scalar_lea.hbm %s20384_s8, 16 }
  0xab   : > { %s362_s12 = sshll.u32 %s19052_s9, 4  ;;  %p18851_p1 = scmp.ne.s32.totalorder %s20384_s8, %s18850_s20  ;;  %s363_s12 = int_to_ptr.vmem [resolvable:$true] %s362_s12 }
  0xac   : > { %p18857_p12 = scmp.lt.u32.totalorder %s18850_s20, %s20384_s8 }
  0xad   : > { %p18853_p3 = pnand %p18851_p1, %p19175_p7 }
  0xaf   : > { %p18854_p11 = pneg %p18853_p3 }
  0xb1   : > { %p18859_p13 = pnand %p18857_p12, %p18854_p11 }
  0xb3   : > { %18862 = shalt.err (!%p18859_p13)
}
  0xb4   : > { %s18863_s28 = scalar_lea.vmem %s363_s12, 16  ;;  %s18870_s26 = scalar_lea.vmem %s363_s12, 32 }
  0xb5   : > { %p18864_p0 = scmp.ne.s32.totalorder %s363_s12, %s18863_s28  ;;  %p18871_p6 = scmp.lt.s32.totalorder %s363_s12, %s363_s12 }
  0xb6   : > { %p18872_p8 = scmp.lt.s32.totalorder %s18870_s26, %s18863_s28 }
  0xb7   : > { %p18866_p2 = pnand %p18864_p0, %p19175_p7 }
  0xb8   : > { %p18873_p9 = por %p18872_p8, %p18871_p6 }
  0xb9   : > { %p18867_p4 = pneg %p18866_p2 }
  0xbb   : > { %p18874_p10 = pnand %p18873_p9, %p18867_p4 }
  0xbd   : > { %18877 = shalt.err (!%p18874_p10)
}
  0xbe   : > { %18165 = dma.hbm_to_vmem [thread:$0]  (!%p19159_p5), %s20384_s8, 16, %s363_s12, [#allocation17]  }
  0xbf   : > { %s38_s29 = sadd.s32 1, %s19034_s13  ;;  %s50_s19 = sadd.s32 1, %s19026_s11 }
  0xc0   : > { %p39_p7 = scmp.ge.s32.totalorder %s38_s29, 2  ;;  %p57_p1 = scmp.ne.s32.totalorder %s19026_s11, %s19022_s10 }
  0xc1   : > { %p58_p3 = scmp.eq.s32.totalorder %s19038_s14, 0  ;;  %p63_p12 = scmp.ne.s32.totalorder %s19022_s10, %s19018_s30 }
  0xc2   : > { %s20445_s29 = smov (%p39_p7, %s38_s29), 0  ;;  %p18180_p13 = scmp.lt.s32.totalorder %s19038_s14, 2 }
  0xc3   : > { %p59_p11 = por %p58_p3, %p57_p1  ;;  %s46_s9 = ssub.s32 %s19034_s13, %s20445_s29 }
  0xc4   : > { %p48_p0 = scmp.eq.s32.totalorder %s46_s9, 0  ;;  %p20406_p2 = scmp.eq.s32.totalorder %s19144_s15, 0 }
  0xc5   : > { %s19338_s12 = sand.u32 1, %s19026_s11   ;;  %s18106_s17 = smul.u32 640, %s19034_s13 }
  0xc6   : > { %p19333_p4 = por %p20406_p2, %p63_p12  ;;  %s18105_s22 = smul.u32 80, %s19338_s12 }
  0xc7   : > { %s19342_s20 = scalar_select %p48_p0, %s19026_s11, %s50_s19  }
  0xc8   : > { %s20408_s0 = sld [smem:[#allocation30_spill]]  ;;  %p19350_p5 = pnand %p18180_p13, %p59_p11 }
  0xc9   : > { %s377_s28 = scalar_lea.vmem [#allocation4], %s18105_s22  ;;  %s374_s24 = scalar_lea.sflag [#allocation5], %s19338_s12 }
  0xca   : > { %s387_s26 = sshll.u32 %s377_s28, 4  ;;  %p18880_p8 = pneg %p19350_p5  ;;  %s19354_s26 = int_to_ptr.vmem [resolvable:$true] %s387_s26 }
  0xce   : > { %s19348_s30 = scalar_lea.hbm %s20408_s0, %s18106_s17  ;;  %s18883_s18 = scalar_lea.hbm %s20408_s0, 2560 }
  0xcf   : > { %s18878_s19 = scalar_lea.hbm %s19348_s30, 1280  ;;  %p18884_p7 = scmp.lt.u32.totalorder %s19348_s30, %s20408_s0 }
  0xd0   : > { %p18879_p6 = scmp.ne.s32.totalorder %s19348_s30, %s18878_s19  ;;  %p18885_p1 = scmp.lt.u32.totalorder %s18883_s18, %s18878_s19 }
  0xd1   : > { %p18887_p11 = scmp.lt.u32.totalorder %s18878_s19, %s19348_s30 }
  0xd2   : > { %p18881_p9 = pnand %p18880_p8, %p18879_p6  ;;  %p18886_p3 = por %p18885_p1, %p18884_p7 }
  0xd4   : > { %p18882_p10 = pneg %p18881_p9  ;;  %p18888_p12 = por %p18887_p11, %p18886_p3 }
  0xd6   : > { %p18889_p13 = pnand %p18888_p12, %p18882_p10 }
  0xd8   : > { %18892 = shalt.err (!%p18889_p13)
}
  0xd9   : > { %s18893_s22 = scalar_lea.vmem %s19354_s26, 1280  ;;  %s19053_s28 = smov [#allocation4]  }
  0xda   : > { %p18894_p0 = scmp.ne.s32.totalorder %s19354_s26, %s18893_s22  ;;  %s18898_s9 = sshll.u32 %s19053_s28, 4  ;;  %s18899_s9 = int_to_ptr.vmem [resolvable:$false] %s18898_s9 }
  0xdb   : > { %s18900_s21 = scalar_lea.vmem %s18899_s9, 2560  ;;  %p18901_p9 = scmp.lt.s32.totalorder %s19354_s26, %s18899_s9 }
  0xdc   : > { %p18896_p2 = pnand %p18894_p0, %p18880_p8  ;;  %p18902_p7 = scmp.lt.s32.totalorder %s18900_s21, %s18893_s22 }
  0xde   : > { %p18897_p6 = pneg %p18896_p2  ;;  %p18903_p1 = por %p18902_p7, %p18901_p9 }
  0xe0   : > { %p18904_p3 = pnand %p18903_p1, %p18897_p6 }
  0xe2   : > { %18907 = shalt.err (!%p18904_p3)
}
  0xe3   : > { %s19054_s19 = smov 1280   ;;  %s19055_s17 = smov 640  }
  0xe4   : > { %s19056_s18 = smov 40   ;;  %s16060_s23 = sshll.u32 %s19338_s12, 7 }
  0xe5   : > { %18169 = dma.hbm_to_vmem [thread:$0]  (!%p19350_p5), %s19348_s30, 1280, %s19354_s26, %s374_s24, %s19054_s19, %s19055_s17, %s19056_s18  }
  0xe6   : > { %s18032_s28 = sshll.u32 %s19034_s13, 10  ;;  %s401_s16 = scalar_lea.vmem [#allocation7], %s16060_s23 }
  0xe7   : > { %s19390_s21 = scalar_lea.hbm %s20377_s1, %s18032_s28  ;;  %s411_s0 = sshll.u32 %s401_s16, 4  ;;  %s19392_s0 = int_to_ptr.vmem [resolvable:$true] %s411_s0 }
  0xe8   : > { %s20410_s2 = sand.u32 1, %s19038_s14   ;;  %s18908_s4 = scalar_lea.hbm %s19390_s21, 2048 }
  0xe9   : > { %s19396_s3 = scalar_lea.sflag [#allocation8], %s20410_s2  ;;  %p18909_p10 = scmp.ne.s32.totalorder %s19390_s21, %s18908_s4 }
  0xea   : > { %s18913_s26 = scalar_lea.hbm %s20377_s1, 4096  ;;  %p18914_p13 = scmp.lt.u32.totalorder %s19390_s21, %s20377_s1 }
  0xeb   : > { %p18911_p11 = pnand %p18909_p10, %p18880_p8  ;;  %p18915_p0 = scmp.lt.u32.totalorder %s18913_s26, %s18908_s4 }
  0xec   : > { %p18917_p6 = scmp.lt.u32.totalorder %s18908_s4, %s19390_s21 }
  0xed   : > { %p18912_p12 = pneg %p18911_p11  ;;  %p18916_p2 = por %p18915_p0, %p18914_p13 }
  0xef   : > { %p18918_p9 = por %p18917_p6, %p18916_p2 }
  0xf1   : > { %p18919_p7 = pnand %p18918_p9, %p18912_p12 }
  0xf3   : > { %18922 = shalt.err (!%p18919_p7)
}
  0xf4   : > { %s18923_s2 = scalar_lea.vmem %s19392_s0, 2048  ;;  %s19057_s16 = smov [#allocation7]  }
  0xf5   : > { %p18924_p1 = scmp.ne.s32.totalorder %s19392_s0, %s18923_s2  ;;  %s18928_s17 = sshll.u32 %s19057_s16, 4  ;;  %s18929_s17 = int_to_ptr.vmem [resolvable:$false] %s18928_s17 }
  0xf6   : > { %s18930_s18 = scalar_lea.vmem %s18929_s17, 4096  ;;  %p18931_p11 = scmp.lt.s32.totalorder %s19392_s0, %s18929_s17 }
  0xf7   : > { %p18926_p3 = pnand %p18924_p1, %p18880_p8  ;;  %p18932_p13 = scmp.lt.s32.totalorder %s18930_s18, %s18923_s2 }
  0xf9   : > { %p18927_p10 = pneg %p18926_p3  ;;  %p18933_p0 = por %p18932_p13, %p18931_p11 }
  0xfb   : > { %p18934_p2 = pnand %p18933_p0, %p18927_p10 }
  0xfd   : > { %18937 = shalt.err (!%p18934_p2)
}
  0xfe   : > { %s19058_s4 = smov 2048   ;;  %s19059_s23 = smov 1024  }
  0xff   : > { %s20411_s28 = smov 64   ;;  %s20412_s22 = sld [smem:[#allocation28_spill]] }
 0x100   : > { %18172 = dma.hbm_to_vmem [thread:$0]  (!%p19350_p5), %s19390_s21, 2048, %s19392_s0, %s19396_s3, %s19058_s4, %s19059_s23, %s20411_s28  }
 0x105   : > { %p20413_p8 = scmp.ne.s32.totalorder %s20412_s22, 0 }
 0x107   : > { %423 = sbr.rel (%p20413_p8) target bundleno = 2815 (0xaff), region = 56 }
 0x10e   : > { %s425_s9 = sand.u32 1, %s19022_s10  }
 0x10f   : > { %s18107_s12 = smul.u32 80, %s425_s9  ;;  %s426_s30 = scalar_lea.sflag [#allocation5], %s425_s9 }
 0x111   : > { %s19426_s26 = scalar_lea.vmem [#allocation4], %s18107_s12 }
 0x112   : > { %18989 = dma.done.wait (%p19333_p4), %s426_s30, 1280  }
 0x113   : > { %18991 = vsyncadd (%p19333_p4), %s426_s30, 4294966016  ;;  %s434_s25 = sand.u32 1, %s19144_s15   ;;  %s16064_s24 = sshll.u32 %s425_s9, 7 }
 0x114   : > { %s435_s0 = scalar_lea.sflag [#allocation8], %s434_s25  ;;  %s19433_s3 = scalar_lea.vmem [#allocation7], %s16064_s24 }
 0x115   : > { %18993 = dma.done.wait (%p19333_p4), %s435_s0, 2048  }
 0x116   : > { %18995 = vsyncadd (%p19333_p4), %s435_s0, 4294965248  ;;  %p20414_p5 = scmp.eq.s32.totalorder %s19144_s15, 0 }
 0x118   : > { %18997 = dma.done.wait (%p20414_p5), [#allocation8], 81920   ;;  %p20415_p12 = pmov %p20414_p5 }
 0x119   : > { %p20416_p6 = pmov %p20414_p5 }
 0x11a   : > { %18999 = vsyncadd (%p20415_p12), [#allocation8], 4294885376 }
 0x11b   : > { %19001 = dma.done.wait (%p20416_p6), [#allocation11], 131200   ;;  %p20417_p9 = pmov %p20414_p5 }
 0x11c   : > { %p20418_p7 = pmov %p20414_p5 }
 0x11d   : > { %19003 = vsyncadd (%p20417_p9), [#allocation11], 4294836096 }
 0x11e   : > { %19005 = dma.done.wait (%p20418_p7), [#allocation14], 32832   ;;  %p20419_p1 = pmov %p20414_p5 }
 0x120   : > { %19007 = vsyncadd (%p20419_p1), [#allocation14], 4294934464  ;;  %p20420_p4 = pmov %p20419_p1 }
 0x121   : > { %p20421_p3 = pmov %p20419_p1 }
 0x122   : > { %19009 = dma.done.wait (%p20420_p4), [#allocation17], 4112  }
 0x123   : > { %19011 = vsyncadd (%p20421_p3), [#allocation17], 4294963184  ;;  %s20422_s27 = sld [smem:[#allocation27_spill]] }
 0x129   : > { %p16072_p10 = scmp.ne.s32.totalorder %s20422_s27, 0 }
 0x12a   : > { %v19060_v0 = vmov (!%p16072_p10), 0.0  }
 0x12b   : > { %507 = sbr.rel (%p16072_p10) target bundleno = 306 (0x132), region = 96  ;;  %508 = vst [vmem:[#allocation2] sm:$0xff] (!%p16072_p10), %v19060_v0  ;;  %509 = vst [vmem:[#allocation2 + $0x8] sm:$0xff] (!%p16072_p10), %v19060_v0 }
 0x12c   : > { %510 = vst [vmem:[#allocation2 + $0x10] sm:$0xf] (!%p16072_p10), %v19060_v0  ;;  %511 = vst [vmem:[#allocation3] sm:$0xff] (!%p16072_p10), %v19060_v0 }
 0x12d   : > { %512 = vst [vmem:[#allocation3 + $0x8] sm:$0xff] (!%p16072_p10), %v19060_v0  ;;  %513 = vst [vmem:[#allocation3 + $0x10] sm:$0xff] (!%p16072_p10), %v19060_v0 }
 0x12e   : > { %514 = vst [vmem:[#allocation3 + $0x18] sm:$0xff] (!%p16072_p10), %v19060_v0 }
 0x132 PF: > { %v518_v1 = vld [vmem:[%s19426_s26] sm:$0xff]  ;;  %v519_v2 = vld [vmem:[%s19426_s26 + $0x8] sm:$0xff]  ;;  %v520_v3 = vld [vmem:[%s19426_s26 + $0x10] sm:$0xff]  ;;  %v19061_v8 = vmov 1983009808   ;;  %v693_v10 = vlaneseq  ;;  %vm777_vm0 = vcmask 1041409  }
 0x133   : > { %v521_v4 = vld [vmem:[%s19426_s26 + $0x18] sm:$0xff]  ;;  %v19461_v5 = vld [vmem:[%s19426_s26 + $0x20] sm:$0xff]  ;;  %v19464_v6 = vld [vmem:[%s19426_s26 + $0x28] sm:$0xff]  ;;  %v528_v7 = vunpack.c.l.bf16 %v518_v1  ;;  %v19466_v9 = vunpack.c.l.s4 %v19061_v8  ;;  %v529_v14 = vunpack.c.h.bf16 %v518_v1  ;;  %v530_v15 = vunpack.c.l.bf16 %v519_v2  ;;  %s20436_s21 = sld [smem:[#allocation27_spill]] }
 0x134   : > { %v19469_v11 = vld [vmem:[%s19426_s26 + $0x30] sm:$0xff]  ;;  %v19472_v12 = vld [vmem:[%s19426_s26 + $0x38] sm:$0xff]  ;;  %v19475_v13 = vld [vmem:[%s19426_s26 + $0x40] sm:$0xff]  ;;  %v531_v16 = vunpack.c.h.bf16 %v519_v2  ;;  %v532_v17 = vunpack.c.l.bf16 %v520_v3  ;;  %v533_v18 = vunpack.c.h.bf16 %v520_v3  ;;  %v534_v19 = vunpack.c.l.bf16 %v521_v4 }
 0x135   : > { %v535_v20 = vunpack.c.h.bf16 %v521_v4  ;;  %v536_v21 = vunpack.c.l.bf16 %v19461_v5  ;;  %v537_v22 = vunpack.c.h.bf16 %v19461_v5  ;;  %v538_v23 = vunpack.c.l.bf16 %v19464_v6  ;;  %v19487_v54 = vld [vmem:[%s19426_s26 + $0x48] sm:$0xff] }
 0x136   : > { %v539_v24 = vunpack.c.h.bf16 %v19464_v6  ;;  %v540_v25 = vunpack.c.l.bf16 %v19469_v11  ;;  %v541_v26 = vunpack.c.h.bf16 %v19469_v11  ;;  %v542_v27 = vunpack.c.l.bf16 %v19472_v12 }
 0x137   : > { %v543_v28 = vunpack.c.h.bf16 %v19472_v12  ;;  %v544_v29 = vunpack.c.l.bf16 %v19475_v13  ;;  %v548_v30 = vrot.slane %v528_v7, 4  ;;  %v554_v31 = vrot.slane %v529_v14, 4 }
 0x138   : > { %v560_v32 = vrot.slane %v530_v15, 4  ;;  %v566_v33 = vrot.slane %v531_v16, 4  ;;  %v572_v34 = vrot.slane %v532_v17, 4  ;;  %v578_v35 = vrot.slane %v533_v18, 4 }
 0x139   : > { %v584_v36 = vrot.slane %v534_v19, 4  ;;  %v590_v37 = vrot.slane %v535_v20, 4  ;;  %v549_v38 = vadd.f32 %v548_v30, %v528_v7  ;;  %v555_v39 = vadd.f32 %v554_v31, %v529_v14  ;;  %p16073_p11 = scmp.ne.s32.totalorder %s20436_s21, 1 }
 0x13a   : > { %v561_v40 = vadd.f32 %v560_v32, %v530_v15  ;;  %v567_v41 = vadd.f32 %v566_v33, %v531_v16  ;;  %v573_v42 = vadd.f32 %v572_v34, %v532_v17  ;;  %v579_v43 = vadd.f32 %v578_v35, %v533_v18 }
 0x13b   : > { %v585_v44 = vadd.f32 %v584_v36, %v534_v19  ;;  %v591_v45 = vadd.f32 %v590_v37, %v535_v20  ;;  %v550_v46 = vrot.slane %v549_v38, 2  ;;  %v556_v47 = vrot.slane %v555_v39, 2 }
 0x13c   : > { %v562_v48 = vrot.slane %v561_v40, 2  ;;  %v568_v49 = vrot.slane %v567_v41, 2  ;;  %v574_v50 = vrot.slane %v573_v42, 2  ;;  %v580_v51 = vrot.slane %v579_v43, 2 }
 0x13d   : > { %v586_v52 = vrot.slane %v585_v44, 2  ;;  %v592_v53 = vrot.slane %v591_v45, 2  ;;  %v551_v55 = vadd.f32 %v550_v46, %v549_v38  ;;  %v557_v56 = vadd.f32 %v556_v47, %v555_v39 }
 0x13e   : > { %v563_v57 = vadd.f32 %v562_v48, %v561_v40  ;;  %v569_v58 = vadd.f32 %v568_v49, %v567_v41  ;;  %v575_v59 = vadd.f32 %v574_v50, %v573_v42  ;;  %v581_v60 = vadd.f32 %v580_v51, %v579_v43 }
 0x13f   : > { %v587_v61 = vadd.f32 %v586_v52, %v585_v44  ;;  %v593_v62 = vadd.f32 %v592_v53, %v591_v45  ;;  %v552_v63 = vrot.slane %v551_v55, 1  ;;  %v558_v0 = vrot.slane %v557_v56, 1 }
 0x140   : > { %v564_v1 = vrot.slane %v563_v57, 1  ;;  %v570_v2 = vrot.slane %v569_v58, 1  ;;  %v545_v3 = vunpack.c.h.bf16 %v19475_v13  ;;  %v546_v4 = vunpack.c.l.bf16 %v19487_v54 }
 0x141   : > { %v547_v7 = vunpack.c.h.bf16 %v19487_v54  ;;  %v576_v8 = vrot.slane %v575_v59, 1  ;;  %v19492_v14 = vadd.f32 %v552_v63, %v551_v55  ;;  %v582_v15 = vrot.slane %v581_v60, 1 }
 0x142   : > { %v588_v16 = vrot.slane %v587_v61, 1  ;;  %v594_v17 = vrot.slane %v593_v62, 1  ;;  %v19494_v18 = vadd.f32 %v558_v0, %v557_v56  ;;  %v19496_v19 = vadd.f32 %v564_v1, %v563_v57 }
 0x143   : > { %v19498_v20 = vadd.f32 %v570_v2, %v569_v58  ;;  %v19500_v30 = vadd.f32 %v576_v8, %v575_v59  ;;  %v596_v31 = vrot.slane %v536_v21, 4  ;;  %v602_v32 = vrot.slane %v537_v22, 4 }
 0x144   : > { %v608_v33 = vrot.slane %v538_v23, 4  ;;  %v614_v34 = vrot.slane %v539_v24, 4  ;;  %v620_v35 = vrot.slane %v540_v25, 4  ;;  %v626_v36 = vrot.slane %v541_v26, 4 }
 0x145   : > { %v632_v37 = vrot.slane %v542_v27, 4  ;;  %v638_v38 = vrot.slane %v543_v28, 4  ;;  %v597_v39 = vadd.f32 %v596_v31, %v536_v21  ;;  %v603_v40 = vadd.f32 %v602_v32, %v537_v22 }
 0x146   : > { %v609_v41 = vadd.f32 %v608_v33, %v538_v23  ;;  %v615_v42 = vadd.f32 %v614_v34, %v539_v24  ;;  %v621_v43 = vadd.f32 %v620_v35, %v540_v25  ;;  %v627_v44 = vadd.f32 %v626_v36, %v541_v26 }
 0x147   : > { %v633_v45 = vadd.f32 %v632_v37, %v542_v27  ;;  %v639_v21 = vadd.f32 %v638_v38, %v543_v28  ;;  %v598_v5 = vrot.slane %v597_v39, 2  ;;  %v604_v22 = vrot.slane %v603_v40, 2 }
 0x148   : > { %v610_v46 = vrot.slane %v609_v41, 2  ;;  %v616_v47 = vrot.slane %v615_v42, 2  ;;  %v622_v23 = vrot.slane %v621_v43, 2  ;;  %v628_v48 = vrot.slane %v627_v44, 2 }
 0x149   : > { %v634_v6 = vrot.slane %v633_v45, 2  ;;  %v640_v24 = vrot.slane %v639_v21, 2  ;;  %v599_v49 = vadd.f32 %v598_v5, %v597_v39  ;;  %v605_v50 = vadd.f32 %v604_v22, %v603_v40 }
 0x14a   : > { %v611_v25 = vadd.f32 %v610_v46, %v609_v41  ;;  %v617_v51 = vadd.f32 %v616_v47, %v615_v42  ;;  %v623_v11 = vadd.f32 %v622_v23, %v621_v43  ;;  %v629_v26 = vadd.f32 %v628_v48, %v627_v44 }
 0x14b   : > { %v635_v52 = vadd.f32 %v634_v6, %v633_v45  ;;  %v641_v53 = vadd.f32 %v640_v24, %v639_v21  ;;  %v600_v27 = vrot.slane %v599_v49, 1  ;;  %v606_v55 = vrot.slane %v605_v50, 1 }
 0x14c   : > { %v612_v12 = vrot.slane %v611_v25, 1  ;;  %v618_v28 = vrot.slane %v617_v51, 1  ;;  %v583_v56 = vadd.f32 %v582_v15, %v581_v60  ;;  %v589_v57 = vadd.f32 %v588_v16, %v587_v61 }
 0x14d   : > { %v624_v58 = vrot.slane %v623_v11, 1  ;;  %v630_v59 = vrot.slane %v629_v26, 1  ;;  %v595_v63 = vadd.f32 %v594_v17, %v593_v62  ;;  %v601_v0 = vadd.f32 %v600_v27, %v599_v49 }
 0x14e   : > { %v636_v1 = vrot.slane %v635_v52, 1  ;;  %v642_v2 = vrot.slane %v641_v53, 1  ;;  %v607_v8 = vadd.f32 %v606_v55, %v605_v50  ;;  %v613_v31 = vadd.f32 %v612_v12, %v611_v25 }
 0x14f   : > { %v619_v32 = vadd.f32 %v618_v28, %v617_v51  ;;  %v625_v33 = vadd.f32 %v624_v58, %v623_v11  ;;  %v644_v34 = vrot.slane %v544_v29, 4  ;;  %v650_v35 = vrot.slane %v545_v3, 4  ;;  %v19572_v51 = vld [vmem:[%s19433_s3] sm:$0xff] }
 0x150   : > { %v656_v60 = vrot.slane %v546_v4, 4  ;;  %v662_v61 = vrot.slane %v547_v7, 4  ;;  %v631_v62 = vadd.f32 %v630_v59, %v629_v26  ;;  %v688_v15 = vcombine.low %v19492_v14, %v19494_v18  ;;  %v19589_v59 = vld [vmem:[%s19433_s3 + $0x20] sm:$0xff] }
 0x151   : > { %v692_v16 = vunpack.c.0.s8 %v19466_v9  ;;  %v19546_v17 = vshrl.u32 %v693_v10, 7  ;;  %v645_v36 = vadd.f32 %v644_v34, %v544_v29  ;;  %v651_v37 = vadd.f32 %v650_v35, %v545_v3  ;;  %v19601_v34 = vld [vmem:[%s19433_s3 + $0x30] sm:$0xff] }
 0x152   : > { %v657_v38 = vadd.f32 %v656_v60, %v546_v4  ;;  %v663_v39 = vadd.f32 %v662_v61, %v547_v7  ;;  %v689_v14 = vcombine.low %v19496_v19, %v19498_v20  ;;  %v705_v10 = vcombine.low %v19500_v30, %v583_v56  ;;  %v19583_v56 = vld [vmem:[%s19433_s3 + $0x10] sm:$0xff] }
 0x153   : > { %20423 = vst [vmem:[#allocation29_spill] sm:$0xff] %v19546_v17  ;;  %v19559_v9 = vsub.s32 %v692_v16, %v19546_v17  ;;  %v706_v18 = vcombine.low %v589_v57, %v595_v63  ;;  %v646_v40 = vrot.slane %v645_v36, 2  ;;  %v652_v29 = vrot.slane %v651_v37, 2  ;;  %v19586_v57 = vld [vmem:[%s19433_s3 + $0x18] sm:$0xff] }
 0x154   : > { %v658_v41 = vrot.slane %v657_v38, 2  ;;  %v664_v13 = vrot.slane %v663_v39, 2  ;;  %v637_v3 = vadd.f32 %v636_v1, %v635_v52  ;;  %v643_v42 = vadd.f32 %v642_v2, %v641_v53  ;;  %v19578_v53 = vld [vmem:[%s19433_s3 + $0x8] sm:$0xff]  ;;  %v19607_v16 = vld [vmem:[%s19433_s3 + $0x38] sm:$0xff] }
 0x155   : > { %v696_v4 = vrot.slane %v688_v15, %v19559_v9  ;;  %v722_v43 = vcombine.low %v601_v0, %v607_v8  ;;  %v647_v54 = vadd.f32 %v646_v40, %v645_v36  ;;  %v653_v7 = vadd.f32 %v652_v29, %v651_v37  ;;  %v19596_v8 = vld [vmem:[%s19433_s3 + $0x28] sm:$0xff] }
 0x156   : > { %v659_v44 = vadd.f32 %v658_v41, %v657_v38  ;;  %v665_v45 = vadd.f32 %v664_v13, %v663_v39  ;;  %v703_v19 = vrot.slane %v689_v14, %v19559_v9  ;;  %v19565_v20 = vrot.slane %v705_v10, %v19559_v9  ;;  %v19618_v13 = vld [vmem:[%s19433_s3 + $0x40] sm:$0xff] }
 0x157   : > { %v19568_v30 = vrot.slane %v706_v18, %v19559_v9  ;;  %v730_v21 = vcombine.low %v613_v31, %v619_v32  ;;  %v648_v5 = vrot.slane %v647_v54, 1  ;;  %v654_v22 = vrot.slane %v653_v7, 1  ;;  %v515_v18 = vld [vmem:[#allocation2] sm:$0xff] }
 0x158   : > { %v660_v46 = vrot.slane %v659_v44, 1  ;;  %v666_v47 = vrot.slane %v665_v45, 1  ;;  %v731_v23 = vcombine.low %v625_v33, %v631_v62  ;;  %v747_v6 = vcombine.low %v637_v3, %v643_v42  ;;  %v517_v42 = vld [vmem:[#allocation2 + $0x10] sm:$0xf] }
 0x159   : > { %v738_v48 = vrot.slane %v730_v21, %v19559_v9  ;;  %vm779_vm1 = vcmask 1043459   ;;  %v649_v24 = vadd.f32 %v648_v5, %v647_v54  ;;  %v655_v49 = vadd.f32 %v654_v22, %v653_v7  ;;  %v19624_v54 = vld [vmem:[%s19433_s3 + $0x48] sm:$0xff]  ;;  %v516_v5 = vld [vmem:[#allocation2 + $0x8] sm:$0xff] }
 0x15a   : > { %v661_v50 = vadd.f32 %v660_v46, %v659_v44  ;;  %v667_v25 = vadd.f32 %v666_v47, %v665_v45  ;;  %v704_v11 = vcombine.low %v696_v4, %v703_v19  ;;  %v721_v26 = vcombine.low %v19565_v20, %v19568_v30  ;;  %v19632_v30 = vld [vmem:[%s19433_s3 + $0x50] sm:$0xff] }
 0x15b   : > { %v745_v52 = vrot.slane %v731_v23, %v19559_v9  ;;  %vm781_vm2 = vcmask 1045509   ;;  %v729_v27 = vrot.slane %v722_v43, %v19559_v9  ;;  %v748_v55 = vcombine.low %v649_v24, %v655_v49  ;;  %v19638_v23 = vld [vmem:[%s19433_s3 + $0x58] sm:$0xff] }
 0x15c   : > { %v755_v12 = vrot.slane %v747_v6, %v19559_v9  ;;  %v764_v28 = vcombine.low %v661_v50, %v667_v25  ;;  %vm783_vm3 = vcmask 1047559   ;;  %v828_v63 = vunpack.c.l.bf16 %v19572_v51  ;;  %v19646_v50 = vld [vmem:[%s19433_s3 + $0x68] sm:$0xff] }
 0x15d   : > { %v746_v58 = vcombine.low %v738_v48, %v745_v52  ;;  %v829_v0 = vunpack.c.h.bf16 %v19572_v51  ;;  %v762_v1 = vrot.slane %v748_v55, %v19559_v9  ;;  %v830_v31 = vunpack.c.l.bf16 %v19578_v53  ;;  %v19641_v48 = vld [vmem:[%s19433_s3 + $0x60] sm:$0xff] }
 0x15e   : > { %v771_v2 = vrot.slane %v764_v28, %v19559_v9  ;;  %v831_v32 = vunpack.c.h.bf16 %v19578_v53  ;;  %v832_v35 = vunpack.c.l.bf16 %v19583_v56  ;;  %v833_v60 = vunpack.c.h.bf16 %v19583_v56  ;;  %v19695_v56 = vld [vmem:[%s19433_s3 + $0x78] sm:$0xff] }
 0x15f   : > { %v776_v33 = vrot.slane %v746_v58, 7  ;;  %v834_v61 = vunpack.c.l.bf16 %v19586_v57  ;;  %v763_v62 = vcombine.low %v755_v12, %v762_v1  ;;  %v835_v36 = vunpack.c.h.bf16 %v19586_v57 }
 0x160   : > { %v794_v15 = vrot.slane %v771_v2, 7  ;;  %v836_v37 = vunpack.c.l.bf16 %v19589_v59  ;;  %v837_v39 = vunpack.c.h.bf16 %v19589_v59  ;;  %v838_v14 = vunpack.c.l.bf16 %v19596_v8 }
 0x161   : > { %v778_v38 = vsel %vm777_vm0, %v776_v33, %v704_v11  ;;  %v839_v10 = vunpack.c.h.bf16 %v19596_v8  ;;  %v787_v29 = vrot.slane %v763_v62, 7  ;;  %v840_v3 = vunpack.c.l.bf16 %v19601_v34 }
 0x162   : > { %v780_v40 = vsel %vm779_vm1, %v776_v33, %v778_v38  ;;  %v795_v41 = vsel %vm777_vm0, %v794_v15, %v729_v27  ;;  %v841_v7 = vunpack.c.h.bf16 %v19601_v34  ;;  %v842_v44 = vunpack.c.l.bf16 %v19607_v16 }
 0x163   : > { %v782_v4 = vsel %vm781_vm2, %v776_v33, %v780_v40  ;;  %v796_v43 = vsel %vm779_vm1, %v794_v15, %v795_v41  ;;  %v788_v19 = vsel %vm777_vm0, %v787_v29, %v721_v26  ;;  %v843_v21 = vunpack.c.h.bf16 %v19607_v16 }
 0x164   : > { %v784_v45 = vsel %vm783_vm3, %v776_v33, %v782_v4  ;;  %v797_v20 = vsel %vm781_vm2, %v794_v15, %v796_v43  ;;  %v789_v22 = vsel %vm779_vm1, %v787_v29, %v788_v19  ;;  %v844_v6 = vunpack.c.l.bf16 %v19618_v13 }
 0x165   : > { %v798_v46 = vsel %vm783_vm3, %v794_v15, %v797_v20  ;;  %v802_v47 = vadd.f32 %v784_v45, %v515_v18  ;;  %v790_v24 = vsel %vm781_vm2, %v787_v29, %v789_v22  ;;  %v845_v25 = vunpack.c.h.bf16 %v19618_v13 }
 0x166   : > { %v804_v49 = vadd.f32 %v798_v46, %v517_v42  ;;  %v846_v11 = vunpack.c.l.bf16 %v19624_v54  ;;  %v791_v26 = vsel %vm783_vm3, %v787_v29, %v790_v24  ;;  %v847_v52 = vunpack.c.h.bf16 %v19624_v54 }
 0x167   : > { %805 = vst [vmem:[#allocation2] sm:$0xff] %v802_v47  ;;  %v848_v27 = vunpack.c.l.bf16 %v19632_v30  ;;  %v849_v55 = vunpack.c.h.bf16 %v19632_v30  ;;  %v803_v12 = vadd.f32 %v791_v26, %v516_v5  ;;  %v850_v28 = vunpack.c.l.bf16 %v19638_v23 }
 0x168   : > { %807 = vst [vmem:[#allocation2 + $0x10] sm:$0xf] %v804_v49  ;;  %v851_v58 = vunpack.c.h.bf16 %v19638_v23  ;;  %v852_v1 = vunpack.c.l.bf16 %v19641_v48  ;;  %v853_v2 = vunpack.c.h.bf16 %v19641_v48  ;;  %v860_v62 = vrot.slane %v828_v63, 4 }
 0x169   : > { %v866_v15 = vrot.slane %v829_v0, 4  ;;  %806 = vst [vmem:[#allocation2 + $0x8] sm:$0xff] %v803_v12  ;;  %v872_v38 = vrot.slane %v830_v31, 4  ;;  %v878_v18 = vrot.slane %v831_v32, 4  ;;  %v884_v40 = vrot.slane %v832_v35, 4 }
 0x16a   : > { %v890_v29 = vrot.slane %v833_v60, 4  ;;  %v861_v41 = vadd.f32 %v860_v62, %v828_v63  ;;  %v896_v4 = vrot.slane %v834_v61, 4  ;;  %v902_v43 = vrot.slane %v835_v36, 4 }
 0x16b   : > { %v867_v42 = vadd.f32 %v866_v15, %v829_v0  ;;  %v873_v45 = vadd.f32 %v872_v38, %v830_v31  ;;  %v879_v19 = vadd.f32 %v878_v18, %v831_v32  ;;  %v885_v63 = vadd.f32 %v884_v40, %v832_v35  ;;  %v19692_v32 = vld [vmem:[%s19433_s3 + $0x70] sm:$0xff] }
 0x16c   : > { %v891_v51 = vadd.f32 %v890_v29, %v833_v60  ;;  %v862_v0 = vrot.slane %v861_v41, 2  ;;  %v897_v5 = vadd.f32 %v896_v4, %v834_v61  ;;  %v903_v22 = vadd.f32 %v902_v43, %v835_v36 }
 0x16d   : > { %v868_v20 = vrot.slane %v867_v42, 2  ;;  %v874_v46 = vrot.slane %v873_v45, 2  ;;  %v880_v31 = vrot.slane %v879_v19, 2  ;;  %v886_v47 = vrot.slane %v885_v63, 2 }
 0x16e   : > { %v892_v53 = vrot.slane %v891_v51, 2  ;;  %v863_v24 = vadd.f32 %v862_v0, %v861_v41  ;;  %v898_v35 = vrot.slane %v897_v5, 2  ;;  %v904_v26 = vrot.slane %v903_v22, 2 }
 0x16f   : > { %v869_v49 = vadd.f32 %v868_v20, %v867_v42  ;;  %v875_v60 = vadd.f32 %v874_v46, %v873_v45  ;;  %v881_v12 = vadd.f32 %v880_v31, %v879_v19  ;;  %v887_v62 = vadd.f32 %v886_v47, %v885_v63 }
 0x170   : > { %v893_v15 = vadd.f32 %v892_v53, %v891_v51  ;;  %v864_v61 = vrot.slane %v863_v24, 1  ;;  %v899_v57 = vadd.f32 %v898_v35, %v897_v5  ;;  %v905_v36 = vadd.f32 %v904_v26, %v903_v22 }
 0x171   : > { %v870_v38 = vrot.slane %v869_v49, 1  ;;  %v876_v41 = vrot.slane %v875_v60, 1  ;;  %v882_v43 = vrot.slane %v881_v12, 1  ;;  %v888_v45 = vrot.slane %v887_v62, 1 }
 0x172   : > { %v19702_v19 = vadd.f32 %v864_v61, %v863_v24  ;;  %v894_v51 = vrot.slane %v893_v15, 1  ;;  %v900_v0 = vrot.slane %v899_v57, 1  ;;  %v906_v5 = vrot.slane %v905_v36, 1 }
 0x173   : > { %v19704_v63 = vadd.f32 %v870_v38, %v869_v49  ;;  %v19706_v20 = vadd.f32 %v876_v41, %v875_v60  ;;  %v908_v22 = vrot.slane %v836_v37, 4  ;;  %v914_v46 = vrot.slane %v837_v39, 4 }
 0x174   : > { %v920_v31 = vrot.slane %v838_v14, 4  ;;  %v926_v47 = vrot.slane %v839_v10, 4  ;;  %v932_v53 = vrot.slane %v840_v3, 4  ;;  %v938_v24 = vrot.slane %v841_v7, 4 }
 0x175   : > { %v909_v49 = vadd.f32 %v908_v22, %v836_v37  ;;  %v915_v35 = vadd.f32 %v914_v46, %v837_v39  ;;  %v944_v26 = vrot.slane %v842_v44, 4  ;;  %v950_v60 = vrot.slane %v843_v21, 4 }
 0x176   : > { %v921_v61 = vadd.f32 %v920_v31, %v838_v14  ;;  %v927_v38 = vadd.f32 %v926_v47, %v839_v10  ;;  %v933_v41 = vadd.f32 %v932_v53, %v840_v3  ;;  %v939_v37 = vadd.f32 %v938_v24, %v841_v7 }
 0x177   : > { %v910_v59 = vrot.slane %v909_v49, 2  ;;  %v916_v39 = vrot.slane %v915_v35, 2  ;;  %v945_v22 = vadd.f32 %v944_v26, %v842_v44  ;;  %v951_v46 = vadd.f32 %v950_v60, %v843_v21 }
 0x178   : > { %v922_v4 = vrot.slane %v921_v61, 2  ;;  %v928_v42 = vrot.slane %v927_v38, 2  ;;  %v934_v14 = vrot.slane %v933_v41, 2  ;;  %v940_v31 = vrot.slane %v939_v37, 2 }
 0x179   : > { %v911_v8 = vadd.f32 %v910_v59, %v909_v49  ;;  %v917_v10 = vadd.f32 %v916_v39, %v915_v35  ;;  %v946_v47 = vrot.slane %v945_v22, 2  ;;  %v952_v29 = vrot.slane %v951_v46, 2 }
 0x17a   : > { %v923_v3 = vadd.f32 %v922_v4, %v921_v61  ;;  %v929_v53 = vadd.f32 %v928_v42, %v927_v38  ;;  %v935_v34 = vadd.f32 %v934_v14, %v933_v41  ;;  %v941_v7 = vadd.f32 %v940_v31, %v939_v37 }
 0x17b   : > { %v912_v24 = vrot.slane %v911_v8, 1  ;;  %v918_v40 = vrot.slane %v917_v10, 1  ;;  %v947_v18 = vadd.f32 %v946_v47, %v945_v22  ;;  %v953_v33 = vadd.f32 %v952_v29, %v951_v46 }
 0x17c   : > { %v19740_v44 = vadd.f32 %v882_v43, %v881_v12  ;;  %v19742_v16 = vadd.f32 %v888_v45, %v887_v62  ;;  %v19744_v21 = vadd.f32 %v894_v51, %v893_v15  ;;  %v924_v26 = vrot.slane %v923_v3, 1 }
 0x17d   : > { %v19746_v60 = vadd.f32 %v900_v0, %v899_v57  ;;  %v19748_v49 = vadd.f32 %v906_v5, %v905_v36  ;;  %v930_v35 = vrot.slane %v929_v53, 1  ;;  %v936_v4 = vrot.slane %v935_v34, 1 }
 0x17e   : > { %v19750_v42 = vadd.f32 %v912_v24, %v911_v8  ;;  %v19752_v61 = vadd.f32 %v918_v40, %v917_v10  ;;  %v942_v38 = vrot.slane %v941_v7, 1  ;;  %v948_v41 = vrot.slane %v947_v18, 1 }
 0x17f   : > { %v19754_v29 = vadd.f32 %v924_v26, %v923_v3  ;;  %v954_v12 = vrot.slane %v953_v33, 1  ;;  %v956_v62 = vrot.slane %v844_v6, 4  ;;  %v962_v15 = vrot.slane %v845_v25, 4 }
 0x180   : > { %v968_v57 = vrot.slane %v846_v11, 4  ;;  %v974_v36 = vrot.slane %v847_v52, 4  ;;  %v980_v40 = vrot.slane %v848_v27, 4  ;;  %v986_v43 = vrot.slane %v849_v55, 4 }
 0x181   : > { %v957_v45 = vadd.f32 %v956_v62, %v844_v6  ;;  %v963_v51 = vadd.f32 %v962_v15, %v845_v25  ;;  %v992_v0 = vrot.slane %v850_v28, 4  ;;  %v998_v5 = vrot.slane %v851_v58, 4 }
 0x182   : > { %v969_v37 = vadd.f32 %v968_v57, %v846_v11  ;;  %v975_v59 = vadd.f32 %v974_v36, %v847_v52  ;;  %v981_v39 = vadd.f32 %v980_v40, %v848_v27  ;;  %v987_v6 = vadd.f32 %v986_v43, %v849_v55 }
 0x183   : > { %v958_v13 = vrot.slane %v957_v45, 2  ;;  %v964_v25 = vrot.slane %v963_v51, 2  ;;  %v993_v22 = vadd.f32 %v992_v0, %v850_v28  ;;  %v999_v46 = vadd.f32 %v998_v5, %v851_v58 }
 0x184   : > { %v970_v14 = vrot.slane %v969_v37, 2  ;;  %v976_v31 = vrot.slane %v975_v59, 2  ;;  %v982_v11 = vrot.slane %v981_v39, 2  ;;  %v988_v8 = vrot.slane %v987_v6, 2 }
 0x185   : > { %v959_v54 = vadd.f32 %v958_v13, %v957_v45  ;;  %v965_v52 = vadd.f32 %v964_v25, %v963_v51  ;;  %v994_v10 = vrot.slane %v993_v22, 2  ;;  %v1000_v47 = vrot.slane %v999_v46, 2 }
 0x186   : > { %v971_v27 = vadd.f32 %v970_v14, %v969_v37  ;;  %v977_v3 = vadd.f32 %v976_v31, %v975_v59  ;;  %v983_v30 = vadd.f32 %v982_v11, %v981_v39  ;;  %v989_v55 = vadd.f32 %v988_v8, %v987_v6 }
 0x187   : > { %v960_v24 = vrot.slane %v959_v54, 1  ;;  %v966_v26 = vrot.slane %v965_v52, 1  ;;  %v995_v62 = vadd.f32 %v994_v10, %v993_v22  ;;  %v1001_v15 = vadd.f32 %v1000_v47, %v999_v46 }
 0x188   : > { %v19788_v28 = vadd.f32 %v930_v35, %v929_v53  ;;  %v19790_v23 = vadd.f32 %v936_v4, %v935_v34  ;;  %v19792_v58 = vadd.f32 %v942_v38, %v941_v7  ;;  %v972_v57 = vrot.slane %v971_v27, 1 }
 0x189   : > { %v19794_v36 = vadd.f32 %v948_v41, %v947_v18  ;;  %v19796_v40 = vadd.f32 %v954_v12, %v953_v33  ;;  %v978_v43 = vrot.slane %v977_v3, 1  ;;  %v984_v45 = vrot.slane %v983_v30, 1 }
 0x18a   : > { %v19798_v51 = vadd.f32 %v960_v24, %v959_v54  ;;  %v19800_v0 = vadd.f32 %v966_v26, %v965_v52  ;;  %v990_v5 = vrot.slane %v989_v55, 1  ;;  %v996_v37 = vrot.slane %v995_v62, 1 }
 0x18b   : > { %v19802_v59 = vadd.f32 %v972_v57, %v971_v27  ;;  %v1002_v53 = vrot.slane %v1001_v15, 1  ;;  %v1004_v34 = vrot.slane %v852_v1, 4  ;;  %v1010_v18 = vrot.slane %v853_v2, 4 }
 0x18c   : > { %v20424_v33 = vunpack.c.l.bf16 %v19646_v50  ;;  %v20425_v35 = vunpack.c.h.bf16 %v19646_v50  ;;  %v20426_v38 = vunpack.c.l.bf16 %v19692_v32  ;;  %v20427_v12 = vunpack.c.h.bf16 %v19692_v32 }
 0x18d   : > { %v1005_v6 = vadd.f32 %v1004_v34, %v852_v1  ;;  %v1011_v13 = vadd.f32 %v1010_v18, %v853_v2  ;;  %v20428_v25 = vunpack.c.l.bf16 %v19695_v56  ;;  %v20429_v46 = vunpack.c.h.bf16 %v19695_v56 }
 0x18e   : > { %v1016_v7 = vrot.slane %v20424_v33, 4  ;;  %v1022_v4 = vrot.slane %v20425_v35, 4  ;;  %v1028_v41 = vrot.slane %v20426_v38, 4  ;;  %v1034_v39 = vrot.slane %v20427_v12, 4 }
 0x18f   : > { %v1040_v22 = vrot.slane %v20428_v25, 4  ;;  %v1046_v14 = vrot.slane %v20429_v46, 4  ;;  %v20430_v31 = vmov %v20424_v33  ;;  %v20431_v8 = vmov %v20425_v35 }
 0x190   : > { %v1017_v11 = vadd.f32 %v1016_v7, %v20430_v31  ;;  %v1023_v54 = vadd.f32 %v1022_v4, %v20431_v8  ;;  %v20432_v52 = vmov %v20426_v38  ;;  %v20433_v1 = vmov %v20427_v12 }
 0x191   : > { %v1029_v10 = vadd.f32 %v1028_v41, %v20432_v52  ;;  %v1035_v47 = vadd.f32 %v1034_v39, %v20433_v1  ;;  %v1006_v48 = vrot.slane %v1005_v6, 2  ;;  %v1012_v2 = vrot.slane %v1011_v13, 2 }
 0x192   : > { %v20434_v27 = vmov %v20428_v25  ;;  %v20435_v26 = vmov %v20429_v46  ;;  %v1018_v34 = vrot.slane %v1017_v11, 2  ;;  %v1024_v18 = vrot.slane %v1023_v54, 2 }
 0x193   : > { %v1041_v24 = vadd.f32 %v1040_v22, %v20434_v27  ;;  %v1047_v57 = vadd.f32 %v1046_v14, %v20435_v26  ;;  %v1030_v33 = vrot.slane %v1029_v10, 2  ;;  %v1036_v7 = vrot.slane %v1035_v47, 2 }
 0x194   : > { %v1007_v50 = vadd.f32 %v1006_v48, %v1005_v6  ;;  %v1013_v35 = vadd.f32 %v1012_v2, %v1011_v13  ;;  %v1019_v41 = vadd.f32 %v1018_v34, %v1017_v11  ;;  %v1025_v12 = vadd.f32 %v1024_v18, %v1023_v54 }
 0x195   : > { %v1042_v4 = vrot.slane %v1041_v24, 2  ;;  %v1048_v38 = vrot.slane %v1047_v57, 2  ;;  %v1031_v32 = vadd.f32 %v1030_v33, %v1029_v10  ;;  %v1037_v39 = vadd.f32 %v1036_v7, %v1035_v47 }
 0x196   : > { %v1008_v25 = vrot.slane %v1007_v50, 1  ;;  %v1014_v46 = vrot.slane %v1013_v35, 1  ;;  %v979_v22 = vadd.f32 %v978_v43, %v977_v3  ;;  %v985_v52 = vadd.f32 %v984_v45, %v983_v30 }
 0x197   : > { %v1043_v31 = vadd.f32 %v1042_v4, %v1041_v24  ;;  %v1049_v8 = vadd.f32 %v1048_v38, %v1047_v57  ;;  %v991_v56 = vadd.f32 %v990_v5, %v989_v55  ;;  %v1020_v14 = vrot.slane %v1019_v41, 1 }
 0x198   : > { %v997_v1 = vadd.f32 %v996_v37, %v995_v62  ;;  %v1026_v27 = vrot.slane %v1025_v12, 1  ;;  %v1032_v26 = vrot.slane %v1031_v32, 1  ;;  %v1038_v17 = vrot.slane %v1037_v39, 1 }
 0x199   : > { %v1003_v6 = vadd.f32 %v1002_v53, %v1001_v15  ;;  %v1009_v13 = vadd.f32 %v1008_v25, %v1007_v50  ;;  %v1044_v48 = vrot.slane %v1043_v31, 1  ;;  %v1050_v2 = vrot.slane %v1049_v8, 1 }
 0x19a   : > { %v1015_v11 = vadd.f32 %v1014_v46, %v1013_v35  ;;  %v1021_v54 = vadd.f32 %v1020_v14, %v1019_v41  ;;  %v1084_v10 = vcombine.low %v19702_v19, %v19704_v63  ;;  %v1085_v47 = vcombine.low %v19706_v20, %v19740_v44  ;;  %v809_v14 = vld [vmem:[#allocation3 + $0x8] sm:$0xff] }
 0x19b   : > { %v1101_v3 = vcombine.low %v19742_v16, %v19744_v21  ;;  %v1102_v30 = vcombine.low %v19746_v60, %v19748_v49  ;;  %v1118_v55 = vcombine.low %v19750_v42, %v19752_v61  ;;  %v1119_v62 = vcombine.low %v19754_v29, %v19788_v28 }
 0x19c   : > { %v1027_v15 = vadd.f32 %v1026_v27, %v1025_v12  ;;  %v1033_v43 = vadd.f32 %v1032_v26, %v1031_v32  ;;  %v1039_v45 = vadd.f32 %v1038_v17, %v1037_v39  ;;  %v1135_v19 = vcombine.low %v19790_v23, %v19792_v58 }
 0x19d   : > { %v1045_v63 = vadd.f32 %v1044_v48, %v1043_v31  ;;  %v1051_v20 = vadd.f32 %v1050_v2, %v1049_v8  ;;  %v1092_v44 = vrot.slane %v1084_v10, %v19559_v9  ;;  %v1099_v16 = vrot.slane %v1085_v47, %v19559_v9  ;;  %v808_v8 = vld [vmem:[#allocation3] sm:$0xff] }
 0x19e   : > { %v1109_v21 = vrot.slane %v1101_v3, %v19559_v9  ;;  %v1116_v60 = vrot.slane %v1102_v30, %v19559_v9  ;;  %v1136_v49 = vcombine.low %v19794_v36, %v19796_v40  ;;  %v1152_v42 = vcombine.low %v19798_v51, %v19800_v0 }
 0x19f   : > { %v1126_v17 = vrot.slane %v1118_v55, %v19559_v9  ;;  %v1133_v61 = vrot.slane %v1119_v62, %v19559_v9  ;;  %v1153_v29 = vcombine.low %v19802_v59, %v979_v22  ;;  %v1169_v28 = vcombine.low %v985_v52, %v991_v56 }
 0x1a0   : > { %v1143_v23 = vrot.slane %v1135_v19, %v19559_v9  ;;  %v1160_v58 = vrot.slane %v1152_v42, %v19559_v9  ;;  %v1170_v5 = vcombine.low %v997_v1, %v1003_v6  ;;  %v1186_v37 = vcombine.low %v1009_v13, %v1015_v11  ;;  %v810_v6 = vld [vmem:[#allocation3 + $0x10] sm:$0xff]  ;;  %v2092_v42 = vld [vmem:[#allocation10 + $0x60] sm:$0xff] (!%p16073_p11) }
 0x1a1   : > { %v1167_v53 = vrot.slane %v1153_v29, %v19559_v9  ;;  %v1177_v36 = vrot.slane %v1169_v28, %v19559_v9  ;;  %v1187_v40 = vcombine.low %v1021_v54, %v1027_v15  ;;  %v1203_v24 = vcombine.low %v1033_v43, %v1039_v45  ;;  %v811_v54 = vld [vmem:[#allocation3 + $0x18] sm:$0xff]  ;;  %v2216_v28 = vld [vmem:[#allocation10 + $0x440] sm:$0xff] (!%p16073_p11) }
 0x1a2   : > { %v1150_v51 = vrot.slane %v1136_v49, %v19559_v9  ;;  %v1184_v0 = vrot.slane %v1170_v5, %v19559_v9  ;;  %v1194_v57 = vrot.slane %v1186_v37, %v19559_v9  ;;  %v1204_v59 = vcombine.low %v1045_v63, %v1051_v20  ;;  %v2080_v63 = vld [vmem:[#allocation10] sm:$0xff] (!%p16073_p11) }
 0x1a3   : > { %v1100_v34 = vcombine.low %v1092_v44, %v1099_v16  ;;  %v1168_v18 = vcombine.low %v1160_v58, %v1167_v53  ;;  %v1201_v33 = vrot.slane %v1187_v40, %v19559_v9  ;;  %v1211_v7 = vrot.slane %v1203_v24, %v19559_v9  ;;  %v2084_v20 = vld [vmem:[#allocation10 + $0x20] sm:$0xff] (!%p16073_p11) }
 0x1a4   : > { %v1117_v50 = vcombine.low %v1109_v21, %v1116_v60  ;;  %v1185_v35 = vcombine.low %v1177_v36, %v1184_v0  ;;  %v1218_v4 = vrot.slane %v1204_v59, %v19559_v9  ;;  %v1134_v38 = vcombine.low %v1126_v17, %v1133_v61  ;;  %v2208_v44 = vld [vmem:[#allocation10 + $0x400] sm:$0xff] (!%p16073_p11) }
 0x1a5   : > { %v1202_v41 = vcombine.low %v1194_v57, %v1201_v33  ;;  %v1222_v12 = vrot.slane %v1168_v18, 7  ;;  %v1151_v32 = vcombine.low %v1143_v23, %v1150_v51  ;;  %v16076_v16 = vcombine.high (!%p16073_p11), %v2080_v63, %v2084_v20  ;;  %v2212_v21 = vld [vmem:[#allocation10 + $0x420] sm:$0xff] (!%p16073_p11) }
 0x1a6   : > { %v1219_v39 = vcombine.low %v1211_v7, %v1218_v4  ;;  %v1229_v25 = vrot.slane %v1185_v35, 7  ;;  %v16075_v60 = vcombine.low (!%p16073_p11), %v2080_v63, %v2084_v20  ;;  %v2088_v49 = vld [vmem:[#allocation10 + $0x40] sm:$0xff] (!%p16073_p11)  ;;  %v16204_v17 = vcombine.high (!%p16073_p11), %v2208_v44, %v2212_v21 }
 0x1a7   : > { %v1223_v46 = vsel %vm777_vm0, %v1222_v12, %v1100_v34  ;;  %v1236_v31 = vrot.slane %v1202_v41, 7  ;;  %v16203_v61 = vcombine.low (!%p16073_p11), %v2208_v44, %v2212_v21  ;;  %v16084_v29 = vcombine.high (!%p16073_p11), %v2088_v49, %v2092_v42  ;;  %v2220_v23 = vld [vmem:[#allocation10 + $0x460] sm:$0xff] (!%p16073_p11)  ;;  %8224 = vmatprep.subr.bf16.mxu0 (!%p16073_p11), %v16076_v16 }
 0x1a8   : > { %v1224_v22 = vsel %vm779_vm1, %v1222_v12, %v1223_v46  ;;  %v1230_v52 = vsel %vm777_vm0, %v1229_v25, %v1117_v50  ;;  %v1243_v56 = vrot.slane %v1219_v39, 7  ;;  %v2096_v58 = vld [vmem:[#allocation10 + $0x80] sm:$0xff] (!%p16073_p11)  ;;  %v16212_v5 = vcombine.high (!%p16073_p11), %v2216_v28, %v2220_v23  ;;  %8265 = vmatprep.subr.bf16.mxu1 (!%p16073_p11), %v16204_v17  ;;  %8225 = vmatpush1.bf16.msra.mxu0 (!%p16073_p11), %v16075_v60 }
 0x1a9   : > { %v1225_v1 = vsel %vm781_vm2, %v1222_v12, %v1224_v22  ;;  %v1231_v27 = vsel %vm779_vm1, %v1229_v25, %v1230_v52  ;;  %v1237_v26 = vsel %vm777_vm0, %v1236_v31, %v1134_v38  ;;  %v2100_v37 = vld [vmem:[#allocation10 + $0xa0] sm:$0xff] (!%p16073_p11)  ;;  %v16083_v40 = vcombine.low (!%p16073_p11), %v2088_v49, %v2092_v42  ;;  %8266 = vmatpush1.bf16.msra.mxu1 (!%p16073_p11), %v16203_v61 }
 0x1aa   : > { %v1226_v13 = vsel %vm783_vm3, %v1222_v12, %v1225_v1  ;;  %v1232_v48 = vsel %vm781_vm2, %v1229_v25, %v1231_v27  ;;  %v1238_v2 = vsel %vm779_vm1, %v1236_v31, %v1237_v26  ;;  %v1244_v11 = vsel %vm777_vm0, %v1243_v56, %v1151_v32  ;;  %1263 = sbr.rel (%p16073_p11) target bundleno = 2784 (0xae0), region = 100  ;;  %v2224_v53 = vld [vmem:[#allocation10 + $0x480] sm:$0xff] (!%p16073_p11)  ;;  %8226 = vmatprep.subr.bf16.mxu0 (!%p16073_p11), %v16084_v29 }
 0x1ab   : > { %v1233_v10 = vsel %vm783_vm3, %v1229_v25, %v1232_v48  ;;  %v1239_v47 = vsel %vm781_vm2, %v1236_v31, %v1238_v2  ;;  %v1245_v3 = vsel %vm779_vm1, %v1243_v56, %v1244_v11  ;;  %v1252_v30 = vadd.f32 %v1226_v13, %v808_v8  ;;  %v2228_v36 = vld [vmem:[#allocation10 + $0x4a0] sm:$0xff] (!%p16073_p11)  ;;  %8267 = vmatprep.subr.bf16.mxu1 (!%p16073_p11), %v16212_v5 }
 0x1ac   : > { %v1240_v55 = vsel %vm783_vm3, %v1236_v31, %v1239_v47  ;;  %v1246_v62 = vsel %vm781_vm2, %v1243_v56, %v1245_v3  ;;  %v1253_v15 = vadd.f32 %v1233_v10, %v809_v14  ;;  %v16211_v24 = vcombine.low (!%p16073_p11), %v2216_v28, %v2220_v23  ;;  %v2104_v57 = vld [vmem:[#allocation10 + $0xc0] sm:$0xff] (!%p16073_p11)  ;;  %8227 = vmatpush1.bf16.msra.mxu0 (!%p16073_p11), %v16083_v40 }
 0x1ad   : > { %v1247_v43 = vsel %vm783_vm3, %v1243_v56, %v1246_v62  ;;  %v1254_v45 = vadd.f32 %v1240_v55, %v810_v6  ;;  %1256 = vst [vmem:[#allocation3] sm:$0xff] %v1252_v30  ;;  %v16092_v51 = vcombine.high (!%p16073_p11), %v2096_v58, %v2100_v37  ;;  %v16220_v0 = vcombine.high (!%p16073_p11), %v2224_v53, %v2228_v36  ;;  %v2108_v59 = vld [vmem:[#allocation10 + $0xe0] sm:$0xff] (!%p16073_p11) }
 0x1ae   : > { %v1255_v19 = vadd.f32 %v1247_v43, %v811_v54  ;;  %1257 = vst [vmem:[#allocation3 + $0x8] sm:$0xff] %v1253_v15  ;;  %v2232_v34 = vld [vmem:[#allocation10 + $0x4c0] sm:$0xff] (!%p16073_p11)  ;;  %v16091_v33 = vcombine.low (!%p16073_p11), %v2096_v58, %v2100_v37  ;;  %8268 = vmatpush1.bf16.msra.mxu1 (!%p16073_p11), %v16211_v24  ;;  %v16219_v7 = vcombine.low (!%p16073_p11), %v2224_v53, %v2228_v36 }
 0x1af   : > { %1258 = vst [vmem:[#allocation3 + $0x10] sm:$0xff] %v1254_v45  ;;  %v2236_v18 = vld [vmem:[#allocation10 + $0x4e0] sm:$0xff] (!%p16073_p11)  ;;  %8228 = vmatprep.subr.bf16.mxu0 (!%p16073_p11), %v16092_v51  ;;  %v16100_v50 = vcombine.high (!%p16073_p11), %v2104_v57, %v2108_v59  ;;  %8269 = vmatprep.subr.bf16.mxu1 (!%p16073_p11), %v16220_v0  ;;  %v16099_v32 = vcombine.low (!%p16073_p11), %v2104_v57, %v2108_v59 }
 0x1b0   : > { %1259 = vst [vmem:[#allocation3 + $0x18] sm:$0xff] %v1255_v19  ;;  %v16228_v35 = vcombine.high (!%p16073_p11), %v2232_v34, %v2236_v18  ;;  %v2112_v4 = vld [vmem:[#allocation10 + $0x100] sm:$0xff] (!%p16073_p11)  ;;  %8229 = vmatpush1.bf16.msra.mxu0 (!%p16073_p11), %v16091_v33  ;;  %v16227_v39 = vcombine.low (!%p16073_p11), %v2232_v34, %v2236_v18 }
 0x1b1   : > { %v2116_v38 = vld [vmem:[#allocation10 + $0x120] sm:$0xff]  ;;  %8230 = vmatprep.subr.bf16.mxu0 %v16100_v50 }
 0x1b2   : > { %v2240_v41 = vld [vmem:[#allocation10 + $0x500] sm:$0xff]  ;;  %8270 = vmatpush1.bf16.msra.mxu1 %v16219_v7  ;;  %v16108_v25 = vcombine.high %v2112_v4, %v2116_v38  ;;  %v16107_v56 = vcombine.low %v2112_v4, %v2116_v38 }
 0x1b3   : > { %v2244_v12 = vld [vmem:[#allocation10 + $0x520] sm:$0xff]  ;;  %8271 = vmatprep.subr.bf16.mxu1 %v16228_v35 }
 0x1b4   : > { %v16236_v46 = vcombine.high %v2240_v41, %v2244_v12  ;;  %v2120_v31 = vld [vmem:[#allocation10 + $0x140] sm:$0xff]  ;;  %8231 = vmatpush1.bf16.msra.mxu0 %v16099_v32  ;;  %v16235_v14 = vcombine.low %v2240_v41, %v2244_v12 }
 0x1b5   : > { %v2124_v8 = vld [vmem:[#allocation10 + $0x160] sm:$0xff]  ;;  %8232 = vmatprep.subr.bf16.mxu0 %v16108_v25 }
 0x1b6   : > { %v2248_v22 = vld [vmem:[#allocation10 + $0x540] sm:$0xff]  ;;  %8272 = vmatpush1.bf16.msra.mxu1 %v16227_v39  ;;  %v16116_v1 = vcombine.high %v2120_v31, %v2124_v8  ;;  %v16115_v2 = vcombine.low %v2120_v31, %v2124_v8 }
 0x1b7   : > { %v2252_v52 = vld [vmem:[#allocation10 + $0x560] sm:$0xff]  ;;  %8273 = vmatprep.subr.bf16.mxu1 %v16236_v46 }
 0x1b8   : > { %v16244_v27 = vcombine.high %v2248_v22, %v2252_v52  ;;  %v2128_v26 = vld [vmem:[#allocation10 + $0x180] sm:$0xff]  ;;  %8233 = vmatpush1.bf16.msra.mxu0 %v16107_v56  ;;  %v16243_v11 = vcombine.low %v2248_v22, %v2252_v52 }
 0x1b9   : > { %v2132_v6 = vld [vmem:[#allocation10 + $0x1a0] sm:$0xff]  ;;  %8234 = vmatprep.subr.bf16.mxu0 %v16116_v1 }
 0x1ba   : > { %v2256_v13 = vld [vmem:[#allocation10 + $0x580] sm:$0xff]  ;;  %8274 = vmatpush1.bf16.msra.mxu1 %v16235_v14  ;;  %v16124_v54 = vcombine.high %v2128_v26, %v2132_v6  ;;  %v16123_v45 = vcombine.low %v2128_v26, %v2132_v6 }
 0x1bb   : > { %v2260_v48 = vld [vmem:[#allocation10 + $0x5a0] sm:$0xff]  ;;  %8275 = vmatprep.subr.bf16.mxu1 %v16244_v27 }
 0x1bc   : > { %v1332_v10 = vld [vmem:[#allocation3] sm:$0xff]  ;;  %v16252_v47 = vcombine.high %v2256_v13, %v2260_v48  ;;  %8235 = vmatpush1.bf16.msra.mxu0 %v16115_v2  ;;  %v16251_v20 = vcombine.low %v2256_v13, %v2260_v48 }
 0x1bd   : > { %v2136_v3 = vld [vmem:[#allocation10 + $0x1c0] sm:$0xff]  ;;  %v19889_v55 = vrot.slane %v1332_v10, %v19559_v9  ;;  %v1340_v62 = vcombine.high %v1332_v10, %v1332_v10  ;;  %8236 = vmatprep.subr.bf16.mxu0 %v16124_v54 }
 0x1be   : > { %v2140_v30 = vld [vmem:[#allocation10 + $0x1e0] sm:$0xff]  ;;  %8276 = vmatpush1.bf16.msra.mxu1 %v16243_v11 }
 0x1bf   : > { %v2264_v15 = vld [vmem:[#allocation10 + $0x5c0] sm:$0xff]  ;;  %v1355_v19 = vcombine.high %v19889_v55, %v19889_v55  ;;  %v19894_v63 = vrot.slane %v1340_v62, %v19559_v9  ;;  %v16132_v44 = vcombine.high %v2136_v3, %v2140_v30  ;;  %8277 = vmatprep.subr.bf16.mxu1 %v16252_v47  ;;  %v16131_v29 = vcombine.low %v2136_v3, %v2140_v30 }
 0x1c0   : > { %v2268_v43 = vld [vmem:[#allocation10 + $0x5e0] sm:$0xff]  ;;  %8237 = vmatpush1.bf16.msra.mxu0 %v16123_v45  ;;  %v1333_v45 = vld [vmem:[#allocation3 + $0x8] sm:$0xff] }
 0x1c1   : > { %v16260_v16 = vcombine.high %v2264_v15, %v2268_v43  ;;  %v2144_v21 = vld [vmem:[#allocation10 + $0x200] sm:$0xff]  ;;  %v19896_v49 = vpack.c.bf16 %v1355_v19, %v1355_v19  ;;  %v1356_v42 = vcombine.high %v19894_v63, %v19894_v63  ;;  %8238 = vmatprep.subr.bf16.mxu0 %v16132_v44  ;;  %v16259_v23 = vcombine.low %v2264_v15, %v2268_v43 }
 0x1c2   : > { %v2148_v60 = vld [vmem:[#allocation10 + $0x220] sm:$0xff]  ;;  %8278 = vmatpush1.bf16.msra.mxu1 %v16251_v20 }
 0x1c3   : > { %v2272_v17 = vld [vmem:[#allocation10 + $0x600] sm:$0xff]  ;;  %8256 = vmatprep.mubr.bf16.mxu0 %v19896_v49  ;;  %v19901_v28 = vpack.c.bf16 %v1356_v42, %v1356_v42  ;;  %v16140_v58 = vcombine.high %v2144_v21, %v2148_v60  ;;  %8279 = vmatprep.subr.bf16.mxu1 %v16260_v16  ;;  %v16139_v24 = vcombine.low %v2144_v21, %v2148_v60 }
 0x1c4   : > { %v2276_v61 = vld [vmem:[#allocation10 + $0x620] sm:$0xff]  ;;  %8239 = vmatpush1.bf16.msra.mxu0 %v16131_v29 }
 0x1c5   : > { %v16268_v5 = vcombine.high %v2272_v17, %v2276_v61  ;;  %v2152_v37 = vld [vmem:[#allocation10 + $0x240] sm:$0xff]  ;;  %8297 = vmatprep.mubr.bf16.mxu1 %v19901_v28  ;;  %8240 = vmatprep.subr.bf16.mxu0 %v16140_v58  ;;  %v16267_v51 = vcombine.low %v2272_v17, %v2276_v61  ;;  %v1357_v17 = vcombine.high %v1333_v45, %v1333_v45 }
 0x1c6   : > { %v2156_v53 = vld [vmem:[#allocation10 + $0x260] sm:$0xff]  ;;  %8280 = vmatpush1.bf16.msra.mxu1 %v16259_v23 }
 0x1c7   : > { %v2280_v36 = vld [vmem:[#allocation10 + $0x640] sm:$0xff]  ;;  %v16148_v0 = vcombine.high %v2152_v37, %v2156_v53  ;;  %8281 = vmatprep.subr.bf16.mxu1 %v16268_v5  ;;  %v16147_v7 = vcombine.low %v2152_v37, %v2156_v53  ;;  %v19905_v53 = vrot.slane %v1333_v45, %v19559_v9 }
 0x1c8   : > { %v2284_v40 = vld [vmem:[#allocation10 + $0x660] sm:$0xff]  ;;  %8241 = vmatpush1.bf16.msra.mxu0 %v16139_v24  ;;  %v19908_v24 = vrot.slane %v1357_v17, %v19559_v9 }
 0x1c9   : > { %v16276_v57 = vcombine.high %v2280_v36, %v2284_v40  ;;  %v2160_v59 = vld [vmem:[#allocation10 + $0x280] sm:$0xff]  ;;  %8242 = vmatprep.subr.bf16.mxu0 %v16148_v0  ;;  %v16275_v50 = vcombine.low %v2280_v36, %v2284_v40 }
 0x1ca   : > { %v2164_v34 = vld [vmem:[#allocation10 + $0x2a0] sm:$0xff]  ;;  %8282 = vmatpush1.bf16.msra.mxu1 %v16267_v51 }
 0x1cb   : > { %v2288_v18 = vld [vmem:[#allocation10 + $0x680] sm:$0xff]  ;;  %v16156_v35 = vcombine.high %v2160_v59, %v2164_v34  ;;  %8283 = vmatprep.subr.bf16.mxu1 %v16276_v57  ;;  %v16155_v39 = vcombine.low %v2160_v59, %v2164_v34 }
 0x1cc   : > { %v2292_v33 = vld [vmem:[#allocation10 + $0x6a0] sm:$0xff]  ;;  %8243 = vmatpush1.bf16.msra.mxu0 %v16147_v7  ;;  %v19914_v7 = vpack.c.bf16 %v19889_v55, %v19889_v55 }
 0x1cd   : > { %v16284_v4 = vcombine.high %v2288_v18, %v2292_v33  ;;  %v2168_v38 = vld [vmem:[#allocation10 + $0x2c0] sm:$0xff]  ;;  %8244 = vmatprep.subr.bf16.mxu0 %v16156_v35  ;;  %v16283_v25 = vcombine.low %v2288_v18, %v2292_v33  ;;  %v1372_v33 = vcombine.high %v19905_v53, %v19905_v53 }
 0x1ce   : > { %v2172_v41 = vld [vmem:[#allocation10 + $0x2e0] sm:$0xff]  ;;  %8284 = vmatpush1.bf16.msra.mxu1 %v16275_v50 }
 0x1cf   : > { %v2296_v12 = vld [vmem:[#allocation10 + $0x6c0] sm:$0xff]  ;;  %v16164_v46 = vcombine.high %v2168_v38, %v2172_v41  ;;  %8285 = vmatprep.subr.bf16.mxu1 %v16284_v4  ;;  %v16163_v14 = vcombine.low %v2168_v38, %v2172_v41  ;;  %v1373_v4 = vcombine.high %v19908_v24, %v19908_v24  ;;  %v19920_v38 = vpack.c.bf16 %v19894_v63, %v19894_v63 }
 0x1d0   : > { %v2300_v32 = vld [vmem:[#allocation10 + $0x6e0] sm:$0xff]  ;;  %8245 = vmatpush1.bf16.msra.mxu0 %v16155_v39 }
 0x1d1   : > { %v16292_v31 = vcombine.high %v2296_v12, %v2300_v32  ;;  %v2176_v8 = vld [vmem:[#allocation10 + $0x300] sm:$0xff]  ;;  %8246 = vmatprep.subr.bf16.mxu0 %v16164_v46  ;;  %v16291_v1 = vcombine.low %v2296_v12, %v2300_v32 }
 0x1d2   : > { %v2180_v22 = vld [vmem:[#allocation10 + $0x320] sm:$0xff]  ;;  %8286 = vmatpush1.bf16.msra.mxu1 %v16283_v25 }
 0x1d3   : > { %v2304_v52 = vld [vmem:[#allocation10 + $0x700] sm:$0xff]  ;;  %v16172_v27 = vcombine.high %v2176_v8, %v2180_v22  ;;  %8287 = vmatprep.subr.bf16.mxu1 %v16292_v31  ;;  %v16171_v11 = vcombine.low %v2176_v8, %v2180_v22  ;;  %v19922_v8 = vpack.c.bf16 %v1372_v33, %v1372_v33  ;;  %v19925_v22 = vpack.c.bf16 %v1373_v4, %v1373_v4 }
 0x1d4   : > { %v2308_v56 = vld [vmem:[#allocation10 + $0x720] sm:$0xff]  ;;  %8247 = vmatpush1.bf16.msra.mxu0 %v16163_v14 }
 0x1d5   : > { %v16300_v26 = vcombine.high %v2304_v52, %v2308_v56  ;;  %v2184_v6 = vld [vmem:[#allocation10 + $0x340] sm:$0xff]  ;;  %8248 = vmatprep.subr.bf16.mxu0 %v16172_v27  ;;  %v16299_v54 = vcombine.low %v2304_v52, %v2308_v56 }
 0x1d6   : > { %v2188_v13 = vld [vmem:[#allocation10 + $0x360] sm:$0xff]  ;;  %8288 = vmatpush1.bf16.msra.mxu1 %v16291_v1 }
 0x1d7   : > { %v2312_v48 = vld [vmem:[#allocation10 + $0x740] sm:$0xff]  ;;  %v16180_v10 = vcombine.high %v2184_v6, %v2188_v13  ;;  %8289 = vmatprep.subr.bf16.mxu1 %v16300_v26  ;;  %v16179_v43 = vcombine.low %v2184_v6, %v2188_v13 }
 0x1d8   : > { %v2316_v2 = vld [vmem:[#allocation10 + $0x760] sm:$0xff]  ;;  %8249 = vmatpush1.bf16.msra.mxu0 %v16171_v11 }
 0x1d9   : > { %v16308_v47 = vcombine.high %v2312_v48, %v2316_v2  ;;  %v2192_v3 = vld [vmem:[#allocation10 + $0x380] sm:$0xff]  ;;  %8250 = vmatprep.subr.bf16.mxu0 %v16180_v10  ;;  %v16307_v19 = vcombine.low %v2312_v48, %v2316_v2 }
 0x1da   : > { %v2196_v30 = vld [vmem:[#allocation10 + $0x3a0] sm:$0xff]  ;;  %8290 = vmatpush1.bf16.msra.mxu1 %v16299_v54 }
 0x1db   : > { %v2320_v62 = vld [vmem:[#allocation10 + $0x780] sm:$0xff]  ;;  %v16188_v20 = vcombine.high %v2192_v3, %v2196_v30  ;;  %8291 = vmatprep.subr.bf16.mxu1 %v16308_v47  ;;  %v16187_v61 = vcombine.low %v2192_v3, %v2196_v30 }
 0x1dc   : > { %v2324_v15 = vld [vmem:[#allocation10 + $0x7a0] sm:$0xff]  ;;  %8251 = vmatpush1.bf16.msra.mxu0 %v16179_v43 }
 0x1dd   : > { %v16316_v44 = vcombine.high %v2320_v62, %v2324_v15  ;;  %v2200_v16 = vld [vmem:[#allocation10 + $0x3c0] sm:$0xff]  ;;  %8252 = vmatprep.subr.bf16.mxu0 %v16188_v20  ;;  %v16315_v29 = vcombine.low %v2320_v62, %v2324_v15 }
 0x1de   : > { %v2204_v21 = vld [vmem:[#allocation10 + $0x3e0] sm:$0xff]  ;;  %8292 = vmatpush1.bf16.msra.mxu1 %v16307_v19 }
 0x1df   : > { %v2328_v60 = vld [vmem:[#allocation10 + $0x7c0] sm:$0xff]  ;;  %v16196_v23 = vcombine.high %v2200_v16, %v2204_v21  ;;  %8293 = vmatprep.subr.bf16.mxu1 %v16316_v44  ;;  %v16195_v51 = vcombine.low %v2200_v16, %v2204_v21 }
 0x1e0   : > { %v2332_v42 = vld [vmem:[#allocation10 + $0x7e0] sm:$0xff]  ;;  %8253 = vmatpush1.bf16.msra.mxu0 %v16187_v61 }
 0x1e1   : > { %v16324_v58 = vcombine.high %v2328_v60, %v2332_v42  ;;  %v2336_v5 = vld [vmem:[#allocation10 + $0x800] sm:$0xff]  ;;  %8254 = vmatprep.subr.bf16.mxu0 %v16196_v23  ;;  %v16323_v0 = vcombine.low %v2328_v60, %v2332_v42 }
 0x1e2   : > { %v2340_v37 = vld [vmem:[#allocation10 + $0x820] sm:$0xff]  ;;  %8294 = vmatpush1.bf16.msra.mxu1 %v16315_v29 }
 0x1e3   : > { %v2464_v36 = vld [vmem:[#allocation10 + $0xc00] sm:$0xff]  ;;  %v16332_v57 = vcombine.high %v2336_v5, %v2340_v37  ;;  %8295 = vmatprep.subr.bf16.mxu1 %v16324_v58  ;;  %v16331_v41 = vcombine.low %v2336_v5, %v2340_v37 }
 0x1e4   : > { %v2468_v40 = vld [vmem:[#allocation10 + $0xc20] sm:$0xff]  ;;  %8255 = vmatpush1.bf16.msra.mxu0 %v16195_v51 }
 0x1e5   : > { %v16460_v59 = vcombine.high %v2464_v36, %v2468_v40  ;;  %v2344_v34 = vld [vmem:[#allocation10 + $0x840] sm:$0xff]  ;;  %8306 = vmatprep.subr.bf16.mxu0 %v16332_v57  ;;  %v16459_v12 = vcombine.low %v2464_v36, %v2468_v40 }
 0x1e6   : > { %v2348_v18 = vld [vmem:[#allocation10 + $0x860] sm:$0xff]  ;;  %8296 = vmatpush1.bf16.msra.mxu1 %v16323_v0 }
 0x1e7   : > { %v2472_v50 = vld [vmem:[#allocation10 + $0xc40] sm:$0xff]  ;;  %v16340_v32 = vcombine.high %v2344_v34, %v2348_v18  ;;  %8347 = vmatprep.subr.bf16.mxu1 %v16460_v59  ;;  %8257 = vmatmul.mubr.bf16.vlgmr.msra.gmra.mrb[0].mxu0 %v19914_v7  ;;  %v16339_v63 = vcombine.low %v2344_v34, %v2348_v18 }
 0x1e8   : > { %v2476_v35 = vld [vmem:[#allocation10 + $0xc60] sm:$0xff]  ;;  %8307 = vmatpush1.bf16.msra.mxu0 %v16331_v41  ;;  %8338 = vmatprep.mubr.bf16.mxu0 %v19922_v8 }
 0x1e9   : > { %v2352_v39 = vld [vmem:[#allocation10 + $0x880] sm:$0xff]  ;;  %v16468_v55 = vcombine.high %v2472_v50, %v2476_v35  ;;  %8298 = vmatmul.mubr.bf16.vlgmr.msra.gmra.mrb[0].mxu1 %v19920_v38  ;;  %8308 = vmatprep.subr.bf16.mxu0 %v16340_v32  ;;  %v16467_v52 = vcombine.low %v2472_v50, %v2476_v35 }
 0x1ea   : > { %v2356_v25 = vld [vmem:[#allocation10 + $0x8a0] sm:$0xff]  ;;  %8348 = vmatpush1.bf16.msra.mxu1 %v16459_v12  ;;  %8379 = vmatprep.mubr.bf16.mxu1 %v19925_v22 }
 0x1eb   : > { %v2480_v46 = vld [vmem:[#allocation10 + $0xc80] sm:$0xff]  ;;  %v16348_v56 = vcombine.high %v2352_v39, %v2356_v25  ;;  %8349 = vmatprep.subr.bf16.mxu1 %v16468_v55  ;;  %v16347_v13 = vcombine.low %v2352_v39, %v2356_v25 }
 0x1ec   : > { %v2484_v31 = vld [vmem:[#allocation10 + $0xca0] sm:$0xff]  ;;  %8309 = vmatpush1.bf16.msra.mxu0 %v16339_v63 }
 0x1ed   : > { %v2360_v14 = vld [vmem:[#allocation10 + $0x8c0] sm:$0xff]  ;;  %v16476_v26 = vcombine.high %v2480_v46, %v2484_v31  ;;  %8310 = vmatprep.subr.bf16.mxu0 %v16348_v56  ;;  %v16475_v48 = vcombine.low %v2480_v46, %v2484_v31 }
 0x1ee   : > { %v2364_v1 = vld [vmem:[#allocation10 + $0x8e0] sm:$0xff]  ;;  %8350 = vmatpush1.bf16.msra.mxu1 %v16467_v52 }
 0x1ef   : > { %v2488_v27 = vld [vmem:[#allocation10 + $0xcc0] sm:$0xff]  ;;  %v16356_v2 = vcombine.high %v2360_v14, %v2364_v1  ;;  %8351 = vmatprep.subr.bf16.mxu1 %v16476_v26  ;;  %v16355_v30 = vcombine.low %v2360_v14, %v2364_v1 }
 0x1f0   : > { %v2492_v6 = vld [vmem:[#allocation10 + $0xce0] sm:$0xff]  ;;  %8311 = vmatpush1.bf16.msra.mxu0 %v16347_v13 }
 0x1f1   : > { %v2368_v11 = vld [vmem:[#allocation10 + $0x900] sm:$0xff]  ;;  %v16484_v47 = vcombine.high %v2488_v27, %v2492_v6  ;;  %8312 = vmatprep.subr.bf16.mxu0 %v16356_v2  ;;  %v16483_v62 = vcombine.low %v2488_v27, %v2492_v6 }
 0x1f2   : > { %v2372_v54 = vld [vmem:[#allocation10 + $0x920] sm:$0xff]  ;;  %8352 = vmatpush1.bf16.msra.mxu1 %v16475_v48 }
 0x1f3   : > { %v2496_v10 = vld [vmem:[#allocation10 + $0xd00] sm:$0xff]  ;;  %v16364_v15 = vcombine.high %v2368_v11, %v2372_v54  ;;  %8353 = vmatprep.subr.bf16.mxu1 %v16484_v47  ;;  %v16363_v16 = vcombine.low %v2368_v11, %v2372_v54 }
 0x1f4   : > { %v2500_v3 = vld [vmem:[#allocation10 + $0xd20] sm:$0xff]  ;;  %8313 = vmatpush1.bf16.msra.mxu0 %v16355_v30 }
 0x1f5   : > { %v2376_v43 = vld [vmem:[#allocation10 + $0x940] sm:$0xff]  ;;  %v16492_v20 = vcombine.high %v2496_v10, %v2500_v3  ;;  %8314 = vmatprep.subr.bf16.mxu0 %v16364_v15  ;;  %v16491_v21 = vcombine.low %v2496_v10, %v2500_v3 }
 0x1f6   : > { %v2380_v45 = vld [vmem:[#allocation10 + $0x960] sm:$0xff]  ;;  %8354 = vmatpush1.bf16.msra.mxu1 %v16483_v62 }
 0x1f7   : > { %v2504_v19 = vld [vmem:[#allocation10 + $0xd40] sm:$0xff]  ;;  %v16372_v60 = vcombine.high %v2376_v43, %v2380_v45  ;;  %8355 = vmatprep.subr.bf16.mxu1 %v16492_v20  ;;  %v16371_v58 = vcombine.low %v2376_v43, %v2380_v45 }
 0x1f8   : > { %v2508_v44 = vld [vmem:[#allocation10 + $0xd60] sm:$0xff]  ;;  %8315 = vmatpush1.bf16.msra.mxu0 %v16363_v16 }
 0x1f9   : > { %v2384_v42 = vld [vmem:[#allocation10 + $0x980] sm:$0xff]  ;;  %v16500_v29 = vcombine.high %v2504_v19, %v2508_v44  ;;  %8316 = vmatprep.subr.bf16.mxu0 %v16372_v60  ;;  %v16499_v5 = vcombine.low %v2504_v19, %v2508_v44 }
 0x1fa   : > { %v2388_v17 = vld [vmem:[#allocation10 + $0x9a0] sm:$0xff]  ;;  %8356 = vmatpush1.bf16.msra.mxu1 %v16491_v21 }
 0x1fb   : > { %v2512_v61 = vld [vmem:[#allocation10 + $0xd80] sm:$0xff]  ;;  %v16380_v37 = vcombine.high %v2384_v42, %v2388_v17  ;;  %8357 = vmatprep.subr.bf16.mxu1 %v16500_v29  ;;  %v16379_v59 = vcombine.low %v2384_v42, %v2388_v17 }
 0x1fc   : > { %v2516_v23 = vld [vmem:[#allocation10 + $0xda0] sm:$0xff]  ;;  %8317 = vmatpush1.bf16.msra.mxu0 %v16371_v58 }
 0x1fd   : > { %v2392_v36 = vld [vmem:[#allocation10 + $0x9c0] sm:$0xff]  ;;  %v16508_v0 = vcombine.high %v2512_v61, %v2516_v23  ;;  %8318 = vmatprep.subr.bf16.mxu0 %v16380_v37  ;;  %v16507_v34 = vcombine.low %v2512_v61, %v2516_v23 }
 0x1fe   : > { %v2396_v40 = vld [vmem:[#allocation10 + $0x9e0] sm:$0xff]  ;;  %8358 = vmatpush1.bf16.msra.mxu1 %v16499_v5 }
 0x1ff   : > { %v2520_v51 = vld [vmem:[#allocation10 + $0xdc0] sm:$0xff]  ;;  %v16388_v18 = vcombine.high %v2392_v36, %v2396_v40  ;;  %8359 = vmatprep.subr.bf16.mxu1 %v16508_v0  ;;  %v16387_v12 = vcombine.low %v2392_v36, %v2396_v40 }
 0x200   : > { %v2524_v57 = vld [vmem:[#allocation10 + $0xde0] sm:$0xff]  ;;  %8319 = vmatpush1.bf16.msra.mxu0 %v16379_v59 }
 0x201   : > { %v2400_v33 = vld [vmem:[#allocation10 + $0xa00] sm:$0xff]  ;;  %v16516_v4 = vcombine.high %v2520_v51, %v2524_v57  ;;  %8320 = vmatprep.subr.bf16.mxu0 %v16388_v18  ;;  %v16515_v32 = vcombine.low %v2520_v51, %v2524_v57 }
 0x202   : > { %v2404_v50 = vld [vmem:[#allocation10 + $0xa20] sm:$0xff]  ;;  %8360 = vmatpush1.bf16.msra.mxu1 %v16507_v34  ;;  %v1334_v34 = vld [vmem:[#allocation3 + $0x10] sm:$0xff] }
 0x203   : > { %v2528_v35 = vld [vmem:[#allocation10 + $0xe00] sm:$0xff]  ;;  %v16396_v39 = vcombine.high %v2400_v33, %v2404_v50  ;;  %8361 = vmatprep.subr.bf16.mxu1 %v16516_v4  ;;  %v16395_v52 = vcombine.low %v2400_v33, %v2404_v50 }
 0x204   : > { %v2532_v41 = vld [vmem:[#allocation10 + $0xe20] sm:$0xff]  ;;  %8321 = vmatpush1.bf16.msra.mxu0 %v16387_v12 }
 0x205   : > { %v2408_v25 = vld [vmem:[#allocation10 + $0xa40] sm:$0xff]  ;;  %v16524_v31 = vcombine.high %v2528_v35, %v2532_v41  ;;  %8322 = vmatprep.subr.bf16.mxu0 %v16396_v39  ;;  %v16523_v56 = vcombine.low %v2528_v35, %v2532_v41  ;;  %v1374_v39 = vcombine.high %v1334_v34, %v1334_v34 }
 0x206   : > { %v2412_v46 = vld [vmem:[#allocation10 + $0xa60] sm:$0xff]  ;;  %8362 = vmatpush1.bf16.msra.mxu1 %v16515_v32 }
 0x207   : > { %v2536_v55 = vld [vmem:[#allocation10 + $0xe40] sm:$0xff]  ;;  %v16404_v14 = vcombine.high %v2408_v25, %v2412_v46  ;;  %8363 = vmatprep.subr.bf16.mxu1 %v16524_v31  ;;  %v16403_v48 = vcombine.low %v2408_v25, %v2412_v46 }
 0x208   : > { %v2540_v63 = vld [vmem:[#allocation10 + $0xe60] sm:$0xff]  ;;  %8323 = vmatpush1.bf16.msra.mxu0 %v16395_v52 }
 0x209   : > { %v2416_v1 = vld [vmem:[#allocation10 + $0xa80] sm:$0xff]  ;;  %v16532_v6 = vcombine.high %v2536_v55, %v2540_v63  ;;  %8324 = vmatprep.subr.bf16.mxu0 %v16404_v14  ;;  %v16531_v2 = vcombine.low %v2536_v55, %v2540_v63 }
 0x20a   : > { %v2420_v27 = vld [vmem:[#allocation10 + $0xaa0] sm:$0xff]  ;;  %8364 = vmatpush1.bf16.msra.mxu1 %v16523_v56 }
 0x20b   : > { %v2544_v26 = vld [vmem:[#allocation10 + $0xe80] sm:$0xff]  ;;  %v16412_v11 = vcombine.high %v2416_v1, %v2420_v27  ;;  %8365 = vmatprep.subr.bf16.mxu1 %v16532_v6  ;;  %v16411_v62 = vcombine.low %v2416_v1, %v2420_v27  ;;  %v19931_v1 = vrot.slane %v1334_v34, %v19559_v9  ;;  %v19934_v27 = vrot.slane %v1374_v39, %v19559_v9 }
 0x20c   : > { %v2548_v13 = vld [vmem:[#allocation10 + $0xea0] sm:$0xff]  ;;  %8325 = vmatpush1.bf16.msra.mxu0 %v16403_v48 }
 0x20d   : > { %v2424_v54 = vld [vmem:[#allocation10 + $0xac0] sm:$0xff]  ;;  %v16540_v3 = vcombine.high %v2544_v26, %v2548_v13  ;;  %8326 = vmatprep.subr.bf16.mxu0 %v16412_v11  ;;  %v16539_v15 = vcombine.low %v2544_v26, %v2548_v13 }
 0x20e   : > { %v2428_v10 = vld [vmem:[#allocation10 + $0xae0] sm:$0xff]  ;;  %8366 = vmatpush1.bf16.msra.mxu1 %v16531_v2 }
 0x20f   : > { %v2552_v47 = vld [vmem:[#allocation10 + $0xec0] sm:$0xff]  ;;  %v16420_v43 = vcombine.high %v2424_v54, %v2428_v10  ;;  %8367 = vmatprep.subr.bf16.mxu1 %v16540_v3  ;;  %v16419_v21 = vcombine.low %v2424_v54, %v2428_v10  ;;  %v19940_v3 = vpack.c.bf16 %v19905_v53, %v19905_v53 }
 0x210   : > { %v2556_v30 = vld [vmem:[#allocation10 + $0xee0] sm:$0xff]  ;;  %8327 = vmatpush1.bf16.msra.mxu0 %v16411_v62  ;;  %v19946_v62 = vpack.c.bf16 %v19908_v24, %v19908_v24 }
 0x211   : > { %v2432_v45 = vld [vmem:[#allocation10 + $0xb00] sm:$0xff]  ;;  %v16548_v44 = vcombine.high %v2552_v47, %v2556_v30  ;;  %8328 = vmatprep.subr.bf16.mxu0 %v16420_v43  ;;  %v16547_v60 = vcombine.low %v2552_v47, %v2556_v30  ;;  %v1389_v47 = vcombine.high %v19931_v1, %v19931_v1  ;;  %v1390_v30 = vcombine.high %v19934_v27, %v19934_v27 }
 0x212   : > { %v2436_v19 = vld [vmem:[#allocation10 + $0xb20] sm:$0xff]  ;;  %8368 = vmatpush1.bf16.msra.mxu1 %v16539_v15 }
 0x213   : > { %v2560_v20 = vld [vmem:[#allocation10 + $0xf00] sm:$0xff]  ;;  %v16428_v42 = vcombine.high %v2432_v45, %v2436_v19  ;;  %8369 = vmatprep.subr.bf16.mxu1 %v16548_v44  ;;  %v16427_v5 = vcombine.low %v2432_v45, %v2436_v19 }
 0x214   : > { %v2564_v16 = vld [vmem:[#allocation10 + $0xf20] sm:$0xff]  ;;  %8329 = vmatpush1.bf16.msra.mxu0 %v16419_v21  ;;  %v19948_v21 = vpack.c.bf16 %v1389_v47, %v1389_v47 }
 0x215   : > { %v2440_v17 = vld [vmem:[#allocation10 + $0xb40] sm:$0xff]  ;;  %v16556_v23 = vcombine.high %v2560_v20, %v2564_v16  ;;  %8330 = vmatprep.subr.bf16.mxu0 %v16428_v42  ;;  %v16555_v36 = vcombine.low %v2560_v20, %v2564_v16 }
 0x216   : > { %v2444_v61 = vld [vmem:[#allocation10 + $0xb60] sm:$0xff]  ;;  %8370 = vmatpush1.bf16.msra.mxu1 %v16547_v60  ;;  %v19951_v60 = vpack.c.bf16 %v1390_v30, %v1390_v30 }
 0x217   : > { %v2568_v29 = vld [vmem:[#allocation10 + $0xf40] sm:$0xff]  ;;  %v16436_v40 = vcombine.high %v2440_v17, %v2444_v61  ;;  %8371 = vmatprep.subr.bf16.mxu1 %v16556_v23  ;;  %v16435_v18 = vcombine.low %v2440_v17, %v2444_v61 }
 0x218   : > { %v2572_v58 = vld [vmem:[#allocation10 + $0xf60] sm:$0xff]  ;;  %8331 = vmatpush1.bf16.msra.mxu0 %v16427_v5 }
 0x219   : > { %v2448_v37 = vld [vmem:[#allocation10 + $0xb80] sm:$0xff]  ;;  %v16564_v59 = vcombine.high %v2568_v29, %v2572_v58  ;;  %8332 = vmatprep.subr.bf16.mxu0 %v16436_v40  ;;  %v16563_v33 = vcombine.low %v2568_v29, %v2572_v58 }
 0x21a   : > { %v2452_v51 = vld [vmem:[#allocation10 + $0xba0] sm:$0xff]  ;;  %8372 = vmatpush1.bf16.msra.mxu1 %v16555_v36 }
 0x21b   : > { %v2576_v0 = vld [vmem:[#allocation10 + $0xf80] sm:$0xff]  ;;  %v16444_v50 = vcombine.high %v2448_v37, %v2452_v51  ;;  %8373 = vmatprep.subr.bf16.mxu1 %v16564_v59  ;;  %v16443_v25 = vcombine.low %v2448_v37, %v2452_v51 }
 0x21c   : > { %v2580_v57 = vld [vmem:[#allocation10 + $0xfa0] sm:$0xff]  ;;  %8333 = vmatpush1.bf16.msra.mxu0 %v16435_v18 }
 0x21d   : > { %v2456_v35 = vld [vmem:[#allocation10 + $0xbc0] sm:$0xff]  ;;  %v16572_v12 = vcombine.high %v2576_v0, %v2580_v57  ;;  %8334 = vmatprep.subr.bf16.mxu0 %v16444_v50  ;;  %v16571_v46 = vcombine.low %v2576_v0, %v2580_v57 }
 0x21e   : > { %v2460_v4 = vld [vmem:[#allocation10 + $0xbe0] sm:$0xff]  ;;  %8374 = vmatpush1.bf16.msra.mxu1 %v16563_v33 }
 0x21f   : > { %v2584_v41 = vld [vmem:[#allocation10 + $0xfc0] sm:$0xff]  ;;  %v16452_v55 = vcombine.high %v2456_v35, %v2460_v4  ;;  %8375 = vmatprep.subr.bf16.mxu1 %v16572_v12  ;;  %v16451_v26 = vcombine.low %v2456_v35, %v2460_v4 }
 0x220   : > { %v2588_v32 = vld [vmem:[#allocation10 + $0xfe0] sm:$0xff]  ;;  %8335 = vmatpush1.bf16.msra.mxu0 %v16443_v25 }
 0x221   : > { %v2592_v31 = vld [vmem:[#allocation10 + $0x1000] sm:$0xff]  ;;  %v16580_v52 = vcombine.high %v2584_v41, %v2588_v32  ;;  %8336 = vmatprep.subr.bf16.mxu0 %v16452_v55  ;;  %v16579_v6 = vcombine.low %v2584_v41, %v2588_v32 }
 0x222   : > { %v2596_v63 = vld [vmem:[#allocation10 + $0x1020] sm:$0xff]  ;;  %8376 = vmatpush1.bf16.msra.mxu1 %v16571_v46 }
 0x223   : > { %v2720_v56 = vld [vmem:[#allocation10 + $0x1400] sm:$0xff]  ;;  %v16588_v13 = vcombine.high %v2592_v31, %v2596_v63  ;;  %8377 = vmatprep.subr.bf16.mxu1 %v16580_v52  ;;  %v16587_v15 = vcombine.low %v2592_v31, %v2596_v63 }
 0x224   : > { %v2724_v14 = vld [vmem:[#allocation10 + $0x1420] sm:$0xff]  ;;  %8337 = vmatpush1.bf16.msra.mxu0 %v16451_v26 }
 0x225   : > { %v2600_v48 = vld [vmem:[#allocation10 + $0x1040] sm:$0xff]  ;;  %v16716_v54 = vcombine.high %v2720_v56, %v2724_v14  ;;  %8388 = vmatprep.subr.bf16.mxu0 %v16588_v13  ;;  %v16715_v43 = vcombine.low %v2720_v56, %v2724_v14 }
 0x226   : > { %v2604_v2 = vld [vmem:[#allocation10 + $0x1060] sm:$0xff]  ;;  %8378 = vmatpush1.bf16.msra.mxu1 %v16579_v6 }
 0x227   : > { %v2728_v11 = vld [vmem:[#allocation10 + $0x1440] sm:$0xff]  ;;  %v16596_v45 = vcombine.high %v2600_v48, %v2604_v2  ;;  %8429 = vmatprep.subr.bf16.mxu1 %v16716_v54  ;;  %8339 = vmatmul.mubr.bf16.vlgmr.msra.gmra.mrb[4].mxu0 %v19940_v3  ;;  %v16595_v24 = vcombine.low %v2600_v48, %v2604_v2 }
 0x228   : > { %v2732_v10 = vld [vmem:[#allocation10 + $0x1460] sm:$0xff]  ;;  %8389 = vmatpush1.bf16.msra.mxu0 %v16587_v15  ;;  %8420 = vmatprep.mubr.bf16.mxu0 %v19948_v21 }
 0x229   : > { %v2608_v19 = vld [vmem:[#allocation10 + $0x1080] sm:$0xff]  ;;  %v16724_v16 = vcombine.high %v2728_v11, %v2732_v10  ;;  %8380 = vmatmul.mubr.bf16.vlgmr.msra.gmra.mrb[4].mxu1 %v19946_v62  ;;  %8390 = vmatprep.subr.bf16.mxu0 %v16596_v45  ;;  %v16723_v42 = vcombine.low %v2728_v11, %v2732_v10 }
 0x22a   : > { %v2612_v20 = vld [vmem:[#allocation10 + $0x10a0] sm:$0xff]  ;;  %8430 = vmatpush1.bf16.msra.mxu1 %v16715_v43  ;;  %8461 = vmatprep.mubr.bf16.mxu1 %v19951_v60 }
 0x22b   : > { %v2736_v44 = vld [vmem:[#allocation10 + $0x1480] sm:$0xff]  ;;  %v16604_v17 = vcombine.high %v2608_v19, %v2612_v20  ;;  %8431 = vmatprep.subr.bf16.mxu1 %v16724_v16  ;;  %v16603_v37 = vcombine.low %v2608_v19, %v2612_v20 }
 0x22c   : > { %v2740_v53 = vld [vmem:[#allocation10 + $0x14a0] sm:$0xff]  ;;  %8391 = vmatpush1.bf16.msra.mxu0 %v16595_v24 }
 0x22d   : > { %v2616_v61 = vld [vmem:[#allocation10 + $0x10c0] sm:$0xff]  ;;  %v16732_v58 = vcombine.high %v2736_v44, %v2740_v53  ;;  %8392 = vmatprep.subr.bf16.mxu0 %v16604_v17  ;;  %v16731_v36 = vcombine.low %v2736_v44, %v2740_v53 }
 0x22e   : > { %v2620_v29 = vld [vmem:[#allocation10 + $0x10e0] sm:$0xff]  ;;  %8432 = vmatpush1.bf16.msra.mxu1 %v16723_v42 }
 0x22f   : > { %v2744_v23 = vld [vmem:[#allocation10 + $0x14c0] sm:$0xff]  ;;  %v16612_v40 = vcombine.high %v2616_v61, %v2620_v29  ;;  %8433 = vmatprep.subr.bf16.mxu1 %v16732_v58  ;;  %v16611_v18 = vcombine.low %v2616_v61, %v2620_v29 }
 0x230   : > { %v2748_v5 = vld [vmem:[#allocation10 + $0x14e0] sm:$0xff]  ;;  %8393 = vmatpush1.bf16.msra.mxu0 %v16603_v37 }
 0x231   : > { %v2624_v51 = vld [vmem:[#allocation10 + $0x1100] sm:$0xff]  ;;  %v16740_v59 = vcombine.high %v2744_v23, %v2748_v5  ;;  %8394 = vmatprep.subr.bf16.mxu0 %v16612_v40  ;;  %v16739_v33 = vcombine.low %v2744_v23, %v2748_v5 }
 0x232   : > { %v2628_v0 = vld [vmem:[#allocation10 + $0x1120] sm:$0xff]  ;;  %8434 = vmatpush1.bf16.msra.mxu1 %v16731_v36 }
 0x233   : > { %v2752_v57 = vld [vmem:[#allocation10 + $0x1500] sm:$0xff]  ;;  %v16620_v50 = vcombine.high %v2624_v51, %v2628_v0  ;;  %8435 = vmatprep.subr.bf16.mxu1 %v16740_v59  ;;  %v16619_v39 = vcombine.low %v2624_v51, %v2628_v0 }
 0x234   : > { %v2756_v34 = vld [vmem:[#allocation10 + $0x1520] sm:$0xff]  ;;  %8395 = vmatpush1.bf16.msra.mxu0 %v16611_v18 }
 0x235   : > { %v2632_v35 = vld [vmem:[#allocation10 + $0x1140] sm:$0xff]  ;;  %v16748_v12 = vcombine.high %v2752_v57, %v2756_v34  ;;  %8396 = vmatprep.subr.bf16.mxu0 %v16620_v50  ;;  %v16747_v25 = vcombine.low %v2752_v57, %v2756_v34 }
 0x236   : > { %v2636_v4 = vld [vmem:[#allocation10 + $0x1160] sm:$0xff]  ;;  %8436 = vmatpush1.bf16.msra.mxu1 %v16739_v33 }
 0x237   : > { %v2760_v41 = vld [vmem:[#allocation10 + $0x1540] sm:$0xff]  ;;  %v16628_v46 = vcombine.high %v2632_v35, %v2636_v4  ;;  %8437 = vmatprep.subr.bf16.mxu1 %v16748_v12  ;;  %v16627_v14 = vcombine.low %v2632_v35, %v2636_v4 }
 0x238   : > { %v2764_v32 = vld [vmem:[#allocation10 + $0x1560] sm:$0xff]  ;;  %8397 = vmatpush1.bf16.msra.mxu0 %v16619_v39 }
 0x239   : > { %v2640_v55 = vld [vmem:[#allocation10 + $0x1180] sm:$0xff]  ;;  %v16756_v52 = vcombine.high %v2760_v41, %v2764_v32  ;;  %8398 = vmatprep.subr.bf16.mxu0 %v16628_v46  ;;  %v16755_v26 = vcombine.low %v2760_v41, %v2764_v32 }
 0x23a   : > { %v2644_v31 = vld [vmem:[#allocation10 + $0x11a0] sm:$0xff]  ;;  %8438 = vmatpush1.bf16.msra.mxu1 %v16747_v25 }
 0x23b   : > { %v2768_v63 = vld [vmem:[#allocation10 + $0x1580] sm:$0xff]  ;;  %v16636_v6 = vcombine.high %v2640_v55, %v2644_v31  ;;  %8439 = vmatprep.subr.bf16.mxu1 %v16756_v52  ;;  %v16635_v10 = vcombine.low %v2640_v55, %v2644_v31 }
 0x23c   : > { %v2772_v56 = vld [vmem:[#allocation10 + $0x15a0] sm:$0xff]  ;;  %8399 = vmatpush1.bf16.msra.mxu0 %v16627_v14 }
 0x23d   : > { %v2648_v13 = vld [vmem:[#allocation10 + $0x11c0] sm:$0xff]  ;;  %v16764_v11 = vcombine.high %v2768_v63, %v2772_v56  ;;  %8400 = vmatprep.subr.bf16.mxu0 %v16636_v6  ;;  %v16763_v47 = vcombine.low %v2768_v63, %v2772_v56 }
 0x23e   : > { %v2652_v48 = vld [vmem:[#allocation10 + $0x11e0] sm:$0xff]  ;;  %8440 = vmatpush1.bf16.msra.mxu1 %v16755_v26 }
 0x23f   : > { %v2776_v2 = vld [vmem:[#allocation10 + $0x15c0] sm:$0xff]  ;;  %v16644_v30 = vcombine.high %v2648_v13, %v2652_v48  ;;  %8441 = vmatprep.subr.bf16.mxu1 %v16764_v11  ;;  %v16643_v44 = vcombine.low %v2648_v13, %v2652_v48 }
 0x240   : > { %v2780_v54 = vld [vmem:[#allocation10 + $0x15e0] sm:$0xff]  ;;  %8401 = vmatpush1.bf16.msra.mxu0 %v16635_v10 }
 0x241   : > { %v2656_v15 = vld [vmem:[#allocation10 + $0x1200] sm:$0xff]  ;;  %v16772_v19 = vcombine.high %v2776_v2, %v2780_v54  ;;  %8402 = vmatprep.subr.bf16.mxu0 %v16644_v30  ;;  %v16771_v16 = vcombine.low %v2776_v2, %v2780_v54 }
 0x242   : > { %v2660_v43 = vld [vmem:[#allocation10 + $0x1220] sm:$0xff]  ;;  %8442 = vmatpush1.bf16.msra.mxu1 %v16763_v47 }
 0x243   : > { %v2784_v45 = vld [vmem:[#allocation10 + $0x1600] sm:$0xff]  ;;  %v16652_v53 = vcombine.high %v2656_v15, %v2660_v43  ;;  %8443 = vmatprep.subr.bf16.mxu1 %v16772_v19  ;;  %v16651_v23 = vcombine.low %v2656_v15, %v2660_v43 }
 0x244   : > { %v2788_v20 = vld [vmem:[#allocation10 + $0x1620] sm:$0xff]  ;;  %8403 = vmatpush1.bf16.msra.mxu0 %v16643_v44 }
 0x245   : > { %v2664_v24 = vld [vmem:[#allocation10 + $0x1240] sm:$0xff]  ;;  %v16780_v61 = vcombine.high %v2784_v45, %v2788_v20  ;;  %8404 = vmatprep.subr.bf16.mxu0 %v16652_v53  ;;  %v16779_v58 = vcombine.low %v2784_v45, %v2788_v20  ;;  %v1335_v45 = vld [vmem:[#allocation3 + $0x18] sm:$0xff] }
 0x246   : > { %v2668_v42 = vld [vmem:[#allocation10 + $0x1260] sm:$0xff]  ;;  %8444 = vmatpush1.bf16.msra.mxu1 %v16771_v16 }
 0x247   : > { %v2792_v17 = vld [vmem:[#allocation10 + $0x1640] sm:$0xff]  ;;  %v16660_v5 = vcombine.high %v2664_v24, %v2668_v42  ;;  %8445 = vmatprep.subr.bf16.mxu1 %v16780_v61  ;;  %v16659_v57 = vcombine.low %v2664_v24, %v2668_v42  ;;  %v1391_v61 = vcombine.high %v1335_v45, %v1335_v45 }
 0x248   : > { %v2796_v29 = vld [vmem:[#allocation10 + $0x1660] sm:$0xff]  ;;  %8405 = vmatpush1.bf16.msra.mxu0 %v16651_v23 }
 0x249   : > { %v2672_v37 = vld [vmem:[#allocation10 + $0x1280] sm:$0xff]  ;;  %v16788_v51 = vcombine.high %v2792_v17, %v2796_v29  ;;  %8406 = vmatprep.subr.bf16.mxu0 %v16660_v5  ;;  %v16787_v59 = vcombine.low %v2792_v17, %v2796_v29 }
 0x24a   : > { %v2676_v36 = vld [vmem:[#allocation10 + $0x12a0] sm:$0xff]  ;;  %8446 = vmatpush1.bf16.msra.mxu1 %v16779_v58 }
 0x24b   : > { %v2800_v40 = vld [vmem:[#allocation10 + $0x1680] sm:$0xff]  ;;  %v16668_v34 = vcombine.high %v2672_v37, %v2676_v36  ;;  %8447 = vmatprep.subr.bf16.mxu1 %v16788_v51  ;;  %v16667_v41 = vcombine.low %v2672_v37, %v2676_v36 }
 0x24c   : > { %v2804_v0 = vld [vmem:[#allocation10 + $0x16a0] sm:$0xff]  ;;  %8407 = vmatpush1.bf16.msra.mxu0 %v16659_v57  ;;  %v19960_v57 = vrot.slane %v1391_v61, %v19559_v9 }
 0x24d   : > { %v2680_v18 = vld [vmem:[#allocation10 + $0x12c0] sm:$0xff]  ;;  %v16796_v35 = vcombine.high %v2800_v40, %v2804_v0  ;;  %8408 = vmatprep.subr.bf16.mxu0 %v16668_v34  ;;  %v16795_v12 = vcombine.low %v2800_v40, %v2804_v0  ;;  %v19957_v0 = vrot.slane %v1335_v45, %v19559_v9 }
 0x24e   : > { %v2684_v33 = vld [vmem:[#allocation10 + $0x12e0] sm:$0xff]  ;;  %8448 = vmatpush1.bf16.msra.mxu1 %v16787_v59 }
 0x24f   : > { %v2808_v50 = vld [vmem:[#allocation10 + $0x16c0] sm:$0xff]  ;;  %v16676_v32 = vcombine.high %v2680_v18, %v2684_v33  ;;  %8449 = vmatprep.subr.bf16.mxu1 %v16796_v35  ;;  %v16675_v63 = vcombine.low %v2680_v18, %v2684_v33 }
 0x250   : > { %v2812_v4 = vld [vmem:[#allocation10 + $0x16e0] sm:$0xff]  ;;  %8409 = vmatpush1.bf16.msra.mxu0 %v16667_v41 }
 0x251   : > { %v2688_v39 = vld [vmem:[#allocation10 + $0x1300] sm:$0xff]  ;;  %v16804_v55 = vcombine.high %v2808_v50, %v2812_v4  ;;  %8410 = vmatprep.subr.bf16.mxu0 %v16676_v32  ;;  %v16803_v52 = vcombine.low %v2808_v50, %v2812_v4  ;;  %v19966_v32 = vpack.c.bf16 %v19931_v1, %v19931_v1 }
 0x252   : > { %v2692_v25 = vld [vmem:[#allocation10 + $0x1320] sm:$0xff]  ;;  %8450 = vmatpush1.bf16.msra.mxu1 %v16795_v12  ;;  %v1406_v12 = vcombine.high %v19957_v0, %v19957_v0 }
 0x253   : > { %v2816_v46 = vld [vmem:[#allocation10 + $0x1700] sm:$0xff]  ;;  %v16684_v56 = vcombine.high %v2688_v39, %v2692_v25  ;;  %8451 = vmatprep.subr.bf16.mxu1 %v16804_v55  ;;  %v16683_v2 = vcombine.low %v2688_v39, %v2692_v25  ;;  %v1407_v39 = vcombine.high %v19960_v57, %v19960_v57  ;;  %v19972_v25 = vpack.c.bf16 %v19934_v27, %v19934_v27 }
 0x254   : > { %v2820_v31 = vld [vmem:[#allocation10 + $0x1720] sm:$0xff]  ;;  %8411 = vmatpush1.bf16.msra.mxu0 %v16675_v63 }
 0x255   : > { %v2696_v14 = vld [vmem:[#allocation10 + $0x1340] sm:$0xff]  ;;  %v16812_v13 = vcombine.high %v2816_v46, %v2820_v31  ;;  %8412 = vmatprep.subr.bf16.mxu0 %v16684_v56  ;;  %v16811_v54 = vcombine.low %v2816_v46, %v2820_v31 }
 0x256   : > { %v2700_v26 = vld [vmem:[#allocation10 + $0x1360] sm:$0xff]  ;;  %8452 = vmatpush1.bf16.msra.mxu1 %v16803_v52 }
 0x257   : > { %v2824_v6 = vld [vmem:[#allocation10 + $0x1740] sm:$0xff]  ;;  %v16692_v10 = vcombine.high %v2696_v14, %v2700_v26  ;;  %8453 = vmatprep.subr.bf16.mxu1 %v16812_v13  ;;  %v16691_v19 = vcombine.low %v2696_v14, %v2700_v26  ;;  %v19974_v26 = vpack.c.bf16 %v1406_v12, %v1406_v12 }
 0x258   : > { %v2828_v48 = vld [vmem:[#allocation10 + $0x1760] sm:$0xff]  ;;  %8413 = vmatpush1.bf16.msra.mxu0 %v16683_v2 }
 0x259   : > { %v2704_v11 = vld [vmem:[#allocation10 + $0x1380] sm:$0xff]  ;;  %v16820_v43 = vcombine.high %v2824_v6, %v2828_v48  ;;  %8414 = vmatprep.subr.bf16.mxu0 %v16692_v10  ;;  %v16819_v20 = vcombine.low %v2824_v6, %v2828_v48  ;;  %v19977_v6 = vpack.c.bf16 %v1407_v39, %v1407_v39 }
 0x25a   : > { %v2708_v47 = vld [vmem:[#allocation10 + $0x13a0] sm:$0xff]  ;;  %8454 = vmatpush1.bf16.msra.mxu1 %v16811_v54 }
 0x25b   : > { %v2832_v30 = vld [vmem:[#allocation10 + $0x1780] sm:$0xff]  ;;  %v16700_v44 = vcombine.high %v2704_v11, %v2708_v47  ;;  %8455 = vmatprep.subr.bf16.mxu1 %v16820_v43  ;;  %v16699_v29 = vcombine.low %v2704_v11, %v2708_v47 }
 0x25c   : > { %v2836_v15 = vld [vmem:[#allocation10 + $0x17a0] sm:$0xff]  ;;  %8415 = vmatpush1.bf16.msra.mxu0 %v16691_v19 }
 0x25d   : > { %v2712_v16 = vld [vmem:[#allocation10 + $0x13c0] sm:$0xff]  ;;  %v16828_v42 = vcombine.high %v2832_v30, %v2836_v15  ;;  %8416 = vmatprep.subr.bf16.mxu0 %v16700_v44  ;;  %v16827_v23 = vcombine.low %v2832_v30, %v2836_v15 }
 0x25e   : > { %v2716_v53 = vld [vmem:[#allocation10 + $0x13e0] sm:$0xff]  ;;  %8456 = vmatpush1.bf16.msra.mxu1 %v16819_v20 }
 0x25f   : > { %v2840_v24 = vld [vmem:[#allocation10 + $0x17c0] sm:$0xff]  ;;  %v16708_v58 = vcombine.high %v2712_v16, %v2716_v53  ;;  %8457 = vmatprep.subr.bf16.mxu1 %v16828_v42  ;;  %v16707_v59 = vcombine.low %v2712_v16, %v2716_v53 }
 0x260   : > { %v2844_v17 = vld [vmem:[#allocation10 + $0x17e0] sm:$0xff]  ;;  %8417 = vmatpush1.bf16.msra.mxu0 %v16699_v29 }
 0x261   : > { %v2848_v5 = vld [vmem:[#allocation10 + $0x1800] sm:$0xff]  ;;  %v16836_v40 = vcombine.high %v2840_v24, %v2844_v17  ;;  %8418 = vmatprep.subr.bf16.mxu0 %v16708_v58  ;;  %v16835_v34 = vcombine.low %v2840_v24, %v2844_v17 }
 0x262   : > { %v2852_v37 = vld [vmem:[#allocation10 + $0x1820] sm:$0xff]  ;;  %8458 = vmatpush1.bf16.msra.mxu1 %v16827_v23 }
 0x263   : > { %v2976_v36 = vld [vmem:[#allocation10 + $0x1c00] sm:$0xff]  ;;  %v16844_v18 = vcombine.high %v2848_v5, %v2852_v37  ;;  %8459 = vmatprep.subr.bf16.mxu1 %v16836_v40  ;;  %v16843_v46 = vcombine.low %v2848_v5, %v2852_v37 }
 0x264   : > { %v2980_v51 = vld [vmem:[#allocation10 + $0x1c20] sm:$0xff]  ;;  %8419 = vmatpush1.bf16.msra.mxu0 %v16707_v59 }
 0x265   : > { %v2856_v33 = vld [vmem:[#allocation10 + $0x1840] sm:$0xff]  ;;  %v16972_v4 = vcombine.high %v2976_v36, %v2980_v51  ;;  %8470 = vmatprep.subr.bf16.mxu0 %v16844_v18  ;;  %v16971_v55 = vcombine.low %v2976_v36, %v2980_v51 }
 0x266   : > { %v2860_v50 = vld [vmem:[#allocation10 + $0x1860] sm:$0xff]  ;;  %8460 = vmatpush1.bf16.msra.mxu1 %v16835_v34 }
 0x267   : > { %v2984_v35 = vld [vmem:[#allocation10 + $0x1c40] sm:$0xff]  ;;  %v16852_v31 = vcombine.high %v2856_v33, %v2860_v50  ;;  %8511 = vmatprep.subr.bf16.mxu1 %v16972_v4  ;;  %8421 = vmatmul.mubr.bf16.vlgmr.msra.gmra.mrb[8].mxu0 %v19966_v32  ;;  %v16851_v27 = vcombine.low %v2856_v33, %v2860_v50 }
 0x268   : > { %v2988_v41 = vld [vmem:[#allocation10 + $0x1c60] sm:$0xff]  ;;  %8471 = vmatpush1.bf16.msra.mxu0 %v16843_v46  ;;  %8502 = vmatprep.mubr.bf16.mxu0 %v19974_v26 }
 0x269   : > { %v2864_v63 = vld [vmem:[#allocation10 + $0x1880] sm:$0xff]  ;;  %v16980_v14 = vcombine.high %v2984_v35, %v2988_v41  ;;  %8462 = vmatmul.mubr.bf16.vlgmr.msra.gmra.mrb[8].mxu1 %v19972_v25  ;;  %8472 = vmatprep.subr.bf16.mxu0 %v16852_v31  ;;  %v16979_v13 = vcombine.low %v2984_v35, %v2988_v41 }
 0x26a   : > { %v2868_v52 = vld [vmem:[#allocation10 + $0x18a0] sm:$0xff]  ;;  %8512 = vmatpush1.bf16.msra.mxu1 %v16971_v55  ;;  %8543 = vmatprep.mubr.bf16.mxu1 %v19977_v6 }
 0x26b   : > { %v2992_v56 = vld [vmem:[#allocation10 + $0x1c80] sm:$0xff]  ;;  %v16860_v48 = vcombine.high %v2864_v63, %v2868_v52  ;;  %8513 = vmatprep.subr.bf16.mxu1 %v16980_v14  ;;  %v16859_v30 = vcombine.low %v2864_v63, %v2868_v52 }
 0x26c   : > { %v2996_v1 = vld [vmem:[#allocation10 + $0x1ca0] sm:$0xff]  ;;  %8473 = vmatpush1.bf16.msra.mxu0 %v16851_v27 }
 0x26d   : > { %v2872_v2 = vld [vmem:[#allocation10 + $0x18c0] sm:$0xff]  ;;  %v16988_v10 = vcombine.high %v2992_v56, %v2996_v1  ;;  %8474 = vmatprep.subr.bf16.mxu0 %v16860_v48  ;;  %v16987_v15 = vcombine.low %v2992_v56, %v2996_v1 }
 0x26e   : > { %v2876_v11 = vld [vmem:[#allocation10 + $0x18e0] sm:$0xff]  ;;  %8514 = vmatpush1.bf16.msra.mxu1 %v16979_v13 }
 0x26f   : > { %v3000_v54 = vld [vmem:[#allocation10 + $0x1cc0] sm:$0xff]  ;;  %v16868_v43 = vcombine.high %v2872_v2, %v2876_v11  ;;  %8515 = vmatprep.subr.bf16.mxu1 %v16988_v10  ;;  %v16867_v53 = vcombine.low %v2872_v2, %v2876_v11 }
 0x270   : > { %v3004_v47 = vld [vmem:[#allocation10 + $0x1ce0] sm:$0xff]  ;;  %8475 = vmatpush1.bf16.msra.mxu0 %v16859_v30 }
 0x271   : > { %v2880_v45 = vld [vmem:[#allocation10 + $0x1900] sm:$0xff]  ;;  %v16996_v44 = vcombine.high %v3000_v54, %v3004_v47  ;;  %8476 = vmatprep.subr.bf16.mxu0 %v16868_v43  ;;  %v16995_v24 = vcombine.low %v3000_v54, %v3004_v47 }
 0x272   : > { %v2884_v19 = vld [vmem:[#allocation10 + $0x1920] sm:$0xff]  ;;  %8516 = vmatpush1.bf16.msra.mxu1 %v16987_v15 }
 0x273   : > { %v3008_v20 = vld [vmem:[#allocation10 + $0x1d00] sm:$0xff]  ;;  %v16876_v42 = vcombine.high %v2880_v45, %v2884_v19  ;;  %8517 = vmatprep.subr.bf16.mxu1 %v16996_v44  ;;  %v16875_v5 = vcombine.low %v2880_v45, %v2884_v19 }
 0x274   : > { %v3012_v16 = vld [vmem:[#allocation10 + $0x1d20] sm:$0xff]  ;;  %8477 = vmatpush1.bf16.msra.mxu0 %v16867_v53 }
 0x275   : > { %v2888_v17 = vld [vmem:[#allocation10 + $0x1940] sm:$0xff]  ;;  %v17004_v23 = vcombine.high %v3008_v20, %v3012_v16  ;;  %8478 = vmatprep.subr.bf16.mxu0 %v16876_v42  ;;  %v17003_v37 = vcombine.low %v3008_v20, %v3012_v16 }
 0x276   : > { %v2892_v61 = vld [vmem:[#allocation10 + $0x1960] sm:$0xff]  ;;  %8518 = vmatpush1.bf16.msra.mxu1 %v16995_v24 }
 0x277   : > { %v3016_v29 = vld [vmem:[#allocation10 + $0x1d40] sm:$0xff]  ;;  %v16884_v36 = vcombine.high %v2888_v17, %v2892_v61  ;;  %8519 = vmatprep.subr.bf16.mxu1 %v17004_v23  ;;  %v16883_v33 = vcombine.low %v2888_v17, %v2892_v61 }
 0x278   : > { %v3020_v58 = vld [vmem:[#allocation10 + $0x1d60] sm:$0xff]  ;;  %8479 = vmatpush1.bf16.msra.mxu0 %v16875_v5 }
 0x279   : > { %v2896_v40 = vld [vmem:[#allocation10 + $0x1980] sm:$0xff]  ;;  %v17012_v34 = vcombine.high %v3016_v29, %v3020_v58  ;;  %8480 = vmatprep.subr.bf16.mxu0 %v16884_v36  ;;  %v17011_v50 = vcombine.low %v3016_v29, %v3020_v58 }
 0x27a   : > { %v2900_v51 = vld [vmem:[#allocation10 + $0x19a0] sm:$0xff]  ;;  %8520 = vmatpush1.bf16.msra.mxu1 %v17003_v37 }
 0x27b   : > { %v3024_v59 = vld [vmem:[#allocation10 + $0x1d80] sm:$0xff]  ;;  %v16892_v35 = vcombine.high %v2896_v40, %v2900_v51  ;;  %8521 = vmatprep.subr.bf16.mxu1 %v17012_v34  ;;  %v16891_v55 = vcombine.low %v2896_v40, %v2900_v51 }
 0x27c   : > { %v3028_v18 = vld [vmem:[#allocation10 + $0x1da0] sm:$0xff]  ;;  %8481 = vmatpush1.bf16.msra.mxu0 %v16883_v33 }
 0x27d   : > { %v2904_v4 = vld [vmem:[#allocation10 + $0x19c0] sm:$0xff]  ;;  %v17020_v39 = vcombine.high %v3024_v59, %v3028_v18  ;;  %8482 = vmatprep.subr.bf16.mxu0 %v16892_v35  ;;  %v17019_v31 = vcombine.low %v3024_v59, %v3028_v18 }
 0x27e   : > { %v2908_v41 = vld [vmem:[#allocation10 + $0x19e0] sm:$0xff]  ;;  %8522 = vmatpush1.bf16.msra.mxu1 %v17011_v50 }
 0x27f   : > { %v3032_v12 = vld [vmem:[#allocation10 + $0x1dc0] sm:$0xff]  ;;  %v16900_v63 = vcombine.high %v2904_v4, %v2908_v41  ;;  %8523 = vmatprep.subr.bf16.mxu1 %v17020_v39  ;;  %v16899_v13 = vcombine.low %v2904_v4, %v2908_v41 }
 0x280   : > { %v3036_v46 = vld [vmem:[#allocation10 + $0x1de0] sm:$0xff]  ;;  %8483 = vmatpush1.bf16.msra.mxu0 %v16891_v55 }
 0x281   : > { %v2912_v52 = vld [vmem:[#allocation10 + $0x1a00] sm:$0xff]  ;;  %v17028_v1 = vcombine.high %v3032_v12, %v3036_v46  ;;  %8484 = vmatprep.subr.bf16.mxu0 %v16900_v63  ;;  %v17027_v48 = vcombine.low %v3032_v12, %v3036_v46 }
 0x282   : > { %v2916_v56 = vld [vmem:[#allocation10 + $0x1a20] sm:$0xff]  ;;  %8524 = vmatpush1.bf16.msra.mxu1 %v17019_v31 }
 0x283   : > { %v3040_v14 = vld [vmem:[#allocation10 + $0x1e00] sm:$0xff]  ;;  %v16908_v2 = vcombine.high %v2912_v52, %v2916_v56  ;;  %8525 = vmatprep.subr.bf16.mxu1 %v17028_v1  ;;  %v16907_v15 = vcombine.low %v2912_v52, %v2916_v56 }
 0x284   : > { %v3044_v27 = vld [vmem:[#allocation10 + $0x1e20] sm:$0xff]  ;;  %8485 = vmatpush1.bf16.msra.mxu0 %v16899_v13 }
 0x285   : > { %v2920_v11 = vld [vmem:[#allocation10 + $0x1a40] sm:$0xff]  ;;  %v17036_v47 = vcombine.high %v3040_v14, %v3044_v27  ;;  %8486 = vmatprep.subr.bf16.mxu0 %v16908_v2  ;;  %v17035_v43 = vcombine.low %v3040_v14, %v3044_v27 }
 0x286   : > { %v2924_v54 = vld [vmem:[#allocation10 + $0x1a60] sm:$0xff]  ;;  %8526 = vmatpush1.bf16.msra.mxu1 %v17027_v48 }
 0x287   : > { %v3048_v10 = vld [vmem:[#allocation10 + $0x1e40] sm:$0xff]  ;;  %v16916_v45 = vcombine.high %v2920_v11, %v2924_v54  ;;  %8527 = vmatprep.subr.bf16.mxu1 %v17036_v47  ;;  %v16915_v24 = vcombine.low %v2920_v11, %v2924_v54 }
 0x288   : > { %v3052_v30 = vld [vmem:[#allocation10 + $0x1e60] sm:$0xff]  ;;  %8487 = vmatpush1.bf16.msra.mxu0 %v16907_v15 }
 0x289   : > { %v17044_v19 = vcombine.high %v3048_v10, %v3052_v30  ;;  %v2928_v20 = vld [vmem:[#allocation10 + $0x1a80] sm:$0xff]  ;;  %8488 = vmatprep.subr.bf16.mxu0 %v16916_v45  ;;  %v17043_v42 = vcombine.low %v3048_v10, %v3052_v30 }
 0x28a   : > { %v2932_v44 = vld [vmem:[#allocation10 + $0x1aa0] sm:$0xff]  ;;  %8528 = vmatpush1.bf16.msra.mxu1 %v17035_v43 }
 0x28b   : > { %v3056_v16 = vld [vmem:[#allocation10 + $0x1e80] sm:$0xff]  ;;  %v16924_v17 = vcombine.high %v2928_v20, %v2932_v44  ;;  %8529 = vmatprep.subr.bf16.mxu1 %v17044_v19  ;;  %v16923_v37 = vcombine.low %v2928_v20, %v2932_v44  ;;  %v2081_v44 = vld [vmem:[#allocation10 + $0x8] sm:$0xff] }
 0x28c   : > { %v3060_v53 = vld [vmem:[#allocation10 + $0x1ea0] sm:$0xff]  ;;  %8489 = vmatpush1.bf16.msra.mxu0 %v16915_v24  ;;  %v2213_v24 = vld [vmem:[#allocation10 + $0x428] sm:$0xff] }
 0x28d   : > { %v17052_v61 = vcombine.high %v3056_v16, %v3060_v53  ;;  %v2936_v29 = vld [vmem:[#allocation10 + $0x1ac0] sm:$0xff]  ;;  %8490 = vmatprep.subr.bf16.mxu0 %v16924_v17  ;;  %v17051_v36 = vcombine.low %v3056_v16, %v3060_v53  ;;  %v2085_v16 = vld [vmem:[#allocation10 + $0x28] sm:$0xff] }
 0x28e   : > { %v2940_v23 = vld [vmem:[#allocation10 + $0x1ae0] sm:$0xff]  ;;  %8530 = vmatpush1.bf16.msra.mxu1 %v17043_v42  ;;  %v2209_v53 = vld [vmem:[#allocation10 + $0x408] sm:$0xff] }
 0x28f   : > { %v3064_v58 = vld [vmem:[#allocation10 + $0x1ec0] sm:$0xff]  ;;  %v16932_v40 = vcombine.high %v2936_v29, %v2940_v23  ;;  %8531 = vmatprep.subr.bf16.mxu1 %v17052_v61  ;;  %v16931_v50 = vcombine.low %v2936_v29, %v2940_v23  ;;  %v16078_v61 = vcombine.high %v2081_v44, %v2085_v16  ;;  %v16206_v29 = vcombine.high %v2209_v53, %v2213_v24  ;;  %v2089_v23 = vld [vmem:[#allocation10 + $0x48] sm:$0xff] }
 0x290   : > { %v3068_v5 = vld [vmem:[#allocation10 + $0x1ee0] sm:$0xff]  ;;  %8491 = vmatpush1.bf16.msra.mxu0 %v16923_v37  ;;  %v2217_v37 = vld [vmem:[#allocation10 + $0x448] sm:$0xff] }
 0x291   : > { %v17060_v51 = vcombine.high %v3064_v58, %v3068_v5  ;;  %v2944_v59 = vld [vmem:[#allocation10 + $0x1b00] sm:$0xff]  ;;  %8492 = vmatprep.subr.bf16.mxu0 %v16932_v40  ;;  %v17059_v35 = vcombine.low %v3064_v58, %v3068_v5  ;;  %v2093_v58 = vld [vmem:[#allocation10 + $0x68] sm:$0xff]  ;;  %v19984_v5 = vpack.c.bf16 %v19957_v0, %v19957_v0  ;;  %v19988_v40 = vpack.c.bf16 %v19960_v57, %v19960_v57 }
 0x292   : > { %v2948_v34 = vld [vmem:[#allocation10 + $0x1b20] sm:$0xff]  ;;  %8532 = vmatpush1.bf16.msra.mxu1 %v17051_v36  ;;  %v2221_v36 = vld [vmem:[#allocation10 + $0x468] sm:$0xff] }
 0x293   : > { %v3072_v18 = vld [vmem:[#allocation10 + $0x1f00] sm:$0xff]  ;;  %v16940_v4 = vcombine.high %v2944_v59, %v2948_v34  ;;  %8533 = vmatprep.subr.bf16.mxu1 %v17060_v51  ;;  %v16939_v31 = vcombine.low %v2944_v59, %v2948_v34  ;;  %v16077_v51 = vcombine.low %v2081_v44, %v2085_v16  ;;  %v16205_v59 = vcombine.low %v2209_v53, %v2213_v24  ;;  %v2225_v0 = vld [vmem:[#allocation10 + $0x488] sm:$0xff] }
 0x294   : > { %v3076_v33 = vld [vmem:[#allocation10 + $0x1f20] sm:$0xff]  ;;  %8493 = vmatpush1.bf16.msra.mxu0 %v16931_v50  ;;  %v16086_v34 = vcombine.high %v2089_v23, %v2093_v58  ;;  %v2101_v50 = vld [vmem:[#allocation10 + $0xa8] sm:$0xff]  ;;  %v16213_v57 = vcombine.low %v2217_v37, %v2221_v36 }
 0x295   : > { %v17068_v41 = vcombine.high %v3072_v18, %v3076_v33  ;;  %v2952_v12 = vld [vmem:[#allocation10 + $0x1b40] sm:$0xff]  ;;  %8494 = vmatprep.subr.bf16.mxu0 %v16940_v4  ;;  %v17067_v63 = vcombine.low %v3072_v18, %v3076_v33  ;;  %v16214_v18 = vcombine.high %v2217_v37, %v2221_v36  ;;  %v2097_v33 = vld [vmem:[#allocation10 + $0x88] sm:$0xff]  ;;  %v16085_v4 = vcombine.low %v2089_v23, %v2093_v58 }
 0x296   : > { %v2956_v39 = vld [vmem:[#allocation10 + $0x1b60] sm:$0xff]  ;;  %8534 = vmatpush1.bf16.msra.mxu1 %v17059_v35  ;;  %v2229_v35 = vld [vmem:[#allocation10 + $0x4a8] sm:$0xff] }
 0x297   : > { %v3080_v46 = vld [vmem:[#allocation10 + $0x1f40] sm:$0xff]  ;;  %v16948_v52 = vcombine.high %v2952_v12, %v2956_v39  ;;  %8535 = vmatprep.subr.bf16.mxu1 %v17068_v41  ;;  %v16947_v48 = vcombine.low %v2952_v12, %v2956_v39  ;;  %v16094_v41 = vcombine.high %v2097_v33, %v2101_v50  ;;  %v16222_v12 = vcombine.high %v2225_v0, %v2229_v35  ;;  %v2105_v39 = vld [vmem:[#allocation10 + $0xc8] sm:$0xff] }
 0x298   : > { %v3084_v55 = vld [vmem:[#allocation10 + $0x1f60] sm:$0xff]  ;;  %8495 = vmatpush1.bf16.msra.mxu0 %v16939_v31  ;;  %v2237_v31 = vld [vmem:[#allocation10 + $0x4e8] sm:$0xff] }
 0x299   : > { %v17076_v56 = vcombine.high %v3080_v46, %v3084_v55  ;;  %v2960_v14 = vld [vmem:[#allocation10 + $0x1b80] sm:$0xff]  ;;  %8496 = vmatprep.subr.bf16.mxu0 %v16948_v52  ;;  %v17075_v2 = vcombine.low %v3080_v46, %v3084_v55  ;;  %v2109_v46 = vld [vmem:[#allocation10 + $0xe8] sm:$0xff]  ;;  %v16221_v52 = vcombine.low %v2225_v0, %v2229_v35 }
 0x29a   : > { %v2964_v1 = vld [vmem:[#allocation10 + $0x1ba0] sm:$0xff]  ;;  %8536 = vmatpush1.bf16.msra.mxu1 %v17067_v63  ;;  %v2233_v55 = vld [vmem:[#allocation10 + $0x4c8] sm:$0xff]  ;;  %v16093_v63 = vcombine.low %v2097_v33, %v2101_v50 }
 0x29b   : > { %v3088_v27 = vld [vmem:[#allocation10 + $0x1f80] sm:$0xff]  ;;  %v16956_v11 = vcombine.high %v2960_v14, %v2964_v1  ;;  %8537 = vmatprep.subr.bf16.mxu1 %v17076_v56  ;;  %v16955_v43 = vcombine.low %v2960_v14, %v2964_v1  ;;  %v16102_v56 = vcombine.high %v2105_v39, %v2109_v46  ;;  %v16230_v14 = vcombine.high %v2233_v55, %v2237_v31  ;;  %v2113_v1 = vld [vmem:[#allocation10 + $0x108] sm:$0xff] }
 0x29c   : > { %v3092_v13 = vld [vmem:[#allocation10 + $0x1fa0] sm:$0xff]  ;;  %8497 = vmatpush1.bf16.msra.mxu0 %v16947_v48  ;;  %v2245_v48 = vld [vmem:[#allocation10 + $0x528] sm:$0xff] }
 0x29d   : > { %v17084_v54 = vcombine.high %v3088_v27, %v3092_v13  ;;  %v2968_v10 = vld [vmem:[#allocation10 + $0x1bc0] sm:$0xff]  ;;  %8498 = vmatprep.subr.bf16.mxu0 %v16956_v11  ;;  %v17083_v45 = vcombine.low %v3088_v27, %v3092_v13  ;;  %v2117_v27 = vld [vmem:[#allocation10 + $0x128] sm:$0xff]  ;;  %v16229_v11 = vcombine.low %v2233_v55, %v2237_v31 }
 0x29e   : > { %v2972_v47 = vld [vmem:[#allocation10 + $0x1be0] sm:$0xff]  ;;  %8538 = vmatpush1.bf16.msra.mxu1 %v17075_v2  ;;  %v2241_v13 = vld [vmem:[#allocation10 + $0x508] sm:$0xff]  ;;  %v16101_v2 = vcombine.low %v2105_v39, %v2109_v46 }
 0x29f   : > { %v3096_v30 = vld [vmem:[#allocation10 + $0x1fc0] sm:$0xff]  ;;  %v16964_v19 = vcombine.high %v2968_v10, %v2972_v47  ;;  %8539 = vmatprep.subr.bf16.mxu1 %v17084_v54  ;;  %v16963_v42 = vcombine.low %v2968_v10, %v2972_v47  ;;  %v16110_v54 = vcombine.high %v2113_v1, %v2117_v27  ;;  %v16238_v10 = vcombine.high %v2241_v13, %v2245_v48  ;;  %v2121_v47 = vld [vmem:[#allocation10 + $0x148] sm:$0xff] }
 0x2a0   : > { %v3100_v15 = vld [vmem:[#allocation10 + $0x1fe0] sm:$0xff]  ;;  %8499 = vmatpush1.bf16.msra.mxu0 %v16955_v43  ;;  %v2253_v43 = vld [vmem:[#allocation10 + $0x568] sm:$0xff] }
 0x2a1   : > { %v17092_v20 = vcombine.high %v3096_v30, %v3100_v15  ;;  %8500 = vmatprep.subr.bf16.mxu0 %v16964_v19  ;;  %v17091_v17 = vcombine.low %v3096_v30, %v3100_v15  ;;  %v2125_v30 = vld [vmem:[#allocation10 + $0x168] sm:$0xff]  ;;  %v16237_v19 = vcombine.low %v2241_v13, %v2245_v48 }
 0x2a2   : > { %8540 = vmatpush1.bf16.msra.mxu1 %v17083_v45  ;;  %v2249_v15 = vld [vmem:[#allocation10 + $0x548] sm:$0xff]  ;;  %v16109_v45 = vcombine.low %v2113_v1, %v2117_v27 }
 0x2a3   : > { %8541 = vmatprep.subr.bf16.mxu1 %v17092_v20  ;;  %v16118_v20 = vcombine.high %v2121_v47, %v2125_v30  ;;  %v16246_v44 = vcombine.high %v2249_v15, %v2253_v43  ;;  %v2129_v16 = vld [vmem:[#allocation10 + $0x188] sm:$0xff] }
 0x2a4   : > { %8501 = vmatpush1.bf16.msra.mxu0 %v16963_v42  ;;  %v2133_v53 = vld [vmem:[#allocation10 + $0x1a8] sm:$0xff] }
 0x2a5   : > { %8552 = vmatprep.subr.bf16.mxu0 %v16078_v61  ;;  %v2257_v24 = vld [vmem:[#allocation10 + $0x588] sm:$0xff]  ;;  %v16245_v61 = vcombine.low %v2249_v15, %v2253_v43  ;;  %v16125_v35 = vcombine.low %v2129_v16, %v2133_v53 }
 0x2a6   : > { %8542 = vmatpush1.bf16.msra.mxu1 %v17091_v17  ;;  %v2261_v42 = vld [vmem:[#allocation10 + $0x5a8] sm:$0xff]  ;;  %v16117_v17 = vcombine.low %v2121_v47, %v2125_v30 }
 0x2a7   : > { %8593 = vmatprep.subr.bf16.mxu1 %v16206_v29  ;;  %8503 = vmatmul.mubr.bf16.vlgmr.msra.gmra.mrb[12].mxu0 %v19984_v5  ;;  %v16126_v29 = vcombine.high %v2129_v16, %v2133_v53  ;;  %v16254_v58 = vcombine.high %v2257_v24, %v2261_v42  ;;  %v2137_v37 = vld [vmem:[#allocation10 + $0x1c8] sm:$0xff] }
 0x2a8   : > { %8553 = vmatpush1.bf16.msra.mxu0 %v16077_v51  ;;  %8584 = vmatprep.mubr.bf16.mxu0 %v19896_v49  ;;  %v2141_v36 = vld [vmem:[#allocation10 + $0x1e8] sm:$0xff] }
 0x2a9   : > { %8544 = vmatmul.mubr.bf16.vlgmr.msra.gmra.mrb[12].mxu1 %v19988_v40  ;;  %8554 = vmatprep.subr.bf16.mxu0 %v16086_v34  ;;  %v2265_v34 = vld [vmem:[#allocation10 + $0x5c8] sm:$0xff]  ;;  %v16134_v39 = vcombine.high %v2137_v37, %v2141_v36 }
 0x2aa   : > { %8594 = vmatpush1.bf16.msra.mxu1 %v16205_v59  ;;  %8625 = vmatprep.mubr.bf16.mxu1 %v19901_v28  ;;  %v2145_v31 = vld [vmem:[#allocation10 + $0x208] sm:$0xff] }
 0x2ab   : > { %8595 = vmatprep.subr.bf16.mxu1 %v16214_v18  ;;  %v2269_v18 = vld [vmem:[#allocation10 + $0x5e8] sm:$0xff] }
 0x2ac   : > { %8555 = vmatpush1.bf16.msra.mxu0 %v16085_v4  ;;  %v16262_v55 = vcombine.high %v2265_v34, %v2269_v18  ;;  %v16261_v1 = vcombine.low %v2265_v34, %v2269_v18  ;;  %v2153_v48 = vld [vmem:[#allocation10 + $0x248] sm:$0xff] }
 0x2ad   : > { %8556 = vmatprep.subr.bf16.mxu0 %v16094_v41  ;;  %v2161_v43 = vld [vmem:[#allocation10 + $0x288] sm:$0xff] }
 0x2ae   : > { %8596 = vmatpush1.bf16.msra.mxu1 %v16213_v57  ;;  %v2305_v34 = vld [vmem:[#allocation10 + $0x708] sm:$0xff] }
 0x2af   : > { %8597 = vmatprep.subr.bf16.mxu1 %v16222_v12  ;;  %v16253_v12 = vcombine.low %v2257_v24, %v2261_v42  ;;  %v2169_v42 = vld [vmem:[#allocation10 + $0x2c8] sm:$0xff] }
 0x2b0   : > { %8557 = vmatpush1.bf16.msra.mxu0 %v16093_v63  ;;  %v2149_v63 = vld [vmem:[#allocation10 + $0x228] sm:$0xff] }
 0x2b1   : > { %8558 = vmatprep.subr.bf16.mxu0 %v16102_v56  ;;  %v2277_v56 = vld [vmem:[#allocation10 + $0x628] sm:$0xff]  ;;  %v16142_v27 = vcombine.high %v2145_v31, %v2149_v63 }
 0x2b2   : > { %8598 = vmatpush1.bf16.msra.mxu1 %v16221_v52  ;;  %v2273_v52 = vld [vmem:[#allocation10 + $0x608] sm:$0xff] }
 0x2b3   : > { %8599 = vmatprep.subr.bf16.mxu1 %v16230_v14  ;;  %v16133_v14 = vcombine.low %v2137_v37, %v2141_v36  ;;  %v16270_v13 = vcombine.high %v2273_v52, %v2277_v56  ;;  %v16269_v47 = vcombine.low %v2273_v52, %v2277_v56  ;;  %v2309_v18 = vld [vmem:[#allocation10 + $0x728] sm:$0xff] }
 0x2b4   : > { %8559 = vmatpush1.bf16.msra.mxu0 %v16101_v2  ;;  %v2157_v2 = vld [vmem:[#allocation10 + $0x268] sm:$0xff] }
 0x2b5   : > { %8560 = vmatprep.subr.bf16.mxu0 %v16110_v54  ;;  %v2285_v54 = vld [vmem:[#allocation10 + $0x668] sm:$0xff]  ;;  %v16150_v30 = vcombine.high %v2153_v48, %v2157_v2 }
 0x2b6   : > { %8600 = vmatpush1.bf16.msra.mxu1 %v16229_v11  ;;  %v2281_v11 = vld [vmem:[#allocation10 + $0x648] sm:$0xff] }
 0x2b7   : > { %8601 = vmatprep.subr.bf16.mxu1 %v16238_v10  ;;  %v16141_v10 = vcombine.low %v2145_v31, %v2149_v63  ;;  %v16278_v15 = vcombine.high %v2281_v11, %v2285_v54  ;;  %v16277_v16 = vcombine.low %v2281_v11, %v2285_v54  ;;  %v16301_v31 = vcombine.low %v2305_v34, %v2309_v18  ;;  %v2193_v56 = vld [vmem:[#allocation10 + $0x388] sm:$0xff] }
 0x2b8   : > { %8561 = vmatpush1.bf16.msra.mxu0 %v16109_v45  ;;  %v2165_v45 = vld [vmem:[#allocation10 + $0x2a8] sm:$0xff] }
 0x2b9   : > { %8562 = vmatprep.subr.bf16.mxu0 %v16118_v20  ;;  %v2293_v20 = vld [vmem:[#allocation10 + $0x6a8] sm:$0xff]  ;;  %v16158_v53 = vcombine.high %v2161_v43, %v2165_v45 }
 0x2ba   : > { %8602 = vmatpush1.bf16.msra.mxu1 %v16237_v19  ;;  %v8258_v23 = vpop.f32.mrb[0].mxu0  ;;  %v2289_v19 = vld [vmem:[#allocation10 + $0x688] sm:$0xff] }
 0x2bb   : > { %8603 = vmatprep.subr.bf16.mxu1 %v16246_v44  ;;  %v8260_v59 = vpop.f32.mrb[1].mxu0  ;;  %v16149_v44 = vcombine.low %v2153_v48, %v2157_v2  ;;  %v16286_v24 = vcombine.high %v2289_v19, %v2293_v20  ;;  %v2201_v54 = vld [vmem:[#allocation10 + $0x3c8] sm:$0xff] }
 0x2bc   : > { %v8299_v51 = vpop.f32.mrb[0].mxu1  ;;  %v8262_v0 = vpop.f32.mrb[2].mxu0  ;;  %8563 = vmatpush1.bf16.msra.mxu0 %v16117_v17  ;;  %v2173_v17 = vld [vmem:[#allocation10 + $0x2e8] sm:$0xff] }
 0x2bd   : > { %v19994_v33 = vadd.f32 %v8299_v51, %v8258_v23  ;;  %v8301_v50 = vpop.f32.mrb[1].mxu1  ;;  %v8263_v41 = vpop.f32.mrb[3].mxu0  ;;  %8564 = vmatprep.subr.bf16.mxu0 %v16126_v29  ;;  %v2301_v29 = vld [vmem:[#allocation10 + $0x6e8] sm:$0xff]  ;;  %v16157_v23 = vcombine.low %v2161_v43, %v2165_v45  ;;  %v16166_v37 = vcombine.high %v2169_v42, %v2173_v17 }
 0x2be   : > { %v19996_v4 = vadd.f32 %v8301_v50, %v8260_v59  ;;  %v8303_v57 = vpop.f32.mrb[2].mxu1  ;;  %8604 = vmatpush1.bf16.msra.mxu1 %v16245_v61  ;;  %v2297_v61 = vld [vmem:[#allocation10 + $0x6c8] sm:$0xff]  ;;  %v16165_v50 = vcombine.low %v2169_v42, %v2173_v17 }
 0x2bf   : > { %v8304_v46 = vpop.f32.mrb[3].mxu1  ;;  %8605 = vmatprep.subr.bf16.mxu1 %v16254_v58  ;;  %v16285_v58 = vcombine.low %v2289_v19, %v2293_v20  ;;  %v16294_v36 = vcombine.high %v2297_v61, %v2301_v29  ;;  %v2177_v51 = vld [vmem:[#allocation10 + $0x308] sm:$0xff]  ;;  %v16293_v0 = vcombine.low %v2297_v61, %v2301_v29  ;;  %v16302_v57 = vcombine.high %v2305_v34, %v2309_v18 }
 0x2c0   : > { %8565 = vmatpush1.bf16.msra.mxu0 %v16125_v35  ;;  %v2181_v59 = vld [vmem:[#allocation10 + $0x328] sm:$0xff] }
 0x2c1   : > { %8566 = vmatprep.subr.bf16.mxu0 %v16134_v39  ;;  %v16174_v35 = vcombine.high %v2177_v51, %v2181_v59  ;;  %v2185_v41 = vld [vmem:[#allocation10 + $0x348] sm:$0xff] }
 0x2c2   : > { %8606 = vmatpush1.bf16.msra.mxu1 %v16253_v12  ;;  %v2189_v12 = vld [vmem:[#allocation10 + $0x368] sm:$0xff] }
 0x2c3   : > { %8607 = vmatprep.subr.bf16.mxu1 %v16262_v55  ;;  %v2313_v39 = vld [vmem:[#allocation10 + $0x748] sm:$0xff]  ;;  %v16173_v55 = vcombine.low %v2177_v51, %v2181_v59  ;;  %v16182_v63 = vcombine.high %v2185_v41, %v2189_v12 }
 0x2c4   : > { %8567 = vmatpush1.bf16.msra.mxu0 %v16133_v14  ;;  %v2317_v46 = vld [vmem:[#allocation10 + $0x768] sm:$0xff] }
 0x2c5   : > { %8568 = vmatprep.subr.bf16.mxu0 %v16142_v27  ;;  %v16310_v52 = vcombine.high %v2313_v39, %v2317_v46  ;;  %v2197_v14 = vld [vmem:[#allocation10 + $0x3a8] sm:$0xff]  ;;  %v16309_v48 = vcombine.low %v2313_v39, %v2317_v46 }
 0x2c6   : > { %8608 = vmatpush1.bf16.msra.mxu1 %v16261_v1  ;;  %v2321_v1 = vld [vmem:[#allocation10 + $0x788] sm:$0xff]  ;;  %v16190_v2 = vcombine.high %v2193_v56, %v2197_v14 }
 0x2c7   : > { %8609 = vmatprep.subr.bf16.mxu1 %v16270_v13  ;;  %v2325_v27 = vld [vmem:[#allocation10 + $0x7a8] sm:$0xff]  ;;  %v16181_v13 = vcombine.low %v2185_v41, %v2189_v12 }
 0x2c8   : > { %8569 = vmatpush1.bf16.msra.mxu0 %v16141_v10  ;;  %v16318_v11 = vcombine.high %v2321_v1, %v2325_v27  ;;  %v2205_v10 = vld [vmem:[#allocation10 + $0x3e8] sm:$0xff]  ;;  %v16317_v43 = vcombine.low %v2321_v1, %v2325_v27 }
 0x2c9   : > { %8570 = vmatprep.subr.bf16.mxu0 %v16150_v30  ;;  %v2333_v30 = vld [vmem:[#allocation10 + $0x7e8] sm:$0xff]  ;;  %v16198_v45 = vcombine.high %v2201_v54, %v2205_v10 }
 0x2ca   : > { %8610 = vmatpush1.bf16.msra.mxu1 %v16269_v47  ;;  %v2329_v47 = vld [vmem:[#allocation10 + $0x7c8] sm:$0xff] }
 0x2cb   : > { %8611 = vmatprep.subr.bf16.mxu1 %v16278_v15  ;;  %v16189_v15 = vcombine.low %v2193_v56, %v2197_v14  ;;  %v16326_v19 = vcombine.high %v2329_v47, %v2333_v30  ;;  %v2337_v20 = vld [vmem:[#allocation10 + $0x808] sm:$0xff]  ;;  %v16325_v42 = vcombine.low %v2329_v47, %v2333_v30 }
 0x2cc   : > { %8571 = vmatpush1.bf16.msra.mxu0 %v16149_v44  ;;  %v2341_v44 = vld [vmem:[#allocation10 + $0x828] sm:$0xff] }
 0x2cd   : > { %8572 = vmatprep.subr.bf16.mxu0 %v16158_v53  ;;  %v2469_v53 = vld [vmem:[#allocation10 + $0xc28] sm:$0xff]  ;;  %v16334_v17 = vcombine.high %v2337_v20, %v2341_v44 }
 0x2ce   : > { %8612 = vmatpush1.bf16.msra.mxu1 %v16277_v16  ;;  %v2465_v16 = vld [vmem:[#allocation10 + $0xc08] sm:$0xff] }
 0x2cf   : > { %8613 = vmatprep.subr.bf16.mxu1 %v16286_v24  ;;  %v16197_v24 = vcombine.low %v2201_v54, %v2205_v10  ;;  %v16462_v61 = vcombine.high %v2465_v16, %v2469_v53  ;;  %v2345_v29 = vld [vmem:[#allocation10 + $0x848] sm:$0xff]  ;;  %v16461_v51 = vcombine.low %v2465_v16, %v2469_v53 }
 0x2d0   : > { %8573 = vmatpush1.bf16.msra.mxu0 %v16157_v23  ;;  %v2349_v23 = vld [vmem:[#allocation10 + $0x868] sm:$0xff] }
 0x2d1   : > { %8574 = vmatprep.subr.bf16.mxu0 %v16166_v37  ;;  %v2477_v37 = vld [vmem:[#allocation10 + $0xc68] sm:$0xff]  ;;  %v16342_v59 = vcombine.high %v2345_v29, %v2349_v23 }
 0x2d2   : > { %8614 = vmatpush1.bf16.msra.mxu1 %v16285_v58  ;;  %v2473_v58 = vld [vmem:[#allocation10 + $0xc48] sm:$0xff] }
 0x2d3   : > { %8615 = vmatprep.subr.bf16.mxu1 %v16294_v36  ;;  %v16333_v36 = vcombine.low %v2337_v20, %v2341_v44  ;;  %v16470_v34 = vcombine.high %v2473_v58, %v2477_v37  ;;  %v2353_v18 = vld [vmem:[#allocation10 + $0x888] sm:$0xff]  ;;  %v16469_v41 = vcombine.low %v2473_v58, %v2477_v37 }
 0x2d4   : > { %8575 = vmatpush1.bf16.msra.mxu0 %v16165_v50  ;;  %v2357_v50 = vld [vmem:[#allocation10 + $0x8a8] sm:$0xff] }
 0x2d5   : > { %8576 = vmatprep.subr.bf16.mxu0 %v16174_v35  ;;  %v2485_v35 = vld [vmem:[#allocation10 + $0xca8] sm:$0xff]  ;;  %v16350_v12 = vcombine.high %v2353_v18, %v2357_v50 }
 0x2d6   : > { %8616 = vmatpush1.bf16.msra.mxu1 %v16293_v0  ;;  %v2481_v0 = vld [vmem:[#allocation10 + $0xc88] sm:$0xff] }
 0x2d7   : > { %8617 = vmatprep.subr.bf16.mxu1 %v16302_v57  ;;  %v16341_v57 = vcombine.low %v2345_v29, %v2349_v23  ;;  %v16478_v39 = vcombine.high %v2481_v0, %v2485_v35  ;;  %v2361_v46 = vld [vmem:[#allocation10 + $0x8c8] sm:$0xff]  ;;  %v16477_v56 = vcombine.low %v2481_v0, %v2485_v35 }
 0x2d8   : > { %8577 = vmatpush1.bf16.msra.mxu0 %v16173_v55  ;;  %v2365_v55 = vld [vmem:[#allocation10 + $0x8e8] sm:$0xff] }
 0x2d9   : > { %8578 = vmatprep.subr.bf16.mxu0 %v16182_v63  ;;  %v2493_v63 = vld [vmem:[#allocation10 + $0xce8] sm:$0xff]  ;;  %v16358_v14 = vcombine.high %v2361_v46, %v2365_v55 }
 0x2da   : > { %8618 = vmatpush1.bf16.msra.mxu1 %v16301_v31  ;;  %v2489_v31 = vld [vmem:[#allocation10 + $0xcc8] sm:$0xff] }
 0x2db   : > { %8619 = vmatprep.subr.bf16.mxu1 %v16310_v52  ;;  %v16349_v52 = vcombine.low %v2353_v18, %v2357_v50  ;;  %v16486_v1 = vcombine.high %v2489_v31, %v2493_v63  ;;  %v2369_v27 = vld [vmem:[#allocation10 + $0x908] sm:$0xff]  ;;  %v16485_v54 = vcombine.low %v2489_v31, %v2493_v63 }
 0x2dc   : > { %8579 = vmatpush1.bf16.msra.mxu0 %v16181_v13  ;;  %v2373_v13 = vld [vmem:[#allocation10 + $0x928] sm:$0xff] }
 0x2dd   : > { %8580 = vmatprep.subr.bf16.mxu0 %v16190_v2  ;;  %v2501_v2 = vld [vmem:[#allocation10 + $0xd28] sm:$0xff]  ;;  %v16366_v10 = vcombine.high %v2369_v27, %v2373_v13 }
 0x2de   : > { %8620 = vmatpush1.bf16.msra.mxu1 %v16309_v48  ;;  %v2497_v48 = vld [vmem:[#allocation10 + $0xd08] sm:$0xff] }
 0x2df   : > { %8621 = vmatprep.subr.bf16.mxu1 %v16318_v11  ;;  %v16357_v11 = vcombine.low %v2361_v46, %v2365_v55  ;;  %v16494_v47 = vcombine.high %v2497_v48, %v2501_v2  ;;  %v2377_v30 = vld [vmem:[#allocation10 + $0x948] sm:$0xff]  ;;  %v16493_v20 = vcombine.low %v2497_v48, %v2501_v2 }
 0x2e0   : > { %8581 = vmatpush1.bf16.msra.mxu0 %v16189_v15  ;;  %v2381_v15 = vld [vmem:[#allocation10 + $0x968] sm:$0xff] }
 0x2e1   : > { %8582 = vmatprep.subr.bf16.mxu0 %v16198_v45  ;;  %v2509_v45 = vld [vmem:[#allocation10 + $0xd68] sm:$0xff]  ;;  %v16374_v44 = vcombine.high %v2377_v30, %v2381_v15 }
 0x2e2   : > { %8622 = vmatpush1.bf16.msra.mxu1 %v16317_v43  ;;  %v2505_v43 = vld [vmem:[#allocation10 + $0xd48] sm:$0xff] }
 0x2e3   : > { %8623 = vmatprep.subr.bf16.mxu1 %v16326_v19  ;;  %v16365_v19 = vcombine.low %v2369_v27, %v2373_v13  ;;  %v16502_v16 = vcombine.high %v2505_v43, %v2509_v45  ;;  %v2385_v53 = vld [vmem:[#allocation10 + $0x988] sm:$0xff]  ;;  %v16501_v29 = vcombine.low %v2505_v43, %v2509_v45 }
 0x2e4   : > { %8583 = vmatpush1.bf16.msra.mxu0 %v16197_v24  ;;  %v2389_v24 = vld [vmem:[#allocation10 + $0x9a8] sm:$0xff] }
 0x2e5   : > { %8634 = vmatprep.subr.bf16.mxu0 %v16334_v17  ;;  %v2517_v17 = vld [vmem:[#allocation10 + $0xda8] sm:$0xff]  ;;  %v16382_v23 = vcombine.high %v2385_v53, %v2389_v24 }
 0x2e6   : > { %8624 = vmatpush1.bf16.msra.mxu1 %v16325_v42  ;;  %v2513_v42 = vld [vmem:[#allocation10 + $0xd88] sm:$0xff] }
 0x2e7   : > { %8675 = vmatprep.subr.bf16.mxu1 %v16462_v61  ;;  %8585 = vmatmul.mubr.bf16.vlgmr.msra.gmra.mrb[16].mxu0 %v19914_v7  ;;  %v16373_v61 = vcombine.low %v2377_v30, %v2381_v15  ;;  %v16510_v37 = vcombine.high %v2513_v42, %v2517_v17  ;;  %v2521_v50 = vld [vmem:[#allocation10 + $0xdc8] sm:$0xff]  ;;  %v16509_v31 = vcombine.low %v2513_v42, %v2517_v17 }
 0x2e8   : > { %8635 = vmatpush1.bf16.msra.mxu0 %v16333_v36  ;;  %8666 = vmatprep.mubr.bf16.mxu0 %v19922_v8  ;;  %v2393_v36 = vld [vmem:[#allocation10 + $0x9c8] sm:$0xff] }
 0x2e9   : > { %8626 = vmatmul.mubr.bf16.vlgmr.msra.gmra.mrb[16].mxu1 %v19920_v38  ;;  %8636 = vmatprep.subr.bf16.mxu0 %v16342_v59  ;;  %v2525_v0 = vld [vmem:[#allocation10 + $0xde8] sm:$0xff] }
 0x2ea   : > { %8676 = vmatpush1.bf16.msra.mxu1 %v16461_v51  ;;  %8707 = vmatprep.mubr.bf16.mxu1 %v19925_v22  ;;  %v2397_v51 = vld [vmem:[#allocation10 + $0x9e8] sm:$0xff]  ;;  %v16517_v48 = vcombine.low %v2521_v50, %v2525_v0 }
 0x2eb   : > { %8677 = vmatprep.subr.bf16.mxu1 %v16470_v34  ;;  %v16390_v63 = vcombine.high %v2393_v36, %v2397_v51  ;;  %v2533_v27 = vld [vmem:[#allocation10 + $0xe28] sm:$0xff]  ;;  %v16389_v13 = vcombine.low %v2393_v36, %v2397_v51 }
 0x2ec   : > { %8637 = vmatpush1.bf16.msra.mxu0 %v16341_v57  ;;  %v2541_v30 = vld [vmem:[#allocation10 + $0xe68] sm:$0xff] }
 0x2ed   : > { %8638 = vmatprep.subr.bf16.mxu0 %v16350_v12  ;;  %v16381_v12 = vcombine.low %v2385_v53, %v2389_v24  ;;  %v2549_v53 = vld [vmem:[#allocation10 + $0xea8] sm:$0xff] }
 0x2ee   : > { %8678 = vmatpush1.bf16.msra.mxu1 %v16469_v41 }
 0x2ef   : > { %8679 = vmatprep.subr.bf16.mxu1 %v16478_v39 }
 0x2f0   : > { %8639 = vmatpush1.bf16.msra.mxu0 %v16349_v52 }
 0x2f1   : > { %8640 = vmatprep.subr.bf16.mxu0 %v16358_v14  ;;  %v2401_v14 = vld [vmem:[#allocation10 + $0xa08] sm:$0xff] }
 0x2f2   : > { %8680 = vmatpush1.bf16.msra.mxu1 %v16477_v56  ;;  %v16518_v56 = vcombine.high %v2521_v50, %v2525_v0  ;;  %v2437_v50 = vld [vmem:[#allocation10 + $0xb28] sm:$0xff] }
 0x2f3   : > { %8681 = vmatprep.subr.bf16.mxu1 %v16486_v1  ;;  %v2405_v1 = vld [vmem:[#allocation10 + $0xa28] sm:$0xff] }
 0x2f4   : > { %8641 = vmatpush1.bf16.msra.mxu0 %v16357_v11  ;;  %v16398_v2 = vcombine.high %v2401_v14, %v2405_v1  ;;  %v16397_v15 = vcombine.low %v2401_v14, %v2405_v1  ;;  %v2561_v0 = vld [vmem:[#allocation10 + $0xf08] sm:$0xff] }
 0x2f5   : > { %8642 = vmatprep.subr.bf16.mxu0 %v16366_v10  ;;  %v2413_v10 = vld [vmem:[#allocation10 + $0xa68] sm:$0xff] }
 0x2f6   : > { %8682 = vmatpush1.bf16.msra.mxu1 %v16485_v54  ;;  %v2409_v54 = vld [vmem:[#allocation10 + $0xa48] sm:$0xff] }
 0x2f7   : > { %8683 = vmatprep.subr.bf16.mxu1 %v16494_v47  ;;  %v2537_v47 = vld [vmem:[#allocation10 + $0xe48] sm:$0xff]  ;;  %v16406_v45 = vcombine.high %v2409_v54, %v2413_v10  ;;  %v16405_v24 = vcombine.low %v2409_v54, %v2413_v10 }
 0x2f8   : > { %8643 = vmatpush1.bf16.msra.mxu0 %v16365_v19  ;;  %v16534_v19 = vcombine.high %v2537_v47, %v2541_v30  ;;  %v16533_v42 = vcombine.low %v2537_v47, %v2541_v30  ;;  %v2457_v30 = vld [vmem:[#allocation10 + $0xbc8] sm:$0xff] }
 0x2f9   : > { %8644 = vmatprep.subr.bf16.mxu0 %v16374_v44  ;;  %v2421_v44 = vld [vmem:[#allocation10 + $0xaa8] sm:$0xff] }
 0x2fa   : > { %8684 = vmatpush1.bf16.msra.mxu1 %v16493_v20  ;;  %v8340_v58 = vpop.f32.mrb[4].mxu0  ;;  %v2417_v20 = vld [vmem:[#allocation10 + $0xa88] sm:$0xff] }
 0x2fb   : > { %8685 = vmatprep.subr.bf16.mxu1 %v16502_v16  ;;  %v8341_v59 = vadd.f32 %v8340_v58, %v19994_v33  ;;  %v8342_v18 = vpop.f32.mrb[5].mxu0  ;;  %v2545_v16 = vld [vmem:[#allocation10 + $0xe88] sm:$0xff]  ;;  %v16414_v17 = vcombine.high %v2417_v20, %v2421_v44  ;;  %v16413_v36 = vcombine.low %v2417_v20, %v2421_v44 }
 0x2fc   : > { %v8381_v34 = vpop.f32.mrb[4].mxu1  ;;  %v8343_v35 = vadd.f32 %v8342_v18, %v19996_v4  ;;  %v8344_v41 = vpop.f32.mrb[6].mxu0  ;;  %8645 = vmatpush1.bf16.msra.mxu0 %v16373_v61  ;;  %v2529_v4 = vld [vmem:[#allocation10 + $0xe08] sm:$0xff]  ;;  %v16542_v61 = vcombine.high %v2545_v16, %v2549_v53  ;;  %v16541_v51 = vcombine.low %v2545_v16, %v2549_v53 }
 0x2fd   : > { %v8383_v57 = vpop.f32.mrb[5].mxu1  ;;  %v20004_v39 = vadd.f32 %v8381_v34, %v8341_v59  ;;  %v8345_v55 = vpop.f32.mrb[7].mxu0  ;;  %8646 = vmatprep.subr.bf16.mxu0 %v16382_v23  ;;  %v16526_v11 = vcombine.high %v2529_v4, %v2533_v27  ;;  %v16525_v43 = vcombine.low %v2529_v4, %v2533_v27  ;;  %v2429_v23 = vld [vmem:[#allocation10 + $0xae8] sm:$0xff] }
 0x2fe   : > { %v8385_v46 = vpop.f32.mrb[6].mxu1  ;;  %8686 = vmatpush1.bf16.msra.mxu1 %v16501_v29  ;;  %v20006_v52 = vadd.f32 %v8383_v57, %v8343_v35  ;;  %v2425_v29 = vld [vmem:[#allocation10 + $0xac8] sm:$0xff] }
 0x2ff   : > { %v8386_v33 = vpop.f32.mrb[7].mxu1  ;;  %8687 = vmatprep.subr.bf16.mxu1 %v16510_v37  ;;  %v2553_v58 = vld [vmem:[#allocation10 + $0xec8] sm:$0xff]  ;;  %v16422_v59 = vcombine.high %v2425_v29, %v2429_v23  ;;  %v16421_v57 = vcombine.low %v2425_v29, %v2429_v23 }
 0x300   : > { %8647 = vmatpush1.bf16.msra.mxu0 %v16381_v12  ;;  %v2557_v37 = vld [vmem:[#allocation10 + $0xee8] sm:$0xff] }
 0x301   : > { %8648 = vmatprep.subr.bf16.mxu0 %v16390_v63  ;;  %v16550_v34 = vcombine.high %v2553_v58, %v2557_v37  ;;  %v2433_v18 = vld [vmem:[#allocation10 + $0xb08] sm:$0xff]  ;;  %v16549_v41 = vcombine.low %v2553_v58, %v2557_v37 }
 0x302   : > { %8688 = vmatpush1.bf16.msra.mxu1 %v16509_v31  ;;  %v2565_v35 = vld [vmem:[#allocation10 + $0xf28] sm:$0xff]  ;;  %v16430_v12 = vcombine.high %v2433_v18, %v2437_v50 }
 0x303   : > { %8689 = vmatprep.subr.bf16.mxu1 %v16518_v56  ;;  %v16558_v46 = vcombine.high %v2561_v0, %v2565_v35  ;;  %v2441_v55 = vld [vmem:[#allocation10 + $0xb48] sm:$0xff]  ;;  %v16429_v56 = vcombine.low %v2433_v18, %v2437_v50  ;;  %v16557_v14 = vcombine.low %v2561_v0, %v2565_v35 }
 0x304   : > { %8649 = vmatpush1.bf16.msra.mxu0 %v16389_v13  ;;  %v2445_v31 = vld [vmem:[#allocation10 + $0xb68] sm:$0xff] }
 0x305   : > { %8650 = vmatprep.subr.bf16.mxu0 %v16398_v2  ;;  %v2569_v63 = vld [vmem:[#allocation10 + $0xf48] sm:$0xff]  ;;  %v16438_v1 = vcombine.high %v2441_v55, %v2445_v31 }
 0x306   : > { %8690 = vmatpush1.bf16.msra.mxu1 %v16517_v48  ;;  %v2573_v33 = vld [vmem:[#allocation10 + $0xf68] sm:$0xff] }
 0x307   : > { %8691 = vmatprep.subr.bf16.mxu1 %v16526_v11  ;;  %v16566_v4 = vcombine.high %v2569_v63, %v2573_v33  ;;  %v2449_v27 = vld [vmem:[#allocation10 + $0xb88] sm:$0xff]  ;;  %v16437_v11 = vcombine.low %v2441_v55, %v2445_v31  ;;  %v16565_v54 = vcombine.low %v2569_v63, %v2573_v33 }
 0x308   : > { %8651 = vmatpush1.bf16.msra.mxu0 %v16397_v15  ;;  %v2453_v13 = vld [vmem:[#allocation10 + $0xba8] sm:$0xff] }
 0x309   : > { %8652 = vmatprep.subr.bf16.mxu0 %v16406_v45  ;;  %v2577_v48 = vld [vmem:[#allocation10 + $0xf88] sm:$0xff]  ;;  %v16446_v10 = vcombine.high %v2449_v27, %v2453_v13 }
 0x30a   : > { %8692 = vmatpush1.bf16.msra.mxu1 %v16525_v43  ;;  %v2581_v2 = vld [vmem:[#allocation10 + $0xfa8] sm:$0xff] }
 0x30b   : > { %8693 = vmatprep.subr.bf16.mxu1 %v16534_v19  ;;  %v16574_v47 = vcombine.high %v2577_v48, %v2581_v2  ;;  %v2461_v15 = vld [vmem:[#allocation10 + $0xbe8] sm:$0xff]  ;;  %v16445_v19 = vcombine.low %v2449_v27, %v2453_v13  ;;  %v16573_v20 = vcombine.low %v2577_v48, %v2581_v2 }
 0x30c   : > { %8653 = vmatpush1.bf16.msra.mxu0 %v16405_v24  ;;  %v2585_v43 = vld [vmem:[#allocation10 + $0xfc8] sm:$0xff]  ;;  %v16454_v44 = vcombine.high %v2457_v30, %v2461_v15 }
 0x30d   : > { %8654 = vmatprep.subr.bf16.mxu0 %v16414_v17  ;;  %v2589_v45 = vld [vmem:[#allocation10 + $0xfe8] sm:$0xff] }
 0x30e   : > { %8694 = vmatpush1.bf16.msra.mxu1 %v16533_v42  ;;  %v16582_v16 = vcombine.high %v2585_v43, %v2589_v45  ;;  %v2593_v53 = vld [vmem:[#allocation10 + $0x1008] sm:$0xff]  ;;  %v16581_v29 = vcombine.low %v2585_v43, %v2589_v45 }
 0x30f   : > { %8695 = vmatprep.subr.bf16.mxu1 %v16542_v61  ;;  %v2597_v24 = vld [vmem:[#allocation10 + $0x1028] sm:$0xff]  ;;  %v16453_v61 = vcombine.low %v2457_v30, %v2461_v15 }
 0x310   : > { %8655 = vmatpush1.bf16.msra.mxu0 %v16413_v36  ;;  %v2721_v42 = vld [vmem:[#allocation10 + $0x1408] sm:$0xff]  ;;  %v16590_v23 = vcombine.high %v2593_v53, %v2597_v24 }
 0x311   : > { %8656 = vmatprep.subr.bf16.mxu0 %v16422_v59  ;;  %v2725_v17 = vld [vmem:[#allocation10 + $0x1428] sm:$0xff] }
 0x312   : > { %8696 = vmatpush1.bf16.msra.mxu1 %v16541_v51  ;;  %v16718_v58 = vcombine.high %v2721_v42, %v2725_v17  ;;  %v2601_v37 = vld [vmem:[#allocation10 + $0x1048] sm:$0xff]  ;;  %v16717_v18 = vcombine.low %v2721_v42, %v2725_v17 }
 0x313   : > { %8697 = vmatprep.subr.bf16.mxu1 %v16550_v34  ;;  %v2605_v36 = vld [vmem:[#allocation10 + $0x1068] sm:$0xff]  ;;  %v16589_v34 = vcombine.low %v2593_v53, %v2597_v24 }
 0x314   : > { %8657 = vmatpush1.bf16.msra.mxu0 %v16421_v57  ;;  %v2729_v51 = vld [vmem:[#allocation10 + $0x1448] sm:$0xff]  ;;  %v16598_v50 = vcombine.high %v2601_v37, %v2605_v36 }
 0x315   : > { %8658 = vmatprep.subr.bf16.mxu0 %v16430_v12  ;;  %v2733_v59 = vld [vmem:[#allocation10 + $0x1468] sm:$0xff] }
 0x316   : > { %8698 = vmatpush1.bf16.msra.mxu1 %v16549_v41  ;;  %v16726_v0 = vcombine.high %v2729_v51, %v2733_v59  ;;  %v2609_v35 = vld [vmem:[#allocation10 + $0x1088] sm:$0xff]  ;;  %v16725_v55 = vcombine.low %v2729_v51, %v2733_v59 }
 0x317   : > { %8699 = vmatprep.subr.bf16.mxu1 %v16558_v46  ;;  %v2613_v57 = vld [vmem:[#allocation10 + $0x10a8] sm:$0xff]  ;;  %v16597_v46 = vcombine.low %v2601_v37, %v2605_v36 }
 0x318   : > { %8659 = vmatpush1.bf16.msra.mxu0 %v16429_v56  ;;  %v2737_v41 = vld [vmem:[#allocation10 + $0x1488] sm:$0xff]  ;;  %v16606_v31 = vcombine.high %v2609_v35, %v2613_v57 }
 0x319   : > { %8660 = vmatprep.subr.bf16.mxu0 %v16438_v1  ;;  %v2741_v12 = vld [vmem:[#allocation10 + $0x14a8] sm:$0xff] }
 0x31a   : > { %8700 = vmatpush1.bf16.msra.mxu1 %v16557_v14  ;;  %v16734_v63 = vcombine.high %v2737_v41, %v2741_v12  ;;  %v2617_v33 = vld [vmem:[#allocation10 + $0x10c8] sm:$0xff]  ;;  %v16733_v27 = vcombine.low %v2737_v41, %v2741_v12 }
 0x31b   : > { %8701 = vmatprep.subr.bf16.mxu1 %v16566_v4  ;;  %v2621_v56 = vld [vmem:[#allocation10 + $0x10e8] sm:$0xff]  ;;  %v16605_v4 = vcombine.low %v2609_v35, %v2613_v57 }
 0x31c   : > { %8661 = vmatpush1.bf16.msra.mxu0 %v16437_v11  ;;  %v2745_v14 = vld [vmem:[#allocation10 + $0x14c8] sm:$0xff]  ;;  %v16614_v13 = vcombine.high %v2617_v33, %v2621_v56 }
 0x31d   : > { %8662 = vmatprep.subr.bf16.mxu0 %v16446_v10  ;;  %v2749_v1 = vld [vmem:[#allocation10 + $0x14e8] sm:$0xff] }
 0x31e   : > { %8702 = vmatpush1.bf16.msra.mxu1 %v16565_v54  ;;  %v16742_v48 = vcombine.high %v2745_v14, %v2749_v1  ;;  %v2625_v2 = vld [vmem:[#allocation10 + $0x1108] sm:$0xff]  ;;  %v16741_v30 = vcombine.low %v2745_v14, %v2749_v1 }
 0x31f   : > { %8703 = vmatprep.subr.bf16.mxu1 %v16574_v47  ;;  %v2629_v11 = vld [vmem:[#allocation10 + $0x1128] sm:$0xff]  ;;  %v16613_v47 = vcombine.low %v2617_v33, %v2621_v56 }
 0x320   : > { %8663 = vmatpush1.bf16.msra.mxu0 %v16445_v19  ;;  %v2753_v54 = vld [vmem:[#allocation10 + $0x1508] sm:$0xff]  ;;  %v16622_v15 = vcombine.high %v2625_v2, %v2629_v11 }
 0x321   : > { %8664 = vmatprep.subr.bf16.mxu0 %v16454_v44  ;;  %v2757_v10 = vld [vmem:[#allocation10 + $0x1528] sm:$0xff] }
 0x322   : > { %8704 = vmatpush1.bf16.msra.mxu1 %v16573_v20  ;;  %v16750_v43 = vcombine.high %v2753_v54, %v2757_v10  ;;  %v2633_v45 = vld [vmem:[#allocation10 + $0x1148] sm:$0xff]  ;;  %v16749_v53 = vcombine.low %v2753_v54, %v2757_v10 }
 0x323   : > { %8705 = vmatprep.subr.bf16.mxu1 %v16582_v16  ;;  %v2637_v19 = vld [vmem:[#allocation10 + $0x1168] sm:$0xff]  ;;  %v16621_v16 = vcombine.low %v2625_v2, %v2629_v11 }
 0x324   : > { %8665 = vmatpush1.bf16.msra.mxu0 %v16453_v61  ;;  %v2761_v20 = vld [vmem:[#allocation10 + $0x1548] sm:$0xff]  ;;  %v16630_v24 = vcombine.high %v2633_v45, %v2637_v19 }
 0x325   : > { %8716 = vmatprep.subr.bf16.mxu0 %v16590_v23  ;;  %v2765_v44 = vld [vmem:[#allocation10 + $0x1568] sm:$0xff] }
 0x326   : > { %8706 = vmatpush1.bf16.msra.mxu1 %v16581_v29  ;;  %v16758_v42 = vcombine.high %v2761_v20, %v2765_v44  ;;  %v2641_v17 = vld [vmem:[#allocation10 + $0x1188] sm:$0xff]  ;;  %v16757_v37 = vcombine.low %v2761_v20, %v2765_v44 }
 0x327   : > { %8757 = vmatprep.subr.bf16.mxu1 %v16718_v58  ;;  %8667 = vmatmul.mubr.bf16.vlgmr.msra.gmra.mrb[20].mxu0 %v19940_v3  ;;  %v2645_v61 = vld [vmem:[#allocation10 + $0x11a8] sm:$0xff]  ;;  %v16629_v58 = vcombine.low %v2633_v45, %v2637_v19 }
 0x328   : > { %8717 = vmatpush1.bf16.msra.mxu0 %v16589_v34  ;;  %8748 = vmatprep.mubr.bf16.mxu0 %v19948_v21  ;;  %v2769_v29 = vld [vmem:[#allocation10 + $0x1588] sm:$0xff]  ;;  %v16638_v36 = vcombine.high %v2641_v17, %v2645_v61 }
 0x329   : > { %8708 = vmatmul.mubr.bf16.vlgmr.msra.gmra.mrb[20].mxu1 %v19946_v62  ;;  %8718 = vmatprep.subr.bf16.mxu0 %v16598_v50  ;;  %v2773_v23 = vld [vmem:[#allocation10 + $0x15a8] sm:$0xff] }
 0x32a   : > { %8758 = vmatpush1.bf16.msra.mxu1 %v16717_v18  ;;  %8789 = vmatprep.mubr.bf16.mxu1 %v19951_v60  ;;  %v16766_v59 = vcombine.high %v2769_v29, %v2773_v23  ;;  %v2649_v34 = vld [vmem:[#allocation10 + $0x11c8] sm:$0xff]  ;;  %v16765_v14 = vcombine.low %v2769_v29, %v2773_v23 }
 0x32b   : > { %8759 = vmatprep.subr.bf16.mxu1 %v16726_v0  ;;  %v2653_v18 = vld [vmem:[#allocation10 + $0x11e8] sm:$0xff] }
 0x32c   : > { %8719 = vmatpush1.bf16.msra.mxu0 %v16597_v46  ;;  %v2777_v57 = vld [vmem:[#allocation10 + $0x15c8] sm:$0xff]  ;;  %v16646_v1 = vcombine.high %v2649_v34, %v2653_v18  ;;  %v16645_v11 = vcombine.low %v2649_v34, %v2653_v18 }
 0x32d   : > { %8720 = vmatprep.subr.bf16.mxu0 %v16606_v31  ;;  %v2781_v41 = vld [vmem:[#allocation10 + $0x15e8] sm:$0xff]  ;;  %v16637_v31 = vcombine.low %v2641_v17, %v2645_v61 }
 0x32e   : > { %8760 = vmatpush1.bf16.msra.mxu1 %v16725_v55  ;;  %v2789_v2 = vld [vmem:[#allocation10 + $0x1628] sm:$0xff]  ;;  %v16773_v54 = vcombine.low %v2777_v57, %v2781_v41 }
 0x32f   : > { %8761 = vmatprep.subr.bf16.mxu1 %v16734_v63  ;;  %v2797_v45 = vld [vmem:[#allocation10 + $0x1668] sm:$0xff] }
 0x330   : > { %8721 = vmatpush1.bf16.msra.mxu0 %v16605_v4  ;;  %v2805_v17 = vld [vmem:[#allocation10 + $0x16a8] sm:$0xff] }
 0x331   : > { %8722 = vmatprep.subr.bf16.mxu0 %v16614_v13  ;;  %v2657_v13 = vld [vmem:[#allocation10 + $0x1208] sm:$0xff] }
 0x332   : > { %8762 = vmatpush1.bf16.msra.mxu1 %v16733_v27  ;;  %v16774_v27 = vcombine.high %v2777_v57, %v2781_v41  ;;  %v2693_v57 = vld [vmem:[#allocation10 + $0x1328] sm:$0xff] }
 0x333   : > { %8763 = vmatprep.subr.bf16.mxu1 %v16742_v48  ;;  %v2661_v48 = vld [vmem:[#allocation10 + $0x1228] sm:$0xff] }
 0x334   : > { %8723 = vmatpush1.bf16.msra.mxu0 %v16613_v47  ;;  %v16654_v10 = vcombine.high %v2657_v13, %v2661_v48  ;;  %v16653_v19 = vcombine.low %v2657_v13, %v2661_v48  ;;  %v2817_v41 = vld [vmem:[#allocation10 + $0x1708] sm:$0xff] }
 0x335   : > { %8724 = vmatprep.subr.bf16.mxu0 %v16622_v15  ;;  %v2669_v15 = vld [vmem:[#allocation10 + $0x1268] sm:$0xff] }
 0x336   : > { %8764 = vmatpush1.bf16.msra.mxu1 %v16741_v30  ;;  %v2665_v30 = vld [vmem:[#allocation10 + $0x1248] sm:$0xff] }
 0x337   : > { %8765 = vmatprep.subr.bf16.mxu1 %v16750_v43  ;;  %v2793_v43 = vld [vmem:[#allocation10 + $0x1648] sm:$0xff]  ;;  %v16662_v44 = vcombine.high %v2665_v30, %v2669_v15  ;;  %v16661_v61 = vcombine.low %v2665_v30, %v2669_v15 }
 0x338   : > { %8725 = vmatpush1.bf16.msra.mxu0 %v16621_v16  ;;  %v16790_v16 = vcombine.high %v2793_v43, %v2797_v45  ;;  %v16789_v29 = vcombine.low %v2793_v43, %v2797_v45  ;;  %v2713_v45 = vld [vmem:[#allocation10 + $0x13c8] sm:$0xff] }
 0x339   : > { %8726 = vmatprep.subr.bf16.mxu0 %v16630_v24  ;;  %v2677_v24 = vld [vmem:[#allocation10 + $0x12a8] sm:$0xff] }
 0x33a   : > { %8766 = vmatpush1.bf16.msra.mxu1 %v16749_v53  ;;  %v8422_v51 = vpop.f32.mrb[8].mxu0  ;;  %v2673_v53 = vld [vmem:[#allocation10 + $0x1288] sm:$0xff] }
 0x33b   : > { %8767 = vmatprep.subr.bf16.mxu1 %v16758_v42  ;;  %v8423_v50 = vadd.f32 %v8422_v51, %v20004_v39  ;;  %v8424_v35 = vpop.f32.mrb[9].mxu0  ;;  %v2801_v42 = vld [vmem:[#allocation10 + $0x1688] sm:$0xff]  ;;  %v16670_v23 = vcombine.high %v2673_v53, %v2677_v24  ;;  %v16669_v34 = vcombine.low %v2673_v53, %v2677_v24 }
 0x33c   : > { %v8463_v0 = vpop.f32.mrb[8].mxu1  ;;  %v8425_v12 = vadd.f32 %v8424_v35, %v20006_v52  ;;  %v8426_v55 = vpop.f32.mrb[10].mxu0  ;;  %8727 = vmatpush1.bf16.msra.mxu0 %v16629_v58  ;;  %v2785_v52 = vld [vmem:[#allocation10 + $0x1608] sm:$0xff]  ;;  %v16798_v58 = vcombine.high %v2801_v42, %v2805_v17  ;;  %v16797_v18 = vcombine.low %v2801_v42, %v2805_v17 }
 0x33d   : > { %v8465_v46 = vpop.f32.mrb[9].mxu1  ;;  %v20014_v63 = vadd.f32 %v8463_v0, %v8423_v50  ;;  %v8427_v56 = vpop.f32.mrb[11].mxu0  ;;  %8728 = vmatprep.subr.bf16.mxu0 %v16638_v36  ;;  %v16782_v47 = vcombine.high %v2785_v52, %v2789_v2  ;;  %v16781_v20 = vcombine.low %v2785_v52, %v2789_v2  ;;  %v2685_v36 = vld [vmem:[#allocation10 + $0x12e8] sm:$0xff] }
 0x33e   : > { %v8467_v33 = vpop.f32.mrb[10].mxu1  ;;  %8768 = vmatpush1.bf16.msra.mxu1 %v16757_v37  ;;  %v20016_v4 = vadd.f32 %v8465_v46, %v8425_v12  ;;  %v2681_v37 = vld [vmem:[#allocation10 + $0x12c8] sm:$0xff] }
 0x33f   : > { %v8468_v39 = vpop.f32.mrb[11].mxu1  ;;  %8769 = vmatprep.subr.bf16.mxu1 %v16766_v59  ;;  %v2809_v51 = vld [vmem:[#allocation10 + $0x16c8] sm:$0xff]  ;;  %v16678_v50 = vcombine.high %v2681_v37, %v2685_v36  ;;  %v16677_v46 = vcombine.low %v2681_v37, %v2685_v36 }
 0x340   : > { %8729 = vmatpush1.bf16.msra.mxu0 %v16637_v31  ;;  %v2813_v59 = vld [vmem:[#allocation10 + $0x16e8] sm:$0xff] }
 0x341   : > { %8730 = vmatprep.subr.bf16.mxu0 %v16646_v1  ;;  %v16806_v0 = vcombine.high %v2809_v51, %v2813_v59  ;;  %v2689_v35 = vld [vmem:[#allocation10 + $0x1308] sm:$0xff]  ;;  %v16805_v55 = vcombine.low %v2809_v51, %v2813_v59 }
 0x342   : > { %8770 = vmatpush1.bf16.msra.mxu1 %v16765_v14  ;;  %v2821_v12 = vld [vmem:[#allocation10 + $0x1728] sm:$0xff]  ;;  %v16686_v31 = vcombine.high %v2689_v35, %v2693_v57 }
 0x343   : > { %8771 = vmatprep.subr.bf16.mxu1 %v16774_v27  ;;  %v16814_v33 = vcombine.high %v2817_v41, %v2821_v12  ;;  %v2697_v56 = vld [vmem:[#allocation10 + $0x1348] sm:$0xff]  ;;  %v16685_v27 = vcombine.low %v2689_v35, %v2693_v57  ;;  %v16813_v13 = vcombine.low %v2817_v41, %v2821_v12 }
 0x344   : > { %8731 = vmatpush1.bf16.msra.mxu0 %v16645_v11  ;;  %v2701_v14 = vld [vmem:[#allocation10 + $0x1368] sm:$0xff] }
 0x345   : > { %8732 = vmatprep.subr.bf16.mxu0 %v16654_v10  ;;  %v2825_v1 = vld [vmem:[#allocation10 + $0x1748] sm:$0xff]  ;;  %v16694_v48 = vcombine.high %v2697_v56, %v2701_v14 }
 0x346   : > { %8772 = vmatpush1.bf16.msra.mxu1 %v16773_v54  ;;  %v2829_v39 = vld [vmem:[#allocation10 + $0x1768] sm:$0xff] }
 0x347   : > { %8773 = vmatprep.subr.bf16.mxu1 %v16782_v47  ;;  %v16822_v52 = vcombine.high %v2825_v1, %v2829_v39  ;;  %v2705_v2 = vld [vmem:[#allocation10 + $0x1388] sm:$0xff]  ;;  %v16693_v47 = vcombine.low %v2697_v56, %v2701_v14  ;;  %v16821_v30 = vcombine.low %v2825_v1, %v2829_v39 }
 0x348   : > { %8733 = vmatpush1.bf16.msra.mxu0 %v16653_v19  ;;  %v2709_v11 = vld [vmem:[#allocation10 + $0x13a8] sm:$0xff] }
 0x349   : > { %8734 = vmatprep.subr.bf16.mxu0 %v16662_v44  ;;  %v2833_v54 = vld [vmem:[#allocation10 + $0x1788] sm:$0xff]  ;;  %v16702_v15 = vcombine.high %v2705_v2, %v2709_v11 }
 0x34a   : > { %8774 = vmatpush1.bf16.msra.mxu1 %v16781_v20  ;;  %v2837_v10 = vld [vmem:[#allocation10 + $0x17a8] sm:$0xff] }
 0x34b   : > { %8775 = vmatprep.subr.bf16.mxu1 %v16790_v16  ;;  %v16830_v43 = vcombine.high %v2833_v54, %v2837_v10  ;;  %v2717_v19 = vld [vmem:[#allocation10 + $0x13e8] sm:$0xff]  ;;  %v16701_v16 = vcombine.low %v2705_v2, %v2709_v11  ;;  %v16829_v53 = vcombine.low %v2833_v54, %v2837_v10 }
 0x34c   : > { %8735 = vmatpush1.bf16.msra.mxu0 %v16661_v61  ;;  %v2841_v20 = vld [vmem:[#allocation10 + $0x17c8] sm:$0xff]  ;;  %v16710_v24 = vcombine.high %v2713_v45, %v2717_v19 }
 0x34d   : > { %8736 = vmatprep.subr.bf16.mxu0 %v16670_v23  ;;  %v2845_v44 = vld [vmem:[#allocation10 + $0x17e8] sm:$0xff] }
 0x34e   : > { %8776 = vmatpush1.bf16.msra.mxu1 %v16789_v29  ;;  %v16838_v42 = vcombine.high %v2841_v20, %v2845_v44  ;;  %v2849_v17 = vld [vmem:[#allocation10 + $0x1808] sm:$0xff]  ;;  %v16837_v37 = vcombine.low %v2841_v20, %v2845_v44 }
 0x34f   : > { %8777 = vmatprep.subr.bf16.mxu1 %v16798_v58  ;;  %v2853_v61 = vld [vmem:[#allocation10 + $0x1828] sm:$0xff]  ;;  %v16709_v58 = vcombine.low %v2713_v45, %v2717_v19 }
 0x350   : > { %8737 = vmatpush1.bf16.msra.mxu0 %v16669_v34  ;;  %v2977_v29 = vld [vmem:[#allocation10 + $0x1c08] sm:$0xff]  ;;  %v16846_v36 = vcombine.high %v2849_v17, %v2853_v61 }
 0x351   : > { %8738 = vmatprep.subr.bf16.mxu0 %v16678_v50  ;;  %v2981_v23 = vld [vmem:[#allocation10 + $0x1c28] sm:$0xff] }
 0x352   : > { %8778 = vmatpush1.bf16.msra.mxu1 %v16797_v18  ;;  %v16974_v51 = vcombine.high %v2977_v29, %v2981_v23  ;;  %v2857_v59 = vld [vmem:[#allocation10 + $0x1848] sm:$0xff]  ;;  %v16973_v35 = vcombine.low %v2977_v29, %v2981_v23 }
 0x353   : > { %8779 = vmatprep.subr.bf16.mxu1 %v16806_v0  ;;  %v2861_v34 = vld [vmem:[#allocation10 + $0x1868] sm:$0xff]  ;;  %v16845_v0 = vcombine.low %v2849_v17, %v2853_v61 }
 0x354   : > { %8739 = vmatpush1.bf16.msra.mxu0 %v16677_v46  ;;  %v2985_v18 = vld [vmem:[#allocation10 + $0x1c48] sm:$0xff]  ;;  %v16854_v57 = vcombine.high %v2857_v59, %v2861_v34 }
 0x355   : > { %8740 = vmatprep.subr.bf16.mxu0 %v16686_v31  ;;  %v2989_v50 = vld [vmem:[#allocation10 + $0x1c68] sm:$0xff] }
 0x356   : > { %8780 = vmatpush1.bf16.msra.mxu1 %v16805_v55  ;;  %v16982_v41 = vcombine.high %v2985_v18, %v2989_v50  ;;  %v2865_v12 = vld [vmem:[#allocation10 + $0x1888] sm:$0xff]  ;;  %v16981_v56 = vcombine.low %v2985_v18, %v2989_v50 }
 0x357   : > { %8781 = vmatprep.subr.bf16.mxu1 %v16814_v33  ;;  %v2869_v46 = vld [vmem:[#allocation10 + $0x18a8] sm:$0xff]  ;;  %v16853_v33 = vcombine.low %v2857_v59, %v2861_v34 }
 0x358   : > { %8741 = vmatpush1.bf16.msra.mxu0 %v16685_v27  ;;  %v2993_v55 = vld [vmem:[#allocation10 + $0x1c88] sm:$0xff]  ;;  %v16862_v14 = vcombine.high %v2865_v12, %v2869_v46 }
 0x359   : > { %8742 = vmatprep.subr.bf16.mxu0 %v16694_v48  ;;  %v2997_v31 = vld [vmem:[#allocation10 + $0x1ca8] sm:$0xff] }
 0x35a   : > { %8782 = vmatpush1.bf16.msra.mxu1 %v16813_v13  ;;  %v16990_v1 = vcombine.high %v2993_v55, %v2997_v31  ;;  %v2873_v39 = vld [vmem:[#allocation10 + $0x18c8] sm:$0xff]  ;;  %v16989_v2 = vcombine.low %v2993_v55, %v2997_v31 }
 0x35b   : > { %8783 = vmatprep.subr.bf16.mxu1 %v16822_v52  ;;  %v2877_v27 = vld [vmem:[#allocation10 + $0x18e8] sm:$0xff]  ;;  %v16861_v52 = vcombine.low %v2865_v12, %v2869_v46 }
 0x35c   : > { %8743 = vmatpush1.bf16.msra.mxu0 %v16693_v47  ;;  %v3001_v13 = vld [vmem:[#allocation10 + $0x1cc8] sm:$0xff]  ;;  %v16870_v11 = vcombine.high %v2873_v39, %v2877_v27 }
 0x35d   : > { %8744 = vmatprep.subr.bf16.mxu0 %v16702_v15  ;;  %v3005_v48 = vld [vmem:[#allocation10 + $0x1ce8] sm:$0xff] }
 0x35e   : > { %8784 = vmatpush1.bf16.msra.mxu1 %v16821_v30  ;;  %v16998_v54 = vcombine.high %v3001_v13, %v3005_v48  ;;  %v2881_v10 = vld [vmem:[#allocation10 + $0x1908] sm:$0xff]  ;;  %v16997_v45 = vcombine.low %v3001_v13, %v3005_v48 }
 0x35f   : > { %8785 = vmatprep.subr.bf16.mxu1 %v16830_v43  ;;  %v2885_v47 = vld [vmem:[#allocation10 + $0x1928] sm:$0xff]  ;;  %v16869_v43 = vcombine.low %v2873_v39, %v2877_v27 }
 0x360   : > { %8745 = vmatpush1.bf16.msra.mxu0 %v16701_v16  ;;  %v3009_v30 = vld [vmem:[#allocation10 + $0x1d08] sm:$0xff]  ;;  %v16878_v19 = vcombine.high %v2881_v10, %v2885_v47 }
 0x361   : > { %8746 = vmatprep.subr.bf16.mxu0 %v16710_v24  ;;  %v3013_v15 = vld [vmem:[#allocation10 + $0x1d28] sm:$0xff] }
 0x362   : > { %8786 = vmatpush1.bf16.msra.mxu1 %v16829_v53  ;;  %v17006_v20 = vcombine.high %v3009_v30, %v3013_v15  ;;  %v2889_v44 = vld [vmem:[#allocation10 + $0x1948] sm:$0xff]  ;;  %v17005_v17 = vcombine.low %v3009_v30, %v3013_v15 }
 0x363   : > { %8787 = vmatprep.subr.bf16.mxu1 %v16838_v42  ;;  %v2893_v16 = vld [vmem:[#allocation10 + $0x1968] sm:$0xff]  ;;  %v16877_v42 = vcombine.low %v2881_v10, %v2885_v47 }
 0x364   : > { %8747 = vmatpush1.bf16.msra.mxu0 %v16709_v58  ;;  %v3017_v53 = vld [vmem:[#allocation10 + $0x1d48] sm:$0xff]  ;;  %v16886_v61 = vcombine.high %v2889_v44, %v2893_v16 }
 0x365   : > { %8798 = vmatprep.subr.bf16.mxu0 %v16846_v36  ;;  %v3021_v24 = vld [vmem:[#allocation10 + $0x1d68] sm:$0xff] }
 0x366   : > { %8788 = vmatpush1.bf16.msra.mxu1 %v16837_v37  ;;  %v17014_v29 = vcombine.high %v3017_v53, %v3021_v24  ;;  %v2897_v23 = vld [vmem:[#allocation10 + $0x1988] sm:$0xff]  ;;  %v17013_v59 = vcombine.low %v3017_v53, %v3021_v24 }
 0x367   : > { %8839 = vmatprep.subr.bf16.mxu1 %v16974_v51  ;;  %8749 = vmatmul.mubr.bf16.vlgmr.msra.gmra.mrb[24].mxu0 %v19966_v32  ;;  %v2901_v58 = vld [vmem:[#allocation10 + $0x19a8] sm:$0xff]  ;;  %v16885_v51 = vcombine.low %v2889_v44, %v2893_v16 }
 0x368   : > { %8799 = vmatpush1.bf16.msra.mxu0 %v16845_v0  ;;  %8830 = vmatprep.mubr.bf16.mxu0 %v19974_v26  ;;  %v3025_v37 = vld [vmem:[#allocation10 + $0x1d88] sm:$0xff]  ;;  %v16894_v34 = vcombine.high %v2897_v23, %v2901_v58 }
 0x369   : > { %8790 = vmatmul.mubr.bf16.vlgmr.msra.gmra.mrb[24].mxu1 %v19972_v25  ;;  %8800 = vmatprep.subr.bf16.mxu0 %v16854_v57  ;;  %v3029_v36 = vld [vmem:[#allocation10 + $0x1da8] sm:$0xff] }
 0x36a   : > { %8840 = vmatpush1.bf16.msra.mxu1 %v16973_v35  ;;  %8871 = vmatprep.mubr.bf16.mxu1 %v19977_v6  ;;  %v17022_v50 = vcombine.high %v3025_v37, %v3029_v36  ;;  %v2905_v0 = vld [vmem:[#allocation10 + $0x19c8] sm:$0xff]  ;;  %v17021_v13 = vcombine.low %v3025_v37, %v3029_v36 }
 0x36b   : > { %8841 = vmatprep.subr.bf16.mxu1 %v16982_v41  ;;  %v2909_v35 = vld [vmem:[#allocation10 + $0x19e8] sm:$0xff] }
 0x36c   : > { %8801 = vmatpush1.bf16.msra.mxu0 %v16853_v33  ;;  %v3033_v46 = vld [vmem:[#allocation10 + $0x1dc8] sm:$0xff]  ;;  %v16902_v48 = vcombine.high %v2905_v0, %v2909_v35  ;;  %v16901_v47 = vcombine.low %v2905_v0, %v2909_v35 }
 0x36d   : > { %8802 = vmatprep.subr.bf16.mxu0 %v16862_v14  ;;  %v3037_v55 = vld [vmem:[#allocation10 + $0x1de8] sm:$0xff]  ;;  %v16893_v14 = vcombine.low %v2897_v23, %v2901_v58 }
 0x36e   : > { %8842 = vmatpush1.bf16.msra.mxu1 %v16981_v56  ;;  %v3045_v10 = vld [vmem:[#allocation10 + $0x1e28] sm:$0xff]  ;;  %v17029_v30 = vcombine.low %v3033_v46, %v3037_v55 }
 0x36f   : > { %8843 = vmatprep.subr.bf16.mxu1 %v16990_v1  ;;  %v3053_v44 = vld [vmem:[#allocation10 + $0x1e68] sm:$0xff] }
 0x370   : > { %8803 = vmatpush1.bf16.msra.mxu0 %v16861_v52  ;;  %v3061_v23 = vld [vmem:[#allocation10 + $0x1ea8] sm:$0xff] }
 0x371   : > { %8804 = vmatprep.subr.bf16.mxu0 %v16870_v11  ;;  %v2913_v11 = vld [vmem:[#allocation10 + $0x1a08] sm:$0xff] }
 0x372   : > { %8844 = vmatpush1.bf16.msra.mxu1 %v16989_v2  ;;  %v17030_v2 = vcombine.high %v3033_v46, %v3037_v55  ;;  %v2949_v46 = vld [vmem:[#allocation10 + $0x1b28] sm:$0xff] }
 0x373   : > { %8845 = vmatprep.subr.bf16.mxu1 %v16998_v54  ;;  %v2917_v54 = vld [vmem:[#allocation10 + $0x1a28] sm:$0xff] }
 0x374   : > { %8805 = vmatpush1.bf16.msra.mxu0 %v16869_v43  ;;  %v16910_v15 = vcombine.high %v2913_v11, %v2917_v54  ;;  %v16909_v16 = vcombine.low %v2913_v11, %v2917_v54  ;;  %v3073_v55 = vld [vmem:[#allocation10 + $0x1f08] sm:$0xff] }
 0x375   : > { %8806 = vmatprep.subr.bf16.mxu0 %v16878_v19  ;;  %v2925_v19 = vld [vmem:[#allocation10 + $0x1a68] sm:$0xff] }
 0x376   : > { %8846 = vmatpush1.bf16.msra.mxu1 %v16997_v45  ;;  %v2921_v45 = vld [vmem:[#allocation10 + $0x1a48] sm:$0xff] }
 0x377   : > { %8847 = vmatprep.subr.bf16.mxu1 %v17006_v20  ;;  %v3049_v20 = vld [vmem:[#allocation10 + $0x1e48] sm:$0xff]  ;;  %v16918_v24 = vcombine.high %v2921_v45, %v2925_v19  ;;  %v16917_v58 = vcombine.low %v2921_v45, %v2925_v19 }
 0x378   : > { %8807 = vmatpush1.bf16.msra.mxu0 %v16877_v42  ;;  %v17046_v42 = vcombine.high %v3049_v20, %v3053_v44  ;;  %v17045_v37 = vcombine.low %v3049_v20, %v3053_v44  ;;  %v2969_v44 = vld [vmem:[#allocation10 + $0x1bc8] sm:$0xff] }
 0x379   : > { %8808 = vmatprep.subr.bf16.mxu0 %v16886_v61  ;;  %v2933_v61 = vld [vmem:[#allocation10 + $0x1aa8] sm:$0xff] }
 0x37a   : > { %8848 = vmatpush1.bf16.msra.mxu1 %v17005_v17  ;;  %v8504_v18 = vpop.f32.mrb[12].mxu0  ;;  %v2929_v17 = vld [vmem:[#allocation10 + $0x1a88] sm:$0xff] }
 0x37b   : > { %8849 = vmatprep.subr.bf16.mxu1 %v17014_v29  ;;  %v8505_v57 = vadd.f32 %v8504_v18, %v20014_v63  ;;  %v8506_v12 = vpop.f32.mrb[13].mxu0  ;;  %v3057_v29 = vld [vmem:[#allocation10 + $0x1e88] sm:$0xff]  ;;  %v16926_v36 = vcombine.high %v2929_v17, %v2933_v61  ;;  %v16925_v0 = vcombine.low %v2929_v17, %v2933_v61 }
 0x37c   : > { %v8545_v41 = vpop.f32.mrb[12].mxu1  ;;  %v8507_v31 = vadd.f32 %v8506_v12, %v20016_v4  ;;  %v8508_v56 = vpop.f32.mrb[14].mxu0  ;;  %8809 = vmatpush1.bf16.msra.mxu0 %v16885_v51  ;;  %v3041_v4 = vld [vmem:[#allocation10 + $0x1e08] sm:$0xff]  ;;  %v17054_v51 = vcombine.high %v3057_v29, %v3061_v23  ;;  %v17053_v35 = vcombine.low %v3057_v29, %v3061_v23  ;;  %v2082_v23 = vld [vmem:[#allocation10 + $0x10] sm:$0xff] }
 0x37d   : > { %v8547_v33 = vpop.f32.mrb[13].mxu1  ;;  %v20024_v1 = vadd.f32 %v8545_v41, %v8505_v57  ;;  %v8509_v27 = vpop.f32.mrb[15].mxu0  ;;  %8810 = vmatprep.subr.bf16.mxu0 %v16894_v34  ;;  %v17038_v43 = vcombine.high %v3041_v4, %v3045_v10  ;;  %v17037_v53 = vcombine.low %v3041_v4, %v3045_v10  ;;  %v2941_v34 = vld [vmem:[#allocation10 + $0x1ae8] sm:$0xff] }
 0x37e   : > { %v8549_v39 = vpop.f32.mrb[14].mxu1  ;;  %8850 = vmatpush1.bf16.msra.mxu1 %v17013_v59  ;;  %v20026_v52 = vadd.f32 %v8547_v33, %v8507_v31  ;;  %v2937_v59 = vld [vmem:[#allocation10 + $0x1ac8] sm:$0xff] }
 0x37f   : > { %v8550_v63 = vpop.f32.mrb[15].mxu1  ;;  %8851 = vmatprep.subr.bf16.mxu1 %v17022_v50  ;;  %v3065_v18 = vld [vmem:[#allocation10 + $0x1ec8] sm:$0xff]  ;;  %v16934_v57 = vcombine.high %v2937_v59, %v2941_v34  ;;  %v16933_v33 = vcombine.low %v2937_v59, %v2941_v34 }
 0x380   : > { %8811 = vmatpush1.bf16.msra.mxu0 %v16893_v14  ;;  %v3069_v50 = vld [vmem:[#allocation10 + $0x1ee8] sm:$0xff] }
 0x381   : > { %8812 = vmatprep.subr.bf16.mxu0 %v16902_v48  ;;  %v17062_v41 = vcombine.high %v3065_v18, %v3069_v50  ;;  %v2945_v12 = vld [vmem:[#allocation10 + $0x1b08] sm:$0xff]  ;;  %v17061_v56 = vcombine.low %v3065_v18, %v3069_v50  ;;  %v2090_v50 = vld [vmem:[#allocation10 + $0x50] sm:$0xff] }
 0x382   : > { %8852 = vmatpush1.bf16.msra.mxu1 %v17021_v13  ;;  %v3077_v31 = vld [vmem:[#allocation10 + $0x1f28] sm:$0xff]  ;;  %v16942_v14 = vcombine.high %v2945_v12, %v2949_v46 }
 0x383   : > { %8853 = vmatprep.subr.bf16.mxu1 %v17030_v2  ;;  %v17070_v39 = vcombine.high %v3073_v55, %v3077_v31  ;;  %v2953_v27 = vld [vmem:[#allocation10 + $0x1b48] sm:$0xff]  ;;  %v16941_v2 = vcombine.low %v2945_v12, %v2949_v46  ;;  %v17069_v11 = vcombine.low %v3073_v55, %v3077_v31  ;;  %v2098_v31 = vld [vmem:[#allocation10 + $0x90] sm:$0xff] }
 0x384   : > { %8813 = vmatpush1.bf16.msra.mxu0 %v16901_v47  ;;  %v2957_v13 = vld [vmem:[#allocation10 + $0x1b68] sm:$0xff] }
 0x385   : > { %8814 = vmatprep.subr.bf16.mxu0 %v16910_v15  ;;  %v3081_v48 = vld [vmem:[#allocation10 + $0x1f48] sm:$0xff]  ;;  %v16950_v54 = vcombine.high %v2953_v27, %v2957_v13 }
 0x386   : > { %8854 = vmatpush1.bf16.msra.mxu1 %v17029_v30  ;;  %v3085_v63 = vld [vmem:[#allocation10 + $0x1f68] sm:$0xff] }
 0x387   : > { %8855 = vmatprep.subr.bf16.mxu1 %v17038_v43  ;;  %v17078_v4 = vcombine.high %v3081_v48, %v3085_v63  ;;  %v2961_v10 = vld [vmem:[#allocation10 + $0x1b88] sm:$0xff]  ;;  %v16949_v43 = vcombine.low %v2953_v27, %v2957_v13  ;;  %v17077_v45 = vcombine.low %v3081_v48, %v3085_v63  ;;  %v2106_v63 = vld [vmem:[#allocation10 + $0xd0] sm:$0xff] }
 0x388   : > { %8815 = vmatpush1.bf16.msra.mxu0 %v16909_v16  ;;  %v2965_v47 = vld [vmem:[#allocation10 + $0x1ba8] sm:$0xff] }
 0x389   : > { %8816 = vmatprep.subr.bf16.mxu0 %v16918_v24  ;;  %v3089_v30 = vld [vmem:[#allocation10 + $0x1f88] sm:$0xff]  ;;  %v16958_v19 = vcombine.high %v2961_v10, %v2965_v47 }
 0x38a   : > { %8856 = vmatpush1.bf16.msra.mxu1 %v17037_v53  ;;  %v3093_v15 = vld [vmem:[#allocation10 + $0x1fa8] sm:$0xff] }
 0x38b   : > { %8857 = vmatprep.subr.bf16.mxu1 %v17046_v42  ;;  %v17086_v20 = vcombine.high %v3089_v30, %v3093_v15  ;;  %v2973_v16 = vld [vmem:[#allocation10 + $0x1be8] sm:$0xff]  ;;  %v16957_v42 = vcombine.low %v2961_v10, %v2965_v47  ;;  %v17085_v17 = vcombine.low %v3089_v30, %v3093_v15  ;;  %v2114_v15 = vld [vmem:[#allocation10 + $0x110] sm:$0xff] }
 0x38c   : > { %8817 = vmatpush1.bf16.msra.mxu0 %v16917_v58  ;;  %v3097_v53 = vld [vmem:[#allocation10 + $0x1fc8] sm:$0xff]  ;;  %v16966_v61 = vcombine.high %v2969_v44, %v2973_v16  ;;  %v2086_v58 = vld [vmem:[#allocation10 + $0x30] sm:$0xff] }
 0x38d   : > { %8818 = vmatprep.subr.bf16.mxu0 %v16926_v36  ;;  %v3101_v24 = vld [vmem:[#allocation10 + $0x1fe8] sm:$0xff]  ;;  %v2214_v36 = vld [vmem:[#allocation10 + $0x430] sm:$0xff]  ;;  %v16080_v34 = vcombine.high %v2082_v23, %v2086_v58 }
 0x38e   : > { %8858 = vmatpush1.bf16.msra.mxu1 %v17045_v37  ;;  %v17094_v29 = vcombine.high %v3097_v53, %v3101_v24  ;;  %v2210_v37 = vld [vmem:[#allocation10 + $0x410] sm:$0xff]  ;;  %v17093_v59 = vcombine.low %v3097_v53, %v3101_v24 }
 0x38f   : > { %8859 = vmatprep.subr.bf16.mxu1 %v17054_v51  ;;  %v16965_v51 = vcombine.low %v2969_v44, %v2973_v16  ;;  %v16208_v18 = vcombine.high %v2210_v37, %v2214_v36  ;;  %v16207_v12 = vcombine.low %v2210_v37, %v2214_v36  ;;  %v2122_v24 = vld [vmem:[#allocation10 + $0x150] sm:$0xff] }
 0x390   : > { %8819 = vmatpush1.bf16.msra.mxu0 %v16925_v0  ;;  %v2094_v0 = vld [vmem:[#allocation10 + $0x70] sm:$0xff] }
 0x391   : > { %8820 = vmatprep.subr.bf16.mxu0 %v16934_v57  ;;  %v2222_v57 = vld [vmem:[#allocation10 + $0x470] sm:$0xff]  ;;  %v16088_v46 = vcombine.high %v2090_v50, %v2094_v0 }
 0x392   : > { %8860 = vmatpush1.bf16.msra.mxu1 %v17053_v35  ;;  %v2218_v35 = vld [vmem:[#allocation10 + $0x450] sm:$0xff] }
 0x393   : > { %8861 = vmatprep.subr.bf16.mxu1 %v17062_v41  ;;  %v16079_v41 = vcombine.low %v2082_v23, %v2086_v58  ;;  %v16216_v55 = vcombine.high %v2218_v35, %v2222_v57  ;;  %v16215_v27 = vcombine.low %v2218_v35, %v2222_v57  ;;  %v2130_v36 = vld [vmem:[#allocation10 + $0x190] sm:$0xff] }
 0x394   : > { %8821 = vmatpush1.bf16.msra.mxu0 %v16933_v33  ;;  %v2102_v33 = vld [vmem:[#allocation10 + $0xb0] sm:$0xff] }
 0x395   : > { %8822 = vmatprep.subr.bf16.mxu0 %v16942_v14  ;;  %v2230_v14 = vld [vmem:[#allocation10 + $0x4b0] sm:$0xff]  ;;  %v16096_v13 = vcombine.high %v2098_v31, %v2102_v33 }
 0x396   : > { %8862 = vmatpush1.bf16.msra.mxu1 %v17061_v56  ;;  %v2226_v56 = vld [vmem:[#allocation10 + $0x490] sm:$0xff] }
 0x397   : > { %8863 = vmatprep.subr.bf16.mxu1 %v17070_v39  ;;  %v16087_v39 = vcombine.low %v2090_v50, %v2094_v0  ;;  %v16224_v48 = vcombine.high %v2226_v56, %v2230_v14  ;;  %v16223_v10 = vcombine.low %v2226_v56, %v2230_v14 }
 0x398   : > { %8823 = vmatpush1.bf16.msra.mxu0 %v16941_v2  ;;  %v2110_v2 = vld [vmem:[#allocation10 + $0xf0] sm:$0xff] }
 0x399   : > { %8824 = vmatprep.subr.bf16.mxu0 %v16950_v54  ;;  %v2238_v54 = vld [vmem:[#allocation10 + $0x4f0] sm:$0xff]  ;;  %v16104_v47 = vcombine.high %v2106_v63, %v2110_v2 }
 0x39a   : > { %8864 = vmatpush1.bf16.msra.mxu1 %v17069_v11  ;;  %v2234_v11 = vld [vmem:[#allocation10 + $0x4d0] sm:$0xff] }
 0x39b   : > { %8865 = vmatprep.subr.bf16.mxu1 %v17078_v4  ;;  %v16095_v4 = vcombine.low %v2098_v31, %v2102_v33  ;;  %v16232_v30 = vcombine.high %v2234_v11, %v2238_v54  ;;  %v16231_v44 = vcombine.low %v2234_v11, %v2238_v54  ;;  %v2266_v31 = vld [vmem:[#allocation10 + $0x5d0] sm:$0xff] }
 0x39c   : > { %8825 = vmatpush1.bf16.msra.mxu0 %v16949_v43  ;;  %v2118_v43 = vld [vmem:[#allocation10 + $0x130] sm:$0xff] }
 0x39d   : > { %8826 = vmatprep.subr.bf16.mxu0 %v16958_v19  ;;  %v2246_v19 = vld [vmem:[#allocation10 + $0x530] sm:$0xff]  ;;  %v16112_v16 = vcombine.high %v2114_v15, %v2118_v43 }
 0x39e   : > { %8866 = vmatpush1.bf16.msra.mxu1 %v17077_v45  ;;  %v2242_v45 = vld [vmem:[#allocation10 + $0x510] sm:$0xff] }
 0x39f   : > { %8867 = vmatprep.subr.bf16.mxu1 %v17086_v20  ;;  %v16103_v20 = vcombine.low %v2106_v63, %v2110_v2  ;;  %v16240_v53 = vcombine.high %v2242_v45, %v2246_v19  ;;  %v16239_v23 = vcombine.low %v2242_v45, %v2246_v19  ;;  %v2270_v33 = vld [vmem:[#allocation10 + $0x5f0] sm:$0xff] }
 0x3a0   : > { %8827 = vmatpush1.bf16.msra.mxu0 %v16957_v42  ;;  %v2126_v42 = vld [vmem:[#allocation10 + $0x170] sm:$0xff]  ;;  %v16263_v45 = vcombine.low %v2266_v31, %v2270_v33 }
 0x3a1   : > { %8828 = vmatprep.subr.bf16.mxu0 %v16966_v61  ;;  %v2254_v61 = vld [vmem:[#allocation10 + $0x570] sm:$0xff]  ;;  %v16120_v58 = vcombine.high %v2122_v24, %v2126_v42 }
 0x3a2   : > { %8868 = vmatpush1.bf16.msra.mxu1 %v17085_v17  ;;  %v2250_v17 = vld [vmem:[#allocation10 + $0x550] sm:$0xff] }
 0x3a3   : > { %8869 = vmatprep.subr.bf16.mxu1 %v17094_v29  ;;  %v16111_v29 = vcombine.low %v2114_v15, %v2118_v43  ;;  %v16248_v37 = vcombine.high %v2250_v17, %v2254_v61  ;;  %v16247_v50 = vcombine.low %v2250_v17, %v2254_v61  ;;  %v2278_v15 = vld [vmem:[#allocation10 + $0x630] sm:$0xff] }
 0x3a4   : > { %8829 = vmatpush1.bf16.msra.mxu0 %v16965_v51  ;;  %v2134_v51 = vld [vmem:[#allocation10 + $0x1b0] sm:$0xff] }
 0x3a5   : > { %8880 = vmatprep.subr.bf16.mxu0 %v16080_v34  ;;  %v2262_v34 = vld [vmem:[#allocation10 + $0x5b0] sm:$0xff]  ;;  %v16128_v0 = vcombine.high %v2130_v36, %v2134_v51 }
 0x3a6   : > { %8870 = vmatpush1.bf16.msra.mxu1 %v17093_v59  ;;  %v2258_v59 = vld [vmem:[#allocation10 + $0x590] sm:$0xff] }
 0x3a7   : > { %8921 = vmatprep.subr.bf16.mxu1 %v16208_v18  ;;  %8831 = vmatmul.mubr.bf16.vlgmr.msra.gmra.mrb[28].mxu0 %v19984_v5  ;;  %v16119_v18 = vcombine.low %v2122_v24, %v2126_v42  ;;  %v16256_v57 = vcombine.high %v2258_v59, %v2262_v34  ;;  %v16255_v2 = vcombine.low %v2258_v59, %v2262_v34  ;;  %v2286_v24 = vld [vmem:[#allocation10 + $0x670] sm:$0xff] }
 0x3a8   : > { %8881 = vmatpush1.bf16.msra.mxu0 %v16079_v41  ;;  %8912 = vmatprep.mubr.bf16.mxu0 %v19896_v49  ;;  %v2138_v41 = vld [vmem:[#allocation10 + $0x1d0] sm:$0xff] }
 0x3a9   : > { %8872 = vmatmul.mubr.bf16.vlgmr.msra.gmra.mrb[28].mxu1 %v19988_v40  ;;  %8882 = vmatprep.subr.bf16.mxu0 %v16088_v46 }
 0x3aa   : > { %8922 = vmatpush1.bf16.msra.mxu1 %v16207_v12  ;;  %8953 = vmatprep.mubr.bf16.mxu1 %v19901_v28  ;;  %v2142_v12 = vld [vmem:[#allocation10 + $0x1f0] sm:$0xff] }
 0x3ab   : > { %8923 = vmatprep.subr.bf16.mxu1 %v16216_v55  ;;  %v16136_v11 = vcombine.high %v2138_v41, %v2142_v12  ;;  %v16135_v43 = vcombine.low %v2138_v41, %v2142_v12 }
 0x3ac   : > { %8883 = vmatpush1.bf16.msra.mxu0 %v16087_v39 }
 0x3ad   : > { %8884 = vmatprep.subr.bf16.mxu0 %v16096_v13 }
 0x3ae   : > { %8924 = vmatpush1.bf16.msra.mxu1 %v16215_v27  ;;  %v16127_v27 = vcombine.low %v2130_v36, %v2134_v51  ;;  %v2294_v36 = vld [vmem:[#allocation10 + $0x6b0] sm:$0xff] }
 0x3af   : > { %8925 = vmatprep.subr.bf16.mxu1 %v16224_v48 }
 0x3b0   : > { %8885 = vmatpush1.bf16.msra.mxu0 %v16095_v4  ;;  %v16264_v4 = vcombine.high %v2266_v31, %v2270_v33  ;;  %v2178_v31 = vld [vmem:[#allocation10 + $0x310] sm:$0xff] }
 0x3b1   : > { %8886 = vmatprep.subr.bf16.mxu0 %v16104_v47  ;;  %v2150_v47 = vld [vmem:[#allocation10 + $0x230] sm:$0xff] }
 0x3b2   : > { %8926 = vmatpush1.bf16.msra.mxu1 %v16223_v10  ;;  %v2146_v10 = vld [vmem:[#allocation10 + $0x210] sm:$0xff] }
 0x3b3   : > { %8927 = vmatprep.subr.bf16.mxu1 %v16232_v30  ;;  %v2274_v30 = vld [vmem:[#allocation10 + $0x610] sm:$0xff]  ;;  %v16144_v19 = vcombine.high %v2146_v10, %v2150_v47  ;;  %v16143_v42 = vcombine.low %v2146_v10, %v2150_v47 }
 0x3b4   : > { %8887 = vmatpush1.bf16.msra.mxu0 %v16103_v20  ;;  %v16272_v20 = vcombine.high %v2274_v30, %v2278_v15  ;;  %v16271_v17 = vcombine.low %v2274_v30, %v2278_v15  ;;  %v2182_v33 = vld [vmem:[#allocation10 + $0x330] sm:$0xff] }
 0x3b5   : > { %8888 = vmatprep.subr.bf16.mxu0 %v16112_v16  ;;  %v2158_v16 = vld [vmem:[#allocation10 + $0x270] sm:$0xff]  ;;  %v16175_v47 = vcombine.low %v2178_v31, %v2182_v33 }
 0x3b6   : > { %8928 = vmatpush1.bf16.msra.mxu1 %v16231_v44  ;;  %v2154_v44 = vld [vmem:[#allocation10 + $0x250] sm:$0xff] }
 0x3b7   : > { %8929 = vmatprep.subr.bf16.mxu1 %v16240_v53  ;;  %v2282_v53 = vld [vmem:[#allocation10 + $0x650] sm:$0xff]  ;;  %v16152_v61 = vcombine.high %v2154_v44, %v2158_v16  ;;  %v16151_v51 = vcombine.low %v2154_v44, %v2158_v16 }
 0x3b8   : > { %8889 = vmatpush1.bf16.msra.mxu0 %v16111_v29  ;;  %v16280_v29 = vcombine.high %v2282_v53, %v2286_v24  ;;  %v16279_v59 = vcombine.low %v2282_v53, %v2286_v24  ;;  %v2318_v10 = vld [vmem:[#allocation10 + $0x770] sm:$0xff] }
 0x3b9   : > { %8890 = vmatprep.subr.bf16.mxu0 %v16120_v58  ;;  %v2166_v58 = vld [vmem:[#allocation10 + $0x2b0] sm:$0xff] }
 0x3ba   : > { %8930 = vmatpush1.bf16.msra.mxu1 %v16239_v23  ;;  %v8586_v35 = vpop.f32.mrb[16].mxu0  ;;  %v2162_v23 = vld [vmem:[#allocation10 + $0x290] sm:$0xff] }
 0x3bb   : > { %8931 = vmatprep.subr.bf16.mxu1 %v16248_v37  ;;  %v8588_v55 = vpop.f32.mrb[17].mxu0  ;;  %v2290_v37 = vld [vmem:[#allocation10 + $0x690] sm:$0xff]  ;;  %v16160_v34 = vcombine.high %v2162_v23, %v2166_v58  ;;  %v16159_v41 = vcombine.low %v2162_v23, %v2166_v58 }
 0x3bc   : > { %v8627_v46 = vpop.f32.mrb[16].mxu1  ;;  %v8590_v39 = vpop.f32.mrb[18].mxu0  ;;  %8891 = vmatpush1.bf16.msra.mxu0 %v16119_v18  ;;  %v16288_v18 = vcombine.high %v2290_v37, %v2294_v36  ;;  %v16287_v12 = vcombine.low %v2290_v37, %v2294_v36  ;;  %v2326_v44 = vld [vmem:[#allocation10 + $0x7b0] sm:$0xff] }
 0x3bd   : > { %v20032_v56 = vadd.f32 %v8627_v46, %v8586_v35  ;;  %v8629_v14 = vpop.f32.mrb[17].mxu1  ;;  %v8591_v63 = vpop.f32.mrb[19].mxu0  ;;  %8892 = vmatprep.subr.bf16.mxu0 %v16128_v0  ;;  %v2174_v0 = vld [vmem:[#allocation10 + $0x2f0] sm:$0xff] }
 0x3be   : > { %v20034_v13 = vadd.f32 %v8629_v14, %v8588_v55  ;;  %v8631_v48 = vpop.f32.mrb[18].mxu1  ;;  %8932 = vmatpush1.bf16.msra.mxu1 %v16247_v50  ;;  %v2170_v50 = vld [vmem:[#allocation10 + $0x2d0] sm:$0xff]  ;;  %v16176_v63 = vcombine.high %v2178_v31, %v2182_v33 }
 0x3bf   : > { %v8632_v54 = vpop.f32.mrb[19].mxu1  ;;  %8933 = vmatprep.subr.bf16.mxu1 %v16256_v57  ;;  %v2298_v35 = vld [vmem:[#allocation10 + $0x6d0] sm:$0xff]  ;;  %v16168_v46 = vcombine.high %v2170_v50, %v2174_v0 }
 0x3c0   : > { %8893 = vmatpush1.bf16.msra.mxu0 %v16127_v27  ;;  %v2302_v57 = vld [vmem:[#allocation10 + $0x6f0] sm:$0xff]  ;;  %v16167_v27 = vcombine.low %v2170_v50, %v2174_v0 }
 0x3c1   : > { %8894 = vmatprep.subr.bf16.mxu0 %v16136_v11  ;;  %v16296_v55 = vcombine.high %v2298_v35, %v2302_v57  ;;  %v2306_v14 = vld [vmem:[#allocation10 + $0x710] sm:$0xff]  ;;  %v16295_v48 = vcombine.low %v2298_v35, %v2302_v57 }
 0x3c2   : > { %8934 = vmatpush1.bf16.msra.mxu1 %v16255_v2  ;;  %v2310_v39 = vld [vmem:[#allocation10 + $0x730] sm:$0xff] }
 0x3c3   : > { %8935 = vmatprep.subr.bf16.mxu1 %v16264_v4  ;;  %v16304_v2 = vcombine.high %v2306_v14, %v2310_v39  ;;  %v2186_v11 = vld [vmem:[#allocation10 + $0x350] sm:$0xff]  ;;  %v16303_v30 = vcombine.low %v2306_v14, %v2310_v39 }
 0x3c4   : > { %8895 = vmatpush1.bf16.msra.mxu0 %v16135_v43  ;;  %v2190_v54 = vld [vmem:[#allocation10 + $0x370] sm:$0xff] }
 0x3c5   : > { %8896 = vmatprep.subr.bf16.mxu0 %v16144_v19  ;;  %v2314_v4 = vld [vmem:[#allocation10 + $0x750] sm:$0xff]  ;;  %v16184_v15 = vcombine.high %v2186_v11, %v2190_v54  ;;  %v16183_v16 = vcombine.low %v2186_v11, %v2190_v54 }
 0x3c6   : > { %8936 = vmatpush1.bf16.msra.mxu1 %v16263_v45  ;;  %v16312_v43 = vcombine.high %v2314_v4, %v2318_v10  ;;  %v2194_v45 = vld [vmem:[#allocation10 + $0x390] sm:$0xff]  ;;  %v16311_v53 = vcombine.low %v2314_v4, %v2318_v10 }
 0x3c7   : > { %8937 = vmatprep.subr.bf16.mxu1 %v16272_v20  ;;  %v2198_v19 = vld [vmem:[#allocation10 + $0x3b0] sm:$0xff] }
 0x3c8   : > { %8897 = vmatpush1.bf16.msra.mxu0 %v16143_v42  ;;  %v2322_v20 = vld [vmem:[#allocation10 + $0x790] sm:$0xff]  ;;  %v16192_v24 = vcombine.high %v2194_v45, %v2198_v19  ;;  %v16191_v58 = vcombine.low %v2194_v45, %v2198_v19 }
 0x3c9   : > { %8898 = vmatprep.subr.bf16.mxu0 %v16152_v61  ;;  %v16320_v42 = vcombine.high %v2322_v20, %v2326_v44  ;;  %v2206_v61 = vld [vmem:[#allocation10 + $0x3f0] sm:$0xff]  ;;  %v16319_v37 = vcombine.low %v2322_v20, %v2326_v44 }
 0x3ca   : > { %8938 = vmatpush1.bf16.msra.mxu1 %v16271_v17  ;;  %v2202_v17 = vld [vmem:[#allocation10 + $0x3d0] sm:$0xff] }
 0x3cb   : > { %8939 = vmatprep.subr.bf16.mxu1 %v16280_v29  ;;  %v2330_v29 = vld [vmem:[#allocation10 + $0x7d0] sm:$0xff]  ;;  %v16200_v36 = vcombine.high %v2202_v17, %v2206_v61  ;;  %v16199_v0 = vcombine.low %v2202_v17, %v2206_v61 }
 0x3cc   : > { %8899 = vmatpush1.bf16.msra.mxu0 %v16151_v51  ;;  %v2334_v23 = vld [vmem:[#allocation10 + $0x7f0] sm:$0xff] }
 0x3cd   : > { %8900 = vmatprep.subr.bf16.mxu0 %v16160_v34  ;;  %v16328_v51 = vcombine.high %v2330_v29, %v2334_v23  ;;  %v2342_v34 = vld [vmem:[#allocation10 + $0x830] sm:$0xff]  ;;  %v16327_v35 = vcombine.low %v2330_v29, %v2334_v23 }
 0x3ce   : > { %8940 = vmatpush1.bf16.msra.mxu1 %v16279_v59  ;;  %v2338_v59 = vld [vmem:[#allocation10 + $0x810] sm:$0xff] }
 0x3cf   : > { %8941 = vmatprep.subr.bf16.mxu1 %v16288_v18  ;;  %v2466_v18 = vld [vmem:[#allocation10 + $0xc10] sm:$0xff]  ;;  %v16336_v57 = vcombine.high %v2338_v59, %v2342_v34  ;;  %v16335_v33 = vcombine.low %v2338_v59, %v2342_v34 }
 0x3d0   : > { %8901 = vmatpush1.bf16.msra.mxu0 %v16159_v41  ;;  %v2470_v50 = vld [vmem:[#allocation10 + $0xc30] sm:$0xff] }
 0x3d1   : > { %8902 = vmatprep.subr.bf16.mxu0 %v16168_v46  ;;  %v16464_v41 = vcombine.high %v2466_v18, %v2470_v50  ;;  %v2350_v46 = vld [vmem:[#allocation10 + $0x870] sm:$0xff]  ;;  %v16463_v14 = vcombine.low %v2466_v18, %v2470_v50 }
 0x3d2   : > { %8942 = vmatpush1.bf16.msra.mxu1 %v16287_v12  ;;  %v2346_v12 = vld [vmem:[#allocation10 + $0x850] sm:$0xff] }
 0x3d3   : > { %8943 = vmatprep.subr.bf16.mxu1 %v16296_v55  ;;  %v2474_v55 = vld [vmem:[#allocation10 + $0xc50] sm:$0xff]  ;;  %v16344_v39 = vcombine.high %v2346_v12, %v2350_v46  ;;  %v16343_v54 = vcombine.low %v2346_v12, %v2350_v46 }
 0x3d4   : > { %8903 = vmatpush1.bf16.msra.mxu0 %v16167_v27  ;;  %v2478_v31 = vld [vmem:[#allocation10 + $0xc70] sm:$0xff] }
 0x3d5   : > { %8904 = vmatprep.subr.bf16.mxu0 %v16176_v63  ;;  %v16472_v27 = vcombine.high %v2474_v55, %v2478_v31  ;;  %v2358_v63 = vld [vmem:[#allocation10 + $0x8b0] sm:$0xff]  ;;  %v16471_v4 = vcombine.low %v2474_v55, %v2478_v31 }
 0x3d6   : > { %8944 = vmatpush1.bf16.msra.mxu1 %v16295_v48  ;;  %v2354_v48 = vld [vmem:[#allocation10 + $0x890] sm:$0xff] }
 0x3d7   : > { %8945 = vmatprep.subr.bf16.mxu1 %v16304_v2  ;;  %v2482_v2 = vld [vmem:[#allocation10 + $0xc90] sm:$0xff]  ;;  %v16352_v10 = vcombine.high %v2354_v48, %v2358_v63  ;;  %v16351_v19 = vcombine.low %v2354_v48, %v2358_v63 }
 0x3d8   : > { %8905 = vmatpush1.bf16.msra.mxu0 %v16175_v47  ;;  %v2486_v11 = vld [vmem:[#allocation10 + $0xcb0] sm:$0xff] }
 0x3d9   : > { %8906 = vmatprep.subr.bf16.mxu0 %v16184_v15  ;;  %v16480_v47 = vcombine.high %v2482_v2, %v2486_v11  ;;  %v2366_v15 = vld [vmem:[#allocation10 + $0x8f0] sm:$0xff]  ;;  %v16479_v20 = vcombine.low %v2482_v2, %v2486_v11 }
 0x3da   : > { %8946 = vmatpush1.bf16.msra.mxu1 %v16303_v30  ;;  %v2362_v30 = vld [vmem:[#allocation10 + $0x8d0] sm:$0xff] }
 0x3db   : > { %8947 = vmatprep.subr.bf16.mxu1 %v16312_v43  ;;  %v2490_v43 = vld [vmem:[#allocation10 + $0xcd0] sm:$0xff]  ;;  %v16360_v44 = vcombine.high %v2362_v30, %v2366_v15  ;;  %v16359_v61 = vcombine.low %v2362_v30, %v2366_v15 }
 0x3dc   : > { %8907 = vmatpush1.bf16.msra.mxu0 %v16183_v16  ;;  %v2494_v45 = vld [vmem:[#allocation10 + $0xcf0] sm:$0xff] }
 0x3dd   : > { %8908 = vmatprep.subr.bf16.mxu0 %v16192_v24  ;;  %v16488_v16 = vcombine.high %v2490_v43, %v2494_v45  ;;  %v2374_v24 = vld [vmem:[#allocation10 + $0x930] sm:$0xff]  ;;  %v16487_v29 = vcombine.low %v2490_v43, %v2494_v45 }
 0x3de   : > { %8948 = vmatpush1.bf16.msra.mxu1 %v16311_v53  ;;  %v2370_v53 = vld [vmem:[#allocation10 + $0x910] sm:$0xff] }
 0x3df   : > { %8949 = vmatprep.subr.bf16.mxu1 %v16320_v42  ;;  %v2498_v42 = vld [vmem:[#allocation10 + $0xd10] sm:$0xff]  ;;  %v16368_v23 = vcombine.high %v2370_v53, %v2374_v24  ;;  %v16367_v34 = vcombine.low %v2370_v53, %v2374_v24 }
 0x3e0   : > { %8909 = vmatpush1.bf16.msra.mxu0 %v16191_v58  ;;  %v2502_v17 = vld [vmem:[#allocation10 + $0xd30] sm:$0xff] }
 0x3e1   : > { %8910 = vmatprep.subr.bf16.mxu0 %v16200_v36  ;;  %v16496_v58 = vcombine.high %v2498_v42, %v2502_v17  ;;  %v2382_v36 = vld [vmem:[#allocation10 + $0x970] sm:$0xff]  ;;  %v16495_v18 = vcombine.low %v2498_v42, %v2502_v17 }
 0x3e2   : > { %8950 = vmatpush1.bf16.msra.mxu1 %v16319_v37  ;;  %v2378_v37 = vld [vmem:[#allocation10 + $0x950] sm:$0xff] }
 0x3e3   : > { %8951 = vmatprep.subr.bf16.mxu1 %v16328_v51  ;;  %v2506_v51 = vld [vmem:[#allocation10 + $0xd50] sm:$0xff]  ;;  %v16376_v50 = vcombine.high %v2378_v37, %v2382_v36  ;;  %v16375_v46 = vcombine.low %v2378_v37, %v2382_v36 }
 0x3e4   : > { %8911 = vmatpush1.bf16.msra.mxu0 %v16199_v0  ;;  %v2510_v59 = vld [vmem:[#allocation10 + $0xd70] sm:$0xff] }
 0x3e5   : > { %8962 = vmatprep.subr.bf16.mxu0 %v16336_v57  ;;  %v16504_v0 = vcombine.high %v2506_v51, %v2510_v59  ;;  %v2390_v57 = vld [vmem:[#allocation10 + $0x9b0] sm:$0xff]  ;;  %v16503_v55 = vcombine.low %v2506_v51, %v2510_v59 }
 0x3e6   : > { %8952 = vmatpush1.bf16.msra.mxu1 %v16327_v35  ;;  %v2386_v35 = vld [vmem:[#allocation10 + $0x990] sm:$0xff] }
 0x3e7   : > { %9003 = vmatprep.subr.bf16.mxu1 %v16464_v41  ;;  %8913 = vmatmul.mubr.bf16.vlgmr.msra.gmra.mrb[32].mxu0 %v19914_v7  ;;  %v2514_v41 = vld [vmem:[#allocation10 + $0xd90] sm:$0xff]  ;;  %v16384_v31 = vcombine.high %v2386_v35, %v2390_v57  ;;  %v16383_v30 = vcombine.low %v2386_v35, %v2390_v57 }
 0x3e8   : > { %8963 = vmatpush1.bf16.msra.mxu0 %v16335_v33  ;;  %8994 = vmatprep.mubr.bf16.mxu0 %v19922_v8  ;;  %v2518_v12 = vld [vmem:[#allocation10 + $0xdb0] sm:$0xff] }
 0x3e9   : > { %8954 = vmatmul.mubr.bf16.vlgmr.msra.gmra.mrb[32].mxu1 %v19920_v38  ;;  %8964 = vmatprep.subr.bf16.mxu0 %v16344_v39  ;;  %v2394_v39 = vld [vmem:[#allocation10 + $0x9d0] sm:$0xff] }
 0x3ea   : > { %9004 = vmatpush1.bf16.msra.mxu1 %v16463_v14  ;;  %9035 = vmatprep.mubr.bf16.mxu1 %v19925_v22  ;;  %v16512_v14 = vcombine.high %v2514_v41, %v2518_v12  ;;  %v2522_v11 = vld [vmem:[#allocation10 + $0xdd0] sm:$0xff] }
 0x3eb   : > { %9005 = vmatprep.subr.bf16.mxu1 %v16472_v27  ;;  %v2398_v27 = vld [vmem:[#allocation10 + $0x9f0] sm:$0xff] }
 0x3ec   : > { %8965 = vmatpush1.bf16.msra.mxu0 %v16343_v54  ;;  %v2526_v54 = vld [vmem:[#allocation10 + $0xdf0] sm:$0xff]  ;;  %v16391_v17 = vcombine.low %v2394_v39, %v2398_v27 }
 0x3ed   : > { %8966 = vmatprep.subr.bf16.mxu0 %v16352_v10  ;;  %v2402_v53 = vld [vmem:[#allocation10 + $0xa10] sm:$0xff] }
 0x3ee   : > { %9006 = vmatpush1.bf16.msra.mxu1 %v16471_v4  ;;  %v2406_v24 = vld [vmem:[#allocation10 + $0xa30] sm:$0xff] }
 0x3ef   : > { %9007 = vmatprep.subr.bf16.mxu1 %v16480_v47  ;;  %v2534_v42 = vld [vmem:[#allocation10 + $0xe30] sm:$0xff]  ;;  %v16399_v59 = vcombine.low %v2402_v53, %v2406_v24 }
 0x3f0   : > { %8967 = vmatpush1.bf16.msra.mxu0 %v16351_v19  ;;  %v16511_v19 = vcombine.low %v2514_v41, %v2518_v12  ;;  %v2414_v37 = vld [vmem:[#allocation10 + $0xa70] sm:$0xff] }
 0x3f1   : > { %8968 = vmatprep.subr.bf16.mxu0 %v16360_v44  ;;  %v2538_v36 = vld [vmem:[#allocation10 + $0xe50] sm:$0xff] }
 0x3f2   : > { %9008 = vmatpush1.bf16.msra.mxu1 %v16479_v20  ;;  %v16392_v20 = vcombine.high %v2394_v39, %v2398_v27  ;;  %v2542_v51 = vld [vmem:[#allocation10 + $0xe70] sm:$0xff] }
 0x3f3   : > { %9009 = vmatprep.subr.bf16.mxu1 %v16488_v16  ;;  %v16520_v16 = vcombine.high %v2522_v11, %v2526_v54  ;;  %v2422_v35 = vld [vmem:[#allocation10 + $0xab0] sm:$0xff] }
 0x3f4   : > { %8969 = vmatpush1.bf16.msra.mxu0 %v16359_v61  ;;  %v16519_v61 = vcombine.low %v2522_v11, %v2526_v54  ;;  %v2546_v57 = vld [vmem:[#allocation10 + $0xe90] sm:$0xff] }
 0x3f5   : > { %8970 = vmatprep.subr.bf16.mxu0 %v16368_v23  ;;  %v2550_v41 = vld [vmem:[#allocation10 + $0xeb0] sm:$0xff] }
 0x3f6   : > { %9010 = vmatpush1.bf16.msra.mxu1 %v16487_v29  ;;  %v16400_v29 = vcombine.high %v2402_v53, %v2406_v24  ;;  %v2554_v39 = vld [vmem:[#allocation10 + $0xed0] sm:$0xff] }
 0x3f7   : > { %9011 = vmatprep.subr.bf16.mxu1 %v16496_v58  ;;  %v2410_v58 = vld [vmem:[#allocation10 + $0xa50] sm:$0xff] }
 0x3f8   : > { %8971 = vmatpush1.bf16.msra.mxu0 %v16367_v34  ;;  %v16407_v12 = vcombine.low %v2410_v58, %v2414_v37  ;;  %v2558_v27 = vld [vmem:[#allocation10 + $0xef0] sm:$0xff] }
 0x3f9   : > { %8972 = vmatprep.subr.bf16.mxu0 %v16376_v50  ;;  %v16536_v50 = vcombine.high %v2538_v36, %v2542_v51  ;;  %v16552_v11 = vcombine.high %v2554_v39, %v2558_v27  ;;  %v2434_v54 = vld [vmem:[#allocation10 + $0xb10] sm:$0xff] }
 0x3fa   : > { %9012 = vmatpush1.bf16.msra.mxu1 %v16495_v18  ;;  %v8668_v33 = vpop.f32.mrb[20].mxu0  ;;  %v16408_v18 = vcombine.high %v2410_v58, %v2414_v37  ;;  %v2574_v53 = vld [vmem:[#allocation10 + $0xf70] sm:$0xff] }
 0x3fb   : > { %9013 = vmatprep.subr.bf16.mxu1 %v16504_v0  ;;  %v8669_v48 = vadd.f32 %v8668_v33, %v20032_v56  ;;  %v8670_v2 = vpop.f32.mrb[21].mxu0  ;;  %v2418_v0 = vld [vmem:[#allocation10 + $0xa90] sm:$0xff] }
 0x3fc   : > { %v8709_v63 = vpop.f32.mrb[20].mxu1  ;;  %v8671_v4 = vadd.f32 %v8670_v2, %v20034_v13  ;;  %v8672_v47 = vpop.f32.mrb[22].mxu0  ;;  %8973 = vmatpush1.bf16.msra.mxu0 %v16375_v46  ;;  %v2530_v13 = vld [vmem:[#allocation10 + $0xe10] sm:$0xff]  ;;  %v16535_v46 = vcombine.low %v2538_v36, %v2542_v51 }
 0x3fd   : > { %v8711_v10 = vpop.f32.mrb[21].mxu1  ;;  %v20042_v15 = vadd.f32 %v8709_v63, %v8669_v48  ;;  %v8673_v45 = vpop.f32.mrb[23].mxu0  ;;  %8974 = vmatprep.subr.bf16.mxu0 %v16384_v31  ;;  %v16528_v23 = vcombine.high %v2530_v13, %v2534_v42  ;;  %v16527_v34 = vcombine.low %v2530_v13, %v2534_v42  ;;  %v16544_v31 = vcombine.high %v2546_v57, %v2550_v41  ;;  %v2426_v33 = vld [vmem:[#allocation10 + $0xad0] sm:$0xff] }
 0x3fe   : > { %v8713_v43 = vpop.f32.mrb[22].mxu1  ;;  %9014 = vmatpush1.bf16.msra.mxu1 %v16503_v55  ;;  %v20044_v44 = vadd.f32 %v8711_v10, %v8671_v4  ;;  %v16416_v55 = vcombine.high %v2418_v0, %v2422_v35  ;;  %v16415_v48 = vcombine.low %v2418_v0, %v2422_v35  ;;  %v16543_v63 = vcombine.low %v2546_v57, %v2550_v41  ;;  %v2438_v4 = vld [vmem:[#allocation10 + $0xb30] sm:$0xff] }
 0x3ff   : > { %v8714_v56 = vpop.f32.mrb[23].mxu1  ;;  %9015 = vmatprep.subr.bf16.mxu1 %v16512_v14  ;;  %v2430_v14 = vld [vmem:[#allocation10 + $0xaf0] sm:$0xff]  ;;  %v16551_v43 = vcombine.low %v2554_v39, %v2558_v27  ;;  %v16432_v45 = vcombine.high %v2434_v54, %v2438_v4  ;;  %v16431_v24 = vcombine.low %v2434_v54, %v2438_v4 }
 0x400   : > { %8975 = vmatpush1.bf16.msra.mxu0 %v16383_v30  ;;  %v16424_v2 = vcombine.high %v2426_v33, %v2430_v14  ;;  %v2562_v10 = vld [vmem:[#allocation10 + $0xf10] sm:$0xff]  ;;  %v16423_v30 = vcombine.low %v2426_v33, %v2430_v14 }
 0x401   : > { %8976 = vmatprep.subr.bf16.mxu0 %v16392_v20  ;;  %v2566_v47 = vld [vmem:[#allocation10 + $0xf30] sm:$0xff] }
 0x402   : > { %9016 = vmatpush1.bf16.msra.mxu1 %v16511_v19  ;;  %v16560_v19 = vcombine.high %v2562_v10, %v2566_v47  ;;  %v2442_v20 = vld [vmem:[#allocation10 + $0xb50] sm:$0xff]  ;;  %v16559_v13 = vcombine.low %v2562_v10, %v2566_v47 }
 0x403   : > { %9017 = vmatprep.subr.bf16.mxu1 %v16520_v16  ;;  %v2446_v56 = vld [vmem:[#allocation10 + $0xb70] sm:$0xff] }
 0x404   : > { %8977 = vmatpush1.bf16.msra.mxu0 %v16391_v17  ;;  %v2570_v16 = vld [vmem:[#allocation10 + $0xf50] sm:$0xff]  ;;  %v16440_v42 = vcombine.high %v2442_v20, %v2446_v56  ;;  %v16439_v37 = vcombine.low %v2442_v20, %v2446_v56 }
 0x405   : > { %8978 = vmatprep.subr.bf16.mxu0 %v16400_v29  ;;  %v16568_v17 = vcombine.high %v2570_v16, %v2574_v53  ;;  %v2454_v29 = vld [vmem:[#allocation10 + $0xbb0] sm:$0xff]  ;;  %v16567_v36 = vcombine.low %v2570_v16, %v2574_v53 }
 0x406   : > { %9018 = vmatpush1.bf16.msra.mxu1 %v16519_v61  ;;  %v2450_v61 = vld [vmem:[#allocation10 + $0xb90] sm:$0xff] }
 0x407   : > { %9019 = vmatprep.subr.bf16.mxu1 %v16528_v23  ;;  %v2578_v23 = vld [vmem:[#allocation10 + $0xf90] sm:$0xff]  ;;  %v16448_v51 = vcombine.high %v2450_v61, %v2454_v29  ;;  %v16447_v35 = vcombine.low %v2450_v61, %v2454_v29 }
 0x408   : > { %8979 = vmatpush1.bf16.msra.mxu0 %v16399_v59  ;;  %v2582_v58 = vld [vmem:[#allocation10 + $0xfb0] sm:$0xff] }
 0x409   : > { %8980 = vmatprep.subr.bf16.mxu0 %v16408_v18  ;;  %v16576_v59 = vcombine.high %v2578_v23, %v2582_v58  ;;  %v2462_v18 = vld [vmem:[#allocation10 + $0xbf0] sm:$0xff]  ;;  %v16575_v57 = vcombine.low %v2578_v23, %v2582_v58 }
 0x40a   : > { %9020 = vmatpush1.bf16.msra.mxu1 %v16527_v34  ;;  %v2458_v34 = vld [vmem:[#allocation10 + $0xbd0] sm:$0xff] }
 0x40b   : > { %9021 = vmatprep.subr.bf16.mxu1 %v16536_v50  ;;  %v2586_v50 = vld [vmem:[#allocation10 + $0xfd0] sm:$0xff]  ;;  %v16456_v41 = vcombine.high %v2458_v34, %v2462_v18  ;;  %v16455_v14 = vcombine.low %v2458_v34, %v2462_v18 }
 0x40c   : > { %8981 = vmatpush1.bf16.msra.mxu0 %v16407_v12  ;;  %v2590_v0 = vld [vmem:[#allocation10 + $0xff0] sm:$0xff] }
 0x40d   : > { %8982 = vmatprep.subr.bf16.mxu0 %v16416_v55  ;;  %v16584_v12 = vcombine.high %v2586_v50, %v2590_v0  ;;  %v2598_v55 = vld [vmem:[#allocation10 + $0x1030] sm:$0xff]  ;;  %v16583_v39 = vcombine.low %v2586_v50, %v2590_v0 }
 0x40e   : > { %9022 = vmatpush1.bf16.msra.mxu1 %v16535_v46  ;;  %v2594_v46 = vld [vmem:[#allocation10 + $0x1010] sm:$0xff] }
 0x40f   : > { %9023 = vmatprep.subr.bf16.mxu1 %v16544_v31  ;;  %v2722_v31 = vld [vmem:[#allocation10 + $0x1410] sm:$0xff]  ;;  %v16592_v27 = vcombine.high %v2594_v46, %v2598_v55  ;;  %v16591_v4 = vcombine.low %v2594_v46, %v2598_v55 }
 0x410   : > { %8983 = vmatpush1.bf16.msra.mxu0 %v16415_v48  ;;  %v2726_v33 = vld [vmem:[#allocation10 + $0x1430] sm:$0xff] }
 0x411   : > { %8984 = vmatprep.subr.bf16.mxu0 %v16424_v2  ;;  %v16720_v48 = vcombine.high %v2722_v31, %v2726_v33  ;;  %v2606_v2 = vld [vmem:[#allocation10 + $0x1070] sm:$0xff]  ;;  %v16719_v10 = vcombine.low %v2722_v31, %v2726_v33 }
 0x412   : > { %9024 = vmatpush1.bf16.msra.mxu1 %v16543_v63  ;;  %v2602_v63 = vld [vmem:[#allocation10 + $0x1050] sm:$0xff] }
 0x413   : > { %9025 = vmatprep.subr.bf16.mxu1 %v16552_v11  ;;  %v2730_v11 = vld [vmem:[#allocation10 + $0x1450] sm:$0xff]  ;;  %v16600_v47 = vcombine.high %v2602_v63, %v2606_v2  ;;  %v16599_v56 = vcombine.low %v2602_v63, %v2606_v2 }
 0x414   : > { %8985 = vmatpush1.bf16.msra.mxu0 %v16423_v30  ;;  %v2734_v54 = vld [vmem:[#allocation10 + $0x1470] sm:$0xff] }
 0x415   : > { %8986 = vmatprep.subr.bf16.mxu0 %v16432_v45  ;;  %v16728_v30 = vcombine.high %v2730_v11, %v2734_v54  ;;  %v2614_v45 = vld [vmem:[#allocation10 + $0x10b0] sm:$0xff]  ;;  %v16727_v16 = vcombine.low %v2730_v11, %v2734_v54 }
 0x416   : > { %9026 = vmatpush1.bf16.msra.mxu1 %v16551_v43  ;;  %v2610_v43 = vld [vmem:[#allocation10 + $0x1090] sm:$0xff] }
 0x417   : > { %9027 = vmatprep.subr.bf16.mxu1 %v16560_v19  ;;  %v2738_v19 = vld [vmem:[#allocation10 + $0x1490] sm:$0xff]  ;;  %v16608_v53 = vcombine.high %v2610_v43, %v2614_v45  ;;  %v16607_v29 = vcombine.low %v2610_v43, %v2614_v45 }
 0x418   : > { %8987 = vmatpush1.bf16.msra.mxu0 %v16431_v24  ;;  %v2742_v20 = vld [vmem:[#allocation10 + $0x14b0] sm:$0xff] }
 0x419   : > { %8988 = vmatprep.subr.bf16.mxu0 %v16440_v42  ;;  %v16736_v24 = vcombine.high %v2738_v19, %v2742_v20  ;;  %v2622_v42 = vld [vmem:[#allocation10 + $0x10f0] sm:$0xff]  ;;  %v16735_v23 = vcombine.low %v2738_v19, %v2742_v20 }
 0x41a   : > { %9028 = vmatpush1.bf16.msra.mxu1 %v16559_v13  ;;  %v2618_v13 = vld [vmem:[#allocation10 + $0x10d0] sm:$0xff] }
 0x41b   : > { %9029 = vmatprep.subr.bf16.mxu1 %v16568_v17  ;;  %v2746_v17 = vld [vmem:[#allocation10 + $0x14d0] sm:$0xff]  ;;  %v16616_v58 = vcombine.high %v2618_v13, %v2622_v42  ;;  %v16615_v18 = vcombine.low %v2618_v13, %v2622_v42 }
 0x41c   : > { %8989 = vmatpush1.bf16.msra.mxu0 %v16439_v37  ;;  %v2750_v61 = vld [vmem:[#allocation10 + $0x14f0] sm:$0xff] }
 0x41d   : > { %8990 = vmatprep.subr.bf16.mxu0 %v16448_v51  ;;  %v16744_v37 = vcombine.high %v2746_v17, %v2750_v61  ;;  %v2630_v51 = vld [vmem:[#allocation10 + $0x1130] sm:$0xff]  ;;  %v16743_v50 = vcombine.low %v2746_v17, %v2750_v61 }
 0x41e   : > { %9030 = vmatpush1.bf16.msra.mxu1 %v16567_v36  ;;  %v2626_v36 = vld [vmem:[#allocation10 + $0x1110] sm:$0xff] }
 0x41f   : > { %9031 = vmatprep.subr.bf16.mxu1 %v16576_v59  ;;  %v2754_v59 = vld [vmem:[#allocation10 + $0x1510] sm:$0xff]  ;;  %v16624_v0 = vcombine.high %v2626_v36, %v2630_v51  ;;  %v16623_v55 = vcombine.low %v2626_v36, %v2630_v51 }
 0x420   : > { %8991 = vmatpush1.bf16.msra.mxu0 %v16447_v35  ;;  %v2758_v34 = vld [vmem:[#allocation10 + $0x1530] sm:$0xff] }
 0x421   : > { %8992 = vmatprep.subr.bf16.mxu0 %v16456_v41  ;;  %v16752_v35 = vcombine.high %v2754_v59, %v2758_v34  ;;  %v2638_v41 = vld [vmem:[#allocation10 + $0x1170] sm:$0xff]  ;;  %v16751_v31 = vcombine.low %v2754_v59, %v2758_v34 }
 0x422   : > { %9032 = vmatpush1.bf16.msra.mxu1 %v16575_v57  ;;  %v2634_v57 = vld [vmem:[#allocation10 + $0x1150] sm:$0xff] }
 0x423   : > { %9033 = vmatprep.subr.bf16.mxu1 %v16584_v12  ;;  %v2762_v12 = vld [vmem:[#allocation10 + $0x1550] sm:$0xff]  ;;  %v16632_v33 = vcombine.high %v2634_v57, %v2638_v41  ;;  %v16631_v2 = vcombine.low %v2634_v57, %v2638_v41 }
 0x424   : > { %8993 = vmatpush1.bf16.msra.mxu0 %v16455_v14  ;;  %v2766_v46 = vld [vmem:[#allocation10 + $0x1570] sm:$0xff] }
 0x425   : > { %9044 = vmatprep.subr.bf16.mxu0 %v16592_v27  ;;  %v16760_v14 = vcombine.high %v2762_v12, %v2766_v46  ;;  %v2646_v27 = vld [vmem:[#allocation10 + $0x11b0] sm:$0xff]  ;;  %v16759_v11 = vcombine.low %v2762_v12, %v2766_v46 }
 0x426   : > { %9034 = vmatpush1.bf16.msra.mxu1 %v16583_v39  ;;  %v2642_v39 = vld [vmem:[#allocation10 + $0x1190] sm:$0xff] }
 0x427   : > { %9085 = vmatprep.subr.bf16.mxu1 %v16720_v48  ;;  %8995 = vmatmul.mubr.bf16.vlgmr.msra.gmra.mrb[36].mxu0 %v19940_v3  ;;  %v2770_v48 = vld [vmem:[#allocation10 + $0x1590] sm:$0xff]  ;;  %v16640_v54 = vcombine.high %v2642_v39, %v2646_v27  ;;  %v16639_v13 = vcombine.low %v2642_v39, %v2646_v27 }
 0x428   : > { %9045 = vmatpush1.bf16.msra.mxu0 %v16591_v4  ;;  %9076 = vmatprep.mubr.bf16.mxu0 %v19948_v21  ;;  %v2774_v63 = vld [vmem:[#allocation10 + $0x15b0] sm:$0xff] }
 0x429   : > { %9036 = vmatmul.mubr.bf16.vlgmr.msra.gmra.mrb[36].mxu1 %v19946_v62  ;;  %9046 = vmatprep.subr.bf16.mxu0 %v16600_v47  ;;  %v2650_v47 = vld [vmem:[#allocation10 + $0x11d0] sm:$0xff] }
 0x42a   : > { %9086 = vmatpush1.bf16.msra.mxu1 %v16719_v10  ;;  %9117 = vmatprep.mubr.bf16.mxu1 %v19951_v60  ;;  %v16768_v10 = vcombine.high %v2770_v48, %v2774_v63  ;;  %v2778_v20 = vld [vmem:[#allocation10 + $0x15d0] sm:$0xff] }
 0x42b   : > { %9087 = vmatprep.subr.bf16.mxu1 %v16728_v30  ;;  %v2654_v30 = vld [vmem:[#allocation10 + $0x11f0] sm:$0xff] }
 0x42c   : > { %9047 = vmatpush1.bf16.msra.mxu0 %v16599_v56  ;;  %v2782_v56 = vld [vmem:[#allocation10 + $0x15f0] sm:$0xff]  ;;  %v16647_v34 = vcombine.low %v2650_v47, %v2654_v30 }
 0x42d   : > { %9048 = vmatprep.subr.bf16.mxu0 %v16608_v53  ;;  %v2658_v36 = vld [vmem:[#allocation10 + $0x1210] sm:$0xff] }
 0x42e   : > { %9088 = vmatpush1.bf16.msra.mxu1 %v16727_v16  ;;  %v2662_v51 = vld [vmem:[#allocation10 + $0x1230] sm:$0xff] }
 0x42f   : > { %9089 = vmatprep.subr.bf16.mxu1 %v16736_v24  ;;  %v2790_v59 = vld [vmem:[#allocation10 + $0x1630] sm:$0xff]  ;;  %v16655_v46 = vcombine.low %v2658_v36, %v2662_v51 }
 0x430   : > { %9049 = vmatpush1.bf16.msra.mxu0 %v16607_v29  ;;  %v16767_v29 = vcombine.low %v2770_v48, %v2774_v63  ;;  %v2670_v57 = vld [vmem:[#allocation10 + $0x1270] sm:$0xff] }
 0x431   : > { %9050 = vmatprep.subr.bf16.mxu0 %v16616_v58  ;;  %v2794_v41 = vld [vmem:[#allocation10 + $0x1650] sm:$0xff] }
 0x432   : > { %9090 = vmatpush1.bf16.msra.mxu1 %v16735_v23  ;;  %v16648_v23 = vcombine.high %v2650_v47, %v2654_v30  ;;  %v2798_v12 = vld [vmem:[#allocation10 + $0x1670] sm:$0xff] }
 0x433   : > { %9091 = vmatprep.subr.bf16.mxu1 %v16744_v37  ;;  %v16776_v37 = vcombine.high %v2778_v20, %v2782_v56  ;;  %v2678_v39 = vld [vmem:[#allocation10 + $0x12b0] sm:$0xff] }
 0x434   : > { %9051 = vmatpush1.bf16.msra.mxu0 %v16615_v18  ;;  %v16775_v18 = vcombine.low %v2778_v20, %v2782_v56  ;;  %v2802_v27 = vld [vmem:[#allocation10 + $0x1690] sm:$0xff] }
 0x435   : > { %9052 = vmatprep.subr.bf16.mxu0 %v16624_v0  ;;  %v2806_v48 = vld [vmem:[#allocation10 + $0x16b0] sm:$0xff] }
 0x436   : > { %9092 = vmatpush1.bf16.msra.mxu1 %v16743_v50  ;;  %v16656_v50 = vcombine.high %v2658_v36, %v2662_v51  ;;  %v2810_v47 = vld [vmem:[#allocation10 + $0x16d0] sm:$0xff] }
 0x437   : > { %9093 = vmatprep.subr.bf16.mxu1 %v16752_v35  ;;  %v2666_v35 = vld [vmem:[#allocation10 + $0x1250] sm:$0xff] }
 0x438   : > { %9053 = vmatpush1.bf16.msra.mxu0 %v16623_v55  ;;  %v16663_v63 = vcombine.low %v2666_v35, %v2670_v57  ;;  %v2814_v30 = vld [vmem:[#allocation10 + $0x16f0] sm:$0xff] }
 0x439   : > { %9054 = vmatprep.subr.bf16.mxu0 %v16632_v33  ;;  %v16792_v33 = vcombine.high %v2794_v41, %v2798_v12  ;;  %v16808_v20 = vcombine.high %v2810_v47, %v2814_v30  ;;  %v2690_v56 = vld [vmem:[#allocation10 + $0x1310] sm:$0xff] }
 0x43a   : > { %9094 = vmatpush1.bf16.msra.mxu1 %v16751_v31  ;;  %v8750_v4 = vpop.f32.mrb[24].mxu0  ;;  %v16664_v31 = vcombine.high %v2666_v35, %v2670_v57  ;;  %v2830_v36 = vld [vmem:[#allocation10 + $0x1770] sm:$0xff] }
 0x43b   : > { %9095 = vmatprep.subr.bf16.mxu1 %v16760_v14  ;;  %v8751_v43 = vadd.f32 %v8750_v4, %v20042_v15  ;;  %v8752_v19 = vpop.f32.mrb[25].mxu0  ;;  %v2674_v14 = vld [vmem:[#allocation10 + $0x1290] sm:$0xff] }
 0x43c   : > { %v8791_v45 = vpop.f32.mrb[24].mxu1  ;;  %v8753_v16 = vadd.f32 %v8752_v19, %v20044_v44  ;;  %v8754_v24 = vpop.f32.mrb[26].mxu0  ;;  %9055 = vmatpush1.bf16.msra.mxu0 %v16631_v2  ;;  %v2786_v44 = vld [vmem:[#allocation10 + $0x1610] sm:$0xff]  ;;  %v16791_v2 = vcombine.low %v2794_v41, %v2798_v12 }
 0x43d   : > { %v8793_v53 = vpop.f32.mrb[25].mxu1  ;;  %v20052_v42 = vadd.f32 %v8791_v45, %v8751_v43  ;;  %v8755_v61 = vpop.f32.mrb[27].mxu0  ;;  %9056 = vmatprep.subr.bf16.mxu0 %v16640_v54  ;;  %v16784_v0 = vcombine.high %v2786_v44, %v2790_v59  ;;  %v16783_v55 = vcombine.low %v2786_v44, %v2790_v59  ;;  %v16800_v54 = vcombine.high %v2802_v27, %v2806_v48  ;;  %v2682_v4 = vld [vmem:[#allocation10 + $0x12d0] sm:$0xff] }
 0x43e   : > { %v8795_v17 = vpop.f32.mrb[26].mxu1  ;;  %9096 = vmatpush1.bf16.msra.mxu1 %v16759_v11  ;;  %v20054_v58 = vadd.f32 %v8793_v53, %v8753_v16  ;;  %v16672_v11 = vcombine.high %v2674_v14, %v2678_v39  ;;  %v16671_v43 = vcombine.low %v2674_v14, %v2678_v39  ;;  %v16799_v45 = vcombine.low %v2802_v27, %v2806_v48  ;;  %v2694_v16 = vld [vmem:[#allocation10 + $0x1330] sm:$0xff] }
 0x43f   : > { %v8796_v15 = vpop.f32.mrb[27].mxu1  ;;  %9097 = vmatprep.subr.bf16.mxu1 %v16768_v10  ;;  %v2686_v10 = vld [vmem:[#allocation10 + $0x12f0] sm:$0xff]  ;;  %v16807_v17 = vcombine.low %v2810_v47, %v2814_v30  ;;  %v16688_v61 = vcombine.high %v2690_v56, %v2694_v16  ;;  %v16687_v51 = vcombine.low %v2690_v56, %v2694_v16 }
 0x440   : > { %9057 = vmatpush1.bf16.msra.mxu0 %v16639_v13  ;;  %v16680_v19 = vcombine.high %v2682_v4, %v2686_v10  ;;  %v2818_v53 = vld [vmem:[#allocation10 + $0x1710] sm:$0xff]  ;;  %v16679_v13 = vcombine.low %v2682_v4, %v2686_v10 }
 0x441   : > { %9058 = vmatprep.subr.bf16.mxu0 %v16648_v23  ;;  %v2822_v24 = vld [vmem:[#allocation10 + $0x1730] sm:$0xff] }
 0x442   : > { %9098 = vmatpush1.bf16.msra.mxu1 %v16767_v29  ;;  %v16816_v29 = vcombine.high %v2818_v53, %v2822_v24  ;;  %v2698_v23 = vld [vmem:[#allocation10 + $0x1350] sm:$0xff]  ;;  %v16815_v44 = vcombine.low %v2818_v53, %v2822_v24 }
 0x443   : > { %9099 = vmatprep.subr.bf16.mxu1 %v16776_v37  ;;  %v2702_v15 = vld [vmem:[#allocation10 + $0x1370] sm:$0xff] }
 0x444   : > { %9059 = vmatpush1.bf16.msra.mxu0 %v16647_v34  ;;  %v2826_v37 = vld [vmem:[#allocation10 + $0x1750] sm:$0xff]  ;;  %v16696_v59 = vcombine.high %v2698_v23, %v2702_v15  ;;  %v16695_v57 = vcombine.low %v2698_v23, %v2702_v15 }
 0x445   : > { %9060 = vmatprep.subr.bf16.mxu0 %v16656_v50  ;;  %v16824_v34 = vcombine.high %v2826_v37, %v2830_v36  ;;  %v2710_v50 = vld [vmem:[#allocation10 + $0x13b0] sm:$0xff]  ;;  %v16823_v41 = vcombine.low %v2826_v37, %v2830_v36 }
 0x446   : > { %9100 = vmatpush1.bf16.msra.mxu1 %v16775_v18  ;;  %v2706_v18 = vld [vmem:[#allocation10 + $0x1390] sm:$0xff] }
 0x447   : > { %9101 = vmatprep.subr.bf16.mxu1 %v16784_v0  ;;  %v2834_v0 = vld [vmem:[#allocation10 + $0x1790] sm:$0xff]  ;;  %v16704_v12 = vcombine.high %v2706_v18, %v2710_v50  ;;  %v16703_v39 = vcombine.low %v2706_v18, %v2710_v50 }
 0x448   : > { %9061 = vmatpush1.bf16.msra.mxu0 %v16655_v46  ;;  %v2838_v35 = vld [vmem:[#allocation10 + $0x17b0] sm:$0xff] }
 0x449   : > { %9062 = vmatprep.subr.bf16.mxu0 %v16664_v31  ;;  %v16832_v46 = vcombine.high %v2834_v0, %v2838_v35  ;;  %v2718_v31 = vld [vmem:[#allocation10 + $0x13f0] sm:$0xff]  ;;  %v16831_v27 = vcombine.low %v2834_v0, %v2838_v35 }
 0x44a   : > { %9102 = vmatpush1.bf16.msra.mxu1 %v16783_v55  ;;  %v2714_v55 = vld [vmem:[#allocation10 + $0x13d0] sm:$0xff] }
 0x44b   : > { %9103 = vmatprep.subr.bf16.mxu1 %v16792_v33  ;;  %v2842_v33 = vld [vmem:[#allocation10 + $0x17d0] sm:$0xff]  ;;  %v16712_v48 = vcombine.high %v2714_v55, %v2718_v31  ;;  %v16711_v10 = vcombine.low %v2714_v55, %v2718_v31 }
 0x44c   : > { %9063 = vmatpush1.bf16.msra.mxu0 %v16663_v63  ;;  %v2846_v14 = vld [vmem:[#allocation10 + $0x17f0] sm:$0xff] }
 0x44d   : > { %9064 = vmatprep.subr.bf16.mxu0 %v16672_v11  ;;  %v16840_v63 = vcombine.high %v2842_v33, %v2846_v14  ;;  %v2854_v11 = vld [vmem:[#allocation10 + $0x1830] sm:$0xff]  ;;  %v16839_v47 = vcombine.low %v2842_v33, %v2846_v14 }
 0x44e   : > { %9104 = vmatpush1.bf16.msra.mxu1 %v16791_v2  ;;  %v2850_v2 = vld [vmem:[#allocation10 + $0x1810] sm:$0xff] }
 0x44f   : > { %9105 = vmatprep.subr.bf16.mxu1 %v16800_v54  ;;  %v2978_v54 = vld [vmem:[#allocation10 + $0x1c10] sm:$0xff]  ;;  %v16848_v30 = vcombine.high %v2850_v2, %v2854_v11  ;;  %v16847_v16 = vcombine.low %v2850_v2, %v2854_v11 }
 0x450   : > { %9065 = vmatpush1.bf16.msra.mxu0 %v16671_v43  ;;  %v2982_v4 = vld [vmem:[#allocation10 + $0x1c30] sm:$0xff] }
 0x451   : > { %9066 = vmatprep.subr.bf16.mxu0 %v16680_v19  ;;  %v16976_v43 = vcombine.high %v2978_v54, %v2982_v4  ;;  %v2862_v19 = vld [vmem:[#allocation10 + $0x1870] sm:$0xff]  ;;  %v16975_v53 = vcombine.low %v2978_v54, %v2982_v4 }
 0x452   : > { %9106 = vmatpush1.bf16.msra.mxu1 %v16799_v45  ;;  %v2858_v45 = vld [vmem:[#allocation10 + $0x1850] sm:$0xff] }
 0x453   : > { %9107 = vmatprep.subr.bf16.mxu1 %v16808_v20  ;;  %v2986_v20 = vld [vmem:[#allocation10 + $0x1c50] sm:$0xff]  ;;  %v16856_v24 = vcombine.high %v2858_v45, %v2862_v19  ;;  %v16855_v15 = vcombine.low %v2858_v45, %v2862_v19 }
 0x454   : > { %9067 = vmatpush1.bf16.msra.mxu0 %v16679_v13  ;;  %v2990_v56 = vld [vmem:[#allocation10 + $0x1c70] sm:$0xff] }
 0x455   : > { %9068 = vmatprep.subr.bf16.mxu0 %v16688_v61  ;;  %v16984_v13 = vcombine.high %v2986_v20, %v2990_v56  ;;  %v2870_v61 = vld [vmem:[#allocation10 + $0x18b0] sm:$0xff]  ;;  %v16983_v37 = vcombine.low %v2986_v20, %v2990_v56 }
 0x456   : > { %9108 = vmatpush1.bf16.msra.mxu1 %v16807_v17  ;;  %v2866_v17 = vld [vmem:[#allocation10 + $0x1890] sm:$0xff] }
 0x457   : > { %9109 = vmatprep.subr.bf16.mxu1 %v16816_v29  ;;  %v2994_v29 = vld [vmem:[#allocation10 + $0x1c90] sm:$0xff]  ;;  %v16864_v36 = vcombine.high %v2866_v17, %v2870_v61  ;;  %v16863_v50 = vcombine.low %v2866_v17, %v2870_v61 }
 0x458   : > { %9069 = vmatpush1.bf16.msra.mxu0 %v16687_v51  ;;  %v2998_v23 = vld [vmem:[#allocation10 + $0x1cb0] sm:$0xff] }
 0x459   : > { %9070 = vmatprep.subr.bf16.mxu0 %v16696_v59  ;;  %v16992_v51 = vcombine.high %v2994_v29, %v2998_v23  ;;  %v2878_v59 = vld [vmem:[#allocation10 + $0x18f0] sm:$0xff]  ;;  %v16991_v0 = vcombine.low %v2994_v29, %v2998_v23 }
 0x45a   : > { %9110 = vmatpush1.bf16.msra.mxu1 %v16815_v44  ;;  %v2874_v44 = vld [vmem:[#allocation10 + $0x18d0] sm:$0xff] }
 0x45b   : > { %9111 = vmatprep.subr.bf16.mxu1 %v16824_v34  ;;  %v3002_v34 = vld [vmem:[#allocation10 + $0x1cd0] sm:$0xff]  ;;  %v16872_v35 = vcombine.high %v2874_v44, %v2878_v59  ;;  %v16871_v31 = vcombine.low %v2874_v44, %v2878_v59 }
 0x45c   : > { %9071 = vmatpush1.bf16.msra.mxu0 %v16695_v57  ;;  %v3006_v18 = vld [vmem:[#allocation10 + $0x1cf0] sm:$0xff] }
 0x45d   : > { %9072 = vmatprep.subr.bf16.mxu0 %v16704_v12  ;;  %v17000_v57 = vcombine.high %v3002_v34, %v3006_v18  ;;  %v2886_v12 = vld [vmem:[#allocation10 + $0x1930] sm:$0xff]  ;;  %v16999_v33 = vcombine.low %v3002_v34, %v3006_v18 }
 0x45e   : > { %9112 = vmatpush1.bf16.msra.mxu1 %v16823_v41  ;;  %v2882_v41 = vld [vmem:[#allocation10 + $0x1910] sm:$0xff] }
 0x45f   : > { %9113 = vmatprep.subr.bf16.mxu1 %v16832_v46  ;;  %v3010_v46 = vld [vmem:[#allocation10 + $0x1d10] sm:$0xff]  ;;  %v16880_v14 = vcombine.high %v2882_v41, %v2886_v12  ;;  %v16879_v11 = vcombine.low %v2882_v41, %v2886_v12 }
 0x460   : > { %9073 = vmatpush1.bf16.msra.mxu0 %v16703_v39  ;;  %v3014_v55 = vld [vmem:[#allocation10 + $0x1d30] sm:$0xff] }
 0x461   : > { %9074 = vmatprep.subr.bf16.mxu0 %v16712_v48  ;;  %v17008_v39 = vcombine.high %v3010_v46, %v3014_v55  ;;  %v2894_v48 = vld [vmem:[#allocation10 + $0x1970] sm:$0xff]  ;;  %v17007_v54 = vcombine.low %v3010_v46, %v3014_v55 }
 0x462   : > { %9114 = vmatpush1.bf16.msra.mxu1 %v16831_v27  ;;  %v2890_v27 = vld [vmem:[#allocation10 + $0x1950] sm:$0xff] }
 0x463   : > { %9115 = vmatprep.subr.bf16.mxu1 %v16840_v63  ;;  %v3018_v63 = vld [vmem:[#allocation10 + $0x1d50] sm:$0xff]  ;;  %v16888_v4 = vcombine.high %v2890_v27, %v2894_v48  ;;  %v16887_v19 = vcombine.low %v2890_v27, %v2894_v48 }
 0x464   : > { %9075 = vmatpush1.bf16.msra.mxu0 %v16711_v10  ;;  %v3022_v2 = vld [vmem:[#allocation10 + $0x1d70] sm:$0xff] }
 0x465   : > { %9126 = vmatprep.subr.bf16.mxu0 %v16848_v30  ;;  %v17016_v10 = vcombine.high %v3018_v63, %v3022_v2  ;;  %v2902_v30 = vld [vmem:[#allocation10 + $0x19b0] sm:$0xff]  ;;  %v17015_v20 = vcombine.low %v3018_v63, %v3022_v2 }
 0x466   : > { %9116 = vmatpush1.bf16.msra.mxu1 %v16839_v47  ;;  %v2898_v47 = vld [vmem:[#allocation10 + $0x1990] sm:$0xff] }
 0x467   : > { %9167 = vmatprep.subr.bf16.mxu1 %v16976_v43  ;;  %9077 = vmatmul.mubr.bf16.vlgmr.msra.gmra.mrb[40].mxu0 %v19966_v32  ;;  %v3026_v43 = vld [vmem:[#allocation10 + $0x1d90] sm:$0xff]  ;;  %v16896_v56 = vcombine.high %v2898_v47, %v2902_v30  ;;  %v16895_v44 = vcombine.low %v2898_v47, %v2902_v30 }
 0x468   : > { %9127 = vmatpush1.bf16.msra.mxu0 %v16847_v16  ;;  %9158 = vmatprep.mubr.bf16.mxu0 %v19974_v26  ;;  %v3030_v45 = vld [vmem:[#allocation10 + $0x1db0] sm:$0xff] }
 0x469   : > { %9118 = vmatmul.mubr.bf16.vlgmr.msra.gmra.mrb[40].mxu1 %v19972_v25  ;;  %9128 = vmatprep.subr.bf16.mxu0 %v16856_v24  ;;  %v2906_v24 = vld [vmem:[#allocation10 + $0x19d0] sm:$0xff] }
 0x46a   : > { %9168 = vmatpush1.bf16.msra.mxu1 %v16975_v53  ;;  %9199 = vmatprep.mubr.bf16.mxu1 %v19977_v6  ;;  %v17024_v53 = vcombine.high %v3026_v43, %v3030_v45  ;;  %v3034_v23 = vld [vmem:[#allocation10 + $0x1dd0] sm:$0xff] }
 0x46b   : > { %9169 = vmatprep.subr.bf16.mxu1 %v16984_v13  ;;  %v2910_v13 = vld [vmem:[#allocation10 + $0x19f0] sm:$0xff] }
 0x46c   : > { %9129 = vmatpush1.bf16.msra.mxu0 %v16855_v15  ;;  %v3038_v15 = vld [vmem:[#allocation10 + $0x1df0] sm:$0xff]  ;;  %v16903_v55 = vcombine.low %v2906_v24, %v2910_v13 }
 0x46d   : > { %9130 = vmatprep.subr.bf16.mxu0 %v16864_v36  ;;  %v2914_v41 = vld [vmem:[#allocation10 + $0x1a10] sm:$0xff] }
 0x46e   : > { %9170 = vmatpush1.bf16.msra.mxu1 %v16983_v37  ;;  %v2918_v12 = vld [vmem:[#allocation10 + $0x1a30] sm:$0xff] }
 0x46f   : > { %9171 = vmatprep.subr.bf16.mxu1 %v16992_v51  ;;  %v3046_v46 = vld [vmem:[#allocation10 + $0x1e30] sm:$0xff]  ;;  %v16911_v2 = vcombine.low %v2914_v41, %v2918_v12 }
 0x470   : > { %9131 = vmatpush1.bf16.msra.mxu0 %v16863_v50  ;;  %v17023_v50 = vcombine.low %v3026_v43, %v3030_v45  ;;  %v2926_v27 = vld [vmem:[#allocation10 + $0x1a70] sm:$0xff] }
 0x471   : > { %9132 = vmatprep.subr.bf16.mxu0 %v16872_v35  ;;  %v3050_v48 = vld [vmem:[#allocation10 + $0x1e50] sm:$0xff] }
 0x472   : > { %9172 = vmatpush1.bf16.msra.mxu1 %v16991_v0  ;;  %v16904_v0 = vcombine.high %v2906_v24, %v2910_v13  ;;  %v3054_v63 = vld [vmem:[#allocation10 + $0x1e70] sm:$0xff] }
 0x473   : > { %9173 = vmatprep.subr.bf16.mxu1 %v17000_v57  ;;  %v17032_v57 = vcombine.high %v3034_v23, %v3038_v15  ;;  %v2934_v47 = vld [vmem:[#allocation10 + $0x1ab0] sm:$0xff] }
 0x474   : > { %9133 = vmatpush1.bf16.msra.mxu0 %v16871_v31  ;;  %v17031_v31 = vcombine.low %v3034_v23, %v3038_v15  ;;  %v3058_v30 = vld [vmem:[#allocation10 + $0x1e90] sm:$0xff] }
 0x475   : > { %9134 = vmatprep.subr.bf16.mxu0 %v16880_v14  ;;  %v3062_v43 = vld [vmem:[#allocation10 + $0x1eb0] sm:$0xff] }
 0x476   : > { %9174 = vmatpush1.bf16.msra.mxu1 %v16999_v33  ;;  %v16912_v33 = vcombine.high %v2914_v41, %v2918_v12  ;;  %v3066_v24 = vld [vmem:[#allocation10 + $0x1ed0] sm:$0xff] }
 0x477   : > { %9175 = vmatprep.subr.bf16.mxu1 %v17008_v39  ;;  %v2922_v39 = vld [vmem:[#allocation10 + $0x1a50] sm:$0xff] }
 0x478   : > { %9135 = vmatpush1.bf16.msra.mxu0 %v16879_v11  ;;  %v16919_v45 = vcombine.low %v2922_v39, %v2926_v27  ;;  %v3070_v13 = vld [vmem:[#allocation10 + $0x1ef0] sm:$0xff] }
 0x479   : > { %9136 = vmatprep.subr.bf16.mxu0 %v16888_v4  ;;  %v17048_v4 = vcombine.high %v3050_v48, %v3054_v63  ;;  %v17064_v23 = vcombine.high %v3066_v24, %v3070_v13  ;;  %v2946_v15 = vld [vmem:[#allocation10 + $0x1b10] sm:$0xff] }
 0x47a   : > { %9176 = vmatpush1.bf16.msra.mxu1 %v17007_v54  ;;  %v8832_v16 = vpop.f32.mrb[28].mxu0  ;;  %v16920_v54 = vcombine.high %v2922_v39, %v2926_v27  ;;  %v3086_v41 = vld [vmem:[#allocation10 + $0x1f70] sm:$0xff] }
 0x47b   : > { %9177 = vmatprep.subr.bf16.mxu1 %v17016_v10  ;;  %v8833_v17 = vadd.f32 %v8832_v16, %v20052_v42  ;;  %v8834_v29 = vpop.f32.mrb[29].mxu0  ;;  %v2930_v10 = vld [vmem:[#allocation10 + $0x1a90] sm:$0xff] }
 0x47c   : > { %v8873_v61 = vpop.f32.mrb[28].mxu1  ;;  %v8835_v37 = vadd.f32 %v8834_v29, %v20054_v58  ;;  %v8836_v51 = vpop.f32.mrb[30].mxu0  ;;  %9137 = vmatpush1.bf16.msra.mxu0 %v16887_v19  ;;  %v3042_v58 = vld [vmem:[#allocation10 + $0x1e10] sm:$0xff]  ;;  %v17047_v19 = vcombine.low %v3050_v48, %v3054_v63 }
 0x47d   : > { %v8875_v36 = vpop.f32.mrb[29].mxu1  ;;  %v20062_v59 = vadd.f32 %v8873_v61, %v8833_v17  ;;  %v8837_v18 = vpop.f32.mrb[31].mxu0  ;;  %9138 = vmatprep.subr.bf16.mxu0 %v16896_v56  ;;  %v17040_v14 = vcombine.high %v3042_v58, %v3046_v46  ;;  %v17039_v11 = vcombine.low %v3042_v58, %v3046_v46  ;;  %v17056_v56 = vcombine.high %v3058_v30, %v3062_v43  ;;  %v2938_v16 = vld [vmem:[#allocation10 + $0x1ad0] sm:$0xff] }
 0x47e   : > { %v8877_v34 = vpop.f32.mrb[30].mxu1  ;;  %9178 = vmatpush1.bf16.msra.mxu1 %v17015_v20  ;;  %v20064_v35 = vadd.f32 %v8875_v36, %v8835_v37  ;;  %v16928_v20 = vcombine.high %v2930_v10, %v2934_v47  ;;  %v16927_v17 = vcombine.low %v2930_v10, %v2934_v47  ;;  %v17055_v61 = vcombine.low %v3058_v30, %v3062_v43  ;;  %v2950_v37 = vld [vmem:[#allocation10 + $0x1b30] sm:$0xff] }
 0x47f   : > { %v8878_v42 = vpop.f32.mrb[31].mxu1  ;;  %9179 = vmatprep.subr.bf16.mxu1 %v17024_v53  ;;  %v2942_v53 = vld [vmem:[#allocation10 + $0x1af0] sm:$0xff]  ;;  %v17063_v34 = vcombine.low %v3066_v24, %v3070_v13  ;;  %v16944_v18 = vcombine.high %v2946_v15, %v2950_v37  ;;  %v16943_v12 = vcombine.low %v2946_v15, %v2950_v37  ;;  %v2223_v15 = vld [vmem:[#allocation10 + $0x478] sm:$0xff] }
 0x480   : > { %9139 = vmatpush1.bf16.msra.mxu0 %v16895_v44  ;;  %v16936_v29 = vcombine.high %v2938_v16, %v2942_v53  ;;  %v3074_v36 = vld [vmem:[#allocation10 + $0x1f10] sm:$0xff]  ;;  %v16935_v44 = vcombine.low %v2938_v16, %v2942_v53  ;;  %v2215_v16 = vld [vmem:[#allocation10 + $0x438] sm:$0xff] }
 0x481   : > { %9140 = vmatprep.subr.bf16.mxu0 %v16904_v0  ;;  %v3078_v51 = vld [vmem:[#allocation10 + $0x1f30] sm:$0xff] }
 0x482   : > { %9180 = vmatpush1.bf16.msra.mxu1 %v17023_v50  ;;  %v17072_v50 = vcombine.high %v3074_v36, %v3078_v51  ;;  %v2954_v0 = vld [vmem:[#allocation10 + $0x1b50] sm:$0xff]  ;;  %v17071_v58 = vcombine.low %v3074_v36, %v3078_v51 }
 0x483   : > { %9181 = vmatprep.subr.bf16.mxu1 %v17032_v57  ;;  %v2958_v42 = vld [vmem:[#allocation10 + $0x1b70] sm:$0xff] }
 0x484   : > { %9141 = vmatpush1.bf16.msra.mxu0 %v16903_v55  ;;  %v3082_v57 = vld [vmem:[#allocation10 + $0x1f50] sm:$0xff]  ;;  %v16952_v46 = vcombine.high %v2954_v0, %v2958_v42  ;;  %v16951_v27 = vcombine.low %v2954_v0, %v2958_v42  ;;  %v2231_v0 = vld [vmem:[#allocation10 + $0x4b8] sm:$0xff] }
 0x485   : > { %9142 = vmatprep.subr.bf16.mxu0 %v16912_v33  ;;  %v17080_v55 = vcombine.high %v3082_v57, %v3086_v41  ;;  %v2966_v33 = vld [vmem:[#allocation10 + $0x1bb0] sm:$0xff]  ;;  %v17079_v48 = vcombine.low %v3082_v57, %v3086_v41 }
 0x486   : > { %9182 = vmatpush1.bf16.msra.mxu1 %v17031_v31  ;;  %v2962_v31 = vld [vmem:[#allocation10 + $0x1b90] sm:$0xff] }
 0x487   : > { %9183 = vmatprep.subr.bf16.mxu1 %v17040_v14  ;;  %v3090_v14 = vld [vmem:[#allocation10 + $0x1f90] sm:$0xff]  ;;  %v16960_v63 = vcombine.high %v2962_v31, %v2966_v33  ;;  %v16959_v47 = vcombine.low %v2962_v31, %v2966_v33  ;;  %v2239_v31 = vld [vmem:[#allocation10 + $0x4f8] sm:$0xff] }
 0x488   : > { %9143 = vmatpush1.bf16.msra.mxu0 %v16911_v2  ;;  %v3094_v39 = vld [vmem:[#allocation10 + $0x1fb0] sm:$0xff] }
 0x489   : > { %9144 = vmatprep.subr.bf16.mxu0 %v16920_v54  ;;  %v17088_v2 = vcombine.high %v3090_v14, %v3094_v39  ;;  %v2974_v54 = vld [vmem:[#allocation10 + $0x1bf0] sm:$0xff]  ;;  %v17087_v30 = vcombine.low %v3090_v14, %v3094_v39 }
 0x48a   : > { %9184 = vmatpush1.bf16.msra.mxu1 %v17039_v11  ;;  %v2970_v11 = vld [vmem:[#allocation10 + $0x1bd0] sm:$0xff] }
 0x48b   : > { %9185 = vmatprep.subr.bf16.mxu1 %v17048_v4  ;;  %v3098_v4 = vld [vmem:[#allocation10 + $0x1fd0] sm:$0xff]  ;;  %v16968_v43 = vcombine.high %v2970_v11, %v2974_v54  ;;  %v16967_v53 = vcombine.low %v2970_v11, %v2974_v54  ;;  %v2247_v11 = vld [vmem:[#allocation10 + $0x538] sm:$0xff] }
 0x48c   : > { %9145 = vmatpush1.bf16.msra.mxu0 %v16919_v45  ;;  %v3102_v10 = vld [vmem:[#allocation10 + $0x1ff0] sm:$0xff] }
 0x48d   : > { %9146 = vmatprep.subr.bf16.mxu0 %v16928_v20  ;;  %v17096_v45 = vcombine.high %v3098_v4, %v3102_v10  ;;  %v2087_v20 = vld [vmem:[#allocation10 + $0x38] sm:$0xff]  ;;  %v17095_v24 = vcombine.low %v3098_v4, %v3102_v10 }
 0x48e   : > { %9186 = vmatpush1.bf16.msra.mxu1 %v17047_v19  ;;  %v2083_v19 = vld [vmem:[#allocation10 + $0x18] sm:$0xff] }
 0x48f   : > { %9187 = vmatprep.subr.bf16.mxu1 %v17056_v56  ;;  %v2211_v56 = vld [vmem:[#allocation10 + $0x418] sm:$0xff]  ;;  %v16082_v13 = vcombine.high %v2083_v19, %v2087_v20  ;;  %v16081_v37 = vcombine.low %v2083_v19, %v2087_v20 }
 0x490   : > { %9147 = vmatpush1.bf16.msra.mxu0 %v16927_v17  ;;  %v16210_v17 = vcombine.high %v2211_v56, %v2215_v16  ;;  %v16209_v36 = vcombine.low %v2211_v56, %v2215_v16  ;;  %v2123_v10 = vld [vmem:[#allocation10 + $0x158] sm:$0xff] }
 0x491   : > { %9148 = vmatprep.subr.bf16.mxu0 %v16936_v29  ;;  %v2095_v29 = vld [vmem:[#allocation10 + $0x78] sm:$0xff] }
 0x492   : > { %9188 = vmatpush1.bf16.msra.mxu1 %v17055_v61  ;;  %v2091_v61 = vld [vmem:[#allocation10 + $0x58] sm:$0xff] }
 0x493   : > { %9189 = vmatprep.subr.bf16.mxu1 %v17064_v23  ;;  %v2219_v23 = vld [vmem:[#allocation10 + $0x458] sm:$0xff]  ;;  %v16090_v51 = vcombine.high %v2091_v61, %v2095_v29  ;;  %v16089_v42 = vcombine.low %v2091_v61, %v2095_v29 }
 0x494   : > { %9149 = vmatpush1.bf16.msra.mxu0 %v16935_v44  ;;  %v16218_v44 = vcombine.high %v2219_v23, %v2223_v15  ;;  %v16217_v57 = vcombine.low %v2219_v23, %v2223_v15  ;;  %v2131_v16 = vld [vmem:[#allocation10 + $0x198] sm:$0xff] }
 0x495   : > { %9150 = vmatprep.subr.bf16.mxu0 %v16944_v18  ;;  %v2103_v18 = vld [vmem:[#allocation10 + $0xb8] sm:$0xff] }
 0x496   : > { %9190 = vmatpush1.bf16.msra.mxu1 %v17063_v34  ;;  %v2099_v34 = vld [vmem:[#allocation10 + $0x98] sm:$0xff] }
 0x497   : > { %9191 = vmatprep.subr.bf16.mxu1 %v17072_v50  ;;  %v2227_v50 = vld [vmem:[#allocation10 + $0x498] sm:$0xff]  ;;  %v16098_v41 = vcombine.high %v2099_v34, %v2103_v18  ;;  %v16097_v33 = vcombine.low %v2099_v34, %v2103_v18 }
 0x498   : > { %9151 = vmatpush1.bf16.msra.mxu0 %v16943_v12  ;;  %v16226_v12 = vcombine.high %v2227_v50, %v2231_v0  ;;  %v16225_v14 = vcombine.low %v2227_v50, %v2231_v0  ;;  %v2267_v34 = vld [vmem:[#allocation10 + $0x5d8] sm:$0xff] }
 0x499   : > { %9152 = vmatprep.subr.bf16.mxu0 %v16952_v46  ;;  %v2111_v46 = vld [vmem:[#allocation10 + $0xf8] sm:$0xff] }
 0x49a   : > { %9192 = vmatpush1.bf16.msra.mxu1 %v17071_v58  ;;  %v2107_v58 = vld [vmem:[#allocation10 + $0xd8] sm:$0xff] }
 0x49b   : > { %9193 = vmatprep.subr.bf16.mxu1 %v17080_v55  ;;  %v2235_v55 = vld [vmem:[#allocation10 + $0x4d8] sm:$0xff]  ;;  %v16106_v39 = vcombine.high %v2107_v58, %v2111_v46  ;;  %v16105_v54 = vcombine.low %v2107_v58, %v2111_v46 }
 0x49c   : > { %9153 = vmatpush1.bf16.msra.mxu0 %v16951_v27  ;;  %v16234_v27 = vcombine.high %v2235_v55, %v2239_v31  ;;  %v2271_v18 = vld [vmem:[#allocation10 + $0x5f8] sm:$0xff] }
 0x49d   : > { %9154 = vmatprep.subr.bf16.mxu0 %v16960_v63  ;;  %v2119_v63 = vld [vmem:[#allocation10 + $0x138] sm:$0xff] }
 0x49e   : > { %9194 = vmatpush1.bf16.msra.mxu1 %v17079_v48  ;;  %v2115_v48 = vld [vmem:[#allocation10 + $0x118] sm:$0xff] }
 0x49f   : > { %9195 = vmatprep.subr.bf16.mxu1 %v17088_v2  ;;  %v2243_v2 = vld [vmem:[#allocation10 + $0x518] sm:$0xff]  ;;  %v16114_v4 = vcombine.high %v2115_v48, %v2119_v63 }
 0x4a0   : > { %9155 = vmatpush1.bf16.msra.mxu0 %v16959_v47  ;;  %v2127_v47 = vld [vmem:[#allocation10 + $0x178] sm:$0xff]  ;;  %v16241_v19 = vcombine.low %v2243_v2, %v2247_v11 }
 0x4a1   : > { %9156 = vmatprep.subr.bf16.mxu0 %v16968_v43  ;;  %v2255_v43 = vld [vmem:[#allocation10 + $0x578] sm:$0xff]  ;;  %v16122_v20 = vcombine.high %v2123_v10, %v2127_v47 }
 0x4a2   : > { %9196 = vmatpush1.bf16.msra.mxu1 %v17087_v30  ;;  %v2251_v30 = vld [vmem:[#allocation10 + $0x558] sm:$0xff] }
 0x4a3   : > { %9197 = vmatprep.subr.bf16.mxu1 %v17096_v45  ;;  %v16113_v45 = vcombine.low %v2115_v48, %v2119_v63  ;;  %v16250_v56 = vcombine.high %v2251_v30, %v2255_v43  ;;  %v16249_v61 = vcombine.low %v2251_v30, %v2255_v43  ;;  %v2279_v48 = vld [vmem:[#allocation10 + $0x638] sm:$0xff] }
 0x4a4   : > { %9157 = vmatpush1.bf16.msra.mxu0 %v16967_v53  ;;  %v2135_v53 = vld [vmem:[#allocation10 + $0x1b8] sm:$0xff] }
 0x4a5   : > { %9208 = vmatprep.subr.bf16.mxu0 %v16082_v13  ;;  %v2263_v13 = vld [vmem:[#allocation10 + $0x5b8] sm:$0xff]  ;;  %v16130_v29 = vcombine.high %v2131_v16, %v2135_v53 }
 0x4a6   : > { %9198 = vmatpush1.bf16.msra.mxu1 %v17095_v24  ;;  %v2259_v24 = vld [vmem:[#allocation10 + $0x598] sm:$0xff] }
 0x4a7   : > { %9249 = vmatprep.subr.bf16.mxu1 %v16210_v17  ;;  %9159 = vmatmul.mubr.bf16.vlgmr.msra.gmra.mrb[44].mxu0 %v19984_v5  ;;  %v16121_v17 = vcombine.low %v2123_v10, %v2127_v47  ;;  %v16258_v15 = vcombine.high %v2259_v24, %v2263_v13  ;;  %v16257_v46 = vcombine.low %v2259_v24, %v2263_v13  ;;  %v2287_v10 = vld [vmem:[#allocation10 + $0x678] sm:$0xff] }
 0x4a8   : > { %9209 = vmatpush1.bf16.msra.mxu0 %v16081_v37  ;;  %9240 = vmatprep.mubr.bf16.mxu0 %v19896_v49  ;;  %v16233_v49 = vcombine.low %v2235_v55, %v2239_v31  ;;  %v2139_v37 = vld [vmem:[#allocation10 + $0x1d8] sm:$0xff] }
 0x4a9   : > { %9200 = vmatmul.mubr.bf16.vlgmr.msra.gmra.mrb[44].mxu1 %v19988_v40  ;;  %9210 = vmatprep.subr.bf16.mxu0 %v16090_v51 }
 0x4aa   : > { %9250 = vmatpush1.bf16.msra.mxu1 %v16209_v36  ;;  %9281 = vmatprep.mubr.bf16.mxu1 %v19901_v28  ;;  %v16242_v28 = vcombine.high %v2243_v2, %v2247_v11  ;;  %v2143_v36 = vld [vmem:[#allocation10 + $0x1f8] sm:$0xff]  ;;  %v16265_v2 = vcombine.low %v2267_v34, %v2271_v18 }
 0x4ab   : > { %9251 = vmatprep.subr.bf16.mxu1 %v16218_v44  ;;  %v16138_v55 = vcombine.high %v2139_v37, %v2143_v36  ;;  %v16137_v63 = vcombine.low %v2139_v37, %v2143_v36 }
 0x4ac   : > { %9211 = vmatpush1.bf16.msra.mxu0 %v16089_v42 }
 0x4ad   : > { %9212 = vmatprep.subr.bf16.mxu0 %v16098_v41 }
 0x4ae   : > { %9252 = vmatpush1.bf16.msra.mxu1 %v16217_v57  ;;  %v16129_v57 = vcombine.low %v2131_v16, %v2135_v53  ;;  %v2295_v16 = vld [vmem:[#allocation10 + $0x6b8] sm:$0xff] }
 0x4af   : > { %9253 = vmatprep.subr.bf16.mxu1 %v16226_v12 }
 0x4b0   : > { %9213 = vmatpush1.bf16.msra.mxu0 %v16097_v33  ;;  %v16266_v33 = vcombine.high %v2267_v34, %v2271_v18  ;;  %v2179_v34 = vld [vmem:[#allocation10 + $0x318] sm:$0xff] }
 0x4b1   : > { %9214 = vmatprep.subr.bf16.mxu0 %v16106_v39  ;;  %v2151_v39 = vld [vmem:[#allocation10 + $0x238] sm:$0xff] }
 0x4b2   : > { %9254 = vmatpush1.bf16.msra.mxu1 %v16225_v14  ;;  %v2147_v14 = vld [vmem:[#allocation10 + $0x218] sm:$0xff] }
 0x4b3   : > { %9255 = vmatprep.subr.bf16.mxu1 %v16234_v27  ;;  %v2275_v27 = vld [vmem:[#allocation10 + $0x618] sm:$0xff]  ;;  %v16146_v11 = vcombine.high %v2147_v14, %v2151_v39  ;;  %v16145_v47 = vcombine.low %v2147_v14, %v2151_v39 }
 0x4b4   : > { %9215 = vmatpush1.bf16.msra.mxu0 %v16105_v54  ;;  %v16274_v54 = vcombine.high %v2275_v27, %v2279_v48  ;;  %v16273_v30 = vcombine.low %v2275_v27, %v2279_v48  ;;  %v2183_v18 = vld [vmem:[#allocation10 + $0x338] sm:$0xff] }
 0x4b5   : > { %9216 = vmatprep.subr.bf16.mxu0 %v16114_v4  ;;  %v2159_v4 = vld [vmem:[#allocation10 + $0x278] sm:$0xff]  ;;  %v16177_v39 = vcombine.low %v2179_v34, %v2183_v18 }
 0x4b6   : > { %9256 = vmatpush1.bf16.msra.mxu1 %v16233_v49  ;;  %v2155_v49 = vld [vmem:[#allocation10 + $0x258] sm:$0xff] }
 0x4b7   : > { %9257 = vmatprep.subr.bf16.mxu1 %v16242_v28  ;;  %v2283_v28 = vld [vmem:[#allocation10 + $0x658] sm:$0xff]  ;;  %v16154_v43 = vcombine.high %v2155_v49, %v2159_v4  ;;  %v16153_v53 = vcombine.low %v2155_v49, %v2159_v4 }
 0x4b8   : > { %9217 = vmatpush1.bf16.msra.mxu0 %v16113_v45  ;;  %v16282_v45 = vcombine.high %v2283_v28, %v2287_v10  ;;  %v16281_v24 = vcombine.low %v2283_v28, %v2287_v10  ;;  %v2319_v14 = vld [vmem:[#allocation10 + $0x778] sm:$0xff] }
 0x4b9   : > { %9218 = vmatprep.subr.bf16.mxu0 %v16122_v20  ;;  %v2167_v20 = vld [vmem:[#allocation10 + $0x2b8] sm:$0xff] }
 0x4ba   : > { %9258 = vmatpush1.bf16.msra.mxu1 %v16241_v19  ;;  %v8914_v23 = vpop.f32.mrb[32].mxu0  ;;  %v2163_v19 = vld [vmem:[#allocation10 + $0x298] sm:$0xff] }
 0x4bb   : > { %9259 = vmatprep.subr.bf16.mxu1 %v16250_v56  ;;  %v8916_v44 = vpop.f32.mrb[33].mxu0  ;;  %v2291_v56 = vld [vmem:[#allocation10 + $0x698] sm:$0xff]  ;;  %v16162_v13 = vcombine.high %v2163_v19, %v2167_v20  ;;  %v16161_v37 = vcombine.low %v2163_v19, %v2167_v20 }
 0x4bc   : > { %v8955_v51 = vpop.f32.mrb[32].mxu1  ;;  %v8918_v42 = vpop.f32.mrb[34].mxu0  ;;  %9219 = vmatpush1.bf16.msra.mxu0 %v16121_v17  ;;  %v16290_v17 = vcombine.high %v2291_v56, %v2295_v16  ;;  %v16289_v36 = vcombine.low %v2291_v56, %v2295_v16  ;;  %v2327_v49 = vld [vmem:[#allocation10 + $0x7b8] sm:$0xff] }
 0x4bd   : > { %v20070_v50 = vadd.f32 %v8955_v51, %v8914_v23  ;;  %v8957_v0 = vpop.f32.mrb[33].mxu1  ;;  %v8919_v58 = vpop.f32.mrb[35].mxu0  ;;  %9220 = vmatprep.subr.bf16.mxu0 %v16130_v29  ;;  %v2175_v29 = vld [vmem:[#allocation10 + $0x2f8] sm:$0xff] }
 0x4be   : > { %v20072_v41 = vadd.f32 %v8957_v0, %v8916_v44  ;;  %v8959_v12 = vpop.f32.mrb[34].mxu1  ;;  %9260 = vmatpush1.bf16.msra.mxu1 %v16249_v61  ;;  %v2171_v61 = vld [vmem:[#allocation10 + $0x2d8] sm:$0xff]  ;;  %v16178_v58 = vcombine.high %v2179_v34, %v2183_v18 }
 0x4bf   : > { %v8960_v31 = vpop.f32.mrb[35].mxu1  ;;  %9261 = vmatprep.subr.bf16.mxu1 %v16258_v15  ;;  %v2299_v23 = vld [vmem:[#allocation10 + $0x6d8] sm:$0xff]  ;;  %v16170_v51 = vcombine.high %v2171_v61, %v2175_v29 }
 0x4c0   : > { %9221 = vmatpush1.bf16.msra.mxu0 %v16129_v57  ;;  %v2303_v15 = vld [vmem:[#allocation10 + $0x6f8] sm:$0xff]  ;;  %v16169_v57 = vcombine.low %v2171_v61, %v2175_v29 }
 0x4c1   : > { %9222 = vmatprep.subr.bf16.mxu0 %v16138_v55  ;;  %v16298_v44 = vcombine.high %v2299_v23, %v2303_v15  ;;  %v2307_v0 = vld [vmem:[#allocation10 + $0x718] sm:$0xff]  ;;  %v16297_v12 = vcombine.low %v2299_v23, %v2303_v15 }
 0x4c2   : > { %9262 = vmatpush1.bf16.msra.mxu1 %v16257_v46  ;;  %v2311_v42 = vld [vmem:[#allocation10 + $0x738] sm:$0xff] }
 0x4c3   : > { %9263 = vmatprep.subr.bf16.mxu1 %v16266_v33  ;;  %v16306_v46 = vcombine.high %v2307_v0, %v2311_v42  ;;  %v2187_v55 = vld [vmem:[#allocation10 + $0x358] sm:$0xff]  ;;  %v16305_v27 = vcombine.low %v2307_v0, %v2311_v42 }
 0x4c4   : > { %9223 = vmatpush1.bf16.msra.mxu0 %v16137_v63  ;;  %v2191_v31 = vld [vmem:[#allocation10 + $0x378] sm:$0xff] }
 0x4c5   : > { %9224 = vmatprep.subr.bf16.mxu0 %v16146_v11  ;;  %v2315_v33 = vld [vmem:[#allocation10 + $0x758] sm:$0xff]  ;;  %v16186_v48 = vcombine.high %v2187_v55, %v2191_v31  ;;  %v16185_v4 = vcombine.low %v2187_v55, %v2191_v31 }
 0x4c6   : > { %9264 = vmatpush1.bf16.msra.mxu1 %v16265_v2  ;;  %v16314_v63 = vcombine.high %v2315_v33, %v2319_v14  ;;  %v2195_v2 = vld [vmem:[#allocation10 + $0x398] sm:$0xff]  ;;  %v16313_v28 = vcombine.low %v2315_v33, %v2319_v14 }
 0x4c7   : > { %9265 = vmatprep.subr.bf16.mxu1 %v16274_v54  ;;  %v2199_v11 = vld [vmem:[#allocation10 + $0x3b8] sm:$0xff] }
 0x4c8   : > { %9225 = vmatpush1.bf16.msra.mxu0 %v16145_v47  ;;  %v2323_v54 = vld [vmem:[#allocation10 + $0x798] sm:$0xff]  ;;  %v16194_v10 = vcombine.high %v2195_v2, %v2199_v11  ;;  %v16193_v20 = vcombine.low %v2195_v2, %v2199_v11 }
 0x4c9   : > { %9226 = vmatprep.subr.bf16.mxu0 %v16154_v43  ;;  %v16322_v47 = vcombine.high %v2323_v54, %v2327_v49  ;;  %v2207_v43 = vld [vmem:[#allocation10 + $0x3f8] sm:$0xff]  ;;  %v16321_v56 = vcombine.low %v2323_v54, %v2327_v49 }
 0x4ca   : > { %9266 = vmatpush1.bf16.msra.mxu1 %v16273_v30  ;;  %v2203_v30 = vld [vmem:[#allocation10 + $0x3d8] sm:$0xff] }
 0x4cb   : > { %9267 = vmatprep.subr.bf16.mxu1 %v16282_v45  ;;  %v2331_v45 = vld [vmem:[#allocation10 + $0x7d8] sm:$0xff]  ;;  %v16202_v16 = vcombine.high %v2203_v30, %v2207_v43  ;;  %v16201_v29 = vcombine.low %v2203_v30, %v2207_v43 }
 0x4cc   : > { %9227 = vmatpush1.bf16.msra.mxu0 %v16153_v53  ;;  %v2335_v19 = vld [vmem:[#allocation10 + $0x7f8] sm:$0xff] }
 0x4cd   : > { %9228 = vmatprep.subr.bf16.mxu0 %v16162_v13  ;;  %v16330_v53 = vcombine.high %v2331_v45, %v2335_v19  ;;  %v2343_v13 = vld [vmem:[#allocation10 + $0x838] sm:$0xff]  ;;  %v16329_v23 = vcombine.low %v2331_v45, %v2335_v19 }
 0x4ce   : > { %9268 = vmatpush1.bf16.msra.mxu1 %v16281_v24  ;;  %v2339_v24 = vld [vmem:[#allocation10 + $0x818] sm:$0xff] }
 0x4cf   : > { %9269 = vmatprep.subr.bf16.mxu1 %v16290_v17  ;;  %v2467_v17 = vld [vmem:[#allocation10 + $0xc18] sm:$0xff]  ;;  %v16338_v15 = vcombine.high %v2339_v24, %v2343_v13  ;;  %v16337_v18 = vcombine.low %v2339_v24, %v2343_v13 }
 0x4d0   : > { %9229 = vmatpush1.bf16.msra.mxu0 %v16161_v37  ;;  %v2471_v61 = vld [vmem:[#allocation10 + $0xc38] sm:$0xff] }
 0x4d1   : > { %9230 = vmatprep.subr.bf16.mxu0 %v16170_v51  ;;  %v16466_v37 = vcombine.high %v2467_v17, %v2471_v61  ;;  %v2351_v51 = vld [vmem:[#allocation10 + $0x878] sm:$0xff]  ;;  %v16465_v0 = vcombine.low %v2467_v17, %v2471_v61 }
 0x4d2   : > { %9270 = vmatpush1.bf16.msra.mxu1 %v16289_v36  ;;  %v2347_v36 = vld [vmem:[#allocation10 + $0x858] sm:$0xff] }
 0x4d3   : > { %9271 = vmatprep.subr.bf16.mxu1 %v16298_v44  ;;  %v2475_v44 = vld [vmem:[#allocation10 + $0xc58] sm:$0xff]  ;;  %v16346_v42 = vcombine.high %v2347_v36, %v2351_v51  ;;  %v16345_v31 = vcombine.low %v2347_v36, %v2351_v51 }
 0x4d4   : > { %9231 = vmatpush1.bf16.msra.mxu0 %v16169_v57  ;;  %v2479_v34 = vld [vmem:[#allocation10 + $0xc78] sm:$0xff] }
 0x4d5   : > { %9232 = vmatprep.subr.bf16.mxu0 %v16178_v58  ;;  %v16474_v57 = vcombine.high %v2475_v44, %v2479_v34  ;;  %v2359_v58 = vld [vmem:[#allocation10 + $0x8b8] sm:$0xff]  ;;  %v16473_v33 = vcombine.low %v2475_v44, %v2479_v34 }
 0x4d6   : > { %9272 = vmatpush1.bf16.msra.mxu1 %v16297_v12  ;;  %v2355_v12 = vld [vmem:[#allocation10 + $0x898] sm:$0xff] }
 0x4d7   : > { %9273 = vmatprep.subr.bf16.mxu1 %v16306_v46  ;;  %v2483_v46 = vld [vmem:[#allocation10 + $0xc98] sm:$0xff]  ;;  %v16354_v14 = vcombine.high %v2355_v12, %v2359_v58 }
 0x4d8   : > { %9233 = vmatpush1.bf16.msra.mxu0 %v16177_v39  ;;  %v2487_v55 = vld [vmem:[#allocation10 + $0xcb8] sm:$0xff] }
 0x4d9   : > { %9234 = vmatprep.subr.bf16.mxu0 %v16186_v48  ;;  %v16482_v39 = vcombine.high %v2483_v46, %v2487_v55  ;;  %v2367_v48 = vld [vmem:[#allocation10 + $0x8f8] sm:$0xff] }
 0x4da   : > { %9274 = vmatpush1.bf16.msra.mxu1 %v16305_v27  ;;  %v2363_v27 = vld [vmem:[#allocation10 + $0x8d8] sm:$0xff] }
 0x4db   : > { %9275 = vmatprep.subr.bf16.mxu1 %v16314_v63  ;;  %v2491_v63 = vld [vmem:[#allocation10 + $0xcd8] sm:$0xff]  ;;  %v16362_v11 = vcombine.high %v2363_v27, %v2367_v48 }
 0x4dc   : > { %9235 = vmatpush1.bf16.msra.mxu0 %v16185_v4  ;;  %v2495_v2 = vld [vmem:[#allocation10 + $0xcf8] sm:$0xff] }
 0x4dd   : > { %9236 = vmatprep.subr.bf16.mxu0 %v16194_v10  ;;  %v16490_v54 = vcombine.high %v2491_v63, %v2495_v2  ;;  %v2371_v49 = vld [vmem:[#allocation10 + $0x918] sm:$0xff] }
 0x4de   : > { %9276 = vmatpush1.bf16.msra.mxu1 %v16313_v28  ;;  %v2375_v4 = vld [vmem:[#allocation10 + $0x938] sm:$0xff] }
 0x4df   : > { %9277 = vmatprep.subr.bf16.mxu1 %v16322_v47  ;;  %v2499_v28 = vld [vmem:[#allocation10 + $0xd18] sm:$0xff]  ;;  %v16361_v47 = vcombine.low %v2363_v27, %v2367_v48  ;;  %v16370_v30 = vcombine.high %v2371_v49, %v2375_v4 }
 0x4e0   : > { %9237 = vmatpush1.bf16.msra.mxu0 %v16193_v20  ;;  %v2503_v10 = vld [vmem:[#allocation10 + $0xd38] sm:$0xff] }
 0x4e1   : > { %9238 = vmatprep.subr.bf16.mxu0 %v16202_v16  ;;  %v2379_v43 = vld [vmem:[#allocation10 + $0x958] sm:$0xff]  ;;  %v16497_v16 = vcombine.low %v2499_v28, %v2503_v10 }
 0x4e2   : > { %9278 = vmatpush1.bf16.msra.mxu1 %v16321_v56  ;;  %v2383_v45 = vld [vmem:[#allocation10 + $0x978] sm:$0xff]  ;;  %v16369_v56 = vcombine.low %v2371_v49, %v2375_v4 }
 0x4e3   : > { %9279 = vmatprep.subr.bf16.mxu1 %v16330_v53  ;;  %v2507_v19 = vld [vmem:[#allocation10 + $0xd58] sm:$0xff]  ;;  %v16378_v53 = vcombine.high %v2379_v43, %v2383_v45 }
 0x4e4   : > { %9239 = vmatpush1.bf16.msra.mxu0 %v16201_v29  ;;  %v2511_v20 = vld [vmem:[#allocation10 + $0xd78] sm:$0xff] }
 0x4e5   : > { %9290 = vmatprep.subr.bf16.mxu0 %v16338_v15  ;;  %v16506_v24 = vcombine.high %v2507_v19, %v2511_v20  ;;  %v2387_v13 = vld [vmem:[#allocation10 + $0x998] sm:$0xff]  ;;  %v16505_v15 = vcombine.low %v2507_v19, %v2511_v20 }
 0x4e6   : > { %9280 = vmatpush1.bf16.msra.mxu1 %v16329_v23  ;;  %v2391_v17 = vld [vmem:[#allocation10 + $0x9b8] sm:$0xff]  ;;  %v16377_v23 = vcombine.low %v2379_v43, %v2383_v45 }
 0x4e7   : > { %9331 = vmatprep.subr.bf16.mxu1 %v16466_v37  ;;  %9241 = vmatmul.mubr.bf16.vlgmr.msra.gmra.mrb[48].mxu0 %v19914_v7  ;;  %v16353_v7 = vcombine.low %v2355_v12, %v2359_v58  ;;  %v2515_v61 = vld [vmem:[#allocation10 + $0xd98] sm:$0xff]  ;;  %v16386_v37 = vcombine.high %v2387_v13, %v2391_v17 }
 0x4e8   : > { %9291 = vmatpush1.bf16.msra.mxu0 %v16337_v18  ;;  %9322 = vmatprep.mubr.bf16.mxu0 %v19922_v8  ;;  %v16489_v8 = vcombine.low %v2491_v63, %v2495_v2  ;;  %v2519_v29 = vld [vmem:[#allocation10 + $0xdb8] sm:$0xff] }
 0x4e9   : > { %9282 = vmatmul.mubr.bf16.vlgmr.msra.gmra.mrb[48].mxu1 %v19920_v38  ;;  %9292 = vmatprep.subr.bf16.mxu0 %v16346_v42  ;;  %v16481_v38 = vcombine.low %v2483_v46, %v2487_v55  ;;  %v16514_v51 = vcombine.high %v2515_v61, %v2519_v29  ;;  %v2395_v44 = vld [vmem:[#allocation10 + $0x9d8] sm:$0xff]  ;;  %v16513_v27 = vcombine.low %v2515_v61, %v2519_v29 }
 0x4ea   : > { %9332 = vmatpush1.bf16.msra.mxu1 %v16465_v0  ;;  %9363 = vmatprep.mubr.bf16.mxu1 %v19925_v22  ;;  %v16498_v22 = vcombine.high %v2499_v28, %v2503_v10  ;;  %v2399_v34 = vld [vmem:[#allocation10 + $0x9f8] sm:$0xff] }
 0x4eb   : > { %9333 = vmatprep.subr.bf16.mxu1 %v16474_v57  ;;  %v2523_v57 = vld [vmem:[#allocation10 + $0xdd8] sm:$0xff]  ;;  %v16394_v48 = vcombine.high %v2395_v44, %v2399_v34 }
 0x4ec   : > { %9293 = vmatpush1.bf16.msra.mxu0 %v16345_v31  ;;  %v2527_v12 = vld [vmem:[#allocation10 + $0xdf8] sm:$0xff]  ;;  %v16385_v31 = vcombine.low %v2387_v13, %v2391_v17 }
 0x4ed   : > { %9294 = vmatprep.subr.bf16.mxu0 %v16354_v14  ;;  %v16522_v2 = vcombine.high %v2523_v57, %v2527_v12  ;;  %v16521_v49 = vcombine.low %v2523_v57, %v2527_v12  ;;  %v2411_v10 = vld [vmem:[#allocation10 + $0xa58] sm:$0xff] }
 0x4ee   : > { %9334 = vmatpush1.bf16.msra.mxu1 %v16473_v33  ;;  %v2419_v20 = vld [vmem:[#allocation10 + $0xa98] sm:$0xff] }
 0x4ef   : > { %9335 = vmatprep.subr.bf16.mxu1 %v16482_v39  ;;  %v2427_v29 = vld [vmem:[#allocation10 + $0xad8] sm:$0xff] }
 0x4f0   : > { %9295 = vmatpush1.bf16.msra.mxu0 %v16353_v7  ;;  %v2403_v7 = vld [vmem:[#allocation10 + $0xa18] sm:$0xff] }
 0x4f1   : > { %9296 = vmatprep.subr.bf16.mxu0 %v16362_v11  ;;  %v2535_v11 = vld [vmem:[#allocation10 + $0xe38] sm:$0xff] }
 0x4f2   : > { %9336 = vmatpush1.bf16.msra.mxu1 %v16481_v38  ;;  %v2407_v38 = vld [vmem:[#allocation10 + $0xa38] sm:$0xff] }
 0x4f3   : > { %9337 = vmatprep.subr.bf16.mxu1 %v16490_v54  ;;  %v16393_v54 = vcombine.low %v2395_v44, %v2399_v34  ;;  %v16402_v4 = vcombine.high %v2403_v7, %v2407_v38  ;;  %v2567_v57 = vld [vmem:[#allocation10 + $0xf38] sm:$0xff] }
 0x4f4   : > { %9297 = vmatpush1.bf16.msra.mxu0 %v16361_v47  ;;  %v2415_v47 = vld [vmem:[#allocation10 + $0xa78] sm:$0xff] }
 0x4f5   : > { %9298 = vmatprep.subr.bf16.mxu0 %v16370_v30  ;;  %v2543_v30 = vld [vmem:[#allocation10 + $0xe78] sm:$0xff]  ;;  %v16410_v45 = vcombine.high %v2411_v10, %v2415_v47 }
 0x4f6   : > { %9338 = vmatpush1.bf16.msra.mxu1 %v16489_v8  ;;  %v2539_v8 = vld [vmem:[#allocation10 + $0xe58] sm:$0xff] }
 0x4f7   : > { %9339 = vmatprep.subr.bf16.mxu1 %v16498_v22  ;;  %v16401_v22 = vcombine.low %v2403_v7, %v2407_v38  ;;  %v16538_v19 = vcombine.high %v2539_v8, %v2543_v30  ;;  %v16537_v13 = vcombine.low %v2539_v8, %v2543_v30  ;;  %v2451_v38 = vld [vmem:[#allocation10 + $0xb98] sm:$0xff] }
 0x4f8   : > { %9299 = vmatpush1.bf16.msra.mxu0 %v16369_v56  ;;  %v2423_v56 = vld [vmem:[#allocation10 + $0xab8] sm:$0xff] }
 0x4f9   : > { %9300 = vmatprep.subr.bf16.mxu0 %v16378_v53  ;;  %v2551_v53 = vld [vmem:[#allocation10 + $0xeb8] sm:$0xff]  ;;  %v16418_v17 = vcombine.high %v2419_v20, %v2423_v56 }
 0x4fa   : > { %9340 = vmatpush1.bf16.msra.mxu1 %v16497_v16  ;;  %v8996_v36 = vpop.f32.mrb[36].mxu0  ;;  %v2547_v16 = vld [vmem:[#allocation10 + $0xe98] sm:$0xff] }
 0x4fb   : > { %9341 = vmatprep.subr.bf16.mxu1 %v16506_v24  ;;  %v8997_v18 = vadd.f32 %v8996_v36, %v20070_v50  ;;  %v8998_v42 = vpop.f32.mrb[37].mxu0  ;;  %v16409_v24 = vcombine.low %v2411_v10, %v2415_v47  ;;  %v16546_v61 = vcombine.high %v2547_v16, %v2551_v53  ;;  %v16417_v36 = vcombine.low %v2419_v20, %v2423_v56  ;;  %v2459_v47 = vld [vmem:[#allocation10 + $0xbd8] sm:$0xff] }
 0x4fc   : > { %v9037_v0 = vpop.f32.mrb[36].mxu1  ;;  %v8999_v58 = vadd.f32 %v8998_v42, %v20072_v41  ;;  %v9000_v55 = vpop.f32.mrb[38].mxu0  ;;  %9301 = vmatpush1.bf16.msra.mxu0 %v16377_v23  ;;  %v2531_v41 = vld [vmem:[#allocation10 + $0xe18] sm:$0xff] }
 0x4fd   : > { %v9039_v46 = vpop.f32.mrb[37].mxu1  ;;  %v20080_v33 = vadd.f32 %v9037_v0, %v8997_v18  ;;  %v9001_v39 = vpop.f32.mrb[39].mxu0  ;;  %9302 = vmatprep.subr.bf16.mxu0 %v16386_v37  ;;  %v16530_v28 = vcombine.high %v2531_v41, %v2535_v11  ;;  %v16529_v43 = vcombine.low %v2531_v41, %v2535_v11  ;;  %v2431_v23 = vld [vmem:[#allocation10 + $0xaf8] sm:$0xff] }
 0x4fe   : > { %v9041_v14 = vpop.f32.mrb[38].mxu1  ;;  %9342 = vmatpush1.bf16.msra.mxu1 %v16505_v15  ;;  %v20082_v63 = vadd.f32 %v9039_v46, %v8999_v58  ;;  %v2555_v15 = vld [vmem:[#allocation10 + $0xed8] sm:$0xff]  ;;  %v16426_v44 = vcombine.high %v2427_v29, %v2431_v23  ;;  %v16425_v12 = vcombine.low %v2427_v29, %v2431_v23 }
 0x4ff   : > { %v9042_v50 = vpop.f32.mrb[39].mxu1  ;;  %9343 = vmatprep.subr.bf16.mxu1 %v16514_v51  ;;  %v2559_v37 = vld [vmem:[#allocation10 + $0xef8] sm:$0xff]  ;;  %v16545_v51 = vcombine.low %v2547_v16, %v2551_v53 }
 0x500   : > { %9303 = vmatpush1.bf16.msra.mxu0 %v16385_v31  ;;  %v16554_v34 = vcombine.high %v2555_v15, %v2559_v37  ;;  %v2435_v18 = vld [vmem:[#allocation10 + $0xb18] sm:$0xff]  ;;  %v16553_v58 = vcombine.low %v2555_v15, %v2559_v37 }
 0x501   : > { %9304 = vmatprep.subr.bf16.mxu0 %v16394_v48  ;;  %v2439_v0 = vld [vmem:[#allocation10 + $0xb38] sm:$0xff] }
 0x502   : > { %9344 = vmatpush1.bf16.msra.mxu1 %v16513_v27  ;;  %v2563_v42 = vld [vmem:[#allocation10 + $0xf18] sm:$0xff]  ;;  %v16434_v46 = vcombine.high %v2435_v18, %v2439_v0  ;;  %v16433_v48 = vcombine.low %v2435_v18, %v2439_v0 }
 0x503   : > { %9345 = vmatprep.subr.bf16.mxu1 %v16522_v2  ;;  %v16562_v55 = vcombine.high %v2563_v42, %v2567_v57  ;;  %v2443_v31 = vld [vmem:[#allocation10 + $0xb58] sm:$0xff]  ;;  %v16561_v50 = vcombine.low %v2563_v42, %v2567_v57 }
 0x504   : > { %9305 = vmatpush1.bf16.msra.mxu0 %v16393_v54  ;;  %v2447_v14 = vld [vmem:[#allocation10 + $0xb78] sm:$0xff] }
 0x505   : > { %9306 = vmatprep.subr.bf16.mxu0 %v16402_v4  ;;  %v2571_v39 = vld [vmem:[#allocation10 + $0xf58] sm:$0xff]  ;;  %v16442_v2 = vcombine.high %v2443_v31, %v2447_v14 }
 0x506   : > { %9346 = vmatpush1.bf16.msra.mxu1 %v16521_v49  ;;  %v2575_v27 = vld [vmem:[#allocation10 + $0xf78] sm:$0xff]  ;;  %v16441_v49 = vcombine.low %v2443_v31, %v2447_v14 }
 0x507   : > { %9347 = vmatprep.subr.bf16.mxu1 %v16530_v28  ;;  %v16570_v7 = vcombine.high %v2571_v39, %v2575_v27  ;;  %v2455_v41 = vld [vmem:[#allocation10 + $0xbb8] sm:$0xff]  ;;  %v16569_v4 = vcombine.low %v2571_v39, %v2575_v27 }
 0x508   : > { %9307 = vmatpush1.bf16.msra.mxu0 %v16401_v22  ;;  %v2579_v11 = vld [vmem:[#allocation10 + $0xf98] sm:$0xff]  ;;  %v16450_v28 = vcombine.high %v2451_v38, %v2455_v41 }
 0x509   : > { %9308 = vmatprep.subr.bf16.mxu0 %v16410_v45  ;;  %v2583_v54 = vld [vmem:[#allocation10 + $0xfb8] sm:$0xff] }
 0x50a   : > { %9348 = vmatpush1.bf16.msra.mxu1 %v16529_v43  ;;  %v16578_v10 = vcombine.high %v2579_v11, %v2583_v54  ;;  %v2463_v8 = vld [vmem:[#allocation10 + $0xbf8] sm:$0xff]  ;;  %v16449_v43 = vcombine.low %v2451_v38, %v2455_v41  ;;  %v16577_v45 = vcombine.low %v2579_v11, %v2583_v54 }
 0x50b   : > { %9349 = vmatprep.subr.bf16.mxu1 %v16538_v19  ;;  %v2587_v30 = vld [vmem:[#allocation10 + $0xfd8] sm:$0xff]  ;;  %v16458_v19 = vcombine.high %v2459_v47, %v2463_v8 }
 0x50c   : > { %9309 = vmatpush1.bf16.msra.mxu0 %v16409_v24  ;;  %v2591_v22 = vld [vmem:[#allocation10 + $0xff8] sm:$0xff] }
 0x50d   : > { %9310 = vmatprep.subr.bf16.mxu0 %v16418_v17  ;;  %v16586_v20 = vcombine.high %v2587_v30, %v2591_v22  ;;  %v2595_v56 = vld [vmem:[#allocation10 + $0x1018] sm:$0xff]  ;;  %v16585_v17 = vcombine.low %v2587_v30, %v2591_v22 }
 0x50e   : > { %9350 = vmatpush1.bf16.msra.mxu1 %v16537_v13  ;;  %v2599_v16 = vld [vmem:[#allocation10 + $0x1038] sm:$0xff]  ;;  %v16457_v13 = vcombine.low %v2459_v47, %v2463_v8 }
 0x50f   : > { %9351 = vmatprep.subr.bf16.mxu1 %v16546_v61  ;;  %v2723_v53 = vld [vmem:[#allocation10 + $0x1418] sm:$0xff]  ;;  %v16594_v61 = vcombine.high %v2595_v56, %v2599_v16 }
 0x510   : > { %9311 = vmatpush1.bf16.msra.mxu0 %v16417_v36  ;;  %v2727_v24 = vld [vmem:[#allocation10 + $0x1438] sm:$0xff] }
 0x511   : > { %9312 = vmatprep.subr.bf16.mxu0 %v16426_v44  ;;  %v16722_v29 = vcombine.high %v2723_v53, %v2727_v24  ;;  %v2603_v23 = vld [vmem:[#allocation10 + $0x1058] sm:$0xff]  ;;  %v16721_v44 = vcombine.low %v2723_v53, %v2727_v24 }
 0x512   : > { %9352 = vmatpush1.bf16.msra.mxu1 %v16545_v51  ;;  %v2607_v15 = vld [vmem:[#allocation10 + $0x1078] sm:$0xff]  ;;  %v16593_v51 = vcombine.low %v2595_v56, %v2599_v16 }
 0x513   : > { %9353 = vmatprep.subr.bf16.mxu1 %v16554_v34  ;;  %v2731_v37 = vld [vmem:[#allocation10 + $0x1458] sm:$0xff]  ;;  %v16602_v34 = vcombine.high %v2603_v23, %v2607_v15 }
 0x514   : > { %9313 = vmatpush1.bf16.msra.mxu0 %v16425_v12  ;;  %v2735_v36 = vld [vmem:[#allocation10 + $0x1478] sm:$0xff] }
 0x515   : > { %9314 = vmatprep.subr.bf16.mxu0 %v16434_v46  ;;  %v16730_v18 = vcombine.high %v2731_v37, %v2735_v36  ;;  %v2611_v0 = vld [vmem:[#allocation10 + $0x1098] sm:$0xff]  ;;  %v16729_v46 = vcombine.low %v2731_v37, %v2735_v36 }
 0x516   : > { %9354 = vmatpush1.bf16.msra.mxu1 %v16553_v58  ;;  %v2615_v42 = vld [vmem:[#allocation10 + $0x10b8] sm:$0xff]  ;;  %v16601_v58 = vcombine.low %v2603_v23, %v2607_v15 }
 0x517   : > { %9355 = vmatprep.subr.bf16.mxu1 %v16562_v55  ;;  %v2739_v57 = vld [vmem:[#allocation10 + $0x1498] sm:$0xff]  ;;  %v16610_v55 = vcombine.high %v2611_v0, %v2615_v42 }
 0x518   : > { %9315 = vmatpush1.bf16.msra.mxu0 %v16433_v48  ;;  %v2743_v12 = vld [vmem:[#allocation10 + $0x14b8] sm:$0xff] }
 0x519   : > { %9316 = vmatprep.subr.bf16.mxu0 %v16442_v2  ;;  %v16738_v31 = vcombine.high %v2739_v57, %v2743_v12  ;;  %v2619_v14 = vld [vmem:[#allocation10 + $0x10d8] sm:$0xff] }
 0x51a   : > { %9356 = vmatpush1.bf16.msra.mxu1 %v16561_v50  ;;  %v2623_v39 = vld [vmem:[#allocation10 + $0x10f8] sm:$0xff] }
 0x51b   : > { %9357 = vmatprep.subr.bf16.mxu1 %v16570_v7  ;;  %v2747_v27 = vld [vmem:[#allocation10 + $0x14d8] sm:$0xff]  ;;  %v16618_v50 = vcombine.high %v2619_v14, %v2623_v39  ;;  %v16617_v54 = vcombine.low %v2619_v14, %v2623_v39 }
 0x51c   : > { %9317 = vmatpush1.bf16.msra.mxu0 %v16441_v49  ;;  %v2751_v48 = vld [vmem:[#allocation10 + $0x14f8] sm:$0xff] }
 0x51d   : > { %9318 = vmatprep.subr.bf16.mxu0 %v16450_v28  ;;  %v16746_v2 = vcombine.high %v2747_v27, %v2751_v48  ;;  %v2627_v7 = vld [vmem:[#allocation10 + $0x1118] sm:$0xff] }
 0x51e   : > { %9358 = vmatpush1.bf16.msra.mxu1 %v16569_v4  ;;  %v2631_v38 = vld [vmem:[#allocation10 + $0x1138] sm:$0xff] }
 0x51f   : > { %9359 = vmatprep.subr.bf16.mxu1 %v16578_v10  ;;  %v2755_v41 = vld [vmem:[#allocation10 + $0x1518] sm:$0xff]  ;;  %v16626_v49 = vcombine.high %v2627_v7, %v2631_v38  ;;  %v16625_v8 = vcombine.low %v2627_v7, %v2631_v38 }
 0x520   : > { %9319 = vmatpush1.bf16.msra.mxu0 %v16449_v43  ;;  %v2759_v11 = vld [vmem:[#allocation10 + $0x1538] sm:$0xff] }
 0x521   : > { %9320 = vmatprep.subr.bf16.mxu0 %v16458_v19  ;;  %v2635_v4 = vld [vmem:[#allocation10 + $0x1158] sm:$0xff]  ;;  %v16753_v30 = vcombine.low %v2755_v41, %v2759_v11 }
 0x522   : > { %9360 = vmatpush1.bf16.msra.mxu1 %v16577_v45  ;;  %v2639_v28 = vld [vmem:[#allocation10 + $0x1178] sm:$0xff] }
 0x523   : > { %9361 = vmatprep.subr.bf16.mxu1 %v16586_v20  ;;  %v2763_v10 = vld [vmem:[#allocation10 + $0x1558] sm:$0xff]  ;;  %v16634_v22 = vcombine.high %v2635_v4, %v2639_v28  ;;  %v16633_v16 = vcombine.low %v2635_v4, %v2639_v28 }
 0x524   : > { %9321 = vmatpush1.bf16.msra.mxu0 %v16457_v13  ;;  %v2767_v47 = vld [vmem:[#allocation10 + $0x1578] sm:$0xff] }
 0x525   : > { %9372 = vmatprep.subr.bf16.mxu0 %v16594_v61  ;;  %v16762_v43 = vcombine.high %v2763_v10, %v2767_v47  ;;  %v2643_v45 = vld [vmem:[#allocation10 + $0x1198] sm:$0xff]  ;;  %v16761_v53 = vcombine.low %v2763_v10, %v2767_v47 }
 0x526   : > { %9362 = vmatpush1.bf16.msra.mxu1 %v16585_v17  ;;  %v2647_v19 = vld [vmem:[#allocation10 + $0x11b8] sm:$0xff] }
 0x527   : > { %9413 = vmatprep.subr.bf16.mxu1 %v16722_v29  ;;  %9323 = vmatmul.mubr.bf16.vlgmr.msra.gmra.mrb[52].mxu0 %v19940_v3  ;;  %v16609_v3 = vcombine.low %v2611_v0, %v2615_v42  ;;  %v2771_v20 = vld [vmem:[#allocation10 + $0x1598] sm:$0xff]  ;;  %v16642_v24 = vcombine.high %v2643_v45, %v2647_v19  ;;  %v16641_v0 = vcombine.low %v2643_v45, %v2647_v19 }
 0x528   : > { %9373 = vmatpush1.bf16.msra.mxu0 %v16593_v51  ;;  %9404 = vmatprep.mubr.bf16.mxu0 %v19948_v21  ;;  %v16745_v21 = vcombine.low %v2747_v27, %v2751_v48  ;;  %v2775_v56 = vld [vmem:[#allocation10 + $0x15b8] sm:$0xff] }
 0x529   : > { %9364 = vmatmul.mubr.bf16.vlgmr.msra.gmra.mrb[52].mxu1 %v19946_v62  ;;  %9374 = vmatprep.subr.bf16.mxu0 %v16602_v34  ;;  %v16737_v62 = vcombine.low %v2739_v57, %v2743_v12  ;;  %v16770_v17 = vcombine.high %v2771_v20, %v2775_v56  ;;  %v2651_v61 = vld [vmem:[#allocation10 + $0x11d8] sm:$0xff] }
 0x52a   : > { %9414 = vmatpush1.bf16.msra.mxu1 %v16721_v44  ;;  %9445 = vmatprep.mubr.bf16.mxu1 %v19951_v60  ;;  %v16754_v60 = vcombine.high %v2755_v41, %v2759_v11  ;;  %v2655_v29 = vld [vmem:[#allocation10 + $0x11f8] sm:$0xff] }
 0x52b   : > { %9415 = vmatprep.subr.bf16.mxu1 %v16730_v18  ;;  %v2779_v36 = vld [vmem:[#allocation10 + $0x15d8] sm:$0xff]  ;;  %v16649_v48 = vcombine.low %v2651_v61, %v2655_v29 }
 0x52c   : > { %9375 = vmatpush1.bf16.msra.mxu0 %v16601_v58  ;;  %v2783_v51 = vld [vmem:[#allocation10 + $0x15f8] sm:$0xff]  ;;  %v16769_v58 = vcombine.low %v2771_v20, %v2775_v56 }
 0x52d   : > { %9376 = vmatprep.subr.bf16.mxu0 %v16610_v55  ;;  %v2659_v14 = vld [vmem:[#allocation10 + $0x1218] sm:$0xff] }
 0x52e   : > { %9416 = vmatpush1.bf16.msra.mxu1 %v16729_v46  ;;  %v16650_v46 = vcombine.high %v2651_v61, %v2655_v29  ;;  %v2663_v39 = vld [vmem:[#allocation10 + $0x1238] sm:$0xff] }
 0x52f   : > { %9417 = vmatprep.subr.bf16.mxu1 %v16738_v31  ;;  %v16778_v31 = vcombine.high %v2779_v36, %v2783_v51  ;;  %v2791_v27 = vld [vmem:[#allocation10 + $0x1638] sm:$0xff]  ;;  %v16657_v11 = vcombine.low %v2659_v14, %v2663_v39 }
 0x530   : > { %9377 = vmatpush1.bf16.msra.mxu0 %v16609_v3  ;;  %v16777_v3 = vcombine.low %v2779_v36, %v2783_v51  ;;  %v2671_v7 = vld [vmem:[#allocation10 + $0x1278] sm:$0xff] }
 0x531   : > { %9378 = vmatprep.subr.bf16.mxu0 %v16618_v50  ;;  %v2795_v38 = vld [vmem:[#allocation10 + $0x1658] sm:$0xff] }
 0x532   : > { %9418 = vmatpush1.bf16.msra.mxu1 %v16737_v62  ;;  %v16658_v62 = vcombine.high %v2659_v14, %v2663_v39  ;;  %v2799_v41 = vld [vmem:[#allocation10 + $0x1678] sm:$0xff] }
 0x533   : > { %9419 = vmatprep.subr.bf16.mxu1 %v16746_v2  ;;  %v2667_v2 = vld [vmem:[#allocation10 + $0x1258] sm:$0xff] }
 0x534   : > { %9379 = vmatpush1.bf16.msra.mxu0 %v16617_v54  ;;  %v2679_v4 = vld [vmem:[#allocation10 + $0x12b8] sm:$0xff]  ;;  %v16665_v47 = vcombine.low %v2667_v2, %v2671_v7 }
 0x535   : > { %9380 = vmatprep.subr.bf16.mxu0 %v16626_v49  ;;  %v16794_v49 = vcombine.high %v2795_v38, %v2799_v41  ;;  %v2803_v28 = vld [vmem:[#allocation10 + $0x1698] sm:$0xff] }
 0x536   : > { %9420 = vmatpush1.bf16.msra.mxu1 %v16745_v21  ;;  %v16666_v21 = vcombine.high %v2667_v2, %v2671_v7  ;;  %v2807_v10 = vld [vmem:[#allocation10 + $0x16b8] sm:$0xff] }
 0x537   : > { %9421 = vmatprep.subr.bf16.mxu1 %v16754_v60  ;;  %v2675_v60 = vld [vmem:[#allocation10 + $0x1298] sm:$0xff] }
 0x538   : > { %9381 = vmatpush1.bf16.msra.mxu0 %v16625_v8  ;;  %v16793_v8 = vcombine.low %v2795_v38, %v2799_v41  ;;  %v2687_v45 = vld [vmem:[#allocation10 + $0x12f8] sm:$0xff]  ;;  %v16673_v56 = vcombine.low %v2675_v60, %v2679_v4 }
 0x539   : > { %9382 = vmatprep.subr.bf16.mxu0 %v16634_v22  ;;  %v16802_v22 = vcombine.high %v2803_v28, %v2807_v10  ;;  %v2811_v19 = vld [vmem:[#allocation10 + $0x16d8] sm:$0xff] }
 0x53a   : > { %9422 = vmatpush1.bf16.msra.mxu1 %v16753_v30  ;;  %v9078_v13 = vpop.f32.mrb[40].mxu0  ;;  %v16674_v30 = vcombine.high %v2675_v60, %v2679_v4  ;;  %v2815_v20 = vld [vmem:[#allocation10 + $0x16f8] sm:$0xff] }
 0x53b   : > { %9423 = vmatprep.subr.bf16.mxu1 %v16762_v43  ;;  %v9079_v23 = vadd.f32 %v9078_v13, %v20080_v33  ;;  %v9080_v37 = vpop.f32.mrb[41].mxu0  ;;  %v2683_v43 = vld [vmem:[#allocation10 + $0x12d8] sm:$0xff] }
 0x53c   : > { %v9119_v15 = vpop.f32.mrb[40].mxu1  ;;  %v9081_v44 = vadd.f32 %v9080_v37, %v20082_v63  ;;  %v9082_v18 = vpop.f32.mrb[42].mxu0  ;;  %9383 = vmatpush1.bf16.msra.mxu0 %v16633_v16  ;;  %v2787_v63 = vld [vmem:[#allocation10 + $0x1618] sm:$0xff]  ;;  %v16801_v16 = vcombine.low %v2803_v28, %v2807_v10 }
 0x53d   : > { %v9121_v34 = vpop.f32.mrb[41].mxu1  ;;  %v20090_v42 = vadd.f32 %v9119_v15, %v9079_v23  ;;  %v9083_v12 = vpop.f32.mrb[43].mxu0  ;;  %9384 = vmatprep.subr.bf16.mxu0 %v16642_v24  ;;  %v16786_v50 = vcombine.high %v2787_v63, %v2791_v27  ;;  %v16785_v54 = vcombine.low %v2787_v63, %v2791_v27  ;;  %v16810_v24 = vcombine.high %v2811_v19, %v2815_v20  ;;  %v2691_v13 = vld [vmem:[#allocation10 + $0x1318] sm:$0xff] }
 0x53e   : > { %v9123_v57 = vpop.f32.mrb[42].mxu1  ;;  %9424 = vmatpush1.bf16.msra.mxu1 %v16761_v53  ;;  %v20092_v55 = vadd.f32 %v9121_v34, %v9081_v44  ;;  %v16682_v53 = vcombine.high %v2683_v43, %v2687_v45  ;;  %v2819_v61 = vld [vmem:[#allocation10 + $0x1718] sm:$0xff]  ;;  %v16681_v23 = vcombine.low %v2683_v43, %v2687_v45  ;;  %v16809_v15 = vcombine.low %v2811_v19, %v2815_v20 }
 0x53f   : > { %v9124_v33 = vpop.f32.mrb[43].mxu1  ;;  %9425 = vmatprep.subr.bf16.mxu1 %v16770_v17  ;;  %v2695_v17 = vld [vmem:[#allocation10 + $0x1338] sm:$0xff] }
 0x540   : > { %9385 = vmatpush1.bf16.msra.mxu0 %v16641_v0  ;;  %v2823_v29 = vld [vmem:[#allocation10 + $0x1738] sm:$0xff]  ;;  %v16690_v37 = vcombine.high %v2691_v13, %v2695_v17  ;;  %v16689_v0 = vcombine.low %v2691_v13, %v2695_v17 }
 0x541   : > { %9386 = vmatprep.subr.bf16.mxu0 %v16650_v46  ;;  %v16818_v36 = vcombine.high %v2819_v61, %v2823_v29  ;;  %v2699_v51 = vld [vmem:[#allocation10 + $0x1358] sm:$0xff]  ;;  %v16817_v57 = vcombine.low %v2819_v61, %v2823_v29 }
 0x542   : > { %9426 = vmatpush1.bf16.msra.mxu1 %v16769_v58  ;;  %v2703_v44 = vld [vmem:[#allocation10 + $0x1378] sm:$0xff] }
 0x543   : > { %9427 = vmatprep.subr.bf16.mxu1 %v16778_v31  ;;  %v2827_v34 = vld [vmem:[#allocation10 + $0x1758] sm:$0xff]  ;;  %v16698_v12 = vcombine.high %v2699_v51, %v2703_v44  ;;  %v16697_v39 = vcombine.low %v2699_v51, %v2703_v44 }
 0x544   : > { %9387 = vmatpush1.bf16.msra.mxu0 %v16649_v48  ;;  %v2831_v18 = vld [vmem:[#allocation10 + $0x1778] sm:$0xff] }
 0x545   : > { %9388 = vmatprep.subr.bf16.mxu0 %v16658_v62  ;;  %v16826_v58 = vcombine.high %v2827_v34, %v2831_v18  ;;  %v2707_v46 = vld [vmem:[#allocation10 + $0x1398] sm:$0xff]  ;;  %v16825_v63 = vcombine.low %v2827_v34, %v2831_v18 }
 0x546   : > { %9428 = vmatpush1.bf16.msra.mxu1 %v16777_v3  ;;  %v2711_v33 = vld [vmem:[#allocation10 + $0x13b8] sm:$0xff] }
 0x547   : > { %9429 = vmatprep.subr.bf16.mxu1 %v16786_v50  ;;  %v2835_v31 = vld [vmem:[#allocation10 + $0x1798] sm:$0xff]  ;;  %v16706_v27 = vcombine.high %v2707_v46, %v2711_v33  ;;  %v16705_v7 = vcombine.low %v2707_v46, %v2711_v33 }
 0x548   : > { %9389 = vmatpush1.bf16.msra.mxu0 %v16657_v11  ;;  %v2839_v14 = vld [vmem:[#allocation10 + $0x17b8] sm:$0xff] }
 0x549   : > { %9390 = vmatprep.subr.bf16.mxu0 %v16666_v21  ;;  %v16834_v48 = vcombine.high %v2835_v31, %v2839_v14  ;;  %v2715_v3 = vld [vmem:[#allocation10 + $0x13d8] sm:$0xff]  ;;  %v16833_v38 = vcombine.low %v2835_v31, %v2839_v14 }
 0x54a   : > { %9430 = vmatpush1.bf16.msra.mxu1 %v16785_v54  ;;  %v2719_v62 = vld [vmem:[#allocation10 + $0x13f8] sm:$0xff] }
 0x54b   : > { %9431 = vmatprep.subr.bf16.mxu1 %v16794_v49  ;;  %v2843_v50 = vld [vmem:[#allocation10 + $0x17d8] sm:$0xff]  ;;  %v16714_v41 = vcombine.high %v2715_v3, %v2719_v62  ;;  %v16713_v4 = vcombine.low %v2715_v3, %v2719_v62 }
 0x54c   : > { %9391 = vmatpush1.bf16.msra.mxu0 %v16665_v47  ;;  %v2847_v2 = vld [vmem:[#allocation10 + $0x17f8] sm:$0xff] }
 0x54d   : > { %9392 = vmatprep.subr.bf16.mxu0 %v16674_v30  ;;  %v16842_v11 = vcombine.high %v2843_v50, %v2847_v2  ;;  %v2851_v54 = vld [vmem:[#allocation10 + $0x1818] sm:$0xff]  ;;  %v16841_v28 = vcombine.low %v2843_v50, %v2847_v2 }
 0x54e   : > { %9432 = vmatpush1.bf16.msra.mxu1 %v16793_v8  ;;  %v2855_v21 = vld [vmem:[#allocation10 + $0x1838] sm:$0xff] }
 0x54f   : > { %9433 = vmatprep.subr.bf16.mxu1 %v16802_v22  ;;  %v2979_v49 = vld [vmem:[#allocation10 + $0x1c18] sm:$0xff]  ;;  %v16850_v10 = vcombine.high %v2851_v54, %v2855_v21  ;;  %v16849_v45 = vcombine.low %v2851_v54, %v2855_v21 }
 0x550   : > { %9393 = vmatpush1.bf16.msra.mxu0 %v16673_v56  ;;  %v2983_v60 = vld [vmem:[#allocation10 + $0x1c38] sm:$0xff] }
 0x551   : > { %9394 = vmatprep.subr.bf16.mxu0 %v16682_v53  ;;  %v16978_v47 = vcombine.high %v2979_v49, %v2983_v60  ;;  %v2859_v8 = vld [vmem:[#allocation10 + $0x1858] sm:$0xff]  ;;  %v16977_v19 = vcombine.low %v2979_v49, %v2983_v60 }
 0x552   : > { %9434 = vmatpush1.bf16.msra.mxu1 %v16801_v16  ;;  %v2863_v30 = vld [vmem:[#allocation10 + $0x1878] sm:$0xff] }
 0x553   : > { %9435 = vmatprep.subr.bf16.mxu1 %v16810_v24  ;;  %v2987_v22 = vld [vmem:[#allocation10 + $0x1c58] sm:$0xff]  ;;  %v16858_v20 = vcombine.high %v2859_v8, %v2863_v30  ;;  %v16857_v17 = vcombine.low %v2859_v8, %v2863_v30 }
 0x554   : > { %9395 = vmatpush1.bf16.msra.mxu0 %v16681_v23  ;;  %v2991_v43 = vld [vmem:[#allocation10 + $0x1c78] sm:$0xff] }
 0x555   : > { %9396 = vmatprep.subr.bf16.mxu0 %v16690_v37  ;;  %v16986_v56 = vcombine.high %v2987_v22, %v2991_v43  ;;  %v2867_v16 = vld [vmem:[#allocation10 + $0x1898] sm:$0xff]  ;;  %v16985_v61 = vcombine.low %v2987_v22, %v2991_v43 }
 0x556   : > { %9436 = vmatpush1.bf16.msra.mxu1 %v16809_v15  ;;  %v2871_v53 = vld [vmem:[#allocation10 + $0x18b8] sm:$0xff] }
 0x557   : > { %9437 = vmatprep.subr.bf16.mxu1 %v16818_v36  ;;  %v2995_v24 = vld [vmem:[#allocation10 + $0x1c98] sm:$0xff]  ;;  %v16866_v29 = vcombine.high %v2867_v16, %v2871_v53 }
 0x558   : > { %9397 = vmatpush1.bf16.msra.mxu0 %v16689_v0  ;;  %v2999_v13 = vld [vmem:[#allocation10 + $0x1cb8] sm:$0xff] }
 0x559   : > { %9398 = vmatprep.subr.bf16.mxu0 %v16698_v12  ;;  %v16994_v23 = vcombine.high %v2995_v24, %v2999_v13  ;;  %v2875_v15 = vld [vmem:[#allocation10 + $0x18d8] sm:$0xff] }
 0x55a   : > { %9438 = vmatpush1.bf16.msra.mxu1 %v16817_v57  ;;  %v2879_v37 = vld [vmem:[#allocation10 + $0x18f8] sm:$0xff] }
 0x55b   : > { %9439 = vmatprep.subr.bf16.mxu1 %v16826_v58  ;;  %v3003_v36 = vld [vmem:[#allocation10 + $0x1cd8] sm:$0xff]  ;;  %v16874_v44 = vcombine.high %v2875_v15, %v2879_v37  ;;  %v16873_v58 = vcombine.low %v2875_v15, %v2879_v37 }
 0x55c   : > { %9399 = vmatpush1.bf16.msra.mxu0 %v16697_v39  ;;  %v3007_v51 = vld [vmem:[#allocation10 + $0x1cf8] sm:$0xff] }
 0x55d   : > { %9400 = vmatprep.subr.bf16.mxu0 %v16706_v27  ;;  %v17002_v34 = vcombine.high %v3003_v36, %v3007_v51  ;;  %v2883_v18 = vld [vmem:[#allocation10 + $0x1918] sm:$0xff] }
 0x55e   : > { %9440 = vmatpush1.bf16.msra.mxu1 %v16825_v63  ;;  %v2887_v0 = vld [vmem:[#allocation10 + $0x1938] sm:$0xff] }
 0x55f   : > { %9441 = vmatprep.subr.bf16.mxu1 %v16834_v48  ;;  %v3011_v57 = vld [vmem:[#allocation10 + $0x1d18] sm:$0xff]  ;;  %v16882_v46 = vcombine.high %v2883_v18, %v2887_v0  ;;  %v16881_v63 = vcombine.low %v2883_v18, %v2887_v0 }
 0x560   : > { %9401 = vmatpush1.bf16.msra.mxu0 %v16705_v7  ;;  %v3015_v12 = vld [vmem:[#allocation10 + $0x1d38] sm:$0xff] }
 0x561   : > { %9402 = vmatprep.subr.bf16.mxu0 %v16714_v41  ;;  %v2891_v33 = vld [vmem:[#allocation10 + $0x1958] sm:$0xff]  ;;  %v17009_v27 = vcombine.low %v3011_v57, %v3015_v12 }
 0x562   : > { %9442 = vmatpush1.bf16.msra.mxu1 %v16833_v38  ;;  %v2895_v31 = vld [vmem:[#allocation10 + $0x1978] sm:$0xff] }
 0x563   : > { %9443 = vmatprep.subr.bf16.mxu1 %v16842_v11  ;;  %v3019_v14 = vld [vmem:[#allocation10 + $0x1d58] sm:$0xff]  ;;  %v16890_v48 = vcombine.high %v2891_v33, %v2895_v31  ;;  %v16889_v38 = vcombine.low %v2891_v33, %v2895_v31 }
 0x564   : > { %9403 = vmatpush1.bf16.msra.mxu0 %v16713_v4  ;;  %v3023_v39 = vld [vmem:[#allocation10 + $0x1d78] sm:$0xff] }
 0x565   : > { %9454 = vmatprep.subr.bf16.mxu0 %v16850_v10  ;;  %v17018_v3 = vcombine.high %v3019_v14, %v3023_v39  ;;  %v2899_v62 = vld [vmem:[#allocation10 + $0x1998] sm:$0xff]  ;;  %v17017_v41 = vcombine.low %v3019_v14, %v3023_v39 }
 0x566   : > { %9444 = vmatpush1.bf16.msra.mxu1 %v16841_v28  ;;  %v2903_v50 = vld [vmem:[#allocation10 + $0x19b8] sm:$0xff] }
 0x567   : > { %9495 = vmatprep.subr.bf16.mxu1 %v16978_v47  ;;  %9405 = vmatmul.mubr.bf16.vlgmr.msra.gmra.mrb[56].mxu0 %v19966_v32  ;;  %v16865_v32 = vcombine.low %v2867_v16, %v2871_v53  ;;  %v3027_v2 = vld [vmem:[#allocation10 + $0x1d98] sm:$0xff]  ;;  %v16898_v11 = vcombine.high %v2899_v62, %v2903_v50 }
 0x568   : > { %9455 = vmatpush1.bf16.msra.mxu0 %v16849_v45  ;;  %9486 = vmatprep.mubr.bf16.mxu0 %v19974_v26  ;;  %v17001_v26 = vcombine.low %v3003_v36, %v3007_v51  ;;  %v3031_v7 = vld [vmem:[#allocation10 + $0x1db8] sm:$0xff]  ;;  %v16897_v45 = vcombine.low %v2899_v62, %v2903_v50 }
 0x569   : > { %9446 = vmatmul.mubr.bf16.vlgmr.msra.gmra.mrb[56].mxu1 %v19972_v25  ;;  %9456 = vmatprep.subr.bf16.mxu0 %v16858_v20  ;;  %v16993_v25 = vcombine.low %v2995_v24, %v2999_v13  ;;  %v17026_v21 = vcombine.high %v3027_v2, %v3031_v7  ;;  %v2907_v49 = vld [vmem:[#allocation10 + $0x19d8] sm:$0xff]  ;;  %v17025_v16 = vcombine.low %v3027_v2, %v3031_v7 }
 0x56a   : > { %9496 = vmatpush1.bf16.msra.mxu1 %v16977_v19  ;;  %9527 = vmatprep.mubr.bf16.mxu1 %v19977_v6  ;;  %v17010_v6 = vcombine.high %v3011_v57, %v3015_v12  ;;  %v2911_v60 = vld [vmem:[#allocation10 + $0x19f8] sm:$0xff] }
 0x56b   : > { %9497 = vmatprep.subr.bf16.mxu1 %v16986_v56  ;;  %v3035_v47 = vld [vmem:[#allocation10 + $0x1dd8] sm:$0xff]  ;;  %v16906_v53 = vcombine.high %v2907_v49, %v2911_v60 }
 0x56c   : > { %9457 = vmatpush1.bf16.msra.mxu0 %v16857_v17  ;;  %v3039_v8 = vld [vmem:[#allocation10 + $0x1df8] sm:$0xff] }
 0x56d   : > { %9458 = vmatprep.subr.bf16.mxu0 %v16866_v29  ;;  %v17034_v13 = vcombine.high %v3035_v47, %v3039_v8  ;;  %v2915_v17 = vld [vmem:[#allocation10 + $0x1a18] sm:$0xff]  ;;  %v17033_v15 = vcombine.low %v3035_v47, %v3039_v8 }
 0x56e   : > { %9498 = vmatpush1.bf16.msra.mxu1 %v16985_v61  ;;  %v2919_v61 = vld [vmem:[#allocation10 + $0x1a38] sm:$0xff] }
 0x56f   : > { %9499 = vmatprep.subr.bf16.mxu1 %v16994_v23  ;;  %v3047_v29 = vld [vmem:[#allocation10 + $0x1e38] sm:$0xff]  ;;  %v16905_v23 = vcombine.low %v2907_v49, %v2911_v60  ;;  %v16914_v37 = vcombine.high %v2915_v17, %v2919_v61 }
 0x570   : > { %9459 = vmatpush1.bf16.msra.mxu0 %v16865_v32  ;;  %v2923_v51 = vld [vmem:[#allocation10 + $0x1a58] sm:$0xff] }
 0x571   : > { %9460 = vmatprep.subr.bf16.mxu0 %v16874_v44  ;;  %v2927_v32 = vld [vmem:[#allocation10 + $0x1a78] sm:$0xff] }
 0x572   : > { %9500 = vmatpush1.bf16.msra.mxu1 %v16993_v25  ;;  %v3051_v25 = vld [vmem:[#allocation10 + $0x1e58] sm:$0xff]  ;;  %v16922_v0 = vcombine.high %v2923_v51, %v2927_v32 }
 0x573   : > { %9501 = vmatprep.subr.bf16.mxu1 %v17002_v34  ;;  %v3055_v44 = vld [vmem:[#allocation10 + $0x1e78] sm:$0xff]  ;;  %v16913_v34 = vcombine.low %v2915_v17, %v2919_v61 }
 0x574   : > { %9461 = vmatpush1.bf16.msra.mxu0 %v16873_v58  ;;  %v17050_v57 = vcombine.high %v3051_v25, %v3055_v44  ;;  %v2931_v12 = vld [vmem:[#allocation10 + $0x1a98] sm:$0xff]  ;;  %v17049_v33 = vcombine.low %v3051_v25, %v3055_v44  ;;  %v1440_v44 = vld [vmem:[#allocation9] sm:$0xff] }
 0x575   : > { %9462 = vmatprep.subr.bf16.mxu0 %v16882_v46  ;;  %v2935_v58 = vld [vmem:[#allocation10 + $0x1ab8] sm:$0xff] }
 0x576   : > { %9502 = vmatpush1.bf16.msra.mxu1 %v17001_v26  ;;  %v3059_v26 = vld [vmem:[#allocation10 + $0x1e98] sm:$0xff]  ;;  %v16930_v31 = vcombine.high %v2931_v12, %v2935_v58 }
 0x577   : > { %9503 = vmatprep.subr.bf16.mxu1 %v17010_v6  ;;  %v3063_v46 = vld [vmem:[#allocation10 + $0x1eb8] sm:$0xff]  ;;  %v16921_v6 = vcombine.low %v2923_v51, %v2927_v32 }
 0x578   : > { %9463 = vmatpush1.bf16.msra.mxu0 %v16881_v63  ;;  %v17058_v14 = vcombine.high %v3059_v26, %v3063_v46  ;;  %v2939_v39 = vld [vmem:[#allocation10 + $0x1ad8] sm:$0xff]  ;;  %v17057_v62 = vcombine.low %v3059_v26, %v3063_v46 }
 0x579   : > { %9464 = vmatprep.subr.bf16.mxu0 %v16890_v48  ;;  %v2943_v63 = vld [vmem:[#allocation10 + $0x1af8] sm:$0xff] }
 0x57a   : > { %9504 = vmatpush1.bf16.msra.mxu1 %v17009_v27  ;;  %v9160_v54 = vpop.f32.mrb[44].mxu0  ;;  %v3067_v27 = vld [vmem:[#allocation10 + $0x1ed8] sm:$0xff]  ;;  %v16938_v50 = vcombine.high %v2939_v39, %v2943_v63 }
 0x57b   : > { %9505 = vmatprep.subr.bf16.mxu1 %v17018_v3  ;;  %v9161_v4 = vadd.f32 %v9160_v54, %v20090_v42  ;;  %v9162_v10 = vpop.f32.mrb[45].mxu0  ;;  %v3071_v48 = vld [vmem:[#allocation10 + $0x1ef8] sm:$0xff]  ;;  %v16929_v3 = vcombine.low %v2931_v12, %v2935_v58  ;;  %v16937_v54 = vcombine.low %v2939_v39, %v2943_v63  ;;  %v1576_v39 = vld [vmem:[#allocation9 + $0x440] sm:$0xff] }
 0x57c   : > { %v9201_v28 = vpop.f32.mrb[44].mxu1  ;;  %v9163_v30 = vadd.f32 %v9162_v10, %v20092_v55  ;;  %v9164_v43 = vpop.f32.mrb[46].mxu0  ;;  %9465 = vmatpush1.bf16.msra.mxu0 %v16889_v38  ;;  %v3043_v55 = vld [vmem:[#allocation10 + $0x1e18] sm:$0xff]  ;;  %v17066_v2 = vcombine.high %v3067_v27, %v3071_v48  ;;  %v1580_v63 = vld [vmem:[#allocation9 + $0x460] sm:$0xff] }
 0x57d   : > { %v9203_v22 = vpop.f32.mrb[45].mxu1  ;;  %v20100_v19 = vadd.f32 %v9201_v28, %v9161_v4  ;;  %v9165_v56 = vpop.f32.mrb[47].mxu0  ;;  %9466 = vmatprep.subr.bf16.mxu0 %v16898_v11  ;;  %v17042_v36 = vcombine.high %v3043_v55, %v3047_v29  ;;  %v17041_v18 = vcombine.low %v3043_v55, %v3047_v29  ;;  %v2947_v7 = vld [vmem:[#allocation10 + $0x1b18] sm:$0xff] }
 0x57e   : > { %v9205_v20 = vpop.f32.mrb[46].mxu1  ;;  %9506 = vmatpush1.bf16.msra.mxu1 %v17017_v41  ;;  %v20102_v24 = vadd.f32 %v9203_v22, %v9163_v30  ;;  %v2951_v38 = vld [vmem:[#allocation10 + $0x1b38] sm:$0xff] }
 0x57f   : > { %v9206_v42 = vpop.f32.mrb[47].mxu1  ;;  %9507 = vmatprep.subr.bf16.mxu1 %v17026_v21  ;;  %v3075_v41 = vld [vmem:[#allocation10 + $0x1f18] sm:$0xff]  ;;  %v17065_v21 = vcombine.low %v3067_v27, %v3071_v48  ;;  %v16946_v49 = vcombine.high %v2947_v7, %v2951_v38  ;;  %v16945_v8 = vcombine.low %v2947_v7, %v2951_v38  ;;  %v1460_v7 = vld [vmem:[#allocation9 + $0xa0] sm:$0xff] }
 0x580   : > { %9467 = vmatpush1.bf16.msra.mxu0 %v16897_v45  ;;  %v3079_v11 = vld [vmem:[#allocation10 + $0x1f38] sm:$0xff]  ;;  %v1264_v42 = vld [vmem:[#allocation2] sm:$0xff] }
 0x581   : > { %9468 = vmatprep.subr.bf16.mxu0 %v16906_v53  ;;  %v17074_v60 = vcombine.high %v3075_v41, %v3079_v11  ;;  %v2955_v4 = vld [vmem:[#allocation10 + $0x1b58] sm:$0xff]  ;;  %v17073_v30 = vcombine.low %v3075_v41, %v3079_v11  ;;  %v1584_v41 = vld [vmem:[#allocation9 + $0x480] sm:$0xff] }
 0x582   : > { %9508 = vmatpush1.bf16.msra.mxu1 %v17025_v16  ;;  %v2959_v28 = vld [vmem:[#allocation10 + $0x1b78] sm:$0xff]  ;;  %v1588_v11 = vld [vmem:[#allocation9 + $0x4a0] sm:$0xff] }
 0x583   : > { %9509 = vmatprep.subr.bf16.mxu1 %v17034_v13  ;;  %v3083_v10 = vld [vmem:[#allocation10 + $0x1f58] sm:$0xff]  ;;  %v16954_v22 = vcombine.high %v2955_v4, %v2959_v28  ;;  %v16953_v53 = vcombine.low %v2955_v4, %v2959_v28  ;;  %v17244_v4 = vcombine.high %v1584_v41, %v1588_v11  ;;  %v1464_v28 = vld [vmem:[#allocation9 + $0xc0] sm:$0xff] }
 0x584   : > { %9469 = vmatpush1.bf16.msra.mxu0 %v16905_v23  ;;  %v3087_v47 = vld [vmem:[#allocation10 + $0x1f78] sm:$0xff] }
 0x585   : > { %9470 = vmatprep.subr.bf16.mxu0 %v16914_v37  ;;  %v17082_v43 = vcombine.high %v3083_v10, %v3087_v47  ;;  %v2963_v45 = vld [vmem:[#allocation10 + $0x1b98] sm:$0xff]  ;;  %v17081_v13 = vcombine.low %v3083_v10, %v3087_v47  ;;  %v1270_v37 = vcombine.high %v1264_v42, %v1264_v42  ;;  %v1468_v10 = vld [vmem:[#allocation9 + $0xe0] sm:$0xff] }
 0x586   : > { %9510 = vmatpush1.bf16.msra.mxu1 %v17033_v15  ;;  %v2967_v20 = vld [vmem:[#allocation10 + $0x1bb8] sm:$0xff]  ;;  %v1592_v47 = vld [vmem:[#allocation9 + $0x4c0] sm:$0xff] }
 0x587   : > { %9511 = vmatprep.subr.bf16.mxu1 %v17042_v36  ;;  %v3091_v56 = vld [vmem:[#allocation10 + $0x1f98] sm:$0xff]  ;;  %v16962_v17 = vcombine.high %v2963_v45, %v2967_v20  ;;  %v16961_v36 = vcombine.low %v2963_v45, %v2967_v20  ;;  %v20108_v12 = vrot.slane %v1270_v37, %v19559_v9  ;;  %v1476_v45 = vld [vmem:[#allocation9 + $0x120] sm:$0xff] }
 0x588   : > { %9471 = vmatpush1.bf16.msra.mxu0 %v16913_v34  ;;  %v3095_v16 = vld [vmem:[#allocation10 + $0x1fb8] sm:$0xff]  ;;  %v1444_v34 = vld [vmem:[#allocation9 + $0x20] sm:$0xff] }
 0x589   : > { %9472 = vmatprep.subr.bf16.mxu0 %v16922_v0  ;;  %v17090_v61 = vcombine.high %v3091_v56, %v3095_v16  ;;  %v2971_v55 = vld [vmem:[#allocation10 + $0x1bd8] sm:$0xff]  ;;  %v17089_v51 = vcombine.low %v3091_v56, %v3095_v16  ;;  %v1568_v0 = vld [vmem:[#allocation9 + $0x400] sm:$0xff]  ;;  %v17100_v46 = vcombine.high %v1440_v44, %v1444_v34  ;;  %v1286_v27 = vcombine.high %v20108_v12, %v20108_v12 }
 0x58a   : > { %9512 = vmatpush1.bf16.msra.mxu1 %v17041_v18  ;;  %v2975_v29 = vld [vmem:[#allocation10 + $0x1bf8] sm:$0xff]  ;;  %v20105_v18 = vrot.slane %v1264_v42, %v19559_v9  ;;  %v17099_v48 = vcombine.low %v1440_v44, %v1444_v34  ;;  %v1600_v20 = vld [vmem:[#allocation9 + $0x500] sm:$0xff]  ;;  %v17123_v16 = vcombine.low %v1464_v28, %v1468_v10 }
 0x58b   : > { %9513 = vmatprep.subr.bf16.mxu1 %v17050_v57  ;;  %v3099_v23 = vld [vmem:[#allocation10 + $0x1fd8] sm:$0xff]  ;;  %v16970_v32 = vcombine.high %v2971_v55, %v2975_v29  ;;  %v1572_v57 = vld [vmem:[#allocation9 + $0x420] sm:$0xff]  ;;  %v16969_v58 = vcombine.low %v2971_v55, %v2975_v29 }
 0x58c   : > { %9473 = vmatpush1.bf16.msra.mxu0 %v16921_v6  ;;  %v3103_v15 = vld [vmem:[#allocation10 + $0x1ff8] sm:$0xff]  ;;  %v17228_v6 = vcombine.high %v1568_v0, %v1572_v57  ;;  %v1604_v56 = vld [vmem:[#allocation9 + $0x520] sm:$0xff] }
 0x58d   : > { %9474 = vmatprep.subr.bf16.mxu0 %v16930_v31  ;;  %v17098_v25 = vcombine.high %v3099_v23, %v3103_v15  ;;  %v17097_v26 = vcombine.low %v3099_v23, %v3103_v15  ;;  %v1452_v31 = vld [vmem:[#allocation9 + $0x60] sm:$0xff]  ;;  %v17259_v15 = vcombine.low %v1600_v20, %v1604_v56 }
 0x58e   : > { %9514 = vmatpush1.bf16.msra.mxu1 %v17049_v33  ;;  %v1448_v33 = vld [vmem:[#allocation9 + $0x40] sm:$0xff] }
 0x58f   : > { %9515 = vmatprep.subr.bf16.mxu1 %v17058_v14  ;;  %v1285_v14 = vcombine.high %v20105_v18, %v20105_v18  ;;  %v1608_v55 = vld [vmem:[#allocation9 + $0x540] sm:$0xff] }
 0x590   : > { %9475 = vmatpush1.bf16.msra.mxu0 %v16929_v3  ;;  %v17227_v3 = vcombine.low %v1568_v0, %v1572_v57  ;;  %v1612_v29 = vld [vmem:[#allocation9 + $0x560] sm:$0xff] }
 0x591   : > { %9476 = vmatprep.subr.bf16.mxu0 %v16938_v50  ;;  %v17236_v50 = vcombine.high %v1576_v39, %v1580_v63  ;;  %v20114_v38 = vpack.c.bf16 %v1285_v14, %v1285_v14  ;;  %v1620_v44 = vld [vmem:[#allocation9 + $0x5a0] sm:$0xff]  ;;  %v17267_v0 = vcombine.low %v1608_v55, %v1612_v29 }
 0x592   : > { %9516 = vmatpush1.bf16.msra.mxu1 %v17057_v62  ;;  %v17108_v62 = vcombine.high %v1448_v33, %v1452_v31  ;;  %v1624_v14 = vld [vmem:[#allocation9 + $0x5c0] sm:$0xff] }
 0x593   : > { %9517 = vmatprep.subr.bf16.mxu1 %v17066_v2  ;;  %v1456_v2 = vld [vmem:[#allocation9 + $0x80] sm:$0xff] }
 0x594   : > { %9477 = vmatpush1.bf16.msra.mxu0 %v16937_v54  ;;  %v20117_v54 = vpack.c.bf16 %v1286_v27, %v1286_v27 }
 0x595   : > { %9478 = vmatprep.subr.bf16.mxu0 %v16946_v49  ;;  %v17235_v49 = vcombine.low %v1576_v39, %v1580_v63  ;;  %v1628_v39 = vld [vmem:[#allocation9 + $0x5e0] sm:$0xff] }
 0x596   : > { %9518 = vmatpush1.bf16.msra.mxu1 %v17065_v21  ;;  %v17107_v21 = vcombine.low %v1448_v33, %v1452_v31 }
 0x597   : > { %9519 = vmatprep.subr.bf16.mxu1 %v17074_v60  ;;  %v17116_v60 = vcombine.high %v1456_v2, %v1460_v7 }
 0x598   : > { %9479 = vmatpush1.bf16.msra.mxu0 %v16945_v8  ;;  %v17115_v8 = vcombine.low %v1456_v2, %v1460_v7 }
 0x599   : > { %9480 = vmatprep.subr.bf16.mxu0 %v16954_v22 }
 0x59a   : > { %9520 = vmatpush1.bf16.msra.mxu1 %v17073_v30  ;;  %v17124_v30 = vcombine.high %v1464_v28, %v1468_v10  ;;  %v1636_v28 = vld [vmem:[#allocation9 + $0x620] sm:$0xff] }
 0x59b   : > { %9521 = vmatprep.subr.bf16.mxu1 %v17082_v43  ;;  %v1472_v43 = vld [vmem:[#allocation9 + $0x100] sm:$0xff] }
 0x59c   : > { %9481 = vmatpush1.bf16.msra.mxu0 %v16953_v53  ;;  %v17132_v42 = vcombine.high %v1472_v43, %v1476_v45  ;;  %v17131_v23 = vcombine.low %v1472_v43, %v1476_v45  ;;  %v1644_v43 = vld [vmem:[#allocation9 + $0x660] sm:$0xff] }
 0x59d   : > { %9482 = vmatprep.subr.bf16.mxu0 %v16962_v17  ;;  %v1480_v17 = vld [vmem:[#allocation9 + $0x140] sm:$0xff] }
 0x59e   : > { %9522 = vmatpush1.bf16.msra.mxu1 %v17081_v13  ;;  %v17260_v13 = vcombine.high %v1600_v20, %v1604_v56 }
 0x59f   : > { %9523 = vmatprep.subr.bf16.mxu1 %v17090_v61  ;;  %v1484_v61 = vld [vmem:[#allocation9 + $0x160] sm:$0xff] }
 0x5a0   : > { %9483 = vmatpush1.bf16.msra.mxu0 %v16961_v36  ;;  %v17140_v37 = vcombine.high %v1480_v17, %v1484_v61  ;;  %v17268_v36 = vcombine.high %v1608_v55, %v1612_v29  ;;  %v17139_v34 = vcombine.low %v1480_v17, %v1484_v61  ;;  %v1652_v17 = vld [vmem:[#allocation9 + $0x6a0] sm:$0xff] }
 0x5a1   : > { %9484 = vmatprep.subr.bf16.mxu0 %v16970_v32  ;;  %v1492_v32 = vld [vmem:[#allocation9 + $0x1a0] sm:$0xff] }
 0x5a2   : > { %9524 = vmatpush1.bf16.msra.mxu1 %v17089_v51  ;;  %v1488_v51 = vld [vmem:[#allocation9 + $0x180] sm:$0xff] }
 0x5a3   : > { %9525 = vmatprep.subr.bf16.mxu1 %v17098_v25  ;;  %v1616_v25 = vld [vmem:[#allocation9 + $0x580] sm:$0xff]  ;;  %v17148_v57 = vcombine.high %v1488_v51, %v1492_v32 }
 0x5a4   : > { %9485 = vmatpush1.bf16.msra.mxu0 %v16969_v58  ;;  %v17275_v7 = vcombine.low %v1616_v25, %v1620_v44 }
 0x5a5   : > { %12736 = vmatprep.subr.bf16.mxu0 %v17100_v46  ;;  %v1496_v46 = vld [vmem:[#allocation9 + $0x1c0] sm:$0xff] }
 0x5a6   : > { %9526 = vmatpush1.bf16.msra.mxu1 %v17097_v26  ;;  %v17276_v26 = vcombine.high %v1616_v25, %v1620_v44 }
 0x5a7   : > { %12777 = vmatprep.subr.bf16.mxu1 %v17228_v6  ;;  %9487 = vmatmul.mubr.bf16.vlgmr.msra.gmra.mrb[60].mxu0 %v19984_v5  ;;  %v1596_v5 = vld [vmem:[#allocation9 + $0x4e0] sm:$0xff] }
 0x5a8   : > { %12737 = vmatpush1.bf16.msra.mxu0 %v17099_v48  ;;  %12768 = vmatprep.mubr.bf16.mxu0 %v20114_v38  ;;  %v17252_v22 = vcombine.high %v1592_v47, %v1596_v5  ;;  %v17251_v53 = vcombine.low %v1592_v47, %v1596_v5  ;;  %v1500_v6 = vld [vmem:[#allocation9 + $0x1e0] sm:$0xff]  ;;  %v17283_v47 = vcombine.low %v1624_v14, %v1628_v39 }
 0x5a9   : > { %9528 = vmatmul.mubr.bf16.vlgmr.msra.gmra.mrb[60].mxu1 %v19988_v40  ;;  %12738 = vmatprep.subr.bf16.mxu0 %v17108_v62  ;;  %v17243_v40 = vcombine.low %v1584_v41, %v1588_v11  ;;  %v17156_v41 = vcombine.high %v1496_v46, %v1500_v6  ;;  %v17155_v10 = vcombine.low %v1496_v46, %v1500_v6 }
 0x5aa   : > { %12778 = vmatpush1.bf16.msra.mxu1 %v17227_v3  ;;  %12809 = vmatprep.mubr.bf16.mxu1 %v20117_v54  ;;  %v17147_v3 = vcombine.low %v1488_v51, %v1492_v32  ;;  %v1660_v51 = vld [vmem:[#allocation9 + $0x6e0] sm:$0xff] }
 0x5ab   : > { %12779 = vmatprep.subr.bf16.mxu1 %v17236_v50 }
 0x5ac   : > { %12739 = vmatpush1.bf16.msra.mxu0 %v17107_v21  ;;  %v17284_v21 = vcombine.high %v1624_v14, %v1628_v39  ;;  %v1544_v14 = vld [vmem:[#allocation9 + $0x340] sm:$0xff] }
 0x5ad   : > { %12740 = vmatprep.subr.bf16.mxu0 %v17116_v60  ;;  %v1508_v60 = vld [vmem:[#allocation9 + $0x220] sm:$0xff] }
 0x5ae   : > { %12780 = vmatpush1.bf16.msra.mxu1 %v17235_v49  ;;  %v1504_v49 = vld [vmem:[#allocation9 + $0x200] sm:$0xff] }
 0x5af   : > { %12781 = vmatprep.subr.bf16.mxu1 %v17244_v4  ;;  %v1632_v4 = vld [vmem:[#allocation9 + $0x600] sm:$0xff]  ;;  %v17164_v5 = vcombine.high %v1504_v49, %v1508_v60  ;;  %v17163_v45 = vcombine.low %v1504_v49, %v1508_v60 }
 0x5b0   : > { %12741 = vmatpush1.bf16.msra.mxu0 %v17115_v8  ;;  %v17292_v8 = vcombine.high %v1632_v4, %v1636_v28  ;;  %v17291_v20 = vcombine.low %v1632_v4, %v1636_v28  ;;  %v1548_v39 = vld [vmem:[#allocation9 + $0x360] sm:$0xff]  ;;  %v1265_v4 = vld [vmem:[#allocation2 + $0x8] sm:$0xff] }
 0x5b1   : > { %12742 = vmatprep.subr.bf16.mxu0 %v17124_v30  ;;  %v1516_v30 = vld [vmem:[#allocation9 + $0x260] sm:$0xff]  ;;  %v17203_v60 = vcombine.low %v1544_v14, %v1548_v39 }
 0x5b2   : > { %12782 = vmatpush1.bf16.msra.mxu1 %v17243_v40  ;;  %v1512_v40 = vld [vmem:[#allocation9 + $0x240] sm:$0xff] }
 0x5b3   : > { %12783 = vmatprep.subr.bf16.mxu1 %v17252_v22  ;;  %v1640_v22 = vld [vmem:[#allocation9 + $0x640] sm:$0xff]  ;;  %v17172_v56 = vcombine.high %v1512_v40, %v1516_v30  ;;  %v17171_v61 = vcombine.low %v1512_v40, %v1516_v30 }
 0x5b4   : > { %12743 = vmatpush1.bf16.msra.mxu0 %v17123_v16  ;;  %v17300_v16 = vcombine.high %v1640_v22, %v1644_v43  ;;  %v17299_v55 = vcombine.low %v1640_v22, %v1644_v43  ;;  %v1684_v49 = vld [vmem:[#allocation9 + $0x7a0] sm:$0xff]  ;;  %v1287_v22 = vcombine.high %v1265_v4, %v1265_v4 }
 0x5b5   : > { %12744 = vmatprep.subr.bf16.mxu0 %v17132_v42  ;;  %v1524_v42 = vld [vmem:[#allocation9 + $0x2a0] sm:$0xff] }
 0x5b6   : > { %12784 = vmatpush1.bf16.msra.mxu1 %v17251_v53  ;;  %v1520_v53 = vld [vmem:[#allocation9 + $0x280] sm:$0xff] }
 0x5b7   : > { %12785 = vmatprep.subr.bf16.mxu1 %v17260_v13  ;;  %v1648_v13 = vld [vmem:[#allocation9 + $0x680] sm:$0xff]  ;;  %v17180_v29 = vcombine.high %v1520_v53, %v1524_v42  ;;  %v17179_v32 = vcombine.low %v1520_v53, %v1524_v42  ;;  %v20127_v42 = vrot.slane %v1265_v4, %v19559_v9 }
 0x5b8   : > { %12745 = vmatpush1.bf16.msra.mxu0 %v17131_v23  ;;  %v17308_v23 = vcombine.high %v1648_v13, %v1652_v17  ;;  %v17307_v25 = vcombine.low %v1648_v13, %v1652_v17  ;;  %v1688_v40 = vld [vmem:[#allocation9 + $0x7c0] sm:$0xff] }
 0x5b9   : > { %12746 = vmatprep.subr.bf16.mxu0 %v17140_v37  ;;  %v1532_v37 = vld [vmem:[#allocation9 + $0x2e0] sm:$0xff] }
 0x5ba   : > { %12786 = vmatpush1.bf16.msra.mxu1 %v17259_v15  ;;  %v9242_v58 = vpop.f32.mrb[48].mxu0  ;;  %v1528_v15 = vld [vmem:[#allocation9 + $0x2c0] sm:$0xff] }
 0x5bb   : > { %12787 = vmatprep.subr.bf16.mxu1 %v17268_v36  ;;  %v9244_v31 = vpop.f32.mrb[49].mxu0  ;;  %v1656_v36 = vld [vmem:[#allocation9 + $0x6c0] sm:$0xff]  ;;  %v17188_v44 = vcombine.high %v1528_v15, %v1532_v37  ;;  %v17187_v46 = vcombine.low %v1528_v15, %v1532_v37 }
 0x5bc   : > { %v9283_v33 = vpop.f32.mrb[48].mxu1  ;;  %v9246_v48 = vpop.f32.mrb[50].mxu0  ;;  %12747 = vmatpush1.bf16.msra.mxu0 %v17139_v34  ;;  %v17316_v34 = vcombine.high %v1656_v36, %v1660_v51  ;;  %v17315_v6 = vcombine.low %v1656_v36, %v1660_v51  ;;  %v1692_v30 = vld [vmem:[#allocation9 + $0x7e0] sm:$0xff]  ;;  %v1302_v51 = vcombine.high %v20127_v42, %v20127_v42 }
 0x5bd   : > { %v20122_v63 = vadd.f32 %v9283_v33, %v9242_v58  ;;  %v9285_v27 = vpop.f32.mrb[49].mxu1  ;;  %v9247_v2 = vpop.f32.mrb[51].mxu0  ;;  %12748 = vmatprep.subr.bf16.mxu0 %v17148_v57  ;;  %v1540_v57 = vld [vmem:[#allocation9 + $0x320] sm:$0xff] }
 0x5be   : > { %v20124_v62 = vadd.f32 %v9285_v27, %v9244_v31  ;;  %v9287_v50 = vpop.f32.mrb[50].mxu1  ;;  %12788 = vmatpush1.bf16.msra.mxu1 %v17267_v0  ;;  %v1536_v0 = vld [vmem:[#allocation9 + $0x300] sm:$0xff]  ;;  %v17204_v2 = vcombine.high %v1544_v14, %v1548_v39 }
 0x5bf   : > { %v9288_v11 = vpop.f32.mrb[51].mxu1  ;;  %12789 = vmatprep.subr.bf16.mxu1 %v17276_v26  ;;  %v1664_v58 = vld [vmem:[#allocation9 + $0x700] sm:$0xff]  ;;  %v17196_v33 = vcombine.high %v1536_v0, %v1540_v57 }
 0x5c0   : > { %12749 = vmatpush1.bf16.msra.mxu0 %v17147_v3  ;;  %v1668_v26 = vld [vmem:[#allocation9 + $0x720] sm:$0xff]  ;;  %v17195_v3 = vcombine.low %v1536_v0, %v1540_v57 }
 0x5c1   : > { %12750 = vmatprep.subr.bf16.mxu0 %v17156_v41  ;;  %v17324_v31 = vcombine.high %v1664_v58, %v1668_v26  ;;  %v1672_v27 = vld [vmem:[#allocation9 + $0x740] sm:$0xff]  ;;  %v17323_v50 = vcombine.low %v1664_v58, %v1668_v26 }
 0x5c2   : > { %12790 = vmatpush1.bf16.msra.mxu1 %v17275_v7  ;;  %v1676_v48 = vld [vmem:[#allocation9 + $0x760] sm:$0xff] }
 0x5c3   : > { %12791 = vmatprep.subr.bf16.mxu1 %v17284_v21  ;;  %v17332_v7 = vcombine.high %v1672_v27, %v1676_v48  ;;  %v1552_v41 = vld [vmem:[#allocation9 + $0x380] sm:$0xff]  ;;  %v17331_v28 = vcombine.low %v1672_v27, %v1676_v48 }
 0x5c4   : > { %12751 = vmatpush1.bf16.msra.mxu0 %v17155_v10  ;;  %v1556_v11 = vld [vmem:[#allocation9 + $0x3a0] sm:$0xff] }
 0x5c5   : > { %12752 = vmatprep.subr.bf16.mxu0 %v17164_v5  ;;  %v1680_v21 = vld [vmem:[#allocation9 + $0x780] sm:$0xff]  ;;  %v17212_v10 = vcombine.high %v1552_v41, %v1556_v11  ;;  %v17211_v43 = vcombine.low %v1552_v41, %v1556_v11 }
 0x5c6   : > { %12792 = vmatpush1.bf16.msra.mxu1 %v17283_v47  ;;  %v17340_v47 = vcombine.high %v1680_v21, %v1684_v49  ;;  %v1560_v5 = vld [vmem:[#allocation9 + $0x3c0] sm:$0xff] }
 0x5c7   : > { %12793 = vmatprep.subr.bf16.mxu1 %v17292_v8  ;;  %v1564_v8 = vld [vmem:[#allocation9 + $0x3e0] sm:$0xff] }
 0x5c8   : > { %12753 = vmatpush1.bf16.msra.mxu0 %v17163_v45  ;;  %v17339_v45 = vcombine.low %v1680_v21, %v1684_v49  ;;  %v1700_v53 = vld [vmem:[#allocation9 + $0x820] sm:$0xff] }
 0x5c9   : > { %12754 = vmatprep.subr.bf16.mxu0 %v17172_v56  ;;  %v17348_v56 = vcombine.high %v1688_v40, %v1692_v30  ;;  %v1824_v13 = vld [vmem:[#allocation9 + $0xc00] sm:$0xff] }
 0x5ca   : > { %12794 = vmatpush1.bf16.msra.mxu1 %v17291_v20  ;;  %v17220_v20 = vcombine.high %v1560_v5, %v1564_v8  ;;  %v1828_v17 = vld [vmem:[#allocation9 + $0xc20] sm:$0xff] }
 0x5cb   : > { %12795 = vmatprep.subr.bf16.mxu1 %v17300_v16  ;;  %v1696_v16 = vld [vmem:[#allocation9 + $0x800] sm:$0xff]  ;;  %v17484_v15 = vcombine.high %v1824_v13, %v1828_v17  ;;  %v17483_v57 = vcombine.low %v1824_v13, %v1828_v17 }
 0x5cc   : > { %12755 = vmatpush1.bf16.msra.mxu0 %v17171_v61  ;;  %v20130_v61 = vrot.slane %v1287_v22, %v19559_v9  ;;  %v1704_v37 = vld [vmem:[#allocation9 + $0x840] sm:$0xff]  ;;  %v17355_v0 = vcombine.low %v1696_v16, %v1700_v53 }
 0x5cd   : > { %12756 = vmatprep.subr.bf16.mxu0 %v17180_v29  ;;  %v17347_v29 = vcombine.low %v1688_v40, %v1692_v30  ;;  %v1708_v36 = vld [vmem:[#allocation9 + $0x860] sm:$0xff] }
 0x5ce   : > { %12796 = vmatpush1.bf16.msra.mxu1 %v17299_v55  ;;  %v17219_v55 = vcombine.low %v1560_v5, %v1564_v8  ;;  %v1836_v9 = vld [vmem:[#allocation9 + $0xc60] sm:$0xff]  ;;  %v17364_v58 = vcombine.high %v1704_v37, %v1708_v36 }
 0x5cf   : > { %12797 = vmatprep.subr.bf16.mxu1 %v17308_v23  ;;  %v17356_v23 = vcombine.high %v1696_v16, %v1700_v53  ;;  %v1732_v4 = vld [vmem:[#allocation9 + $0x920] sm:$0xff] }
 0x5d0   : > { %12757 = vmatpush1.bf16.msra.mxu0 %v17179_v32  ;;  %v20136_v32 = vpack.c.bf16 %v20105_v18, %v20105_v18  ;;  %v1716_v18 = vld [vmem:[#allocation9 + $0x8a0] sm:$0xff] }
 0x5d1   : > { %12758 = vmatprep.subr.bf16.mxu0 %v17188_v44  ;;  %v1303_v44 = vcombine.high %v20130_v61, %v20130_v61  ;;  %v1736_v30 = vld [vmem:[#allocation9 + $0x940] sm:$0xff] }
 0x5d2   : > { %12798 = vmatpush1.bf16.msra.mxu1 %v17307_v25  ;;  %v1832_v25 = vld [vmem:[#allocation9 + $0xc40] sm:$0xff] }
 0x5d3   : > { %12799 = vmatprep.subr.bf16.mxu1 %v17316_v34  ;;  %v20142_v34 = vpack.c.bf16 %v20108_v12, %v20108_v12  ;;  %v17492_v26 = vcombine.high %v1832_v25, %v1836_v9  ;;  %v20147_v14 = vpack.c.bf16 %v1303_v44, %v1303_v44  ;;  %v17363_v12 = vcombine.low %v1704_v37, %v1708_v36  ;;  %v1740_v22 = vld [vmem:[#allocation9 + $0x960] sm:$0xff] }
 0x5d4   : > { %12759 = vmatpush1.bf16.msra.mxu0 %v17187_v46  ;;  %v1712_v46 = vld [vmem:[#allocation9 + $0x880] sm:$0xff]  ;;  %v17491_v39 = vcombine.low %v1832_v25, %v1836_v9  ;;  %v17396_v16 = vcombine.high %v1736_v30, %v1740_v22 }
 0x5d5   : > { %12760 = vmatprep.subr.bf16.mxu0 %v17196_v33  ;;  %v1840_v33 = vld [vmem:[#allocation9 + $0xc80] sm:$0xff]  ;;  %v17372_v27 = vcombine.high %v1712_v46, %v1716_v18  ;;  %v17371_v41 = vcombine.low %v1712_v46, %v1716_v18 }
 0x5d6   : > { %12800 = vmatpush1.bf16.msra.mxu1 %v17315_v6  ;;  %v20144_v6 = vpack.c.bf16 %v1302_v51, %v1302_v51  ;;  %v1744_v13 = vld [vmem:[#allocation9 + $0x980] sm:$0xff] }
 0x5d7   : > { %12801 = vmatprep.subr.bf16.mxu1 %v17324_v31  ;;  %v1844_v31 = vld [vmem:[#allocation9 + $0xca0] sm:$0xff] }
 0x5d8   : > { %12761 = vmatpush1.bf16.msra.mxu0 %v17195_v3  ;;  %v17500_v48 = vcombine.high %v1840_v33, %v1844_v31  ;;  %v1720_v3 = vld [vmem:[#allocation9 + $0x8c0] sm:$0xff]  ;;  %v17499_v11 = vcombine.low %v1840_v33, %v1844_v31 }
 0x5d9   : > { %12762 = vmatprep.subr.bf16.mxu0 %v17204_v2  ;;  %v1848_v2 = vld [vmem:[#allocation9 + $0xcc0] sm:$0xff] }
 0x5da   : > { %12802 = vmatpush1.bf16.msra.mxu1 %v17323_v50  ;;  %v1724_v50 = vld [vmem:[#allocation9 + $0x8e0] sm:$0xff] }
 0x5db   : > { %12803 = vmatprep.subr.bf16.mxu1 %v17332_v7  ;;  %v1852_v7 = vld [vmem:[#allocation9 + $0xce0] sm:$0xff]  ;;  %v17380_v21 = vcombine.high %v1720_v3, %v1724_v50 }
 0x5dc   : > { %12763 = vmatpush1.bf16.msra.mxu0 %v17203_v60  ;;  %v17508_v49 = vcombine.high %v1848_v2, %v1852_v7  ;;  %v1728_v60 = vld [vmem:[#allocation9 + $0x900] sm:$0xff]  ;;  %v17507_v5 = vcombine.low %v1848_v2, %v1852_v7 }
 0x5dd   : > { %12764 = vmatprep.subr.bf16.mxu0 %v17212_v10  ;;  %v1860_v10 = vld [vmem:[#allocation9 + $0xd20] sm:$0xff]  ;;  %v17388_v8 = vcombine.high %v1728_v60, %v1732_v4 }
 0x5de   : > { %12804 = vmatpush1.bf16.msra.mxu1 %v17331_v28  ;;  %v1856_v28 = vld [vmem:[#allocation9 + $0xd00] sm:$0xff] }
 0x5df   : > { %12805 = vmatprep.subr.bf16.mxu1 %v17340_v47  ;;  %v17379_v47 = vcombine.low %v1720_v3, %v1724_v50  ;;  %v17516_v40 = vcombine.high %v1856_v28, %v1860_v10  ;;  %v1748_v17 = vld [vmem:[#allocation9 + $0x9a0] sm:$0xff] }
 0x5e0   : > { %12765 = vmatpush1.bf16.msra.mxu0 %v17211_v43  ;;  %v1864_v43 = vld [vmem:[#allocation9 + $0xd40] sm:$0xff]  ;;  %v17404_v37 = vcombine.high %v1744_v13, %v1748_v17  ;;  %v17403_v31 = vcombine.low %v1744_v13, %v1748_v17 }
 0x5e1   : > { %12766 = vmatprep.subr.bf16.mxu0 %v17220_v20  ;;  %v17387_v20 = vcombine.low %v1728_v60, %v1732_v4  ;;  %v1752_v25 = vld [vmem:[#allocation9 + $0x9c0] sm:$0xff] }
 0x5e2   : > { %12806 = vmatpush1.bf16.msra.mxu1 %v17339_v45  ;;  %v1868_v45 = vld [vmem:[#allocation9 + $0xd60] sm:$0xff] }
 0x5e3   : > { %12807 = vmatprep.subr.bf16.mxu1 %v17348_v56  ;;  %v17515_v56 = vcombine.low %v1856_v28, %v1860_v10  ;;  %v17524_v53 = vcombine.high %v1864_v43, %v1868_v45  ;;  %v1756_v9 = vld [vmem:[#allocation9 + $0x9e0] sm:$0xff] }
 0x5e4   : > { %12767 = vmatpush1.bf16.msra.mxu0 %v17219_v55  ;;  %v1872_v55 = vld [vmem:[#allocation9 + $0xd80] sm:$0xff]  ;;  %v17412_v3 = vcombine.high %v1752_v25, %v1756_v9 }
 0x5e5   : > { %12818 = vmatprep.subr.bf16.mxu0 %v17356_v23  ;;  %v17395_v23 = vcombine.low %v1736_v30, %v1740_v22  ;;  %v1760_v7 = vld [vmem:[#allocation9 + $0xa00] sm:$0xff] }
 0x5e6   : > { %12808 = vmatpush1.bf16.msra.mxu1 %v17347_v29  ;;  %v1876_v29 = vld [vmem:[#allocation9 + $0xda0] sm:$0xff] }
 0x5e7   : > { %12859 = vmatprep.subr.bf16.mxu1 %v17484_v15  ;;  %12769 = vmatmul.mubr.bf16.vlgmr.msra.gmra.mrb[64].mxu0 %v20136_v32  ;;  %v17523_v15 = vcombine.low %v1864_v43, %v1868_v45  ;;  %v17532_v51 = vcombine.high %v1872_v55, %v1876_v29  ;;  %v1768_v28 = vld [vmem:[#allocation9 + $0xa40] sm:$0xff] }
 0x5e8   : > { %12819 = vmatpush1.bf16.msra.mxu0 %v17355_v0  ;;  %12850 = vmatprep.mubr.bf16.mxu0 %v20144_v6  ;;  %v1772_v10 = vld [vmem:[#allocation9 + $0xa60] sm:$0xff] }
 0x5e9   : > { %12810 = vmatmul.mubr.bf16.vlgmr.msra.gmra.mrb[64].mxu1 %v20142_v34  ;;  %12820 = vmatprep.subr.bf16.mxu0 %v17364_v58  ;;  %v1880_v58 = vld [vmem:[#allocation9 + $0xdc0] sm:$0xff]  ;;  %v17428_v30 = vcombine.high %v1768_v28, %v1772_v10 }
 0x5ea   : > { %12860 = vmatpush1.bf16.msra.mxu1 %v17483_v57  ;;  %12891 = vmatprep.mubr.bf16.mxu1 %v20147_v14  ;;  %v1776_v43 = vld [vmem:[#allocation9 + $0xa80] sm:$0xff] }
 0x5eb   : > { %12861 = vmatprep.subr.bf16.mxu1 %v17492_v26  ;;  %v1884_v26 = vld [vmem:[#allocation9 + $0xde0] sm:$0xff] }
 0x5ec   : > { %12821 = vmatpush1.bf16.msra.mxu0 %v17363_v12  ;;  %v17540_v2 = vcombine.high %v1880_v58, %v1884_v26  ;;  %v1780_v45 = vld [vmem:[#allocation9 + $0xaa0] sm:$0xff] }
 0x5ed   : > { %12822 = vmatprep.subr.bf16.mxu0 %v17372_v27  ;;  %v17436_v13 = vcombine.high %v1776_v43, %v1780_v45 }
 0x5ee   : > { %12862 = vmatpush1.bf16.msra.mxu1 %v17491_v39 }
 0x5ef   : > { %12863 = vmatprep.subr.bf16.mxu1 %v17500_v48  ;;  %v17531_v48 = vcombine.low %v1872_v55, %v1876_v29  ;;  %v1784_v55 = vld [vmem:[#allocation9 + $0xac0] sm:$0xff] }
 0x5f0   : > { %12823 = vmatpush1.bf16.msra.mxu0 %v17371_v41  ;;  %v1764_v41 = vld [vmem:[#allocation9 + $0xa20] sm:$0xff] }
 0x5f1   : > { %12824 = vmatprep.subr.bf16.mxu0 %v17380_v21  ;;  %v17411_v21 = vcombine.low %v1752_v25, %v1756_v9  ;;  %v17420_v60 = vcombine.high %v1760_v7, %v1764_v41  ;;  %v1788_v29 = vld [vmem:[#allocation9 + $0xae0] sm:$0xff] }
 0x5f2   : > { %12864 = vmatpush1.bf16.msra.mxu1 %v17499_v11  ;;  %v1892_v11 = vld [vmem:[#allocation9 + $0xe20] sm:$0xff] }
 0x5f3   : > { %12865 = vmatprep.subr.bf16.mxu1 %v17508_v49  ;;  %v17539_v49 = vcombine.low %v1880_v58, %v1884_v26  ;;  %v1792_v9 = vld [vmem:[#allocation9 + $0xb00] sm:$0xff]  ;;  %v17443_v58 = vcombine.low %v1784_v55, %v1788_v29 }
 0x5f4   : > { %12825 = vmatpush1.bf16.msra.mxu0 %v17379_v47  ;;  %v1896_v47 = vld [vmem:[#allocation9 + $0xe40] sm:$0xff] }
 0x5f5   : > { %12826 = vmatprep.subr.bf16.mxu0 %v17388_v8  ;;  %v17419_v8 = vcombine.low %v1760_v7, %v1764_v41  ;;  %v1808_v7 = vld [vmem:[#allocation9 + $0xb80] sm:$0xff] }
 0x5f6   : > { %12866 = vmatpush1.bf16.msra.mxu1 %v17507_v5  ;;  %v1900_v5 = vld [vmem:[#allocation9 + $0xe60] sm:$0xff] }
 0x5f7   : > { %12867 = vmatprep.subr.bf16.mxu1 %v17516_v40  ;;  %v17556_v22 = vcombine.high %v1896_v47, %v1900_v5  ;;  %v1812_v41 = vld [vmem:[#allocation9 + $0xba0] sm:$0xff] }
 0x5f8   : > { %12827 = vmatpush1.bf16.msra.mxu0 %v17387_v20  ;;  %v1904_v20 = vld [vmem:[#allocation9 + $0xe80] sm:$0xff] }
 0x5f9   : > { %12828 = vmatprep.subr.bf16.mxu0 %v17396_v16  ;;  %v17427_v16 = vcombine.low %v1768_v28, %v1772_v10  ;;  %v1816_v28 = vld [vmem:[#allocation9 + $0xbc0] sm:$0xff] }
 0x5fa   : > { %12868 = vmatpush1.bf16.msra.mxu1 %v17515_v56  ;;  %v9324_v36 = vpop.f32.mrb[52].mxu0  ;;  %v1908_v56 = vld [vmem:[#allocation9 + $0xea0] sm:$0xff] }
 0x5fb   : > { %12869 = vmatprep.subr.bf16.mxu1 %v17524_v53  ;;  %v9325_v44 = vadd.f32 %v9324_v36, %v20122_v63  ;;  %v9326_v57 = vpop.f32.mrb[53].mxu0  ;;  %v17555_v53 = vcombine.low %v1896_v47, %v1900_v5  ;;  %v17564_v17 = vcombine.high %v1904_v20, %v1908_v56  ;;  %v17563_v36 = vcombine.low %v1904_v20, %v1908_v56  ;;  %v1820_v10 = vld [vmem:[#allocation9 + $0xbe0] sm:$0xff]  ;;  %v1441_v20 = vld [vmem:[#allocation9 + $0x8] sm:$0xff] }
 0x5fc   : > { %v9365_v0 = vpop.f32.mrb[52].mxu1  ;;  %v9327_v46 = vadd.f32 %v9326_v57, %v20124_v62  ;;  %v9328_v33 = vpop.f32.mrb[54].mxu0  ;;  %12829 = vmatpush1.bf16.msra.mxu0 %v17395_v23  ;;  %v1888_v62 = vld [vmem:[#allocation9 + $0xe00] sm:$0xff]  ;;  %v1445_v56 = vld [vmem:[#allocation9 + $0x28] sm:$0xff] }
 0x5fd   : > { %v9367_v18 = vpop.f32.mrb[53].mxu1  ;;  %v20154_v12 = vadd.f32 %v9365_v0, %v9325_v44  ;;  %v9329_v27 = vpop.f32.mrb[55].mxu0  ;;  %12830 = vmatprep.subr.bf16.mxu0 %v17404_v37  ;;  %v17548_v4 = vcombine.high %v1888_v62, %v1892_v11  ;;  %v17547_v40 = vcombine.low %v1888_v62, %v1892_v11  ;;  %v1912_v23 = vld [vmem:[#allocation9 + $0xec0] sm:$0xff]  ;;  %v17435_v37 = vcombine.low %v1776_v43, %v1780_v45 }
 0x5fe   : > { %v9369_v39 = vpop.f32.mrb[54].mxu1  ;;  %12870 = vmatpush1.bf16.msra.mxu1 %v17523_v15  ;;  %v20156_v50 = vadd.f32 %v9367_v18, %v9327_v46  ;;  %v1916_v15 = vld [vmem:[#allocation9 + $0xee0] sm:$0xff] }
 0x5ff   : > { %v9370_v63 = vpop.f32.mrb[55].mxu1  ;;  %12871 = vmatprep.subr.bf16.mxu1 %v17532_v51  ;;  %v17444_v51 = vcombine.high %v1784_v55, %v1788_v29  ;;  %v17572_v25 = vcombine.high %v1912_v23, %v1916_v15  ;;  %v1796_v44 = vld [vmem:[#allocation9 + $0xb20] sm:$0xff]  ;;  %v17571_v26 = vcombine.low %v1912_v23, %v1916_v15  ;;  %v17102_v55 = vcombine.high %v1441_v20, %v1445_v56 }
 0x600   : > { %12831 = vmatpush1.bf16.msra.mxu0 %v17403_v31  ;;  %v1920_v0 = vld [vmem:[#allocation9 + $0xf00] sm:$0xff]  ;;  %v17452_v46 = vcombine.high %v1792_v9, %v1796_v44 }
 0x601   : > { %12832 = vmatprep.subr.bf16.mxu0 %v17412_v3  ;;  %v1924_v57 = vld [vmem:[#allocation9 + $0xf20] sm:$0xff] }
 0x602   : > { %12872 = vmatpush1.bf16.msra.mxu1 %v17531_v48  ;;  %v17580_v18 = vcombine.high %v1920_v0, %v1924_v57  ;;  %v1800_v33 = vld [vmem:[#allocation9 + $0xb40] sm:$0xff]  ;;  %v17451_v48 = vcombine.low %v1792_v9, %v1796_v44  ;;  %v17579_v3 = vcombine.low %v1920_v0, %v1924_v57  ;;  %v17101_v44 = vcombine.low %v1441_v20, %v1445_v56 }
 0x603   : > { %12873 = vmatprep.subr.bf16.mxu1 %v17540_v2  ;;  %v1804_v31 = vld [vmem:[#allocation9 + $0xb60] sm:$0xff] }
 0x604   : > { %12833 = vmatpush1.bf16.msra.mxu0 %v17411_v21  ;;  %v1928_v39 = vld [vmem:[#allocation9 + $0xf40] sm:$0xff]  ;;  %v17460_v63 = vcombine.high %v1800_v33, %v1804_v31  ;;  %v17459_v21 = vcombine.low %v1800_v33, %v1804_v31 }
 0x605   : > { %12834 = vmatprep.subr.bf16.mxu0 %v17420_v60  ;;  %v1932_v27 = vld [vmem:[#allocation9 + $0xf60] sm:$0xff]  ;;  %v17468_v60 = vcombine.high %v1808_v7, %v1812_v41 }
 0x606   : > { %12874 = vmatpush1.bf16.msra.mxu1 %v17539_v49  ;;  %v17588_v2 = vcombine.high %v1928_v39, %v1932_v27  ;;  %v1936_v62 = vld [vmem:[#allocation9 + $0xf80] sm:$0xff]  ;;  %v17587_v49 = vcombine.low %v1928_v39, %v1932_v27 }
 0x607   : > { %12875 = vmatprep.subr.bf16.mxu1 %v17548_v4  ;;  %v1940_v11 = vld [vmem:[#allocation9 + $0xfa0] sm:$0xff] }
 0x608   : > { %12835 = vmatpush1.bf16.msra.mxu0 %v17419_v8  ;;  %v17596_v4 = vcombine.high %v1936_v62, %v1940_v11  ;;  %v1944_v47 = vld [vmem:[#allocation9 + $0xfc0] sm:$0xff]  ;;  %v17467_v8 = vcombine.low %v1808_v7, %v1812_v41 }
 0x609   : > { %12836 = vmatprep.subr.bf16.mxu0 %v17428_v30  ;;  %v1948_v5 = vld [vmem:[#allocation9 + $0xfe0] sm:$0xff]  ;;  %v17476_v30 = vcombine.high %v1816_v28, %v1820_v10 }
 0x60a   : > { %12876 = vmatpush1.bf16.msra.mxu1 %v17547_v40  ;;  %v17595_v40 = vcombine.low %v1936_v62, %v1940_v11  ;;  %v1952_v43 = vld [vmem:[#allocation9 + $0x1000] sm:$0xff] }
 0x60b   : > { %12877 = vmatprep.subr.bf16.mxu1 %v17556_v22  ;;  %v17604_v22 = vcombine.high %v1944_v47, %v1948_v5  ;;  %v1956_v45 = vld [vmem:[#allocation9 + $0x1020] sm:$0xff] }
 0x60c   : > { %12837 = vmatpush1.bf16.msra.mxu0 %v17427_v16  ;;  %v20158_v16 = vld.sshfl [vmem:[#allocation2 + $0x10] sm:$0x33 pattern:$0x76325410]  ;;  %v1960_v29 = vld [vmem:[#allocation9 + $0x1040] sm:$0xff]  ;;  %v17611_v9 = vcombine.low %v1952_v43, %v1956_v45 }
 0x60d   : > { %12838 = vmatprep.subr.bf16.mxu0 %v17436_v13  ;;  %v17603_v13 = vcombine.low %v1944_v47, %v1948_v5  ;;  %v1964_v23 = vld [vmem:[#allocation9 + $0x1060] sm:$0xff]  ;;  %v1311_v15 = vcombine.high %v20158_v16, %v20158_v16 }
 0x60e   : > { %12878 = vmatpush1.bf16.msra.mxu1 %v17555_v53  ;;  %v17475_v53 = vcombine.low %v1816_v28, %v1820_v10  ;;  %v17620_v0 = vcombine.high %v1960_v29, %v1964_v23  ;;  %v1976_v27 = vld [vmem:[#allocation9 + $0x10c0] sm:$0xff] }
 0x60f   : > { %12879 = vmatprep.subr.bf16.mxu1 %v17564_v17  ;;  %v17612_v17 = vcombine.high %v1952_v43, %v1956_v45  ;;  %v1984_v11 = vld [vmem:[#allocation9 + $0x1100] sm:$0xff] }
 0x610   : > { %12839 = vmatpush1.bf16.msra.mxu0 %v17435_v37  ;;  %v20164_v37 = vpack.c.bf16 %v20127_v42, %v20127_v42  ;;  %v1457_v42 = vld [vmem:[#allocation9 + $0x88] sm:$0xff]  ;;  %v1992_v5 = vld [vmem:[#allocation9 + $0x1140] sm:$0xff] }
 0x611   : > { %12840 = vmatprep.subr.bf16.mxu0 %v17444_v51  ;;  %v1453_v51 = vld [vmem:[#allocation9 + $0x68] sm:$0xff]  ;;  %v2000_v56 = vld [vmem:[#allocation9 + $0x1180] sm:$0xff] }
 0x612   : > { %12880 = vmatpush1.bf16.msra.mxu1 %v17563_v36  ;;  %v1449_v36 = vld [vmem:[#allocation9 + $0x48] sm:$0xff] }
 0x613   : > { %12881 = vmatprep.subr.bf16.mxu1 %v17572_v25  ;;  %v20168_v25 = vpack.c.bf16 %v20130_v61, %v20130_v61  ;;  %v17110_v57 = vcombine.high %v1449_v36, %v1453_v51  ;;  %v17619_v61 = vcombine.low %v1960_v29, %v1964_v23  ;;  %v17109_v33 = vcombine.low %v1449_v36, %v1453_v51  ;;  %v2008_v51 = vld [vmem:[#allocation9 + $0x11c0] sm:$0xff] }
 0x614   : > { %12841 = vmatpush1.bf16.msra.mxu0 %v17443_v58  ;;  %v1968_v58 = vld [vmem:[#allocation9 + $0x1080] sm:$0xff] }
 0x615   : > { %12842 = vmatprep.subr.bf16.mxu0 %v17452_v46  ;;  %v20170_v46 = vpack.c.bf16 %v1311_v15, %v1311_v15 }
 0x616   : > { %12882 = vmatpush1.bf16.msra.mxu1 %v17571_v26  ;;  %v1972_v26 = vld [vmem:[#allocation9 + $0x10a0] sm:$0xff] }
 0x617   : > { %12883 = vmatprep.subr.bf16.mxu1 %v17580_v18  ;;  %v1461_v18 = vld [vmem:[#allocation9 + $0xa8] sm:$0xff]  ;;  %v17628_v31 = vcombine.high %v1968_v58, %v1972_v26 }
 0x618   : > { %12843 = vmatpush1.bf16.msra.mxu0 %v17451_v48  ;;  %v17118_v39 = vcombine.high %v1457_v42, %v1461_v18  ;;  %v1980_v48 = vld [vmem:[#allocation9 + $0x10e0] sm:$0xff]  ;;  %v17117_v7 = vcombine.low %v1457_v42, %v1461_v18 }
 0x619   : > { %12844 = vmatprep.subr.bf16.mxu0 %v17460_v63  ;;  %v1469_v63 = vld [vmem:[#allocation9 + $0xe8] sm:$0xff]  ;;  %v17636_v41 = vcombine.high %v1976_v27, %v1980_v48 }
 0x61a   : > { %12884 = vmatpush1.bf16.msra.mxu1 %v17579_v3  ;;  %v1465_v3 = vld [vmem:[#allocation9 + $0xc8] sm:$0xff] }
 0x61b   : > { %12885 = vmatprep.subr.bf16.mxu1 %v17588_v2  ;;  %v17627_v2 = vcombine.low %v1968_v58, %v1972_v26  ;;  %v17126_v62 = vcombine.high %v1465_v3, %v1469_v63  ;;  %v17125_v28 = vcombine.low %v1465_v3, %v1469_v63  ;;  %v1497_v58 = vld [vmem:[#allocation9 + $0x1c8] sm:$0xff] }
 0x61c   : > { %12845 = vmatpush1.bf16.msra.mxu0 %v17459_v21  ;;  %v1988_v21 = vld [vmem:[#allocation9 + $0x1120] sm:$0xff]  ;;  %v1501_v26 = vld [vmem:[#allocation9 + $0x1e8] sm:$0xff] }
 0x61d   : > { %12846 = vmatprep.subr.bf16.mxu0 %v17468_v60  ;;  %v1477_v60 = vld [vmem:[#allocation9 + $0x128] sm:$0xff]  ;;  %v17644_v10 = vcombine.high %v1984_v11, %v1988_v21 }
 0x61e   : > { %12886 = vmatpush1.bf16.msra.mxu1 %v17587_v49  ;;  %v1473_v49 = vld [vmem:[#allocation9 + $0x108] sm:$0xff] }
 0x61f   : > { %12887 = vmatprep.subr.bf16.mxu1 %v17596_v4  ;;  %v17635_v4 = vcombine.low %v1976_v27, %v1980_v48  ;;  %v17134_v47 = vcombine.high %v1473_v49, %v1477_v60  ;;  %v17133_v43 = vcombine.low %v1473_v49, %v1477_v60 }
 0x620   : > { %12847 = vmatpush1.bf16.msra.mxu0 %v17467_v8  ;;  %v1996_v8 = vld [vmem:[#allocation9 + $0x1160] sm:$0xff] }
 0x621   : > { %12848 = vmatprep.subr.bf16.mxu0 %v17476_v30  ;;  %v1485_v30 = vld [vmem:[#allocation9 + $0x168] sm:$0xff]  ;;  %v17652_v45 = vcombine.high %v1992_v5, %v1996_v8 }
 0x622   : > { %12888 = vmatpush1.bf16.msra.mxu1 %v17595_v40  ;;  %v1481_v40 = vld [vmem:[#allocation9 + $0x148] sm:$0xff] }
 0x623   : > { %12889 = vmatprep.subr.bf16.mxu1 %v17604_v22  ;;  %v17643_v22 = vcombine.low %v1984_v11, %v1988_v21  ;;  %v17142_v20 = vcombine.high %v1481_v40, %v1485_v30  ;;  %v17141_v29 = vcombine.low %v1481_v40, %v1485_v30  ;;  %v17157_v21 = vcombine.low %v1497_v58, %v1501_v26 }
 0x624   : > { %12849 = vmatpush1.bf16.msra.mxu0 %v17475_v53  ;;  %v2004_v53 = vld [vmem:[#allocation9 + $0x11a0] sm:$0xff] }
 0x625   : > { %12900 = vmatprep.subr.bf16.mxu0 %v17612_v17  ;;  %v1493_v17 = vld [vmem:[#allocation9 + $0x1a8] sm:$0xff]  ;;  %v17660_v23 = vcombine.high %v2000_v56, %v2004_v53 }
 0x626   : > { %12890 = vmatpush1.bf16.msra.mxu1 %v17603_v13  ;;  %v1489_v13 = vld [vmem:[#allocation9 + $0x188] sm:$0xff] }
 0x627   : > { %12941 = vmatprep.subr.bf16.mxu1 %v17102_v55  ;;  %12851 = vmatmul.mubr.bf16.vlgmr.msra.gmra.mrb[68].mxu0 %v20164_v37  ;;  %v17651_v55 = vcombine.low %v1992_v5, %v1996_v8  ;;  %v17150_v36 = vcombine.high %v1489_v13, %v1493_v17  ;;  %v17149_v48 = vcombine.low %v1489_v13, %v1493_v17 }
 0x628   : > { %12901 = vmatpush1.bf16.msra.mxu0 %v17611_v9  ;;  %12932 = vmatprep.mubr.bf16.mxu0 %v20170_v46  ;;  %v2012_v9 = vld [vmem:[#allocation9 + $0x11e0] sm:$0xff] }
 0x629   : > { %12892 = vmatmul.mubr.bf16.vlgmr.msra.gmra.mrb[68].mxu1 %v20168_v25  ;;  %12902 = vmatprep.subr.bf16.mxu0 %v17620_v0  ;;  %v17668_v3 = vcombine.high %v2008_v51, %v2012_v9  ;;  %v17667_v11 = vcombine.low %v2008_v51, %v2012_v9 }
 0x62a   : > { %12942 = vmatpush1.bf16.msra.mxu1 %v17101_v44  ;;  %12973 = vmatprep.mubr.bf16.mxu1 %v20114_v38 }
 0x62b   : > { %12943 = vmatprep.subr.bf16.mxu1 %v17110_v57 }
 0x62c   : > { %12903 = vmatpush1.bf16.msra.mxu0 %v17619_v61 }
 0x62d   : > { %12904 = vmatprep.subr.bf16.mxu0 %v17628_v31 }
 0x62e   : > { %12944 = vmatpush1.bf16.msra.mxu1 %v17109_v33  ;;  %v17659_v33 = vcombine.low %v2000_v56, %v2004_v53 }
 0x62f   : > { %12945 = vmatprep.subr.bf16.mxu1 %v17118_v39 }
 0x630   : > { %12905 = vmatpush1.bf16.msra.mxu0 %v17627_v2  ;;  %v17158_v2 = vcombine.high %v1497_v58, %v1501_v26  ;;  %v1537_v58 = vld [vmem:[#allocation9 + $0x308] sm:$0xff] }
 0x631   : > { %12906 = vmatprep.subr.bf16.mxu0 %v17636_v41  ;;  %v2020_v41 = vld [vmem:[#allocation9 + $0x1220] sm:$0xff]  ;;  %v1541_v26 = vld [vmem:[#allocation9 + $0x328] sm:$0xff] }
 0x632   : > { %12946 = vmatpush1.bf16.msra.mxu1 %v17117_v7  ;;  %v2016_v7 = vld [vmem:[#allocation9 + $0x1200] sm:$0xff] }
 0x633   : > { %12947 = vmatprep.subr.bf16.mxu1 %v17126_v62  ;;  %v1509_v62 = vld [vmem:[#allocation9 + $0x228] sm:$0xff]  ;;  %v17676_v49 = vcombine.high %v2016_v7, %v2020_v41  ;;  %v17675_v5 = vcombine.low %v2016_v7, %v2020_v41 }
 0x634   : > { %12907 = vmatpush1.bf16.msra.mxu0 %v17635_v4  ;;  %v2024_v4 = vld [vmem:[#allocation9 + $0x1240] sm:$0xff] }
 0x635   : > { %12908 = vmatprep.subr.bf16.mxu0 %v17644_v10  ;;  %v1513_v10 = vld [vmem:[#allocation9 + $0x248] sm:$0xff] }
 0x636   : > { %12948 = vmatpush1.bf16.msra.mxu1 %v17125_v28  ;;  %v2028_v28 = vld [vmem:[#allocation9 + $0x1260] sm:$0xff] }
 0x637   : > { %12949 = vmatprep.subr.bf16.mxu1 %v17134_v47  ;;  %v1517_v47 = vld [vmem:[#allocation9 + $0x268] sm:$0xff]  ;;  %v17684_v40 = vcombine.high %v2024_v4, %v2028_v28  ;;  %v17683_v56 = vcombine.low %v2024_v4, %v2028_v28 }
 0x638   : > { %12909 = vmatpush1.bf16.msra.mxu0 %v17643_v22  ;;  %v17174_v30 = vcombine.high %v1513_v10, %v1517_v47  ;;  %v2032_v22 = vld [vmem:[#allocation9 + $0x1280] sm:$0xff]  ;;  %v17173_v53 = vcombine.low %v1513_v10, %v1517_v47 }
 0x639   : > { %12910 = vmatprep.subr.bf16.mxu0 %v17652_v45  ;;  %v1521_v45 = vld [vmem:[#allocation9 + $0x288] sm:$0xff]  ;;  %v2072_v10 = vld [vmem:[#allocation9 + $0x13c0] sm:$0xff] }
 0x63a   : > { %12950 = vmatpush1.bf16.msra.mxu1 %v17133_v43  ;;  %v9406_v15 = vpop.f32.mrb[56].mxu0  ;;  %v2036_v43 = vld [vmem:[#allocation9 + $0x12a0] sm:$0xff] }
 0x63b   : > { %12951 = vmatprep.subr.bf16.mxu1 %v17142_v20  ;;  %v9407_v44 = vadd.f32 %v9406_v15, %v20154_v12  ;;  %v9408_v57 = vpop.f32.mrb[57].mxu0  ;;  %v1525_v20 = vld [vmem:[#allocation9 + $0x2a8] sm:$0xff]  ;;  %v17692_v13 = vcombine.high %v2032_v22, %v2036_v43  ;;  %v2076_v47 = vld [vmem:[#allocation9 + $0x13e0] sm:$0xff] }
 0x63c   : > { %v9447_v0 = vpop.f32.mrb[56].mxu1  ;;  %v9409_v42 = vadd.f32 %v9408_v57, %v20156_v50  ;;  %v9410_v61 = vpop.f32.mrb[58].mxu0  ;;  %12911 = vmatpush1.bf16.msra.mxu0 %v17651_v55  ;;  %v1505_v50 = vld [vmem:[#allocation9 + $0x208] sm:$0xff]  ;;  %v17182_v17 = vcombine.high %v1521_v45, %v1525_v20  ;;  %v2040_v55 = vld [vmem:[#allocation9 + $0x12c0] sm:$0xff]  ;;  %v17181_v51 = vcombine.low %v1521_v45, %v1525_v20 }
 0x63d   : > { %v9449_v18 = vpop.f32.mrb[57].mxu1  ;;  %v20178_v31 = vadd.f32 %v9447_v0, %v9407_v44  ;;  %v9411_v27 = vpop.f32.mrb[59].mxu0  ;;  %12912 = vmatprep.subr.bf16.mxu0 %v17660_v23  ;;  %v17166_v60 = vcombine.high %v1505_v50, %v1509_v62  ;;  %v17165_v8 = vcombine.low %v1505_v50, %v1509_v62  ;;  %v1529_v23 = vld [vmem:[#allocation9 + $0x2c8] sm:$0xff]  ;;  %v2048_v0 = vld [vmem:[#allocation9 + $0x1300] sm:$0xff] }
 0x63e   : > { %v9451_v39 = vpop.f32.mrb[58].mxu1  ;;  %12952 = vmatpush1.bf16.msra.mxu1 %v17141_v29  ;;  %v20180_v63 = vadd.f32 %v9449_v18, %v9409_v42  ;;  %v2044_v29 = vld [vmem:[#allocation9 + $0x12e0] sm:$0xff]  ;;  %v1533_v15 = vld [vmem:[#allocation9 + $0x2e8] sm:$0xff] }
 0x63f   : > { %v9452_v12 = vpop.f32.mrb[59].mxu1  ;;  %12953 = vmatprep.subr.bf16.mxu1 %v17150_v36  ;;  %v17691_v36 = vcombine.low %v2032_v22, %v2036_v43  ;;  %v17700_v9 = vcombine.high %v2040_v55, %v2044_v29  ;;  %v17190_v44 = vcombine.high %v1529_v23, %v1533_v15  ;;  %v2052_v57 = vld [vmem:[#allocation9 + $0x1320] sm:$0xff]  ;;  %v17699_v42 = vcombine.low %v2040_v55, %v2044_v29  ;;  %v1569_v45 = vld [vmem:[#allocation9 + $0x408] sm:$0xff] }
 0x640   : > { %12913 = vmatpush1.bf16.msra.mxu0 %v17659_v33  ;;  %v17189_v18 = vcombine.low %v1529_v23, %v1533_v15  ;;  %v17708_v61 = vcombine.high %v2048_v0, %v2052_v57  ;;  %v17198_v33 = vcombine.high %v1537_v58, %v1541_v26  ;;  %v2056_v39 = vld [vmem:[#allocation9 + $0x1340] sm:$0xff]  ;;  %v17707_v12 = vcombine.low %v2048_v0, %v2052_v57  ;;  %v1573_v20 = vld [vmem:[#allocation9 + $0x428] sm:$0xff] }
 0x641   : > { %12914 = vmatprep.subr.bf16.mxu0 %v17668_v3  ;;  %v2060_v27 = vld [vmem:[#allocation9 + $0x1360] sm:$0xff]  ;;  %v1549_v3 = vld [vmem:[#allocation9 + $0x368] sm:$0xff]  ;;  %v17732_v22 = vcombine.high %v2072_v10, %v2076_v47  ;;  %v17230_v55 = vcombine.high %v1569_v45, %v1573_v20 }
 0x642   : > { %12954 = vmatpush1.bf16.msra.mxu1 %v17149_v48  ;;  %v1545_v48 = vld [vmem:[#allocation9 + $0x348] sm:$0xff]  ;;  %v17716_v7 = vcombine.high %v2056_v39, %v2060_v27  ;;  %v2064_v50 = vld [vmem:[#allocation9 + $0x1380] sm:$0xff] }
 0x643   : > { %12955 = vmatprep.subr.bf16.mxu1 %v17158_v2  ;;  %v17197_v2 = vcombine.low %v1537_v58, %v1541_v26  ;;  %v17206_v41 = vcombine.high %v1545_v48, %v1549_v3  ;;  %v2068_v62 = vld [vmem:[#allocation9 + $0x13a0] sm:$0xff]  ;;  %v1577_v23 = vld [vmem:[#allocation9 + $0x448] sm:$0xff] }
 0x644   : > { %12915 = vmatpush1.bf16.msra.mxu0 %v17667_v11  ;;  %v1553_v11 = vld [vmem:[#allocation9 + $0x388] sm:$0xff]  ;;  %v17724_v4 = vcombine.high %v2064_v50, %v2068_v62 }
 0x645   : > { %12916 = vmatprep.subr.bf16.mxu0 %v17676_v49  ;;  %v17715_v49 = vcombine.low %v2056_v39, %v2060_v27  ;;  %v1581_v15 = vld [vmem:[#allocation9 + $0x468] sm:$0xff] }
 0x646   : > { %12956 = vmatpush1.bf16.msra.mxu1 %v17157_v21  ;;  %v1557_v21 = vld [vmem:[#allocation9 + $0x3a8] sm:$0xff]  ;;  %v17238_v57 = vcombine.high %v1577_v23, %v1581_v15 }
 0x647   : > { %12957 = vmatprep.subr.bf16.mxu1 %v17166_v60  ;;  %v17205_v60 = vcombine.low %v1545_v48, %v1549_v3  ;;  %v17214_v28 = vcombine.high %v1553_v11, %v1557_v21  ;;  %v1585_v26 = vld [vmem:[#allocation9 + $0x488] sm:$0xff] }
 0x648   : > { %12917 = vmatpush1.bf16.msra.mxu0 %v17675_v5  ;;  %v1561_v5 = vld [vmem:[#allocation9 + $0x3c8] sm:$0xff] }
 0x649   : > { %12918 = vmatprep.subr.bf16.mxu0 %v17684_v40  ;;  %v17723_v40 = vcombine.low %v2064_v50, %v2068_v62  ;;  %v1593_v48 = vld [vmem:[#allocation9 + $0x4c8] sm:$0xff] }
 0x64a   : > { %12958 = vmatpush1.bf16.msra.mxu1 %v17165_v8  ;;  %v1565_v8 = vld [vmem:[#allocation9 + $0x3e8] sm:$0xff] }
 0x64b   : > { %12959 = vmatprep.subr.bf16.mxu1 %v17174_v30  ;;  %v17213_v30 = vcombine.low %v1553_v11, %v1557_v21  ;;  %v17222_v43 = vcombine.high %v1561_v5, %v1565_v8  ;;  %v1597_v3 = vld [vmem:[#allocation9 + $0x4e8] sm:$0xff] }
 0x64c   : > { %12919 = vmatpush1.bf16.msra.mxu0 %v17683_v56  ;;  %v1697_v56 = vld [vmem:[#allocation9 + $0x808] sm:$0xff]  ;;  %v17254_v50 = vcombine.high %v1593_v48, %v1597_v3 }
 0x64d   : > { %12920 = vmatprep.subr.bf16.mxu0 %v17692_v13  ;;  %v17731_v13 = vcombine.low %v2072_v10, %v2076_v47  ;;  %v1601_v11 = vld [vmem:[#allocation9 + $0x508] sm:$0xff] }
 0x64e   : > { %12960 = vmatpush1.bf16.msra.mxu1 %v17173_v53  ;;  %v1701_v53 = vld [vmem:[#allocation9 + $0x828] sm:$0xff] }
 0x64f   : > { %12961 = vmatprep.subr.bf16.mxu1 %v17182_v17  ;;  %v17221_v17 = vcombine.low %v1561_v5, %v1565_v8  ;;  %v17358_v29 = vcombine.high %v1697_v56, %v1701_v53  ;;  %v17357_v0 = vcombine.low %v1697_v56, %v1701_v53  ;;  %v1605_v21 = vld [vmem:[#allocation9 + $0x528] sm:$0xff] }
 0x650   : > { %12921 = vmatpush1.bf16.msra.mxu0 %v17691_v36  ;;  %v20184_v36 = vpack.c.bf16 %v20158_v16, %v20158_v16  ;;  %v17237_v16 = vcombine.low %v1577_v23, %v1581_v15  ;;  %v17262_v10 = vcombine.high %v1601_v11, %v1605_v21  ;;  %v1609_v5 = vld [vmem:[#allocation9 + $0x548] sm:$0xff] }
 0x651   : > { %12922 = vmatprep.subr.bf16.mxu0 %v17700_v9  ;;  %v1709_v9 = vld [vmem:[#allocation9 + $0x868] sm:$0xff] }
 0x652   : > { %12962 = vmatpush1.bf16.msra.mxu1 %v17181_v51  ;;  %v1705_v51 = vld [vmem:[#allocation9 + $0x848] sm:$0xff] }
 0x653   : > { %12963 = vmatprep.subr.bf16.mxu1 %v17190_v44  ;;  %v17229_v44 = vcombine.low %v1569_v45, %v1573_v20  ;;  %v17366_v58 = vcombine.high %v1705_v51, %v1709_v9  ;;  %v1613_v8 = vld [vmem:[#allocation9 + $0x568] sm:$0xff] }
 0x654   : > { %12923 = vmatpush1.bf16.msra.mxu0 %v17699_v42  ;;  %v1589_v42 = vld [vmem:[#allocation9 + $0x4a8] sm:$0xff]  ;;  %v17270_v45 = vcombine.high %v1609_v5, %v1613_v8 }
 0x655   : > { %12924 = vmatprep.subr.bf16.mxu0 %v17708_v61  ;;  %v1717_v61 = vld [vmem:[#allocation9 + $0x8a8] sm:$0xff]  ;;  %v17246_v39 = vcombine.high %v1585_v26, %v1589_v42 }
 0x656   : > { %12964 = vmatpush1.bf16.msra.mxu1 %v17189_v18  ;;  %v1713_v18 = vld [vmem:[#allocation9 + $0x888] sm:$0xff] }
 0x657   : > { %12965 = vmatprep.subr.bf16.mxu1 %v17198_v33  ;;  %v17365_v33 = vcombine.low %v1705_v51, %v1709_v9  ;;  %v17374_v27 = vcombine.high %v1713_v18, %v1717_v61  ;;  %v1617_v56 = vld [vmem:[#allocation9 + $0x588] sm:$0xff] }
 0x658   : > { %12925 = vmatpush1.bf16.msra.mxu0 %v17707_v12  ;;  %v1721_v12 = vld [vmem:[#allocation9 + $0x8c8] sm:$0xff] }
 0x659   : > { %12926 = vmatprep.subr.bf16.mxu0 %v17716_v7  ;;  %v17245_v7 = vcombine.low %v1585_v26, %v1589_v42  ;;  %v1621_v53 = vld [vmem:[#allocation9 + $0x5a8] sm:$0xff] }
 0x65a   : > { %12966 = vmatpush1.bf16.msra.mxu1 %v17197_v2  ;;  %v1725_v2 = vld [vmem:[#allocation9 + $0x8e8] sm:$0xff]  ;;  %v17278_v23 = vcombine.high %v1617_v56, %v1621_v53 }
 0x65b   : > { %12967 = vmatprep.subr.bf16.mxu1 %v17206_v41  ;;  %v17373_v41 = vcombine.low %v1713_v18, %v1717_v61  ;;  %v17382_v62 = vcombine.high %v1721_v12, %v1725_v2  ;;  %v1625_v9 = vld [vmem:[#allocation9 + $0x5c8] sm:$0xff] }
 0x65c   : > { %12927 = vmatpush1.bf16.msra.mxu0 %v17715_v49  ;;  %v1729_v49 = vld [vmem:[#allocation9 + $0x908] sm:$0xff] }
 0x65d   : > { %12928 = vmatprep.subr.bf16.mxu0 %v17724_v4  ;;  %v17253_v4 = vcombine.low %v1593_v48, %v1597_v3  ;;  %v1753_v26 = vld [vmem:[#allocation9 + $0x9c8] sm:$0xff] }
 0x65e   : > { %12968 = vmatpush1.bf16.msra.mxu1 %v17205_v60  ;;  %v1733_v60 = vld [vmem:[#allocation9 + $0x928] sm:$0xff] }
 0x65f   : > { %12969 = vmatprep.subr.bf16.mxu1 %v17214_v28  ;;  %v17381_v28 = vcombine.low %v1721_v12, %v1725_v2  ;;  %v17390_v47 = vcombine.high %v1729_v49, %v1733_v60  ;;  %v1757_v42 = vld [vmem:[#allocation9 + $0x9e8] sm:$0xff] }
 0x660   : > { %12929 = vmatpush1.bf16.msra.mxu0 %v17723_v40  ;;  %v1737_v40 = vld [vmem:[#allocation9 + $0x948] sm:$0xff] }
 0x661   : > { %12930 = vmatprep.subr.bf16.mxu0 %v17732_v22  ;;  %v17261_v22 = vcombine.low %v1601_v11, %v1605_v21  ;;  %v17413_v21 = vcombine.low %v1753_v26, %v1757_v42 }
 0x662   : > { %12970 = vmatpush1.bf16.msra.mxu1 %v17213_v30  ;;  %v1741_v30 = vld [vmem:[#allocation9 + $0x968] sm:$0xff] }
 0x663   : > { %12971 = vmatprep.subr.bf16.mxu1 %v17222_v43  ;;  %v17389_v43 = vcombine.low %v1729_v49, %v1733_v60  ;;  %v17398_v20 = vcombine.high %v1737_v40, %v1741_v30 }
 0x664   : > { %12931 = vmatpush1.bf16.msra.mxu0 %v17731_v13  ;;  %v1745_v13 = vld [vmem:[#allocation9 + $0x988] sm:$0xff] }
 0x665   : > { %12982 = vmatprep.subr.bf16.mxu0 %v17230_v55  ;;  %v17269_v55 = vcombine.low %v1609_v5, %v1613_v8 }
 0x666   : > { %12972 = vmatpush1.bf16.msra.mxu1 %v17221_v17  ;;  %v1749_v17 = vld [vmem:[#allocation9 + $0x9a8] sm:$0xff] }
 0x667   : > { %13023 = vmatprep.subr.bf16.mxu1 %v17358_v29  ;;  %12933 = vmatmul.mubr.bf16.vlgmr.msra.gmra.mrb[72].mxu0 %v20184_v36  ;;  %v17397_v29 = vcombine.low %v1737_v40, %v1741_v30  ;;  %v17406_v51 = vcombine.high %v1745_v13, %v1749_v17  ;;  %v17405_v3 = vcombine.low %v1745_v13, %v1749_v17 }
 0x668   : > { %12983 = vmatpush1.bf16.msra.mxu0 %v17229_v44  ;;  %13014 = vmatprep.mubr.bf16.mxu0 %v20117_v54  ;;  %v1629_v44 = vld [vmem:[#allocation9 + $0x5e8] sm:$0xff] }
 0x669   : > { %12974 = vmatmul.mubr.bf16.vlgmr.msra.gmra.mrb[72].mxu1 %v20136_v32  ;;  %12984 = vmatprep.subr.bf16.mxu0 %v17238_v57  ;;  %v17286_v12 = vcombine.high %v1625_v9, %v1629_v44  ;;  %v17285_v11 = vcombine.low %v1625_v9, %v1629_v44 }
 0x66a   : > { %13024 = vmatpush1.bf16.msra.mxu1 %v17357_v0  ;;  %13055 = vmatprep.mubr.bf16.mxu1 %v20144_v6 }
 0x66b   : > { %13025 = vmatprep.subr.bf16.mxu1 %v17366_v58 }
 0x66c   : > { %12985 = vmatpush1.bf16.msra.mxu0 %v17237_v16 }
 0x66d   : > { %12986 = vmatprep.subr.bf16.mxu0 %v17246_v39 }
 0x66e   : > { %13026 = vmatpush1.bf16.msra.mxu1 %v17365_v33  ;;  %v17277_v33 = vcombine.low %v1617_v56, %v1621_v53 }
 0x66f   : > { %13027 = vmatprep.subr.bf16.mxu1 %v17374_v27 }
 0x670   : > { %12987 = vmatpush1.bf16.msra.mxu0 %v17245_v7  ;;  %v17414_v7 = vcombine.high %v1753_v26, %v1757_v42  ;;  %v1793_v26 = vld [vmem:[#allocation9 + $0xb08] sm:$0xff] }
 0x671   : > { %12988 = vmatprep.subr.bf16.mxu0 %v17254_v50  ;;  %v1637_v50 = vld [vmem:[#allocation9 + $0x628] sm:$0xff] }
 0x672   : > { %13028 = vmatpush1.bf16.msra.mxu1 %v17373_v41  ;;  %v1633_v41 = vld [vmem:[#allocation9 + $0x608] sm:$0xff] }
 0x673   : > { %13029 = vmatprep.subr.bf16.mxu1 %v17382_v62  ;;  %v1765_v62 = vld [vmem:[#allocation9 + $0xa28] sm:$0xff]  ;;  %v17294_v49 = vcombine.high %v1633_v41, %v1637_v50  ;;  %v17293_v5 = vcombine.low %v1633_v41, %v1637_v50 }
 0x674   : > { %12989 = vmatpush1.bf16.msra.mxu0 %v17253_v4  ;;  %v1641_v4 = vld [vmem:[#allocation9 + $0x648] sm:$0xff] }
 0x675   : > { %12990 = vmatprep.subr.bf16.mxu0 %v17262_v10  ;;  %v1769_v10 = vld [vmem:[#allocation9 + $0xa48] sm:$0xff] }
 0x676   : > { %13030 = vmatpush1.bf16.msra.mxu1 %v17381_v28  ;;  %v1645_v28 = vld [vmem:[#allocation9 + $0x668] sm:$0xff] }
 0x677   : > { %13031 = vmatprep.subr.bf16.mxu1 %v17390_v47  ;;  %v1773_v47 = vld [vmem:[#allocation9 + $0xa68] sm:$0xff]  ;;  %v17302_v40 = vcombine.high %v1641_v4, %v1645_v28  ;;  %v17301_v56 = vcombine.low %v1641_v4, %v1645_v28 }
 0x678   : > { %12991 = vmatpush1.bf16.msra.mxu0 %v17261_v22  ;;  %v17430_v30 = vcombine.high %v1769_v10, %v1773_v47  ;;  %v1649_v22 = vld [vmem:[#allocation9 + $0x688] sm:$0xff]  ;;  %v17429_v53 = vcombine.low %v1769_v10, %v1773_v47 }
 0x679   : > { %12992 = vmatprep.subr.bf16.mxu0 %v17270_v45  ;;  %v1777_v45 = vld [vmem:[#allocation9 + $0xa88] sm:$0xff] }
 0x67a   : > { %13032 = vmatpush1.bf16.msra.mxu1 %v17389_v43  ;;  %v9488_v15 = vpop.f32.mrb[60].mxu0  ;;  %v1653_v43 = vld [vmem:[#allocation9 + $0x6a8] sm:$0xff] }
 0x67b   : > { %13033 = vmatprep.subr.bf16.mxu1 %v17398_v20  ;;  %v9489_v0 = vadd.f32 %v9488_v15, %v20178_v31  ;;  %v9490_v58 = vpop.f32.mrb[61].mxu0  ;;  %v1781_v20 = vld [vmem:[#allocation9 + $0xaa8] sm:$0xff]  ;;  %v17310_v13 = vcombine.high %v1649_v22, %v1653_v43 }
 0x67c   : > { %v9529_v57 = vpop.f32.mrb[60].mxu1  ;;  %v9491_v18 = vadd.f32 %v9490_v58, %v20180_v63  ;;  %v9492_v16 = vpop.f32.mrb[62].mxu0  ;;  %12993 = vmatpush1.bf16.msra.mxu0 %v17269_v55  ;;  %v1761_v63 = vld [vmem:[#allocation9 + $0xa08] sm:$0xff]  ;;  %v17438_v17 = vcombine.high %v1777_v45, %v1781_v20  ;;  %v17437_v9 = vcombine.low %v1777_v45, %v1781_v20 }
 0x67d   : > { %v9531_v61 = vpop.f32.mrb[61].mxu1  ;;  %v20192_v39 = vadd.f32 %v9529_v57, %v9489_v0  ;;  %v9493_v48 = vpop.f32.mrb[63].mxu0  ;;  %12994 = vmatprep.subr.bf16.mxu0 %v17278_v23  ;;  %v17422_v60 = vcombine.high %v1761_v63, %v1765_v62  ;;  %v17421_v8 = vcombine.low %v1761_v63, %v1765_v62  ;;  %v1657_v55 = vld [vmem:[#allocation9 + $0x6c8] sm:$0xff] }
 0x67e   : > { %v9533_v27 = vpop.f32.mrb[62].mxu1  ;;  %13034 = vmatpush1.bf16.msra.mxu1 %v17397_v29  ;;  %v20194_v2 = vadd.f32 %v9531_v61, %v9491_v18  ;;  %v1661_v29 = vld [vmem:[#allocation9 + $0x6e8] sm:$0xff] }
 0x67f   : > { %v9534_v31 = vpop.f32.mrb[63].mxu1  ;;  %13035 = vmatprep.subr.bf16.mxu1 %v17406_v51  ;;  %v1785_v23 = vld [vmem:[#allocation9 + $0xac8] sm:$0xff]  ;;  %v17309_v51 = vcombine.low %v1649_v22, %v1653_v43  ;;  %v17318_v44 = vcombine.high %v1657_v55, %v1661_v29  ;;  %v17317_v18 = vcombine.low %v1657_v55, %v1661_v29 }
 0x680   : > { %12995 = vmatpush1.bf16.msra.mxu0 %v17277_v33  ;;  %v1789_v15 = vld [vmem:[#allocation9 + $0xae8] sm:$0xff] }
 0x681   : > { %12996 = vmatprep.subr.bf16.mxu0 %v17286_v12  ;;  %v17446_v0 = vcombine.high %v1785_v23, %v1789_v15  ;;  %v1665_v57 = vld [vmem:[#allocation9 + $0x708] sm:$0xff]  ;;  %v17445_v61 = vcombine.low %v1785_v23, %v1789_v15 }
 0x682   : > { %13036 = vmatpush1.bf16.msra.mxu1 %v17405_v3  ;;  %v1669_v58 = vld [vmem:[#allocation9 + $0x728] sm:$0xff] }
 0x683   : > { %13037 = vmatprep.subr.bf16.mxu1 %v17414_v7  ;;  %v1797_v42 = vld [vmem:[#allocation9 + $0xb28] sm:$0xff]  ;;  %v17326_v16 = vcombine.high %v1665_v57, %v1669_v58  ;;  %v17325_v31 = vcombine.low %v1665_v57, %v1669_v58 }
 0x684   : > { %12997 = vmatpush1.bf16.msra.mxu0 %v17285_v11  ;;  %v17454_v33 = vcombine.high %v1793_v26, %v1797_v42  ;;  %v1673_v27 = vld [vmem:[#allocation9 + $0x748] sm:$0xff]  ;;  %v17453_v7 = vcombine.low %v1793_v26, %v1797_v42 }
 0x685   : > { %12998 = vmatprep.subr.bf16.mxu0 %v17294_v49  ;;  %v1677_v48 = vld [vmem:[#allocation9 + $0x768] sm:$0xff] }
 0x686   : > { %13038 = vmatpush1.bf16.msra.mxu1 %v17413_v21  ;;  %v1801_v3 = vld [vmem:[#allocation9 + $0xb48] sm:$0xff]  ;;  %v17334_v41 = vcombine.high %v1673_v27, %v1677_v48  ;;  %v17333_v49 = vcombine.low %v1673_v27, %v1677_v48 }
 0x687   : > { %13039 = vmatprep.subr.bf16.mxu1 %v17422_v60  ;;  %v1805_v12 = vld [vmem:[#allocation9 + $0xb68] sm:$0xff] }
 0x688   : > { %12999 = vmatpush1.bf16.msra.mxu0 %v17293_v5  ;;  %v17462_v50 = vcombine.high %v1801_v3, %v1805_v12  ;;  %v1681_v63 = vld [vmem:[#allocation9 + $0x788] sm:$0xff]  ;;  %v17461_v60 = vcombine.low %v1801_v3, %v1805_v12 }
 0x689   : > { %13000 = vmatprep.subr.bf16.mxu0 %v17302_v40  ;;  %v1685_v62 = vld [vmem:[#allocation9 + $0x7a8] sm:$0xff] }
 0x68a   : > { %13040 = vmatpush1.bf16.msra.mxu1 %v17421_v8  ;;  %v1809_v11 = vld [vmem:[#allocation9 + $0xb88] sm:$0xff]  ;;  %v17342_v4 = vcombine.high %v1681_v63, %v1685_v62  ;;  %v17341_v40 = vcombine.low %v1681_v63, %v1685_v62 }
 0x68b   : > { %13041 = vmatprep.subr.bf16.mxu1 %v17430_v30  ;;  %v1813_v21 = vld [vmem:[#allocation9 + $0xba8] sm:$0xff] }
 0x68c   : > { %13001 = vmatpush1.bf16.msra.mxu0 %v17301_v56  ;;  %v17470_v28 = vcombine.high %v1809_v11, %v1813_v21  ;;  %v1689_v10 = vld [vmem:[#allocation9 + $0x7c8] sm:$0xff]  ;;  %v17469_v30 = vcombine.low %v1809_v11, %v1813_v21 }
 0x68d   : > { %13002 = vmatprep.subr.bf16.mxu0 %v17310_v13  ;;  %v1693_v47 = vld [vmem:[#allocation9 + $0x7e8] sm:$0xff] }
 0x68e   : > { %13042 = vmatpush1.bf16.msra.mxu1 %v17429_v53  ;;  %v1817_v5 = vld [vmem:[#allocation9 + $0xbc8] sm:$0xff]  ;;  %v17350_v22 = vcombine.high %v1689_v10, %v1693_v47  ;;  %v17349_v13 = vcombine.low %v1689_v10, %v1693_v47 }
 0x68f   : > { %13043 = vmatprep.subr.bf16.mxu1 %v17438_v17  ;;  %v1821_v8 = vld [vmem:[#allocation9 + $0xbe8] sm:$0xff] }
 0x690   : > { %13003 = vmatpush1.bf16.msra.mxu0 %v17309_v51  ;;  %v17478_v43 = vcombine.high %v1817_v5, %v1821_v8  ;;  %v1825_v45 = vld [vmem:[#allocation9 + $0xc08] sm:$0xff]  ;;  %v17477_v17 = vcombine.low %v1817_v5, %v1821_v8 }
 0x691   : > { %13004 = vmatprep.subr.bf16.mxu0 %v17318_v44  ;;  %v1829_v20 = vld [vmem:[#allocation9 + $0xc28] sm:$0xff] }
 0x692   : > { %13044 = vmatpush1.bf16.msra.mxu1 %v17437_v9  ;;  %v1953_v56 = vld [vmem:[#allocation9 + $0x1008] sm:$0xff]  ;;  %v17486_v55 = vcombine.high %v1825_v45, %v1829_v20  ;;  %v17485_v44 = vcombine.low %v1825_v45, %v1829_v20 }
 0x693   : > { %13045 = vmatprep.subr.bf16.mxu1 %v17446_v0  ;;  %v1957_v53 = vld [vmem:[#allocation9 + $0x1028] sm:$0xff] }
 0x694   : > { %13005 = vmatpush1.bf16.msra.mxu0 %v17317_v18  ;;  %v17614_v29 = vcombine.high %v1953_v56, %v1957_v53  ;;  %v1833_v23 = vld [vmem:[#allocation9 + $0xc48] sm:$0xff]  ;;  %v17613_v0 = vcombine.low %v1953_v56, %v1957_v53 }
 0x695   : > { %13006 = vmatprep.subr.bf16.mxu0 %v17326_v16  ;;  %v1837_v15 = vld [vmem:[#allocation9 + $0xc68] sm:$0xff] }
 0x696   : > { %13046 = vmatpush1.bf16.msra.mxu1 %v17445_v61  ;;  %v1961_v51 = vld [vmem:[#allocation9 + $0x1048] sm:$0xff]  ;;  %v17494_v57 = vcombine.high %v1833_v23, %v1837_v15  ;;  %v17493_v16 = vcombine.low %v1833_v23, %v1837_v15 }
 0x697   : > { %13047 = vmatprep.subr.bf16.mxu1 %v17454_v33  ;;  %v1965_v9 = vld [vmem:[#allocation9 + $0x1068] sm:$0xff] }
 0x698   : > { %13007 = vmatpush1.bf16.msra.mxu0 %v17325_v31  ;;  %v17622_v58 = vcombine.high %v1961_v51, %v1965_v9  ;;  %v1841_v26 = vld [vmem:[#allocation9 + $0xc88] sm:$0xff]  ;;  %v17621_v33 = vcombine.low %v1961_v51, %v1965_v9 }
 0x699   : > { %13008 = vmatprep.subr.bf16.mxu0 %v17334_v41  ;;  %v1845_v42 = vld [vmem:[#allocation9 + $0xca8] sm:$0xff] }
 0x69a   : > { %13048 = vmatpush1.bf16.msra.mxu1 %v17453_v7  ;;  %v1969_v18 = vld [vmem:[#allocation9 + $0x1088] sm:$0xff]  ;;  %v17502_v27 = vcombine.high %v1841_v26, %v1845_v42  ;;  %v17501_v41 = vcombine.low %v1841_v26, %v1845_v42 }
 0x69b   : > { %13049 = vmatprep.subr.bf16.mxu1 %v17462_v50  ;;  %v1973_v61 = vld [vmem:[#allocation9 + $0x10a8] sm:$0xff] }
 0x69c   : > { %13009 = vmatpush1.bf16.msra.mxu0 %v17333_v49  ;;  %v17630_v48 = vcombine.high %v1969_v18, %v1973_v61  ;;  %v1849_v3 = vld [vmem:[#allocation9 + $0xcc8] sm:$0xff]  ;;  %v17629_v50 = vcombine.low %v1969_v18, %v1973_v61 }
 0x69d   : > { %13010 = vmatprep.subr.bf16.mxu0 %v17342_v4  ;;  %v1853_v12 = vld [vmem:[#allocation9 + $0xce8] sm:$0xff] }
 0x69e   : > { %13050 = vmatpush1.bf16.msra.mxu1 %v17461_v60  ;;  %v1977_v31 = vld [vmem:[#allocation9 + $0x10c8] sm:$0xff]  ;;  %v17510_v63 = vcombine.high %v1849_v3, %v1853_v12  ;;  %v17509_v4 = vcombine.low %v1849_v3, %v1853_v12 }
 0x69f   : > { %13051 = vmatprep.subr.bf16.mxu1 %v17470_v28  ;;  %v1981_v7 = vld [vmem:[#allocation9 + $0x10e8] sm:$0xff] }
 0x6a0   : > { %13011 = vmatpush1.bf16.msra.mxu0 %v17341_v40  ;;  %v17638_v62 = vcombine.high %v1977_v31, %v1981_v7  ;;  %v1857_v11 = vld [vmem:[#allocation9 + $0xd08] sm:$0xff]  ;;  %v17637_v28 = vcombine.low %v1977_v31, %v1981_v7 }
 0x6a1   : > { %13012 = vmatprep.subr.bf16.mxu0 %v17350_v22  ;;  %v1861_v21 = vld [vmem:[#allocation9 + $0xd28] sm:$0xff] }
 0x6a2   : > { %13052 = vmatpush1.bf16.msra.mxu1 %v17469_v30  ;;  %v1985_v49 = vld [vmem:[#allocation9 + $0x1108] sm:$0xff]  ;;  %v17518_v10 = vcombine.high %v1857_v11, %v1861_v21  ;;  %v17517_v22 = vcombine.low %v1857_v11, %v1861_v21 }
 0x6a3   : > { %13053 = vmatprep.subr.bf16.mxu1 %v17478_v43  ;;  %v1989_v60 = vld [vmem:[#allocation9 + $0x1128] sm:$0xff] }
 0x6a4   : > { %13013 = vmatpush1.bf16.msra.mxu0 %v17349_v13  ;;  %v17646_v47 = vcombine.high %v1985_v49, %v1989_v60  ;;  %v1865_v5 = vld [vmem:[#allocation9 + $0xd48] sm:$0xff]  ;;  %v17645_v43 = vcombine.low %v1985_v49, %v1989_v60 }
 0x6a5   : > { %13064 = vmatprep.subr.bf16.mxu0 %v17486_v55  ;;  %v1869_v8 = vld [vmem:[#allocation9 + $0xd68] sm:$0xff] }
 0x6a6   : > { %13054 = vmatpush1.bf16.msra.mxu1 %v17477_v17  ;;  %v1993_v40 = vld [vmem:[#allocation9 + $0x1148] sm:$0xff]  ;;  %v17526_v45 = vcombine.high %v1865_v5, %v1869_v8  ;;  %v17525_v55 = vcombine.low %v1865_v5, %v1869_v8 }
 0x6a7   : > { %13105 = vmatprep.subr.bf16.mxu1 %v17614_v29  ;;  %13015 = vmatmul.mubr.bf16.vlgmr.msra.gmra.mrb[76].mxu0 %v20142_v34  ;;  %v1997_v30 = vld [vmem:[#allocation9 + $0x1168] sm:$0xff] }
 0x6a8   : > { %13065 = vmatpush1.bf16.msra.mxu0 %v17485_v44  ;;  %13096 = vmatprep.mubr.bf16.mxu0 %v20147_v14  ;;  %v17654_v20 = vcombine.high %v1993_v40, %v1997_v30  ;;  %v1873_v56 = vld [vmem:[#allocation9 + $0xd88] sm:$0xff]  ;;  %v17653_v29 = vcombine.low %v1993_v40, %v1997_v30 }
 0x6a9   : > { %13056 = vmatmul.mubr.bf16.vlgmr.msra.gmra.mrb[76].mxu1 %v20164_v37  ;;  %13066 = vmatprep.subr.bf16.mxu0 %v17494_v57  ;;  %v1877_v53 = vld [vmem:[#allocation9 + $0xda8] sm:$0xff] }
 0x6aa   : > { %13106 = vmatpush1.bf16.msra.mxu1 %v17613_v0  ;;  %13137 = vmatprep.mubr.bf16.mxu1 %v20170_v46  ;;  %v2001_v13 = vld [vmem:[#allocation9 + $0x1188] sm:$0xff]  ;;  %v17534_v23 = vcombine.high %v1873_v56, %v1877_v53 }
 0x6ab   : > { %13107 = vmatprep.subr.bf16.mxu1 %v17622_v58  ;;  %v2005_v17 = vld [vmem:[#allocation9 + $0x11a8] sm:$0xff] }
 0x6ac   : > { %13067 = vmatpush1.bf16.msra.mxu0 %v17493_v16  ;;  %v17662_v51 = vcombine.high %v2001_v13, %v2005_v17  ;;  %v1881_v9 = vld [vmem:[#allocation9 + $0xdc8] sm:$0xff]  ;;  %v17661_v12 = vcombine.low %v2001_v13, %v2005_v17 }
 0x6ad   : > { %13068 = vmatprep.subr.bf16.mxu0 %v17502_v27  ;;  %v1885_v44 = vld [vmem:[#allocation9 + $0xde8] sm:$0xff] }
 0x6ae   : > { %13108 = vmatpush1.bf16.msra.mxu1 %v17621_v33  ;;  %v2009_v26 = vld [vmem:[#allocation9 + $0x11c8] sm:$0xff]  ;;  %v17533_v33 = vcombine.low %v1873_v56, %v1877_v53  ;;  %v17542_v31 = vcombine.high %v1881_v9, %v1885_v44  ;;  %v17541_v11 = vcombine.low %v1881_v9, %v1885_v44 }
 0x6af   : > { %13109 = vmatprep.subr.bf16.mxu1 %v17630_v48  ;;  %v2013_v42 = vld [vmem:[#allocation9 + $0x11e8] sm:$0xff] }
 0x6b0   : > { %13069 = vmatpush1.bf16.msra.mxu0 %v17501_v41  ;;  %v17670_v41 = vcombine.high %v2009_v26, %v2013_v42  ;;  %v17669_v21 = vcombine.low %v2009_v26, %v2013_v42  ;;  %v2049_v26 = vld [vmem:[#allocation9 + $0x1308] sm:$0xff] }
 0x6b1   : > { %13070 = vmatprep.subr.bf16.mxu0 %v17510_v63  ;;  %v1893_v63 = vld [vmem:[#allocation9 + $0xe28] sm:$0xff] }
 0x6b2   : > { %13110 = vmatpush1.bf16.msra.mxu1 %v17629_v50  ;;  %v1889_v50 = vld [vmem:[#allocation9 + $0xe08] sm:$0xff] }
 0x6b3   : > { %13111 = vmatprep.subr.bf16.mxu1 %v17638_v62  ;;  %v2021_v62 = vld [vmem:[#allocation9 + $0x1228] sm:$0xff]  ;;  %v17550_v49 = vcombine.high %v1889_v50, %v1893_v63  ;;  %v17549_v5 = vcombine.low %v1889_v50, %v1893_v63 }
 0x6b4   : > { %13071 = vmatpush1.bf16.msra.mxu0 %v17509_v4  ;;  %v1897_v4 = vld [vmem:[#allocation9 + $0xe48] sm:$0xff] }
 0x6b5   : > { %13072 = vmatprep.subr.bf16.mxu0 %v17518_v10  ;;  %v2025_v10 = vld [vmem:[#allocation9 + $0x1248] sm:$0xff] }
 0x6b6   : > { %13112 = vmatpush1.bf16.msra.mxu1 %v17637_v28  ;;  %v1901_v28 = vld [vmem:[#allocation9 + $0xe68] sm:$0xff] }
 0x6b7   : > { %13113 = vmatprep.subr.bf16.mxu1 %v17646_v47  ;;  %v2029_v47 = vld [vmem:[#allocation9 + $0x1268] sm:$0xff]  ;;  %v17558_v40 = vcombine.high %v1897_v4, %v1901_v28  ;;  %v17557_v56 = vcombine.low %v1897_v4, %v1901_v28 }
 0x6b8   : > { %13073 = vmatpush1.bf16.msra.mxu0 %v17517_v22  ;;  %v17686_v30 = vcombine.high %v2025_v10, %v2029_v47  ;;  %v1905_v22 = vld [vmem:[#allocation9 + $0xe88] sm:$0xff]  ;;  %v17685_v53 = vcombine.low %v2025_v10, %v2029_v47 }
 0x6b9   : > { %13074 = vmatprep.subr.bf16.mxu0 %v17526_v45  ;;  %v2033_v45 = vld [vmem:[#allocation9 + $0x1288] sm:$0xff] }
 0x6ba   : > { %13114 = vmatpush1.bf16.msra.mxu1 %v17645_v43  ;;  %v12770_v15 = vpop.f32.mrb[64].mxu0  ;;  %v1909_v43 = vld [vmem:[#allocation9 + $0xea8] sm:$0xff] }
 0x6bb   : > { %13115 = vmatprep.subr.bf16.mxu1 %v17654_v20  ;;  %v12771_v0 = vadd.f32 %v12770_v15, %v20024_v1  ;;  %v12772_v58 = vpop.f32.mrb[65].mxu0  ;;  %v2037_v20 = vld [vmem:[#allocation9 + $0x12a8] sm:$0xff]  ;;  %v17566_v13 = vcombine.high %v1905_v22, %v1909_v43 }
 0x6bc   : > { %v12811_v57 = vpop.f32.mrb[64].mxu1  ;;  %v12773_v18 = vadd.f32 %v12772_v58, %v20026_v52  ;;  %v12774_v16 = vpop.f32.mrb[66].mxu0  ;;  %13075 = vmatpush1.bf16.msra.mxu0 %v17525_v55  ;;  %v2017_v52 = vld [vmem:[#allocation9 + $0x1208] sm:$0xff]  ;;  %v17694_v17 = vcombine.high %v2033_v45, %v2037_v20  ;;  %v17693_v9 = vcombine.low %v2033_v45, %v2037_v20  ;;  %v1442_v45 = vld [vmem:[#allocation9 + $0x10] sm:$0xff] }
 0x6bd   : > { %v12813_v61 = vpop.f32.mrb[65].mxu1  ;;  %v20202_v27 = vadd.f32 %v12811_v57, %v12771_v0  ;;  %v12775_v3 = vpop.f32.mrb[67].mxu0  ;;  %13076 = vmatprep.subr.bf16.mxu0 %v17534_v23  ;;  %v17678_v60 = vcombine.high %v2017_v52, %v2021_v62  ;;  %v17677_v8 = vcombine.low %v2017_v52, %v2021_v62  ;;  %v1913_v55 = vld [vmem:[#allocation9 + $0xec8] sm:$0xff]  ;;  %v1446_v20 = vld [vmem:[#allocation9 + $0x30] sm:$0xff] }
 0x6be   : > { %v12815_v48 = vpop.f32.mrb[66].mxu1  ;;  %13116 = vmatpush1.bf16.msra.mxu1 %v17653_v29  ;;  %v20204_v7 = vadd.f32 %v12813_v61, %v12773_v18  ;;  %v1917_v29 = vld [vmem:[#allocation9 + $0xee8] sm:$0xff] }
 0x6bf   : > { %v12816_v1 = vpop.f32.mrb[67].mxu1  ;;  %13117 = vmatprep.subr.bf16.mxu1 %v17662_v51  ;;  %v2041_v23 = vld [vmem:[#allocation9 + $0x12c8] sm:$0xff]  ;;  %v17565_v51 = vcombine.low %v1905_v22, %v1909_v43  ;;  %v17574_v44 = vcombine.high %v1913_v55, %v1917_v29  ;;  %v17573_v18 = vcombine.low %v1913_v55, %v1917_v29  ;;  %v17104_v55 = vcombine.high %v1442_v45, %v1446_v20 }
 0x6c0   : > { %13077 = vmatpush1.bf16.msra.mxu0 %v17533_v33  ;;  %v2045_v15 = vld [vmem:[#allocation9 + $0x12e8] sm:$0xff] }
 0x6c1   : > { %13078 = vmatprep.subr.bf16.mxu0 %v17542_v31  ;;  %v17702_v0 = vcombine.high %v2041_v23, %v2045_v15  ;;  %v1921_v57 = vld [vmem:[#allocation9 + $0xf08] sm:$0xff]  ;;  %v17701_v61 = vcombine.low %v2041_v23, %v2045_v15  ;;  %v1450_v23 = vld [vmem:[#allocation9 + $0x50] sm:$0xff] }
 0x6c2   : > { %13118 = vmatpush1.bf16.msra.mxu1 %v17661_v12  ;;  %v1925_v58 = vld [vmem:[#allocation9 + $0xf28] sm:$0xff]  ;;  %v1454_v15 = vld [vmem:[#allocation9 + $0x70] sm:$0xff] }
 0x6c3   : > { %13119 = vmatprep.subr.bf16.mxu1 %v17670_v41  ;;  %v2053_v42 = vld [vmem:[#allocation9 + $0x1328] sm:$0xff]  ;;  %v17582_v16 = vcombine.high %v1921_v57, %v1925_v58  ;;  %v17581_v1 = vcombine.low %v1921_v57, %v1925_v58  ;;  %v17112_v57 = vcombine.high %v1450_v23, %v1454_v15 }
 0x6c4   : > { %13079 = vmatpush1.bf16.msra.mxu0 %v17541_v11  ;;  %v17710_v33 = vcombine.high %v2049_v26, %v2053_v42  ;;  %v1929_v48 = vld [vmem:[#allocation9 + $0xf48] sm:$0xff]  ;;  %v17709_v41 = vcombine.low %v2049_v26, %v2053_v42  ;;  %v1458_v26 = vld [vmem:[#allocation9 + $0x90] sm:$0xff] }
 0x6c5   : > { %13080 = vmatprep.subr.bf16.mxu0 %v17550_v49  ;;  %v1933_v3 = vld [vmem:[#allocation9 + $0xf68] sm:$0xff]  ;;  %v1462_v42 = vld [vmem:[#allocation9 + $0xb0] sm:$0xff] }
 0x6c6   : > { %13120 = vmatpush1.bf16.msra.mxu1 %v17669_v21  ;;  %v2057_v12 = vld [vmem:[#allocation9 + $0x1348] sm:$0xff]  ;;  %v17590_v50 = vcombine.high %v1929_v48, %v1933_v3  ;;  %v17589_v49 = vcombine.low %v1929_v48, %v1933_v3  ;;  %v17120_v48 = vcombine.high %v1458_v26, %v1462_v42 }
 0x6c7   : > { %13121 = vmatprep.subr.bf16.mxu1 %v17678_v60  ;;  %v2061_v31 = vld [vmem:[#allocation9 + $0x1368] sm:$0xff] }
 0x6c8   : > { %13081 = vmatpush1.bf16.msra.mxu0 %v17549_v5  ;;  %v17718_v63 = vcombine.high %v2057_v12, %v2061_v31  ;;  %v1937_v52 = vld [vmem:[#allocation9 + $0xf88] sm:$0xff]  ;;  %v17717_v60 = vcombine.low %v2057_v12, %v2061_v31  ;;  %v1466_v12 = vld [vmem:[#allocation9 + $0xd0] sm:$0xff] }
 0x6c9   : > { %13082 = vmatprep.subr.bf16.mxu0 %v17558_v40  ;;  %v1941_v62 = vld [vmem:[#allocation9 + $0xfa8] sm:$0xff]  ;;  %v1470_v31 = vld [vmem:[#allocation9 + $0xf0] sm:$0xff] }
 0x6ca   : > { %13122 = vmatpush1.bf16.msra.mxu1 %v17677_v8  ;;  %v2065_v11 = vld [vmem:[#allocation9 + $0x1388] sm:$0xff]  ;;  %v17598_v4 = vcombine.high %v1937_v52, %v1941_v62  ;;  %v17597_v40 = vcombine.low %v1937_v52, %v1941_v62  ;;  %v17128_v52 = vcombine.high %v1466_v12, %v1470_v31 }
 0x6cb   : > { %13123 = vmatprep.subr.bf16.mxu1 %v17686_v30  ;;  %v2069_v21 = vld [vmem:[#allocation9 + $0x13a8] sm:$0xff] }
 0x6cc   : > { %13083 = vmatpush1.bf16.msra.mxu0 %v17557_v56  ;;  %v17726_v28 = vcombine.high %v2065_v11, %v2069_v21  ;;  %v1945_v10 = vld [vmem:[#allocation9 + $0xfc8] sm:$0xff]  ;;  %v17725_v30 = vcombine.low %v2065_v11, %v2069_v21  ;;  %v1570_v56 = vld [vmem:[#allocation9 + $0x410] sm:$0xff] }
 0x6cd   : > { %13084 = vmatprep.subr.bf16.mxu0 %v17566_v13  ;;  %v1949_v47 = vld [vmem:[#allocation9 + $0xfe8] sm:$0xff]  ;;  %v1474_v11 = vld [vmem:[#allocation9 + $0x110] sm:$0xff] }
 0x6ce   : > { %13124 = vmatpush1.bf16.msra.mxu1 %v17685_v53  ;;  %v2073_v5 = vld [vmem:[#allocation9 + $0x13c8] sm:$0xff]  ;;  %v17606_v22 = vcombine.high %v1945_v10, %v1949_v47  ;;  %v1574_v53 = vld [vmem:[#allocation9 + $0x430] sm:$0xff]  ;;  %v17605_v13 = vcombine.low %v1945_v10, %v1949_v47 }
 0x6cf   : > { %13125 = vmatprep.subr.bf16.mxu1 %v17694_v17  ;;  %v2077_v8 = vld [vmem:[#allocation9 + $0x13e8] sm:$0xff]  ;;  %v17232_v29 = vcombine.high %v1570_v56, %v1574_v53  ;;  %v1478_v21 = vld [vmem:[#allocation9 + $0x130] sm:$0xff] }
 0x6d0   : > { %13085 = vmatpush1.bf16.msra.mxu0 %v17565_v51  ;;  %v17734_v43 = vcombine.high %v2073_v5, %v2077_v8  ;;  %v17733_v17 = vcombine.low %v2073_v5, %v2077_v8  ;;  %v1578_v51 = vld [vmem:[#allocation9 + $0x450] sm:$0xff]  ;;  %v17136_v10 = vcombine.high %v1474_v11, %v1478_v21 }
 0x6d1   : > { %13086 = vmatprep.subr.bf16.mxu0 %v17574_v44  ;;  %v17103_v44 = vcombine.low %v1442_v45, %v1446_v20  ;;  %v1482_v5 = vld [vmem:[#allocation9 + $0x150] sm:$0xff] }
 0x6d2   : > { %13126 = vmatpush1.bf16.msra.mxu1 %v17693_v9  ;;  %v1582_v9 = vld [vmem:[#allocation9 + $0x470] sm:$0xff] }
 0x6d3   : > { %13127 = vmatprep.subr.bf16.mxu1 %v17702_v0  ;;  %v17231_v0 = vcombine.low %v1570_v56, %v1574_v53  ;;  %v17240_v58 = vcombine.high %v1578_v51, %v1582_v9  ;;  %v1486_v8 = vld [vmem:[#allocation9 + $0x170] sm:$0xff] }
 0x6d4   : > { %13087 = vmatpush1.bf16.msra.mxu0 %v17573_v18  ;;  %v1586_v18 = vld [vmem:[#allocation9 + $0x490] sm:$0xff]  ;;  %v17144_v45 = vcombine.high %v1482_v5, %v1486_v8 }
 0x6d5   : > { %13088 = vmatprep.subr.bf16.mxu0 %v17582_v16  ;;  %v17111_v16 = vcombine.low %v1450_v23, %v1454_v15  ;;  %v1490_v56 = vld [vmem:[#allocation9 + $0x190] sm:$0xff] }
 0x6d6   : > { %13128 = vmatpush1.bf16.msra.mxu1 %v17701_v61  ;;  %v1590_v61 = vld [vmem:[#allocation9 + $0x4b0] sm:$0xff] }
 0x6d7   : > { %13129 = vmatprep.subr.bf16.mxu1 %v17710_v33  ;;  %v17239_v33 = vcombine.low %v1578_v51, %v1582_v9  ;;  %v17248_v3 = vcombine.high %v1586_v18, %v1590_v61  ;;  %v1494_v53 = vld [vmem:[#allocation9 + $0x1b0] sm:$0xff] }
 0x6d8   : > { %13089 = vmatpush1.bf16.msra.mxu0 %v17581_v1  ;;  %v1594_v1 = vld [vmem:[#allocation9 + $0x4d0] sm:$0xff]  ;;  %v17152_v23 = vcombine.high %v1490_v56, %v1494_v53 }
 0x6d9   : > { %13090 = vmatprep.subr.bf16.mxu0 %v17590_v50  ;;  %v17119_v50 = vcombine.low %v1458_v26, %v1462_v42  ;;  %v1498_v9 = vld [vmem:[#allocation9 + $0x1d0] sm:$0xff] }
 0x6da   : > { %13130 = vmatpush1.bf16.msra.mxu1 %v17709_v41  ;;  %v1598_v41 = vld [vmem:[#allocation9 + $0x4f0] sm:$0xff] }
 0x6db   : > { %13131 = vmatprep.subr.bf16.mxu1 %v17718_v63  ;;  %v17247_v63 = vcombine.low %v1586_v18, %v1590_v61  ;;  %v17256_v62 = vcombine.high %v1594_v1, %v1598_v41  ;;  %v1626_v26 = vld [vmem:[#allocation9 + $0x5d0] sm:$0xff] }
 0x6dc   : > { %13091 = vmatpush1.bf16.msra.mxu0 %v17589_v49  ;;  %v1602_v49 = vld [vmem:[#allocation9 + $0x510] sm:$0xff] }
 0x6dd   : > { %13092 = vmatprep.subr.bf16.mxu0 %v17598_v4  ;;  %v17127_v4 = vcombine.low %v1466_v12, %v1470_v31  ;;  %v1630_v42 = vld [vmem:[#allocation9 + $0x5f0] sm:$0xff] }
 0x6de   : > { %13132 = vmatpush1.bf16.msra.mxu1 %v17717_v60  ;;  %v1606_v60 = vld [vmem:[#allocation9 + $0x530] sm:$0xff] }
 0x6df   : > { %13133 = vmatprep.subr.bf16.mxu1 %v17726_v28  ;;  %v17255_v28 = vcombine.low %v1594_v1, %v1598_v41  ;;  %v17264_v47 = vcombine.high %v1602_v49, %v1606_v60 }
 0x6e0   : > { %13093 = vmatpush1.bf16.msra.mxu0 %v17597_v40  ;;  %v1610_v40 = vld [vmem:[#allocation9 + $0x550] sm:$0xff] }
 0x6e1   : > { %13094 = vmatprep.subr.bf16.mxu0 %v17606_v22  ;;  %v17135_v22 = vcombine.low %v1474_v11, %v1478_v21  ;;  %v17287_v21 = vcombine.low %v1626_v26, %v1630_v42 }
 0x6e2   : > { %13134 = vmatpush1.bf16.msra.mxu1 %v17725_v30  ;;  %v1614_v30 = vld [vmem:[#allocation9 + $0x570] sm:$0xff] }
 0x6e3   : > { %13135 = vmatprep.subr.bf16.mxu1 %v17734_v43  ;;  %v17263_v43 = vcombine.low %v1602_v49, %v1606_v60  ;;  %v17272_v20 = vcombine.high %v1610_v40, %v1614_v30 }
 0x6e4   : > { %13095 = vmatpush1.bf16.msra.mxu0 %v17605_v13  ;;  %v1618_v13 = vld [vmem:[#allocation9 + $0x590] sm:$0xff] }
 0x6e5   : > { %13146 = vmatprep.subr.bf16.mxu0 %v17104_v55  ;;  %v17143_v55 = vcombine.low %v1482_v5, %v1486_v8 }
 0x6e6   : > { %13136 = vmatpush1.bf16.msra.mxu1 %v17733_v17  ;;  %v1622_v17 = vld [vmem:[#allocation9 + $0x5b0] sm:$0xff] }
 0x6e7   : > { %13187 = vmatprep.subr.bf16.mxu1 %v17232_v29  ;;  %13097 = vmatmul.mubr.bf16.vlgmr.msra.gmra.mrb[80].mxu0 %v20168_v25  ;;  %v17271_v29 = vcombine.low %v1610_v40, %v1614_v30  ;;  %v17280_v51 = vcombine.high %v1618_v13, %v1622_v17  ;;  %v17279_v31 = vcombine.low %v1618_v13, %v1622_v17 }
 0x6e8   : > { %13147 = vmatpush1.bf16.msra.mxu0 %v17103_v44  ;;  %13178 = vmatprep.mubr.bf16.mxu0 %v20114_v38  ;;  %v1502_v44 = vld [vmem:[#allocation9 + $0x1f0] sm:$0xff] }
 0x6e9   : > { %13138 = vmatmul.mubr.bf16.vlgmr.msra.gmra.mrb[80].mxu1 %v20184_v36  ;;  %13148 = vmatprep.subr.bf16.mxu0 %v17112_v57  ;;  %v17160_v1 = vcombine.high %v1498_v9, %v1502_v44  ;;  %v17159_v11 = vcombine.low %v1498_v9, %v1502_v44 }
 0x6ea   : > { %13188 = vmatpush1.bf16.msra.mxu1 %v17231_v0  ;;  %13219 = vmatprep.mubr.bf16.mxu1 %v20117_v54 }
 0x6eb   : > { %13189 = vmatprep.subr.bf16.mxu1 %v17240_v58 }
 0x6ec   : > { %13149 = vmatpush1.bf16.msra.mxu0 %v17111_v16 }
 0x6ed   : > { %13150 = vmatprep.subr.bf16.mxu0 %v17120_v48 }
 0x6ee   : > { %13190 = vmatpush1.bf16.msra.mxu1 %v17239_v33  ;;  %v17151_v33 = vcombine.low %v1490_v56, %v1494_v53 }
 0x6ef   : > { %13191 = vmatprep.subr.bf16.mxu1 %v17248_v3 }
 0x6f0   : > { %13151 = vmatpush1.bf16.msra.mxu0 %v17119_v50  ;;  %v17288_v50 = vcombine.high %v1626_v26, %v1630_v42  ;;  %v1666_v26 = vld [vmem:[#allocation9 + $0x710] sm:$0xff] }
 0x6f1   : > { %13152 = vmatprep.subr.bf16.mxu0 %v17128_v52  ;;  %v1510_v52 = vld [vmem:[#allocation9 + $0x230] sm:$0xff] }
 0x6f2   : > { %13192 = vmatpush1.bf16.msra.mxu1 %v17247_v63  ;;  %v1506_v63 = vld [vmem:[#allocation9 + $0x210] sm:$0xff] }
 0x6f3   : > { %13193 = vmatprep.subr.bf16.mxu1 %v17256_v62  ;;  %v1638_v62 = vld [vmem:[#allocation9 + $0x630] sm:$0xff]  ;;  %v17168_v49 = vcombine.high %v1506_v63, %v1510_v52  ;;  %v17167_v5 = vcombine.low %v1506_v63, %v1510_v52 }
 0x6f4   : > { %13153 = vmatpush1.bf16.msra.mxu0 %v17127_v4  ;;  %v1514_v4 = vld [vmem:[#allocation9 + $0x250] sm:$0xff] }
 0x6f5   : > { %13154 = vmatprep.subr.bf16.mxu0 %v17136_v10  ;;  %v1642_v10 = vld [vmem:[#allocation9 + $0x650] sm:$0xff] }
 0x6f6   : > { %13194 = vmatpush1.bf16.msra.mxu1 %v17255_v28  ;;  %v1518_v28 = vld [vmem:[#allocation9 + $0x270] sm:$0xff] }
 0x6f7   : > { %13195 = vmatprep.subr.bf16.mxu1 %v17264_v47  ;;  %v1646_v47 = vld [vmem:[#allocation9 + $0x670] sm:$0xff]  ;;  %v17176_v40 = vcombine.high %v1514_v4, %v1518_v28  ;;  %v17175_v56 = vcombine.low %v1514_v4, %v1518_v28 }
 0x6f8   : > { %13155 = vmatpush1.bf16.msra.mxu0 %v17135_v22  ;;  %v17304_v30 = vcombine.high %v1642_v10, %v1646_v47  ;;  %v1522_v22 = vld [vmem:[#allocation9 + $0x290] sm:$0xff]  ;;  %v17303_v53 = vcombine.low %v1642_v10, %v1646_v47 }
 0x6f9   : > { %13156 = vmatprep.subr.bf16.mxu0 %v17144_v45  ;;  %v1650_v45 = vld [vmem:[#allocation9 + $0x690] sm:$0xff] }
 0x6fa   : > { %13196 = vmatpush1.bf16.msra.mxu1 %v17263_v43  ;;  %v12852_v15 = vpop.f32.mrb[68].mxu0  ;;  %v1526_v43 = vld [vmem:[#allocation9 + $0x2b0] sm:$0xff] }
 0x6fb   : > { %13197 = vmatprep.subr.bf16.mxu1 %v17272_v20  ;;  %v12853_v0 = vadd.f32 %v12852_v15, %v20202_v27  ;;  %v12854_v58 = vpop.f32.mrb[69].mxu0  ;;  %v1654_v20 = vld [vmem:[#allocation9 + $0x6b0] sm:$0xff]  ;;  %v17184_v13 = vcombine.high %v1522_v22, %v1526_v43 }
 0x6fc   : > { %v12893_v57 = vpop.f32.mrb[68].mxu1  ;;  %v12855_v18 = vadd.f32 %v12854_v58, %v20204_v7  ;;  %v12856_v16 = vpop.f32.mrb[70].mxu0  ;;  %13157 = vmatpush1.bf16.msra.mxu0 %v17143_v55  ;;  %v1634_v7 = vld [vmem:[#allocation9 + $0x610] sm:$0xff]  ;;  %v17312_v17 = vcombine.high %v1650_v45, %v1654_v20  ;;  %v17311_v9 = vcombine.low %v1650_v45, %v1654_v20 }
 0x6fd   : > { %v12895_v61 = vpop.f32.mrb[69].mxu1  ;;  %v20212_v48 = vadd.f32 %v12893_v57, %v12853_v0  ;;  %v12857_v12 = vpop.f32.mrb[71].mxu0  ;;  %13158 = vmatprep.subr.bf16.mxu0 %v17152_v23  ;;  %v17296_v60 = vcombine.high %v1634_v7, %v1638_v62  ;;  %v17295_v8 = vcombine.low %v1634_v7, %v1638_v62  ;;  %v1530_v55 = vld [vmem:[#allocation9 + $0x2d0] sm:$0xff] }
 0x6fe   : > { %v12897_v3 = vpop.f32.mrb[70].mxu1  ;;  %13198 = vmatpush1.bf16.msra.mxu1 %v17271_v29  ;;  %v20214_v41 = vadd.f32 %v12895_v61, %v12855_v18  ;;  %v1534_v29 = vld [vmem:[#allocation9 + $0x2f0] sm:$0xff] }
 0x6ff   : > { %v12898_v27 = vpop.f32.mrb[71].mxu1  ;;  %13199 = vmatprep.subr.bf16.mxu1 %v17280_v51  ;;  %v1658_v23 = vld [vmem:[#allocation9 + $0x6d0] sm:$0xff]  ;;  %v17183_v51 = vcombine.low %v1522_v22, %v1526_v43  ;;  %v17192_v44 = vcombine.high %v1530_v55, %v1534_v29  ;;  %v17191_v18 = vcombine.low %v1530_v55, %v1534_v29 }
 0x700   : > { %13159 = vmatpush1.bf16.msra.mxu0 %v17151_v33  ;;  %v1662_v15 = vld [vmem:[#allocation9 + $0x6f0] sm:$0xff] }
 0x701   : > { %13160 = vmatprep.subr.bf16.mxu0 %v17160_v1  ;;  %v17320_v0 = vcombine.high %v1658_v23, %v1662_v15  ;;  %v1538_v57 = vld [vmem:[#allocation9 + $0x310] sm:$0xff]  ;;  %v17319_v61 = vcombine.low %v1658_v23, %v1662_v15 }
 0x702   : > { %13200 = vmatpush1.bf16.msra.mxu1 %v17279_v31  ;;  %v1542_v58 = vld [vmem:[#allocation9 + $0x330] sm:$0xff] }
 0x703   : > { %13201 = vmatprep.subr.bf16.mxu1 %v17288_v50  ;;  %v1670_v42 = vld [vmem:[#allocation9 + $0x730] sm:$0xff]  ;;  %v17200_v16 = vcombine.high %v1538_v57, %v1542_v58  ;;  %v17199_v27 = vcombine.low %v1538_v57, %v1542_v58 }
 0x704   : > { %13161 = vmatpush1.bf16.msra.mxu0 %v17159_v11  ;;  %v17328_v33 = vcombine.high %v1666_v26, %v1670_v42  ;;  %v1546_v3 = vld [vmem:[#allocation9 + $0x350] sm:$0xff]  ;;  %v17327_v50 = vcombine.low %v1666_v26, %v1670_v42 }
 0x705   : > { %13162 = vmatprep.subr.bf16.mxu0 %v17168_v49  ;;  %v1550_v12 = vld [vmem:[#allocation9 + $0x370] sm:$0xff] }
 0x706   : > { %13202 = vmatpush1.bf16.msra.mxu1 %v17287_v21  ;;  %v1674_v31 = vld [vmem:[#allocation9 + $0x750] sm:$0xff]  ;;  %v17208_v63 = vcombine.high %v1546_v3, %v1550_v12  ;;  %v17207_v49 = vcombine.low %v1546_v3, %v1550_v12 }
 0x707   : > { %13203 = vmatprep.subr.bf16.mxu1 %v17296_v60  ;;  %v1678_v1 = vld [vmem:[#allocation9 + $0x770] sm:$0xff] }
 0x708   : > { %13163 = vmatpush1.bf16.msra.mxu0 %v17167_v5  ;;  %v17336_v52 = vcombine.high %v1674_v31, %v1678_v1  ;;  %v1554_v7 = vld [vmem:[#allocation9 + $0x390] sm:$0xff]  ;;  %v17335_v60 = vcombine.low %v1674_v31, %v1678_v1 }
 0x709   : > { %13164 = vmatprep.subr.bf16.mxu0 %v17176_v40  ;;  %v1558_v62 = vld [vmem:[#allocation9 + $0x3b0] sm:$0xff] }
 0x70a   : > { %13204 = vmatpush1.bf16.msra.mxu1 %v17295_v8  ;;  %v1682_v11 = vld [vmem:[#allocation9 + $0x790] sm:$0xff]  ;;  %v17216_v4 = vcombine.high %v1554_v7, %v1558_v62  ;;  %v17215_v40 = vcombine.low %v1554_v7, %v1558_v62 }
 0x70b   : > { %13205 = vmatprep.subr.bf16.mxu1 %v17304_v30  ;;  %v1686_v21 = vld [vmem:[#allocation9 + $0x7b0] sm:$0xff] }
 0x70c   : > { %13165 = vmatpush1.bf16.msra.mxu0 %v17175_v56  ;;  %v17344_v28 = vcombine.high %v1682_v11, %v1686_v21  ;;  %v1562_v10 = vld [vmem:[#allocation9 + $0x3d0] sm:$0xff]  ;;  %v17343_v30 = vcombine.low %v1682_v11, %v1686_v21 }
 0x70d   : > { %13166 = vmatprep.subr.bf16.mxu0 %v17184_v13  ;;  %v1566_v47 = vld [vmem:[#allocation9 + $0x3f0] sm:$0xff] }
 0x70e   : > { %13206 = vmatpush1.bf16.msra.mxu1 %v17303_v53  ;;  %v1690_v5 = vld [vmem:[#allocation9 + $0x7d0] sm:$0xff]  ;;  %v17224_v22 = vcombine.high %v1562_v10, %v1566_v47  ;;  %v17223_v13 = vcombine.low %v1562_v10, %v1566_v47 }
 0x70f   : > { %13207 = vmatprep.subr.bf16.mxu1 %v17312_v17  ;;  %v1694_v8 = vld [vmem:[#allocation9 + $0x7f0] sm:$0xff] }
 0x710   : > { %13167 = vmatpush1.bf16.msra.mxu0 %v17183_v51  ;;  %v17352_v43 = vcombine.high %v1690_v5, %v1694_v8  ;;  %v1698_v45 = vld [vmem:[#allocation9 + $0x810] sm:$0xff]  ;;  %v17351_v17 = vcombine.low %v1690_v5, %v1694_v8 }
 0x711   : > { %13168 = vmatprep.subr.bf16.mxu0 %v17192_v44  ;;  %v1702_v20 = vld [vmem:[#allocation9 + $0x830] sm:$0xff] }
 0x712   : > { %13208 = vmatpush1.bf16.msra.mxu1 %v17311_v9  ;;  %v1826_v56 = vld [vmem:[#allocation9 + $0xc10] sm:$0xff]  ;;  %v17360_v55 = vcombine.high %v1698_v45, %v1702_v20  ;;  %v17359_v44 = vcombine.low %v1698_v45, %v1702_v20 }
 0x713   : > { %13209 = vmatprep.subr.bf16.mxu1 %v17320_v0  ;;  %v1830_v53 = vld [vmem:[#allocation9 + $0xc30] sm:$0xff] }
 0x714   : > { %13169 = vmatpush1.bf16.msra.mxu0 %v17191_v18  ;;  %v17488_v29 = vcombine.high %v1826_v56, %v1830_v53  ;;  %v1706_v23 = vld [vmem:[#allocation9 + $0x850] sm:$0xff]  ;;  %v17487_v0 = vcombine.low %v1826_v56, %v1830_v53 }
 0x715   : > { %13170 = vmatprep.subr.bf16.mxu0 %v17200_v16  ;;  %v1710_v15 = vld [vmem:[#allocation9 + $0x870] sm:$0xff] }
 0x716   : > { %13210 = vmatpush1.bf16.msra.mxu1 %v17319_v61  ;;  %v1834_v51 = vld [vmem:[#allocation9 + $0xc50] sm:$0xff]  ;;  %v17368_v57 = vcombine.high %v1706_v23, %v1710_v15  ;;  %v17367_v16 = vcombine.low %v1706_v23, %v1710_v15 }
 0x717   : > { %13211 = vmatprep.subr.bf16.mxu1 %v17328_v33  ;;  %v1838_v9 = vld [vmem:[#allocation9 + $0xc70] sm:$0xff] }
 0x718   : > { %13171 = vmatpush1.bf16.msra.mxu0 %v17199_v27  ;;  %v17496_v58 = vcombine.high %v1834_v51, %v1838_v9  ;;  %v1714_v26 = vld [vmem:[#allocation9 + $0x890] sm:$0xff]  ;;  %v17495_v33 = vcombine.low %v1834_v51, %v1838_v9 }
 0x719   : > { %13172 = vmatprep.subr.bf16.mxu0 %v17208_v63  ;;  %v1718_v42 = vld [vmem:[#allocation9 + $0x8b0] sm:$0xff] }
 0x71a   : > { %13212 = vmatpush1.bf16.msra.mxu1 %v17327_v50  ;;  %v1842_v18 = vld [vmem:[#allocation9 + $0xc90] sm:$0xff]  ;;  %v17376_v3 = vcombine.high %v1714_v26, %v1718_v42  ;;  %v17375_v63 = vcombine.low %v1714_v26, %v1718_v42 }
 0x71b   : > { %13213 = vmatprep.subr.bf16.mxu1 %v17336_v52  ;;  %v1846_v61 = vld [vmem:[#allocation9 + $0xcb0] sm:$0xff] }
 0x71c   : > { %13173 = vmatpush1.bf16.msra.mxu0 %v17207_v49  ;;  %v17504_v12 = vcombine.high %v1842_v18, %v1846_v61  ;;  %v1722_v31 = vld [vmem:[#allocation9 + $0x8d0] sm:$0xff]  ;;  %v17503_v52 = vcombine.low %v1842_v18, %v1846_v61 }
 0x71d   : > { %13174 = vmatprep.subr.bf16.mxu0 %v17216_v4  ;;  %v1726_v1 = vld [vmem:[#allocation9 + $0x8f0] sm:$0xff] }
 0x71e   : > { %13214 = vmatpush1.bf16.msra.mxu1 %v17335_v60  ;;  %v1850_v27 = vld [vmem:[#allocation9 + $0xcd0] sm:$0xff]  ;;  %v17384_v7 = vcombine.high %v1722_v31, %v1726_v1  ;;  %v17383_v4 = vcombine.low %v1722_v31, %v1726_v1 }
 0x71f   : > { %13215 = vmatprep.subr.bf16.mxu1 %v17344_v28  ;;  %v1854_v50 = vld [vmem:[#allocation9 + $0xcf0] sm:$0xff] }
 0x720   : > { %13175 = vmatpush1.bf16.msra.mxu0 %v17215_v40  ;;  %v17512_v62 = vcombine.high %v1850_v27, %v1854_v50  ;;  %v1730_v11 = vld [vmem:[#allocation9 + $0x910] sm:$0xff]  ;;  %v17511_v28 = vcombine.low %v1850_v27, %v1854_v50 }
 0x721   : > { %13176 = vmatprep.subr.bf16.mxu0 %v17224_v22  ;;  %v1734_v21 = vld [vmem:[#allocation9 + $0x930] sm:$0xff] }
 0x722   : > { %13216 = vmatpush1.bf16.msra.mxu1 %v17343_v30  ;;  %v1858_v49 = vld [vmem:[#allocation9 + $0xd10] sm:$0xff]  ;;  %v17392_v10 = vcombine.high %v1730_v11, %v1734_v21  ;;  %v17391_v22 = vcombine.low %v1730_v11, %v1734_v21 }
 0x723   : > { %13217 = vmatprep.subr.bf16.mxu1 %v17352_v43  ;;  %v1862_v60 = vld [vmem:[#allocation9 + $0xd30] sm:$0xff] }
 0x724   : > { %13177 = vmatpush1.bf16.msra.mxu0 %v17223_v13  ;;  %v17520_v47 = vcombine.high %v1858_v49, %v1862_v60  ;;  %v1738_v5 = vld [vmem:[#allocation9 + $0x950] sm:$0xff]  ;;  %v17519_v43 = vcombine.low %v1858_v49, %v1862_v60 }
 0x725   : > { %13228 = vmatprep.subr.bf16.mxu0 %v17360_v55  ;;  %v1742_v8 = vld [vmem:[#allocation9 + $0x970] sm:$0xff] }
 0x726   : > { %13218 = vmatpush1.bf16.msra.mxu1 %v17351_v17  ;;  %v1866_v40 = vld [vmem:[#allocation9 + $0xd50] sm:$0xff]  ;;  %v17400_v45 = vcombine.high %v1738_v5, %v1742_v8  ;;  %v17399_v55 = vcombine.low %v1738_v5, %v1742_v8 }
 0x727   : > { %13269 = vmatprep.subr.bf16.mxu1 %v17488_v29  ;;  %13179 = vmatmul.mubr.bf16.vlgmr.msra.gmra.mrb[84].mxu0 %v20136_v32  ;;  %v1870_v30 = vld [vmem:[#allocation9 + $0xd70] sm:$0xff] }
 0x728   : > { %13229 = vmatpush1.bf16.msra.mxu0 %v17359_v44  ;;  %13260 = vmatprep.mubr.bf16.mxu0 %v20144_v6  ;;  %v17528_v20 = vcombine.high %v1866_v40, %v1870_v30  ;;  %v1746_v56 = vld [vmem:[#allocation9 + $0x990] sm:$0xff]  ;;  %v17527_v29 = vcombine.low %v1866_v40, %v1870_v30 }
 0x729   : > { %13220 = vmatmul.mubr.bf16.vlgmr.msra.gmra.mrb[84].mxu1 %v20142_v34  ;;  %13230 = vmatprep.subr.bf16.mxu0 %v17368_v57  ;;  %v1750_v53 = vld [vmem:[#allocation9 + $0x9b0] sm:$0xff] }
 0x72a   : > { %13270 = vmatpush1.bf16.msra.mxu1 %v17487_v0  ;;  %13301 = vmatprep.mubr.bf16.mxu1 %v20147_v14  ;;  %v1874_v13 = vld [vmem:[#allocation9 + $0xd90] sm:$0xff]  ;;  %v17408_v23 = vcombine.high %v1746_v56, %v1750_v53 }
 0x72b   : > { %13271 = vmatprep.subr.bf16.mxu1 %v17496_v58  ;;  %v1878_v17 = vld [vmem:[#allocation9 + $0xdb0] sm:$0xff] }
 0x72c   : > { %13231 = vmatpush1.bf16.msra.mxu0 %v17367_v16  ;;  %v17536_v51 = vcombine.high %v1874_v13, %v1878_v17  ;;  %v1754_v9 = vld [vmem:[#allocation9 + $0x9d0] sm:$0xff]  ;;  %v17535_v1 = vcombine.low %v1874_v13, %v1878_v17 }
 0x72d   : > { %13232 = vmatprep.subr.bf16.mxu0 %v17376_v3  ;;  %v1758_v44 = vld [vmem:[#allocation9 + $0x9f0] sm:$0xff]  ;;  %v17407_v3 = vcombine.low %v1746_v56, %v1750_v53 }
 0x72e   : > { %13272 = vmatpush1.bf16.msra.mxu1 %v17495_v33  ;;  %v1882_v26 = vld [vmem:[#allocation9 + $0xdd0] sm:$0xff]  ;;  %v17416_v27 = vcombine.high %v1754_v9, %v1758_v44 }
 0x72f   : > { %13273 = vmatprep.subr.bf16.mxu1 %v17504_v12  ;;  %v1886_v42 = vld [vmem:[#allocation9 + $0xdf0] sm:$0xff] }
 0x730   : > { %13233 = vmatpush1.bf16.msra.mxu0 %v17375_v63  ;;  %v1762_v63 = vld [vmem:[#allocation9 + $0xa10] sm:$0xff]  ;;  %v17543_v11 = vcombine.low %v1882_v26, %v1886_v42 }
 0x731   : > { %13234 = vmatprep.subr.bf16.mxu0 %v17384_v7  ;;  %v1894_v7 = vld [vmem:[#allocation9 + $0xe30] sm:$0xff] }
 0x732   : > { %13274 = vmatpush1.bf16.msra.mxu1 %v17503_v52  ;;  %v1766_v52 = vld [vmem:[#allocation9 + $0xa30] sm:$0xff] }
 0x733   : > { %13275 = vmatprep.subr.bf16.mxu1 %v17512_v62  ;;  %v17415_v62 = vcombine.low %v1754_v9, %v1758_v44  ;;  %v1770_v49 = vld [vmem:[#allocation9 + $0xa50] sm:$0xff] }
 0x734   : > { %13235 = vmatpush1.bf16.msra.mxu0 %v17383_v4  ;;  %v1774_v60 = vld [vmem:[#allocation9 + $0xa70] sm:$0xff] }
 0x735   : > { %13236 = vmatprep.subr.bf16.mxu0 %v17392_v10  ;;  %v1898_v4 = vld [vmem:[#allocation9 + $0xe50] sm:$0xff]  ;;  %v17423_v10 = vcombine.low %v1762_v63, %v1766_v52  ;;  %v17432_v5 = vcombine.high %v1770_v49, %v1774_v60 }
 0x736   : > { %13276 = vmatpush1.bf16.msra.mxu1 %v17511_v28  ;;  %v1902_v28 = vld [vmem:[#allocation9 + $0xe70] sm:$0xff] }
 0x737   : > { %13277 = vmatprep.subr.bf16.mxu1 %v17520_v47  ;;  %v17560_v8 = vcombine.high %v1898_v4, %v1902_v28  ;;  %v1778_v40 = vld [vmem:[#allocation9 + $0xa90] sm:$0xff] }
 0x738   : > { %13237 = vmatpush1.bf16.msra.mxu0 %v17391_v22  ;;  %v1782_v30 = vld [vmem:[#allocation9 + $0xab0] sm:$0xff] }
 0x739   : > { %13238 = vmatprep.subr.bf16.mxu0 %v17400_v45  ;;  %v1906_v22 = vld [vmem:[#allocation9 + $0xe90] sm:$0xff]  ;;  %v17431_v45 = vcombine.low %v1770_v49, %v1774_v60  ;;  %v17440_v56 = vcombine.high %v1778_v40, %v1782_v30 }
 0x73a   : > { %13278 = vmatpush1.bf16.msra.mxu1 %v17519_v43  ;;  %v12934_v15 = vpop.f32.mrb[72].mxu0  ;;  %v1910_v43 = vld [vmem:[#allocation9 + $0xeb0] sm:$0xff] }
 0x73b   : > { %13279 = vmatprep.subr.bf16.mxu1 %v17528_v20  ;;  %v20221_v0 = vadd.f32 %v12934_v15, %v20212_v48  ;;  %v12936_v58 = vpop.f32.mrb[73].mxu0  ;;  %v17559_v20 = vcombine.low %v1898_v4, %v1902_v28  ;;  %v17568_v53 = vcombine.high %v1906_v22, %v1910_v43  ;;  %v1786_v13 = vld [vmem:[#allocation9 + $0xad0] sm:$0xff]  ;;  %v17567_v15 = vcombine.low %v1906_v22, %v1910_v43 }
 0x73c   : > { %v12975_v57 = vpop.f32.mrb[72].mxu1  ;;  %v20227_v61 = vadd.f32 %v12936_v58, %v20214_v41  ;;  %v12938_v33 = vpop.f32.mrb[74].mxu0  ;;  %13239 = vmatpush1.bf16.msra.mxu0 %v17399_v55  ;;  %v1890_v41 = vld [vmem:[#allocation9 + $0xe10] sm:$0xff] }
 0x73d   : > { %v20224_v18 = vadd.f32 %v12975_v57, %v20062_v59  ;;  %v12977_v16 = vpop.f32.mrb[73].mxu1  ;;  %v12939_v48 = vpop.f32.mrb[75].mxu0  ;;  %13240 = vmatprep.subr.bf16.mxu0 %v17408_v23  ;;  %v17544_v59 = vcombine.high %v1882_v26, %v1886_v42  ;;  %v17552_v21 = vcombine.high %v1890_v41, %v1894_v7  ;;  %v17551_v47 = vcombine.low %v1890_v41, %v1894_v7  ;;  %v1790_v17 = vld [vmem:[#allocation9 + $0xaf0] sm:$0xff] }
 0x73e   : > { %v20230_v12 = vadd.f32 %v12977_v16, %v20064_v35  ;;  %v12979_v31 = vpop.f32.mrb[74].mxu1  ;;  %13280 = vmatpush1.bf16.msra.mxu1 %v17527_v29  ;;  %v17424_v35 = vcombine.high %v1762_v63, %v1766_v52  ;;  %v1914_v55 = vld [vmem:[#allocation9 + $0xed0] sm:$0xff]  ;;  %v17439_v23 = vcombine.low %v1778_v40, %v1782_v30  ;;  %v17447_v42 = vcombine.low %v1786_v13, %v1790_v17 }
 0x73f   : > { %v12980_v50 = vpop.f32.mrb[75].mxu1  ;;  %13281 = vmatprep.subr.bf16.mxu1 %v17536_v51  ;;  %v1918_v29 = vld [vmem:[#allocation9 + $0xef0] sm:$0xff]  ;;  %v17448_v51 = vcombine.high %v1786_v13, %v1790_v17 }
 0x740   : > { %13241 = vmatpush1.bf16.msra.mxu0 %v17407_v3  ;;  %v17576_v9 = vcombine.high %v1914_v55, %v1918_v29  ;;  %v1794_v44 = vld [vmem:[#allocation9 + $0xb10] sm:$0xff]  ;;  %v17575_v16 = vcombine.low %v1914_v55, %v1918_v29 }
 0x741   : > { %13242 = vmatprep.subr.bf16.mxu0 %v17416_v27  ;;  %v1798_v57 = vld [vmem:[#allocation9 + $0xb30] sm:$0xff] }
 0x742   : > { %13282 = vmatpush1.bf16.msra.mxu1 %v17535_v1  ;;  %v1922_v58 = vld [vmem:[#allocation9 + $0xf10] sm:$0xff]  ;;  %v17456_v33 = vcombine.high %v1794_v44, %v1798_v57  ;;  %v17455_v50 = vcombine.low %v1794_v44, %v1798_v57 }
 0x743   : > { %13283 = vmatprep.subr.bf16.mxu1 %v17544_v59  ;;  %v1926_v26 = vld [vmem:[#allocation9 + $0xf30] sm:$0xff] }
 0x744   : > { %13243 = vmatpush1.bf16.msra.mxu0 %v17415_v62  ;;  %v17584_v3 = vcombine.high %v1922_v58, %v1926_v26  ;;  %v1802_v31 = vld [vmem:[#allocation9 + $0xb50] sm:$0xff]  ;;  %v17583_v59 = vcombine.low %v1922_v58, %v1926_v26 }
 0x745   : > { %13244 = vmatprep.subr.bf16.mxu0 %v17424_v35  ;;  %v1806_v48 = vld [vmem:[#allocation9 + $0xb70] sm:$0xff] }
 0x746   : > { %13284 = vmatpush1.bf16.msra.mxu1 %v17543_v11  ;;  %v1930_v1 = vld [vmem:[#allocation9 + $0xf50] sm:$0xff]  ;;  %v17464_v63 = vcombine.high %v1802_v31, %v1806_v48  ;;  %v17463_v35 = vcombine.low %v1802_v31, %v1806_v48 }
 0x747   : > { %13285 = vmatprep.subr.bf16.mxu1 %v17552_v21  ;;  %v1934_v27 = vld [vmem:[#allocation9 + $0xf70] sm:$0xff] }
 0x748   : > { %13245 = vmatpush1.bf16.msra.mxu0 %v17423_v10  ;;  %v17592_v52 = vcombine.high %v1930_v1, %v1934_v27  ;;  %v1810_v41 = vld [vmem:[#allocation9 + $0xb90] sm:$0xff]  ;;  %v17591_v21 = vcombine.low %v1930_v1, %v1934_v27 }
 0x749   : > { %13246 = vmatprep.subr.bf16.mxu0 %v17432_v5  ;;  %v1814_v7 = vld [vmem:[#allocation9 + $0xbb0] sm:$0xff] }
 0x74a   : > { %13286 = vmatpush1.bf16.msra.mxu1 %v17551_v47  ;;  %v1938_v62 = vld [vmem:[#allocation9 + $0xf90] sm:$0xff]  ;;  %v17472_v49 = vcombine.high %v1810_v41, %v1814_v7  ;;  %v17471_v5 = vcombine.low %v1810_v41, %v1814_v7 }
 0x74b   : > { %13287 = vmatprep.subr.bf16.mxu1 %v17560_v8  ;;  %v1942_v11 = vld [vmem:[#allocation9 + $0xfb0] sm:$0xff] }
 0x74c   : > { %13247 = vmatpush1.bf16.msra.mxu0 %v17431_v45  ;;  %v17600_v60 = vcombine.high %v1938_v62, %v1942_v11  ;;  %v1818_v4 = vld [vmem:[#allocation9 + $0xbd0] sm:$0xff]  ;;  %v17599_v8 = vcombine.low %v1938_v62, %v1942_v11  ;;  %v1443_v45 = vld [vmem:[#allocation9 + $0x18] sm:$0xff] }
 0x74d   : > { %13248 = vmatprep.subr.bf16.mxu0 %v17440_v56  ;;  %v1822_v28 = vld [vmem:[#allocation9 + $0xbf0] sm:$0xff] }
 0x74e   : > { %13288 = vmatpush1.bf16.msra.mxu1 %v17559_v20  ;;  %v1946_v10 = vld [vmem:[#allocation9 + $0xfd0] sm:$0xff]  ;;  %v17480_v40 = vcombine.high %v1818_v4, %v1822_v28  ;;  %v1447_v20 = vld [vmem:[#allocation9 + $0x38] sm:$0xff]  ;;  %v17479_v56 = vcombine.low %v1818_v4, %v1822_v28 }
 0x74f   : > { %13289 = vmatprep.subr.bf16.mxu1 %v17568_v53  ;;  %v1950_v47 = vld [vmem:[#allocation9 + $0xff0] sm:$0xff]  ;;  %v17106_v17 = vcombine.high %v1443_v45, %v1447_v20 }
 0x750   : > { %13249 = vmatpush1.bf16.msra.mxu0 %v17439_v23  ;;  %v17608_v30 = vcombine.high %v1946_v10, %v1950_v47  ;;  %v1954_v22 = vld [vmem:[#allocation9 + $0x1010] sm:$0xff]  ;;  %v17607_v53 = vcombine.low %v1946_v10, %v1950_v47  ;;  %v1451_v23 = vld [vmem:[#allocation9 + $0x58] sm:$0xff] }
 0x751   : > { %13250 = vmatprep.subr.bf16.mxu0 %v17448_v51  ;;  %v1958_v43 = vld [vmem:[#allocation9 + $0x1030] sm:$0xff]  ;;  %v1483_v47 = vld [vmem:[#allocation9 + $0x158] sm:$0xff] }
 0x752   : > { %13290 = vmatpush1.bf16.msra.mxu1 %v17567_v15  ;;  %v17616_v13 = vcombine.high %v1954_v22, %v1958_v43  ;;  %v1962_v55 = vld [vmem:[#allocation9 + $0x1050] sm:$0xff]  ;;  %v1455_v15 = vld [vmem:[#allocation9 + $0x78] sm:$0xff]  ;;  %v17615_v51 = vcombine.low %v1954_v22, %v1958_v43 }
 0x753   : > { %13291 = vmatprep.subr.bf16.mxu1 %v17576_v9  ;;  %v1966_v29 = vld [vmem:[#allocation9 + $0x1070] sm:$0xff]  ;;  %v17105_v9 = vcombine.low %v1443_v45, %v1447_v20  ;;  %v17114_v57 = vcombine.high %v1451_v23, %v1455_v15  ;;  %v1491_v20 = vld [vmem:[#allocation9 + $0x198] sm:$0xff] }
 0x754   : > { %13251 = vmatpush1.bf16.msra.mxu0 %v17447_v42  ;;  %v17624_v44 = vcombine.high %v1962_v55, %v1966_v29  ;;  %v1970_v58 = vld [vmem:[#allocation9 + $0x1090] sm:$0xff]  ;;  %v1459_v42 = vld [vmem:[#allocation9 + $0x98] sm:$0xff] }
 0x755   : > { %13252 = vmatprep.subr.bf16.mxu0 %v17456_v33  ;;  %v1974_v26 = vld [vmem:[#allocation9 + $0x10b0] sm:$0xff]  ;;  %v17623_v33 = vcombine.low %v1962_v55, %v1966_v29 }
 0x756   : > { %13292 = vmatpush1.bf16.msra.mxu1 %v17575_v16  ;;  %v1463_v16 = vld [vmem:[#allocation9 + $0xb8] sm:$0xff]  ;;  %v17632_v31 = vcombine.high %v1970_v58, %v1974_v26  ;;  %v1978_v1 = vld [vmem:[#allocation9 + $0x10d0] sm:$0xff] }
 0x757   : > { %13293 = vmatprep.subr.bf16.mxu1 %v17584_v3  ;;  %v17113_v3 = vcombine.low %v1451_v23, %v1455_v15  ;;  %v17122_v48 = vcombine.high %v1459_v42, %v1463_v16  ;;  %v1982_v27 = vld [vmem:[#allocation9 + $0x10f0] sm:$0xff] }
 0x758   : > { %13253 = vmatpush1.bf16.msra.mxu0 %v17455_v50  ;;  %v1467_v50 = vld [vmem:[#allocation9 + $0xd8] sm:$0xff]  ;;  %v17640_v41 = vcombine.high %v1978_v1, %v1982_v27  ;;  %v1986_v62 = vld [vmem:[#allocation9 + $0x1110] sm:$0xff] }
 0x759   : > { %13254 = vmatprep.subr.bf16.mxu0 %v17464_v63  ;;  %v17631_v63 = vcombine.low %v1970_v58, %v1974_v26  ;;  %v1990_v11 = vld [vmem:[#allocation9 + $0x1130] sm:$0xff]  ;;  %v1503_v58 = vld [vmem:[#allocation9 + $0x1f8] sm:$0xff] }
 0x75a   : > { %13294 = vmatpush1.bf16.msra.mxu1 %v17583_v59  ;;  %v1471_v59 = vld [vmem:[#allocation9 + $0xf8] sm:$0xff]  ;;  %v17648_v4 = vcombine.high %v1986_v62, %v1990_v11  ;;  %v1994_v28 = vld [vmem:[#allocation9 + $0x1150] sm:$0xff] }
 0x75b   : > { %13295 = vmatprep.subr.bf16.mxu1 %v17592_v52  ;;  %v17121_v52 = vcombine.low %v1459_v42, %v1463_v16  ;;  %v17130_v7 = vcombine.high %v1467_v50, %v1471_v59  ;;  %v1998_v10 = vld [vmem:[#allocation9 + $0x1170] sm:$0xff] }
 0x75c   : > { %13255 = vmatpush1.bf16.msra.mxu0 %v17463_v35  ;;  %v1475_v35 = vld [vmem:[#allocation9 + $0x118] sm:$0xff]  ;;  %v2002_v43 = vld [vmem:[#allocation9 + $0x1190] sm:$0xff] }
 0x75d   : > { %13256 = vmatprep.subr.bf16.mxu0 %v17472_v49  ;;  %v17639_v49 = vcombine.low %v1978_v1, %v1982_v27  ;;  %v2006_v45 = vld [vmem:[#allocation9 + $0x11b0] sm:$0xff] }
 0x75e   : > { %13296 = vmatpush1.bf16.msra.mxu1 %v17591_v21  ;;  %v1479_v21 = vld [vmem:[#allocation9 + $0x138] sm:$0xff]  ;;  %v2010_v23 = vld [vmem:[#allocation9 + $0x11d0] sm:$0xff] }
 0x75f   : > { %13297 = vmatprep.subr.bf16.mxu1 %v17600_v60  ;;  %v17129_v60 = vcombine.low %v1467_v50, %v1471_v59  ;;  %v2014_v15 = vld [vmem:[#allocation9 + $0x11f0] sm:$0xff] }
 0x760   : > { %13257 = vmatpush1.bf16.msra.mxu0 %v17471_v5  ;;  %v1487_v5 = vld [vmem:[#allocation9 + $0x178] sm:$0xff]  ;;  %v17672_v27 = vcombine.high %v2010_v23, %v2014_v15 }
 0x761   : > { %13258 = vmatprep.subr.bf16.mxu0 %v17480_v40  ;;  %v17137_v40 = vcombine.low %v1475_v35, %v1479_v21  ;;  %v17146_v22 = vcombine.high %v1483_v47, %v1487_v5 }
 0x762   : > { %13298 = vmatpush1.bf16.msra.mxu1 %v17599_v8  ;;  %v17647_v8 = vcombine.low %v1986_v62, %v1990_v11 }
 0x763   : > { %13299 = vmatprep.subr.bf16.mxu1 %v17608_v30  ;;  %v17656_v30 = vcombine.high %v1994_v28, %v1998_v10 }
 0x764   : > { %13259 = vmatpush1.bf16.msra.mxu0 %v17479_v56  ;;  %v1495_v56 = vld [vmem:[#allocation9 + $0x1b8] sm:$0xff] }
 0x765   : > { %13310 = vmatprep.subr.bf16.mxu0 %v17616_v13  ;;  %v17145_v13 = vcombine.low %v1483_v47, %v1487_v5  ;;  %v17154_v29 = vcombine.high %v1491_v20, %v1495_v56  ;;  %v17153_v1 = vcombine.low %v1491_v20, %v1495_v56  ;;  %v2034_v5 = vld [vmem:[#allocation9 + $0x1290] sm:$0xff] }
 0x766   : > { %13300 = vmatpush1.bf16.msra.mxu1 %v17607_v53  ;;  %v17655_v53 = vcombine.low %v1994_v28, %v1998_v10  ;;  %v2042_v56 = vld [vmem:[#allocation9 + $0x12d0] sm:$0xff] }
 0x767   : > { %13351 = vmatprep.subr.bf16.mxu1 %v17106_v17  ;;  %13261 = vmatmul.mubr.bf16.vlgmr.msra.gmra.mrb[88].mxu0 %v20164_v37  ;;  %v17664_v17 = vcombine.high %v2002_v43, %v2006_v45 }
 0x768   : > { %13311 = vmatpush1.bf16.msra.mxu0 %v17615_v51  ;;  %13342 = vmatprep.mubr.bf16.mxu0 %v20170_v46 }
 0x769   : > { %13302 = vmatmul.mubr.bf16.vlgmr.msra.gmra.mrb[88].mxu1 %v20168_v25  ;;  %13312 = vmatprep.subr.bf16.mxu0 %v17624_v44 }
 0x76a   : > { %13352 = vmatpush1.bf16.msra.mxu1 %v17105_v9  ;;  %13383 = vmatprep.mubr.bf16.mxu1 %v20114_v38  ;;  %v17138_v38 = vcombine.high %v1475_v35, %v1479_v21  ;;  %v2026_v21 = vld [vmem:[#allocation9 + $0x1250] sm:$0xff] }
 0x76b   : > { %13353 = vmatprep.subr.bf16.mxu1 %v17114_v57  ;;  %v1499_v57 = vld [vmem:[#allocation9 + $0x1d8] sm:$0xff] }
 0x76c   : > { %13313 = vmatpush1.bf16.msra.mxu0 %v17623_v33  ;;  %v17663_v33 = vcombine.low %v2002_v43, %v2006_v45  ;;  %v17162_v59 = vcombine.high %v1499_v57, %v1503_v58  ;;  %v17161_v62 = vcombine.low %v1499_v57, %v1503_v58  ;;  %v1543_v57 = vld [vmem:[#allocation9 + $0x338] sm:$0xff] }
 0x76d   : > { %13314 = vmatprep.subr.bf16.mxu0 %v17632_v31 }
 0x76e   : > { %13354 = vmatpush1.bf16.msra.mxu1 %v17113_v3 }
 0x76f   : > { %13355 = vmatprep.subr.bf16.mxu1 %v17122_v48 }
 0x770   : > { %13315 = vmatpush1.bf16.msra.mxu0 %v17631_v63  ;;  %v2018_v63 = vld [vmem:[#allocation9 + $0x1210] sm:$0xff] }
 0x771   : > { %13316 = vmatprep.subr.bf16.mxu0 %v17640_v41  ;;  %v1511_v41 = vld [vmem:[#allocation9 + $0x238] sm:$0xff] }
 0x772   : > { %13356 = vmatpush1.bf16.msra.mxu1 %v17121_v52  ;;  %v2022_v52 = vld [vmem:[#allocation9 + $0x1230] sm:$0xff] }
 0x773   : > { %13357 = vmatprep.subr.bf16.mxu1 %v17130_v7  ;;  %v17671_v7 = vcombine.low %v2010_v23, %v2014_v15  ;;  %v17680_v11 = vcombine.high %v2018_v63, %v2022_v52 }
 0x774   : > { %13317 = vmatpush1.bf16.msra.mxu0 %v17639_v49  ;;  %v2030_v49 = vld [vmem:[#allocation9 + $0x1270] sm:$0xff] }
 0x775   : > { %13318 = vmatprep.subr.bf16.mxu0 %v17648_v4  ;;  %v1519_v4 = vld [vmem:[#allocation9 + $0x278] sm:$0xff]  ;;  %v17688_v10 = vcombine.high %v2026_v21, %v2030_v49 }
 0x776   : > { %13358 = vmatpush1.bf16.msra.mxu1 %v17129_v60  ;;  %v1515_v60 = vld [vmem:[#allocation9 + $0x258] sm:$0xff] }
 0x777   : > { %13359 = vmatprep.subr.bf16.mxu1 %v17138_v38  ;;  %v17679_v38 = vcombine.low %v2018_v63, %v2022_v52  ;;  %v17178_v47 = vcombine.high %v1515_v60, %v1519_v4  ;;  %v17177_v43 = vcombine.low %v1515_v60, %v1519_v4  ;;  %v2066_v52 = vld [vmem:[#allocation9 + $0x1390] sm:$0xff]  ;;  %v1563_v4 = vld [vmem:[#allocation9 + $0x3d8] sm:$0xff] }
 0x778   : > { %13319 = vmatpush1.bf16.msra.mxu0 %v17647_v8  ;;  %v2038_v8 = vld [vmem:[#allocation9 + $0x12b0] sm:$0xff] }
 0x779   : > { %13320 = vmatprep.subr.bf16.mxu0 %v17656_v30  ;;  %v1527_v30 = vld [vmem:[#allocation9 + $0x2b8] sm:$0xff]  ;;  %v17696_v45 = vcombine.high %v2034_v5, %v2038_v8  ;;  %v2078_v60 = vld [vmem:[#allocation9 + $0x13f0] sm:$0xff] }
 0x77a   : > { %13360 = vmatpush1.bf16.msra.mxu1 %v17137_v40  ;;  %v13016_v55 = vpop.f32.mrb[76].mxu0  ;;  %v1523_v40 = vld [vmem:[#allocation9 + $0x298] sm:$0xff] }
 0x77b   : > { %13361 = vmatprep.subr.bf16.mxu1 %v17146_v22  ;;  %v13017_v51 = vadd.f32 %v13016_v55, %v20224_v18  ;;  %v13018_v44 = vpop.f32.mrb[77].mxu0  ;;  %v17687_v22 = vcombine.low %v2026_v21, %v2030_v49  ;;  %v17186_v20 = vcombine.high %v1523_v40, %v1527_v30  ;;  %v17695_v55 = vcombine.low %v2034_v5, %v2038_v8  ;;  %v2074_v49 = vld [vmem:[#allocation9 + $0x13d0] sm:$0xff]  ;;  %v1571_v8 = vld [vmem:[#allocation9 + $0x418] sm:$0xff] }
 0x77c   : > { %v13057_v9 = vpop.f32.mrb[76].mxu1  ;;  %v13019_v26 = vadd.f32 %v13018_v44, %v20230_v12  ;;  %v13020_v16 = vpop.f32.mrb[78].mxu0  ;;  %13321 = vmatpush1.bf16.msra.mxu0 %v17655_v53  ;;  %v1507_v12 = vld [vmem:[#allocation9 + $0x218] sm:$0xff]  ;;  %v2046_v53 = vld [vmem:[#allocation9 + $0x12f0] sm:$0xff] }
 0x77d   : > { %v13059_v42 = vpop.f32.mrb[77].mxu1  ;;  %v20238_v3 = vadd.f32 %v13057_v9, %v13017_v51  ;;  %v13021_v48 = vpop.f32.mrb[79].mxu0  ;;  %13322 = vmatprep.subr.bf16.mxu0 %v17664_v17  ;;  %v17170_v35 = vcombine.high %v1507_v12, %v1511_v41  ;;  %v17169_v28 = vcombine.low %v1507_v12, %v1511_v41  ;;  %v1535_v17 = vld [vmem:[#allocation9 + $0x2f8] sm:$0xff]  ;;  %v17704_v23 = vcombine.high %v2042_v56, %v2046_v53  ;;  %v2050_v51 = vld [vmem:[#allocation9 + $0x1310] sm:$0xff] }
 0x77e   : > { %v13061_v31 = vpop.f32.mrb[78].mxu1  ;;  %13362 = vmatpush1.bf16.msra.mxu1 %v17145_v13  ;;  %v20240_v50 = vadd.f32 %v13059_v42, %v13019_v26  ;;  %v1531_v13 = vld [vmem:[#allocation9 + $0x2d8] sm:$0xff]  ;;  %v2054_v9 = vld [vmem:[#allocation9 + $0x1330] sm:$0xff]  ;;  %v17703_v58 = vcombine.low %v2042_v56, %v2046_v53 }
 0x77f   : > { %v13062_v18 = vpop.f32.mrb[79].mxu1  ;;  %13363 = vmatprep.subr.bf16.mxu1 %v17154_v29  ;;  %v17185_v29 = vcombine.low %v1523_v40, %v1527_v30  ;;  %v17194_v15 = vcombine.high %v1531_v13, %v1535_v17  ;;  %v1539_v44 = vld [vmem:[#allocation9 + $0x318] sm:$0xff]  ;;  %v17193_v26 = vcombine.low %v1531_v13, %v1535_v17  ;;  %v17712_v42 = vcombine.high %v2050_v51, %v2054_v9  ;;  %v2062_v31 = vld [vmem:[#allocation9 + $0x1370] sm:$0xff] }
 0x780   : > { %13323 = vmatpush1.bf16.msra.mxu0 %v17663_v33  ;;  %v17202_v16 = vcombine.high %v1539_v44, %v1543_v57  ;;  %v2058_v33 = vld [vmem:[#allocation9 + $0x1350] sm:$0xff]  ;;  %v1547_v48 = vld [vmem:[#allocation9 + $0x358] sm:$0xff]  ;;  %v17201_v18 = vcombine.low %v1539_v44, %v1543_v57 }
 0x781   : > { %13324 = vmatprep.subr.bf16.mxu0 %v17672_v27  ;;  %v17711_v27 = vcombine.low %v2050_v51, %v2054_v9  ;;  %v2070_v12 = vld [vmem:[#allocation9 + $0x13b0] sm:$0xff]  ;;  %v1555_v41 = vld [vmem:[#allocation9 + $0x398] sm:$0xff] }
 0x782   : > { %13364 = vmatpush1.bf16.msra.mxu1 %v17153_v1  ;;  %v1551_v1 = vld [vmem:[#allocation9 + $0x378] sm:$0xff] }
 0x783   : > { %13365 = vmatprep.subr.bf16.mxu1 %v17162_v59  ;;  %v17720_v59 = vcombine.high %v2058_v33, %v2062_v31  ;;  %v17210_v63 = vcombine.high %v1547_v48, %v1551_v1  ;;  %v1575_v40 = vld [vmem:[#allocation9 + $0x438] sm:$0xff] }
 0x784   : > { %13325 = vmatpush1.bf16.msra.mxu0 %v17671_v7  ;;  %v1559_v7 = vld [vmem:[#allocation9 + $0x3b8] sm:$0xff] }
 0x785   : > { %13326 = vmatprep.subr.bf16.mxu0 %v17680_v11  ;;  %v17209_v11 = vcombine.low %v1547_v48, %v1551_v1  ;;  %v17218_v21 = vcombine.high %v1555_v41, %v1559_v7  ;;  %v1699_v30 = vld [vmem:[#allocation9 + $0x818] sm:$0xff] }
 0x786   : > { %13366 = vmatpush1.bf16.msra.mxu1 %v17161_v62  ;;  %v17719_v62 = vcombine.low %v2058_v33, %v2062_v31  ;;  %v1579_v53 = vld [vmem:[#allocation9 + $0x458] sm:$0xff] }
 0x787   : > { %13367 = vmatprep.subr.bf16.mxu1 %v17170_v35  ;;  %v17728_v35 = vcombine.high %v2066_v52, %v2070_v12  ;;  %v1583_v13 = vld [vmem:[#allocation9 + $0x478] sm:$0xff] }
 0x788   : > { %13327 = vmatpush1.bf16.msra.mxu0 %v17679_v38  ;;  %v1567_v38 = vld [vmem:[#allocation9 + $0x3f8] sm:$0xff] }
 0x789   : > { %13328 = vmatprep.subr.bf16.mxu0 %v17688_v10  ;;  %v17217_v10 = vcombine.low %v1555_v41, %v1559_v7  ;;  %v17226_v5 = vcombine.high %v1563_v4, %v1567_v38  ;;  %v1707_v17 = vld [vmem:[#allocation9 + $0x858] sm:$0xff] }
 0x78a   : > { %13368 = vmatpush1.bf16.msra.mxu1 %v17169_v28  ;;  %v17727_v28 = vcombine.low %v2066_v52, %v2070_v12  ;;  %v1587_v9 = vld [vmem:[#allocation9 + $0x498] sm:$0xff] }
 0x78b   : > { %13369 = vmatprep.subr.bf16.mxu1 %v17178_v47  ;;  %v17736_v47 = vcombine.high %v2074_v49, %v2078_v60  ;;  %v1591_v44 = vld [vmem:[#allocation9 + $0x4b8] sm:$0xff] }
 0x78c   : > { %13329 = vmatpush1.bf16.msra.mxu0 %v17687_v22  ;;  %v1703_v22 = vld [vmem:[#allocation9 + $0x838] sm:$0xff] }
 0x78d   : > { %13330 = vmatprep.subr.bf16.mxu0 %v17696_v45  ;;  %v17225_v45 = vcombine.low %v1563_v4, %v1567_v38  ;;  %v17362_v56 = vcombine.high %v1699_v30, %v1703_v22  ;;  %v1715_v57 = vld [vmem:[#allocation9 + $0x898] sm:$0xff] }
 0x78e   : > { %13370 = vmatpush1.bf16.msra.mxu1 %v17177_v43  ;;  %v17735_v43 = vcombine.low %v2074_v49, %v2078_v60  ;;  %v1595_v31 = vld [vmem:[#allocation9 + $0x4d8] sm:$0xff] }
 0x78f   : > { %13371 = vmatprep.subr.bf16.mxu1 %v17186_v20  ;;  %v17234_v20 = vcombine.high %v1571_v8, %v1575_v40  ;;  %v1599_v48 = vld [vmem:[#allocation9 + $0x4f8] sm:$0xff] }
 0x790   : > { %13331 = vmatpush1.bf16.msra.mxu0 %v17695_v55  ;;  %v1711_v55 = vld [vmem:[#allocation9 + $0x878] sm:$0xff] }
 0x791   : > { %13332 = vmatprep.subr.bf16.mxu0 %v17704_v23  ;;  %v17361_v23 = vcombine.low %v1699_v30, %v1703_v22  ;;  %v17370_v51 = vcombine.high %v1707_v17, %v1711_v55  ;;  %v1723_v1 = vld [vmem:[#allocation9 + $0x8d8] sm:$0xff] }
 0x792   : > { %13372 = vmatpush1.bf16.msra.mxu1 %v17185_v29  ;;  %v17233_v29 = vcombine.low %v1571_v8, %v1575_v40  ;;  %v1603_v52 = vld [vmem:[#allocation9 + $0x518] sm:$0xff] }
 0x793   : > { %13373 = vmatprep.subr.bf16.mxu1 %v17194_v15  ;;  %v17242_v15 = vcombine.high %v1579_v53, %v1583_v13  ;;  %v1607_v12 = vld [vmem:[#allocation9 + $0x538] sm:$0xff] }
 0x794   : > { %13333 = vmatpush1.bf16.msra.mxu0 %v17703_v58  ;;  %v1719_v58 = vld [vmem:[#allocation9 + $0x8b8] sm:$0xff]  ;;  %v17265_v4 = vcombine.low %v1603_v52, %v1607_v12 }
 0x795   : > { %13334 = vmatprep.subr.bf16.mxu0 %v17712_v42  ;;  %v17369_v42 = vcombine.low %v1707_v17, %v1711_v55  ;;  %v17378_v33 = vcombine.high %v1715_v57, %v1719_v58  ;;  %v1731_v41 = vld [vmem:[#allocation9 + $0x918] sm:$0xff] }
 0x796   : > { %13374 = vmatpush1.bf16.msra.mxu1 %v17193_v26  ;;  %v17241_v26 = vcombine.low %v1579_v53, %v1583_v13  ;;  %v1735_v7 = vld [vmem:[#allocation9 + $0x938] sm:$0xff] }
 0x797   : > { %13375 = vmatprep.subr.bf16.mxu1 %v17202_v16  ;;  %v17250_v16 = vcombine.high %v1587_v9, %v1591_v44  ;;  %v1739_v49 = vld [vmem:[#allocation9 + $0x958] sm:$0xff]  ;;  %v17393_v38 = vcombine.low %v1731_v41, %v1735_v7 }
 0x798   : > { %13335 = vmatpush1.bf16.msra.mxu0 %v17711_v27  ;;  %v1727_v27 = vld [vmem:[#allocation9 + $0x8f8] sm:$0xff] }
 0x799   : > { %13336 = vmatprep.subr.bf16.mxu0 %v17720_v59  ;;  %v17258_v59 = vcombine.high %v1595_v31, %v1599_v48  ;;  %v1743_v60 = vld [vmem:[#allocation9 + $0x978] sm:$0xff] }
 0x79a   : > { %13376 = vmatpush1.bf16.msra.mxu1 %v17201_v18  ;;  %v17249_v18 = vcombine.low %v1587_v9, %v1591_v44  ;;  %v1747_v8 = vld [vmem:[#allocation9 + $0x998] sm:$0xff]  ;;  %v17401_v22 = vcombine.low %v1739_v49, %v1743_v60 }
 0x79b   : > { %13377 = vmatprep.subr.bf16.mxu1 %v17210_v63  ;;  %v17386_v63 = vcombine.high %v1723_v1, %v1727_v27  ;;  %v1751_v40 = vld [vmem:[#allocation9 + $0x9b8] sm:$0xff] }
 0x79c   : > { %13337 = vmatpush1.bf16.msra.mxu0 %v17719_v62  ;;  %v17257_v62 = vcombine.low %v1595_v31, %v1599_v48  ;;  %v1631_v53 = vld [vmem:[#allocation9 + $0x5f8] sm:$0xff] }
 0x79d   : > { %13338 = vmatprep.subr.bf16.mxu0 %v17728_v35  ;;  %v1611_v35 = vld [vmem:[#allocation9 + $0x558] sm:$0xff] }
 0x79e   : > { %13378 = vmatpush1.bf16.msra.mxu1 %v17209_v11  ;;  %v17266_v11 = vcombine.high %v1603_v52, %v1607_v12  ;;  %v1635_v48 = vld [vmem:[#allocation9 + $0x618] sm:$0xff] }
 0x79f   : > { %13379 = vmatprep.subr.bf16.mxu1 %v17218_v21  ;;  %v1615_v21 = vld [vmem:[#allocation9 + $0x578] sm:$0xff] }
 0x7a0   : > { %13339 = vmatpush1.bf16.msra.mxu0 %v17727_v28  ;;  %v17274_v28 = vcombine.high %v1611_v35, %v1615_v21  ;;  %v17273_v30 = vcombine.low %v1611_v35, %v1615_v21  ;;  %v1643_v52 = vld [vmem:[#allocation9 + $0x658] sm:$0xff] }
 0x7a1   : > { %13340 = vmatprep.subr.bf16.mxu0 %v17736_v47  ;;  %v1619_v47 = vld [vmem:[#allocation9 + $0x598] sm:$0xff] }
 0x7a2   : > { %13380 = vmatpush1.bf16.msra.mxu1 %v17217_v10  ;;  %v17402_v10 = vcombine.high %v1739_v49, %v1743_v60  ;;  %v1647_v12 = vld [vmem:[#allocation9 + $0x678] sm:$0xff] }
 0x7a3   : > { %13381 = vmatprep.subr.bf16.mxu1 %v17226_v5  ;;  %v1623_v5 = vld [vmem:[#allocation9 + $0x5b8] sm:$0xff] }
 0x7a4   : > { %13341 = vmatpush1.bf16.msra.mxu0 %v17735_v43  ;;  %v17282_v43 = vcombine.high %v1619_v47, %v1623_v5  ;;  %v17281_v44 = vcombine.low %v1619_v47, %v1623_v5  ;;  %v1651_v35 = vld [vmem:[#allocation9 + $0x698] sm:$0xff] }
 0x7a5   : > { %13392 = vmatprep.subr.bf16.mxu0 %v17234_v20  ;;  %v17410_v20 = vcombine.high %v1747_v8, %v1751_v40  ;;  %v1655_v21 = vld [vmem:[#allocation9 + $0x6b8] sm:$0xff] }
 0x7a6   : > { %13382 = vmatpush1.bf16.msra.mxu1 %v17225_v45  ;;  %v1779_v49 = vld [vmem:[#allocation9 + $0xa98] sm:$0xff] }
 0x7a7   : > { %13433 = vmatprep.subr.bf16.mxu1 %v17362_v56  ;;  %13343 = vmatmul.mubr.bf16.vlgmr.msra.gmra.mrb[92].mxu0 %v20184_v36  ;;  %v1627_v56 = vld [vmem:[#allocation9 + $0x5d8] sm:$0xff] }
 0x7a8   : > { %13393 = vmatpush1.bf16.msra.mxu0 %v17233_v29  ;;  %13424 = vmatprep.mubr.bf16.mxu0 %v20117_v54  ;;  %v17385_v54 = vcombine.low %v1723_v1, %v1727_v27  ;;  %v1755_v29 = vld [vmem:[#allocation9 + $0x9d8] sm:$0xff] }
 0x7a9   : > { %13384 = vmatmul.mubr.bf16.vlgmr.msra.gmra.mrb[92].mxu1 %v20136_v32  ;;  %13394 = vmatprep.subr.bf16.mxu0 %v17242_v15  ;;  %v17377_v32 = vcombine.low %v1715_v57, %v1719_v58  ;;  %v1639_v1 = vld [vmem:[#allocation9 + $0x638] sm:$0xff] }
 0x7aa   : > { %13434 = vmatpush1.bf16.msra.mxu1 %v17361_v23  ;;  %13465 = vmatprep.mubr.bf16.mxu1 %v20144_v6  ;;  %v17394_v6 = vcombine.high %v1731_v41, %v1735_v7  ;;  %v1759_v23 = vld [vmem:[#allocation9 + $0x9f8] sm:$0xff] }
 0x7ab   : > { %13435 = vmatprep.subr.bf16.mxu1 %v17370_v51  ;;  %v17418_v31 = vcombine.high %v1755_v29, %v1759_v23  ;;  %v1767_v27 = vld [vmem:[#allocation9 + $0xa38] sm:$0xff] }
 0x7ac   : > { %13395 = vmatpush1.bf16.msra.mxu0 %v17241_v26  ;;  %v1771_v41 = vld [vmem:[#allocation9 + $0xa58] sm:$0xff] }
 0x7ad   : > { %13396 = vmatprep.subr.bf16.mxu0 %v17250_v16  ;;  %v17290_v16 = vcombine.high %v1627_v56, %v1631_v53  ;;  %v1775_v7 = vld [vmem:[#allocation9 + $0xa78] sm:$0xff] }
 0x7ae   : > { %13436 = vmatpush1.bf16.msra.mxu1 %v17369_v42  ;;  %v17409_v42 = vcombine.low %v1747_v8, %v1751_v40  ;;  %v1783_v60 = vld [vmem:[#allocation9 + $0xab8] sm:$0xff] }
 0x7af   : > { %13437 = vmatprep.subr.bf16.mxu1 %v17378_v33  ;;  %v1659_v47 = vld [vmem:[#allocation9 + $0x6d8] sm:$0xff] }
 0x7b0   : > { %13397 = vmatpush1.bf16.msra.mxu0 %v17249_v18  ;;  %v17289_v18 = vcombine.low %v1627_v56, %v1631_v53  ;;  %v1663_v5 = vld [vmem:[#allocation9 + $0x6f8] sm:$0xff] }
 0x7b1   : > { %13398 = vmatprep.subr.bf16.mxu0 %v17258_v59  ;;  %v17298_v59 = vcombine.high %v1635_v48, %v1639_v1  ;;  %v1787_v8 = vld [vmem:[#allocation9 + $0xad8] sm:$0xff] }
 0x7b2   : > { %13438 = vmatpush1.bf16.msra.mxu1 %v17377_v32  ;;  %v17417_v32 = vcombine.low %v1755_v29, %v1759_v23  ;;  %v1791_v40 = vld [vmem:[#allocation9 + $0xaf8] sm:$0xff] }
 0x7b3   : > { %13439 = vmatprep.subr.bf16.mxu1 %v17386_v63  ;;  %v1671_v56 = vld [vmem:[#allocation9 + $0x738] sm:$0xff] }
 0x7b4   : > { %13399 = vmatpush1.bf16.msra.mxu0 %v17257_v62  ;;  %v17297_v62 = vcombine.low %v1635_v48, %v1639_v1  ;;  %v1795_v53 = vld [vmem:[#allocation9 + $0xb18] sm:$0xff] }
 0x7b5   : > { %13400 = vmatprep.subr.bf16.mxu0 %v17266_v11  ;;  %v17306_v11 = vcombine.high %v1643_v52, %v1647_v12  ;;  %v1811_v48 = vld [vmem:[#allocation9 + $0xb98] sm:$0xff] }
 0x7b6   : > { %13440 = vmatpush1.bf16.msra.mxu1 %v17385_v54  ;;  %v1815_v1 = vld [vmem:[#allocation9 + $0xbb8] sm:$0xff] }
 0x7b7   : > { %13441 = vmatprep.subr.bf16.mxu1 %v17394_v6  ;;  %v17434_v6 = vcombine.high %v1771_v41, %v1775_v7 }
 0x7b8   : > { %13401 = vmatpush1.bf16.msra.mxu0 %v17265_v4  ;;  %v17305_v4 = vcombine.low %v1643_v52, %v1647_v12  ;;  %v1819_v52 = vld [vmem:[#allocation9 + $0xbd8] sm:$0xff] }
 0x7b9   : > { %13402 = vmatprep.subr.bf16.mxu0 %v17274_v28  ;;  %v17314_v28 = vcombine.high %v1651_v35, %v1655_v21  ;;  %v1823_v12 = vld [vmem:[#allocation9 + $0xbf8] sm:$0xff] }
 0x7ba   : > { %13442 = vmatpush1.bf16.msra.mxu1 %v17393_v38  ;;  %v13098_v45 = vpop.f32.mrb[80].mxu0  ;;  %v17433_v38 = vcombine.low %v1771_v41, %v1775_v7  ;;  %v17473_v7 = vcombine.low %v1811_v48, %v1815_v1 }
 0x7bb   : > { %13443 = vmatprep.subr.bf16.mxu1 %v17402_v10  ;;  %v13099_v13 = vadd.f32 %v13098_v45, %v20238_v3  ;;  %v13100_v55 = vpop.f32.mrb[81].mxu0  ;;  %v17442_v10 = vcombine.high %v1779_v49, %v1783_v60  ;;  %v17450_v45 = vcombine.high %v1787_v8, %v1791_v40 }
 0x7bc   : > { %v13139_v17 = vpop.f32.mrb[80].mxu1  ;;  %v13101_v15 = vadd.f32 %v13100_v55, %v20240_v50  ;;  %v13102_v9 = vpop.f32.mrb[82].mxu0  ;;  %13403 = vmatpush1.bf16.msra.mxu0 %v17273_v30  ;;  %v1763_v50 = vld [vmem:[#allocation9 + $0xa18] sm:$0xff]  ;;  %v17313_v30 = vcombine.low %v1651_v35, %v1655_v21  ;;  %v17449_v55 = vcombine.low %v1787_v8, %v1791_v40 }
 0x7bd   : > { %v13141_v51 = vpop.f32.mrb[81].mxu1  ;;  %v20248_v57 = vadd.f32 %v13139_v17, %v13099_v13  ;;  %v13103_v26 = vpop.f32.mrb[83].mxu0  ;;  %13404 = vmatprep.subr.bf16.mxu0 %v17282_v43  ;;  %v17426_v63 = vcombine.high %v1763_v50, %v1767_v27  ;;  %v17425_v54 = vcombine.low %v1763_v50, %v1767_v27  ;;  %v17322_v43 = vcombine.high %v1659_v47, %v1663_v5  ;;  %v1799_v13 = vld [vmem:[#allocation9 + $0xb38] sm:$0xff] }
 0x7be   : > { %v13143_v58 = vpop.f32.mrb[82].mxu1  ;;  %13444 = vmatpush1.bf16.msra.mxu1 %v17401_v22  ;;  %v20250_v33 = vadd.f32 %v13141_v51, %v13101_v15  ;;  %v17441_v22 = vcombine.low %v1779_v49, %v1783_v60  ;;  %v17321_v17 = vcombine.low %v1659_v47, %v1663_v5  ;;  %v17458_v23 = vcombine.high %v1795_v53, %v1799_v13  ;;  %v1675_v15 = vld [vmem:[#allocation9 + $0x758] sm:$0xff] }
 0x7bf   : > { %v13144_v3 = vpop.f32.mrb[83].mxu1  ;;  %13445 = vmatprep.subr.bf16.mxu1 %v17410_v20  ;;  %v1667_v20 = vld [vmem:[#allocation9 + $0x718] sm:$0xff]  ;;  %v17457_v26 = vcombine.low %v1795_v53, %v1799_v13  ;;  %v17481_v60 = vcombine.low %v1819_v52, %v1823_v12 }
 0x7c0   : > { %13405 = vmatpush1.bf16.msra.mxu0 %v17281_v44  ;;  %v17330_v29 = vcombine.high %v1667_v20, %v1671_v56  ;;  %v1679_v51 = vld [vmem:[#allocation9 + $0x778] sm:$0xff]  ;;  %v17329_v58 = vcombine.low %v1667_v20, %v1671_v56 }
 0x7c1   : > { %13406 = vmatprep.subr.bf16.mxu0 %v17290_v16  ;;  %v1803_v9 = vld [vmem:[#allocation9 + $0xb58] sm:$0xff]  ;;  %v17337_v50 = vcombine.low %v1675_v15, %v1679_v51 }
 0x7c2   : > { %13446 = vmatpush1.bf16.msra.mxu1 %v17409_v42  ;;  %v1807_v44 = vld [vmem:[#allocation9 + $0xb78] sm:$0xff]  ;;  %v17338_v42 = vcombine.high %v1675_v15, %v1679_v51 }
 0x7c3   : > { %13447 = vmatprep.subr.bf16.mxu1 %v17418_v31  ;;  %v17466_v16 = vcombine.high %v1803_v9, %v1807_v44  ;;  %v1683_v3 = vld [vmem:[#allocation9 + $0x798] sm:$0xff]  ;;  %v17465_v27 = vcombine.low %v1803_v9, %v1807_v44 }
 0x7c4   : > { %13407 = vmatpush1.bf16.msra.mxu0 %v17289_v18  ;;  %v1687_v31 = vld [vmem:[#allocation9 + $0x7b8] sm:$0xff] }
 0x7c5   : > { %13408 = vmatprep.subr.bf16.mxu0 %v17298_v59  ;;  %v17346_v18 = vcombine.high %v1683_v3, %v1687_v31  ;;  %v1691_v59 = vld [vmem:[#allocation9 + $0x7d8] sm:$0xff]  ;;  %v17345_v41 = vcombine.low %v1683_v3, %v1687_v31 }
 0x7c6   : > { %13448 = vmatpush1.bf16.msra.mxu1 %v17417_v32  ;;  %v17474_v32 = vcombine.high %v1811_v48, %v1815_v1  ;;  %v1955_v35 = vld [vmem:[#allocation9 + $0x1018] sm:$0xff] }
 0x7c7   : > { %13449 = vmatprep.subr.bf16.mxu1 %v17426_v63  ;;  %v1695_v63 = vld [vmem:[#allocation9 + $0x7f8] sm:$0xff] }
 0x7c8   : > { %13409 = vmatpush1.bf16.msra.mxu0 %v17297_v62  ;;  %v17354_v62 = vcombine.high %v1691_v59, %v1695_v63  ;;  %v1959_v21 = vld [vmem:[#allocation9 + $0x1038] sm:$0xff]  ;;  %v17353_v49 = vcombine.low %v1691_v59, %v1695_v63 }
 0x7c9   : > { %13410 = vmatprep.subr.bf16.mxu0 %v17306_v11  ;;  %v1827_v11 = vld [vmem:[#allocation9 + $0xc18] sm:$0xff]  ;;  %v17617_v40 = vcombine.low %v1955_v35, %v1959_v21 }
 0x7ca   : > { %13450 = vmatpush1.bf16.msra.mxu1 %v17425_v54  ;;  %v17482_v54 = vcombine.high %v1819_v52, %v1823_v12  ;;  %v1963_v47 = vld [vmem:[#allocation9 + $0x1058] sm:$0xff] }
 0x7cb   : > { %13451 = vmatprep.subr.bf16.mxu1 %v17434_v6  ;;  %v1831_v6 = vld [vmem:[#allocation9 + $0xc38] sm:$0xff] }
 0x7cc   : > { %13411 = vmatpush1.bf16.msra.mxu0 %v17305_v4  ;;  %v17490_v4 = vcombine.high %v1827_v11, %v1831_v6  ;;  %v1967_v5 = vld [vmem:[#allocation9 + $0x1078] sm:$0xff]  ;;  %v17489_v8 = vcombine.low %v1827_v11, %v1831_v6 }
 0x7cd   : > { %13412 = vmatprep.subr.bf16.mxu0 %v17314_v28  ;;  %v1835_v28 = vld [vmem:[#allocation9 + $0xc58] sm:$0xff]  ;;  %v17625_v13 = vcombine.low %v1963_v47, %v1967_v5 }
 0x7ce   : > { %13452 = vmatpush1.bf16.msra.mxu1 %v17433_v38  ;;  %v17618_v38 = vcombine.high %v1955_v35, %v1959_v21  ;;  %v1971_v20 = vld [vmem:[#allocation9 + $0x1098] sm:$0xff] }
 0x7cf   : > { %13453 = vmatprep.subr.bf16.mxu1 %v17442_v10  ;;  %v1839_v10 = vld [vmem:[#allocation9 + $0xc78] sm:$0xff] }
 0x7d0   : > { %13413 = vmatpush1.bf16.msra.mxu0 %v17313_v30  ;;  %v17498_v30 = vcombine.high %v1835_v28, %v1839_v10  ;;  %v1975_v56 = vld [vmem:[#allocation9 + $0x10b8] sm:$0xff]  ;;  %v17497_v53 = vcombine.low %v1835_v28, %v1839_v10 }
 0x7d1   : > { %13414 = vmatprep.subr.bf16.mxu0 %v17322_v43  ;;  %v1843_v43 = vld [vmem:[#allocation9 + $0xc98] sm:$0xff] }
 0x7d2   : > { %13454 = vmatpush1.bf16.msra.mxu1 %v17441_v22  ;;  %v17626_v22 = vcombine.high %v1963_v47, %v1967_v5  ;;  %v1979_v15 = vld [vmem:[#allocation9 + $0x10d8] sm:$0xff] }
 0x7d3   : > { %13455 = vmatprep.subr.bf16.mxu1 %v17450_v45  ;;  %v1847_v45 = vld [vmem:[#allocation9 + $0xcb8] sm:$0xff] }
 0x7d4   : > { %13415 = vmatpush1.bf16.msra.mxu0 %v17321_v17  ;;  %v17506_v17 = vcombine.high %v1843_v43, %v1847_v45  ;;  %v1983_v51 = vld [vmem:[#allocation9 + $0x10f8] sm:$0xff] }
 0x7d5   : > { %13416 = vmatprep.subr.bf16.mxu0 %v17330_v29  ;;  %v1851_v29 = vld [vmem:[#allocation9 + $0xcd8] sm:$0xff]  ;;  %v17642_v44 = vcombine.high %v1979_v15, %v1983_v51 }
 0x7d6   : > { %13456 = vmatpush1.bf16.msra.mxu1 %v17449_v55  ;;  %v17634_v55 = vcombine.high %v1971_v20, %v1975_v56  ;;  %v1867_v48 = vld [vmem:[#allocation9 + $0xd58] sm:$0xff] }
 0x7d7   : > { %13457 = vmatprep.subr.bf16.mxu1 %v17458_v23  ;;  %v1855_v23 = vld [vmem:[#allocation9 + $0xcf8] sm:$0xff] }
 0x7d8   : > { %13417 = vmatpush1.bf16.msra.mxu0 %v17329_v58  ;;  %v17514_v9 = vcombine.high %v1851_v29, %v1855_v23  ;;  %v1859_v58 = vld [vmem:[#allocation9 + $0xd18] sm:$0xff]  ;;  %v17513_v3 = vcombine.low %v1851_v29, %v1855_v23 }
 0x7d9   : > { %13418 = vmatprep.subr.bf16.mxu0 %v17338_v42  ;;  %v1987_v42 = vld [vmem:[#allocation9 + $0x1118] sm:$0xff] }
 0x7da   : > { %13458 = vmatpush1.bf16.msra.mxu1 %v17457_v26  ;;  %v1863_v26 = vld [vmem:[#allocation9 + $0xd38] sm:$0xff] }
 0x7db   : > { %13459 = vmatprep.subr.bf16.mxu1 %v17466_v16  ;;  %v1991_v16 = vld [vmem:[#allocation9 + $0x1138] sm:$0xff]  ;;  %v17522_v31 = vcombine.high %v1859_v58, %v1863_v26 }
 0x7dc   : > { %13419 = vmatpush1.bf16.msra.mxu0 %v17337_v50  ;;  %v1871_v1 = vld [vmem:[#allocation9 + $0xd78] sm:$0xff] }
 0x7dd   : > { %13420 = vmatprep.subr.bf16.mxu0 %v17346_v18  ;;  %v1995_v50 = vld [vmem:[#allocation9 + $0x1158] sm:$0xff]  ;;  %v17521_v18 = vcombine.low %v1859_v58, %v1863_v26  ;;  %v17530_v59 = vcombine.high %v1867_v48, %v1871_v1 }
 0x7de   : > { %13460 = vmatpush1.bf16.msra.mxu1 %v17465_v27  ;;  %v1999_v27 = vld [vmem:[#allocation9 + $0x1178] sm:$0xff] }
 0x7df   : > { %13461 = vmatprep.subr.bf16.mxu1 %v17474_v32  ;;  %v17649_v32 = vcombine.low %v1987_v42, %v1991_v16  ;;  %v17658_v63 = vcombine.high %v1995_v50, %v1999_v27  ;;  %v1875_v52 = vld [vmem:[#allocation9 + $0xd98] sm:$0xff] }
 0x7e0   : > { %13421 = vmatpush1.bf16.msra.mxu0 %v17345_v41  ;;  %v1879_v12 = vld [vmem:[#allocation9 + $0xdb8] sm:$0xff] }
 0x7e1   : > { %13422 = vmatprep.subr.bf16.mxu0 %v17354_v62  ;;  %v2003_v41 = vld [vmem:[#allocation9 + $0x1198] sm:$0xff]  ;;  %v17529_v62 = vcombine.low %v1867_v48, %v1871_v1  ;;  %v17538_v11 = vcombine.high %v1875_v52, %v1879_v12 }
 0x7e2   : > { %13462 = vmatpush1.bf16.msra.mxu1 %v17473_v7  ;;  %v2007_v7 = vld [vmem:[#allocation9 + $0x11b8] sm:$0xff] }
 0x7e3   : > { %13463 = vmatprep.subr.bf16.mxu1 %v17482_v54  ;;  %v17657_v54 = vcombine.low %v1995_v50, %v1999_v27  ;;  %v17666_v35 = vcombine.high %v2003_v41, %v2007_v7  ;;  %v1883_v21 = vld [vmem:[#allocation9 + $0xdd8] sm:$0xff] }
 0x7e4   : > { %13423 = vmatpush1.bf16.msra.mxu0 %v17353_v49  ;;  %v1887_v49 = vld [vmem:[#allocation9 + $0xdf8] sm:$0xff] }
 0x7e5   : > { %13474 = vmatprep.subr.bf16.mxu0 %v17490_v4  ;;  %v2011_v28 = vld [vmem:[#allocation9 + $0x11d8] sm:$0xff]  ;;  %v17545_v29 = vcombine.low %v1883_v21, %v1887_v49 }
 0x7e6   : > { %13464 = vmatpush1.bf16.msra.mxu1 %v17481_v60  ;;  %v2015_v10 = vld [vmem:[#allocation9 + $0x11f8] sm:$0xff] }
 0x7e7   : > { %13515 = vmatprep.subr.bf16.mxu1 %v17618_v38  ;;  %13425 = vmatmul.mubr.bf16.vlgmr.msra.gmra.mrb[96].mxu0 %v20142_v34  ;;  %v17505_v34 = vcombine.low %v1843_v43, %v1847_v45  ;;  %v17665_v45 = vcombine.low %v2003_v41, %v2007_v7  ;;  %v17673_v23 = vcombine.low %v2011_v28, %v2015_v10 }
 0x7e8   : > { %13475 = vmatpush1.bf16.msra.mxu0 %v17489_v8  ;;  %13506 = vmatprep.mubr.bf16.mxu0 %v20147_v14  ;;  %v17641_v14 = vcombine.low %v1979_v15, %v1983_v51 }
 0x7e9   : > { %13466 = vmatmul.mubr.bf16.vlgmr.msra.gmra.mrb[96].mxu1 %v20164_v37  ;;  %13476 = vmatprep.subr.bf16.mxu0 %v17498_v30  ;;  %v17633_v37 = vcombine.low %v1971_v20, %v1975_v56  ;;  %v17546_v20 = vcombine.high %v1883_v21, %v1887_v49 }
 0x7ea   : > { %13516 = vmatpush1.bf16.msra.mxu1 %v17617_v40  ;;  %13547 = vmatprep.mubr.bf16.mxu1 %v20170_v46  ;;  %v17650_v46 = vcombine.high %v1987_v42, %v1991_v16  ;;  %v17537_v40 = vcombine.low %v1875_v52, %v1879_v12 }
 0x7eb   : > { %13517 = vmatprep.subr.bf16.mxu1 %v17626_v22 }
 0x7ec   : > { %13477 = vmatpush1.bf16.msra.mxu0 %v17497_v53  ;;  %v17674_v53 = vcombine.high %v2011_v28, %v2015_v10  ;;  %v2059_v28 = vld [vmem:[#allocation9 + $0x1358] sm:$0xff] }
 0x7ed   : > { %13478 = vmatprep.subr.bf16.mxu0 %v17506_v17  ;;  %v1895_v17 = vld [vmem:[#allocation9 + $0xe38] sm:$0xff] }
 0x7ee   : > { %13518 = vmatpush1.bf16.msra.mxu1 %v17625_v13  ;;  %v1891_v13 = vld [vmem:[#allocation9 + $0xe18] sm:$0xff] }
 0x7ef   : > { %13519 = vmatprep.subr.bf16.mxu1 %v17634_v55  ;;  %v2023_v55 = vld [vmem:[#allocation9 + $0x1238] sm:$0xff]  ;;  %v17554_v15 = vcombine.high %v1891_v13, %v1895_v17  ;;  %v17553_v58 = vcombine.low %v1891_v13, %v1895_v17 }
 0x7f0   : > { %13479 = vmatpush1.bf16.msra.mxu0 %v17505_v34  ;;  %v1899_v34 = vld [vmem:[#allocation9 + $0xe58] sm:$0xff] }
 0x7f1   : > { %13480 = vmatprep.subr.bf16.mxu0 %v17514_v9  ;;  %v2027_v9 = vld [vmem:[#allocation9 + $0x1258] sm:$0xff] }
 0x7f2   : > { %13520 = vmatpush1.bf16.msra.mxu1 %v17633_v37  ;;  %v1903_v37 = vld [vmem:[#allocation9 + $0xe78] sm:$0xff] }
 0x7f3   : > { %13521 = vmatprep.subr.bf16.mxu1 %v17642_v44  ;;  %v2031_v44 = vld [vmem:[#allocation9 + $0x1278] sm:$0xff]  ;;  %v17562_v42 = vcombine.high %v1899_v34, %v1903_v37  ;;  %v17561_v48 = vcombine.low %v1899_v34, %v1903_v37 }
 0x7f4   : > { %13481 = vmatpush1.bf16.msra.mxu0 %v17513_v3  ;;  %v17690_v16 = vcombine.high %v2027_v9, %v2031_v44  ;;  %v1907_v3 = vld [vmem:[#allocation9 + $0xe98] sm:$0xff]  ;;  %v17689_v1 = vcombine.low %v2027_v9, %v2031_v44 }
 0x7f5   : > { %13482 = vmatprep.subr.bf16.mxu0 %v17522_v31  ;;  %v2035_v31 = vld [vmem:[#allocation9 + $0x1298] sm:$0xff] }
 0x7f6   : > { %13522 = vmatpush1.bf16.msra.mxu1 %v17641_v14  ;;  %v1911_v14 = vld [vmem:[#allocation9 + $0xeb8] sm:$0xff] }
 0x7f7   : > { %13523 = vmatprep.subr.bf16.mxu1 %v17650_v46  ;;  %v2039_v46 = vld [vmem:[#allocation9 + $0x12b8] sm:$0xff]  ;;  %v17570_v50 = vcombine.high %v1907_v3, %v1911_v14  ;;  %v17569_v52 = vcombine.low %v1907_v3, %v1911_v14 }
 0x7f8   : > { %13483 = vmatpush1.bf16.msra.mxu0 %v17521_v18  ;;  %v17698_v27 = vcombine.high %v2035_v31, %v2039_v46  ;;  %v1915_v18 = vld [vmem:[#allocation9 + $0xed8] sm:$0xff]  ;;  %v17697_v12 = vcombine.low %v2035_v31, %v2039_v46  ;;  %v18270_v46 = vld [vmem:[#allocation13 + $0xc] ss:$16 sps:$4 sm:$0xff]  }
 0x7f9   : > { %13484 = vmatprep.subr.bf16.mxu0 %v17530_v59  ;;  %v2043_v59 = vld [vmem:[#allocation9 + $0x12d8] sm:$0xff] }
 0x7fa   : > { %13524 = vmatpush1.bf16.msra.mxu1 %v17649_v32  ;;  %v13180_v6 = vpop.f32.mrb[84].mxu0  ;;  %v1919_v32 = vld [vmem:[#allocation9 + $0xef8] sm:$0xff] }
 0x7fb   : > { %13525 = vmatprep.subr.bf16.mxu1 %v17658_v63  ;;  %v13181_v60 = vadd.f32 %v13180_v6, %v20100_v19  ;;  %v13182_v38 = vpop.f32.mrb[85].mxu0  ;;  %v2047_v63 = vld [vmem:[#allocation9 + $0x12f8] sm:$0xff]  ;;  %v17578_v41 = vcombine.high %v1915_v18, %v1919_v32 }
 0x7fc   : > { %v13221_v4 = vpop.f32.mrb[84].mxu1  ;;  %v13183_v47 = vadd.f32 %v13182_v38, %v20102_v24  ;;  %v13184_v8 = vpop.f32.mrb[86].mxu0  ;;  %13485 = vmatpush1.bf16.msra.mxu0 %v17529_v62  ;;  %v2019_v24 = vld [vmem:[#allocation9 + $0x1218] sm:$0xff]  ;;  %v17706_v7 = vcombine.high %v2043_v59, %v2047_v63  ;;  %v17705_v21 = vcombine.low %v2043_v59, %v2047_v63  ;;  %v18274_v59 = vld [vmem:[#allocation13 + $0x28] ss:$16 sps:$4 sm:$0xff]  }
 0x7fd   : > { %v13223_v5 = vpop.f32.mrb[85].mxu1  ;;  %v20258_v30 = vadd.f32 %v13221_v4, %v13181_v60  ;;  %v13185_v43 = vpop.f32.mrb[87].mxu0  ;;  %13486 = vmatprep.subr.bf16.mxu0 %v17538_v11  ;;  %v17682_v51 = vcombine.high %v2019_v24, %v2023_v55  ;;  %v17681_v26 = vcombine.low %v2019_v24, %v2023_v55  ;;  %v1923_v62 = vld [vmem:[#allocation9 + $0xf18] sm:$0xff] }
 0x7fe   : > { %v13225_v22 = vpop.f32.mrb[86].mxu1  ;;  %13526 = vmatpush1.bf16.msra.mxu1 %v17657_v54  ;;  %v20260_v56 = vadd.f32 %v13223_v5, %v13183_v47  ;;  %v1927_v54 = vld [vmem:[#allocation9 + $0xf38] sm:$0xff]  ;;  %v20437_v47 = vld [vmem:[#allocation29_spill] sm:$0xff] }
 0x7ff   : > { %v13226_v19 = vpop.f32.mrb[87].mxu1  ;;  %13527 = vmatprep.subr.bf16.mxu1 %v17666_v35  ;;  %v2051_v11 = vld [vmem:[#allocation9 + $0x1318] sm:$0xff]  ;;  %v17577_v35 = vcombine.low %v1915_v18, %v1919_v32  ;;  %v17586_v49 = vcombine.high %v1923_v62, %v1927_v54  ;;  %v13564_v5 = vsub.s32 1, %v20437_v47  ;;  %v17585_v8 = vcombine.low %v1923_v62, %v1927_v54  ;;  %v18276_v18 = vld [vmem:[#allocation13 + $0x2c] ss:$16 sps:$4 sm:$0xff]  }
 0x800   : > { %13487 = vmatpush1.bf16.msra.mxu0 %v17537_v40  ;;  %v2055_v6 = vld [vmem:[#allocation9 + $0x1338] sm:$0xff]  ;;  %v20263_v40 = vld [vmem:[#allocation12] sm:$0xff] }
 0x801   : > { %13488 = vmatprep.subr.bf16.mxu0 %v17546_v20  ;;  %v17714_v60 = vcombine.high %v2051_v11, %v2055_v6  ;;  %v1931_v4 = vld [vmem:[#allocation9 + $0xf58] sm:$0xff]  ;;  %v17713_v22 = vcombine.low %v2051_v11, %v2055_v6  ;;  %v13565_v17 = vrot.slane %v20263_v40, %v13564_v5  ;;  %v18286_v62 = vld [vmem:[#allocation13 + $0x68] ss:$16 sps:$4 sm:$0xff]   ;;  %v18294_v11 = vld [vmem:[#allocation13 + $0x8c] ss:$16 sps:$4 sm:$0xff]  }
 0x802   : > { %13528 = vmatpush1.bf16.msra.mxu1 %v17665_v45  ;;  %v1935_v38 = vld [vmem:[#allocation9 + $0xf78] sm:$0xff] }
 0x803   : > { %13529 = vmatprep.subr.bf16.mxu1 %v17674_v53  ;;  %v2063_v10 = vld [vmem:[#allocation9 + $0x1378] sm:$0xff]  ;;  %v17594_v43 = vcombine.high %v1931_v4, %v1935_v38  ;;  %v17593_v24 = vcombine.low %v1931_v4, %v1935_v38  ;;  %v13599_v9 = vadd.f32 %v13565_v17, %v20227_v61  ;;  %v18298_v4 = vld [vmem:[#allocation13 + $0xa8] ss:$16 sps:$4 sm:$0xff]  }
 0x804   : > { %13489 = vmatpush1.bf16.msra.mxu0 %v17545_v29  ;;  %v17722_v45 = vcombine.high %v2059_v28, %v2063_v10  ;;  %v1939_v20 = vld [vmem:[#allocation9 + $0xf98] sm:$0xff]  ;;  %v17721_v55 = vcombine.low %v2059_v28, %v2063_v10  ;;  %v18306_v10 = vld [vmem:[#allocation13 + $0xcc] ss:$16 sps:$4 sm:$0xff]  }
 0x805   : > { %13490 = vmatprep.subr.bf16.mxu0 %v17554_v15  ;;  %v1943_v19 = vld [vmem:[#allocation9 + $0xfb8] sm:$0xff]  ;;  %vm13607_vm4 = vcmp.gt.f32.partialorder %v13599_v9, 0.0 }
 0x806   : > { %13530 = vmatpush1.bf16.msra.mxu1 %v17673_v23  ;;  %v2067_v53 = vld [vmem:[#allocation9 + $0x1398] sm:$0xff]  ;;  %v17602_v29 = vcombine.high %v1939_v20, %v1943_v19  ;;  %v17601_v44 = vcombine.low %v1939_v20, %v1943_v19 }
 0x807   : > { %13531 = vmatprep.subr.bf16.mxu1 %v17682_v51  ;;  %v2071_v13 = vld [vmem:[#allocation9 + $0x13b8] sm:$0xff] }
 0x808   : > { %13491 = vmatpush1.bf16.msra.mxu0 %v17553_v58  ;;  %v17730_v23 = vcombine.high %v2067_v53, %v2071_v13  ;;  %v1947_v15 = vld [vmem:[#allocation9 + $0xfd8] sm:$0xff]  ;;  %v17729_v58 = vcombine.low %v2067_v53, %v2071_v13 }
 0x809   : > { %13492 = vmatprep.subr.bf16.mxu0 %v17562_v42  ;;  %v1951_v51 = vld [vmem:[#allocation9 + $0xff8] sm:$0xff] }
 0x80a   : > { %13532 = vmatpush1.bf16.msra.mxu1 %v17681_v26  ;;  %v2075_v34 = vld [vmem:[#allocation9 + $0x13d8] sm:$0xff]  ;;  %v17610_v26 = vcombine.high %v1947_v15, %v1951_v51  ;;  %v17609_v3 = vcombine.low %v1947_v15, %v1951_v51 }
 0x80b   : > { %13533 = vmatprep.subr.bf16.mxu1 %v17690_v16  ;;  %v2079_v37 = vld [vmem:[#allocation9 + $0x13f8] sm:$0xff]  ;;  %v13615_v16 = vmul.f32 0.01, %v13599_v9 }
 0x80c   : > { %13493 = vmatpush1.bf16.msra.mxu0 %v17561_v48  ;;  %v17738_v42 = vcombine.high %v2075_v34, %v2079_v37  ;;  %v17737_v14 = vcombine.low %v2075_v34, %v2079_v37  ;;  %v18267_v31 = vld [vmem:[#allocation13 + $0x4] ss:$16 sps:$4 sm:$0xff]   ;;  %v18265_v61 = vld [vmem:[#allocation13] ss:$16 sps:$4 sm:$0xff]   ;;  %v18318_v37 = vld [vmem:[#allocation13 + $0x10c] ss:$16 sps:$4 sm:$0xff]  }
 0x80d   : > { %13494 = vmatprep.subr.bf16.mxu0 %v17570_v50  ;;  %v13623_v48 = vsel %vm13607_vm4, %v13599_v9, %v13615_v16  ;;  %v18273_v50 = vld [vmem:[#allocation13 + $0x24] ss:$16 sps:$4 sm:$0xff]   ;;  %v18271_v32 = vld [vmem:[#allocation13 + $0x20] ss:$16 sps:$4 sm:$0xff]   ;;  %v18322_v16 = vld [vmem:[#allocation13 + $0x128] ss:$16 sps:$4 sm:$0xff]  }
 0x80e   : > { %13534 = vmatpush1.bf16.msra.mxu1 %v17689_v1  ;;  %v18268_v1 = vld [vmem:[#allocation13 + $0x8] ss:$16 sps:$4 sm:$0xff]   ;;  %v18279_v63 = vld [vmem:[#allocation13 + $0x44] ss:$16 sps:$4 sm:$0xff]   ;;  %v18289_v6 = vld [vmem:[#allocation13 + $0x80] ss:$16 sps:$4 sm:$0xff]  }
 0x80f   : > { %13535 = vmatprep.subr.bf16.mxu1 %v17698_v27  ;;  %v13631_v27 = vpack.c.bf16 %v13623_v48, %v13623_v48  ;;  %v18291_v54 = vld [vmem:[#allocation13 + $0x84] ss:$16 sps:$4 sm:$0xff]   ;;  %v18301_v53 = vld [vmem:[#allocation13 + $0xc0] ss:$16 sps:$4 sm:$0xff]   ;;  %v18336_v48 = vld [vmem:[#allocation13 + $0x16c] ss:$16 sps:$4 sm:$0xff]  }
 0x810   : > { %13495 = vmatpush1.bf16.msra.mxu0 %v17569_v52  ;;  %v18282_v52 = vld [vmem:[#allocation13 + $0x4c] ss:$16 sps:$4 sm:$0xff]   ;;  %v18303_v38 = vld [vmem:[#allocation13 + $0xc4] ss:$16 sps:$4 sm:$0xff]   ;;  %v18307_v51 = vld [vmem:[#allocation13 + $0xe0] ss:$16 sps:$4 sm:$0xff]  }
 0x811   : > { %13496 = vmatprep.subr.bf16.mxu0 %v17578_v41  ;;  %v18280_v41 = vld [vmem:[#allocation13 + $0x48] ss:$16 sps:$4 sm:$0xff]   ;;  %v18315_v34 = vld [vmem:[#allocation13 + $0x104] ss:$16 sps:$4 sm:$0xff]   ;;  %v18313_v9 = vld [vmem:[#allocation13 + $0x100] ss:$16 sps:$4 sm:$0xff]  }
 0x812   : > { %13536 = vmatpush1.bf16.msra.mxu1 %v17697_v12  ;;  %v18277_v12 = vld [vmem:[#allocation13 + $0x40] ss:$16 sps:$4 sm:$0xff]  }
 0x813   : > { %13537 = vmatprep.subr.bf16.mxu1 %v17706_v7  ;;  %v18288_v7 = vld [vmem:[#allocation13 + $0x6c] ss:$16 sps:$4 sm:$0xff]  }
 0x814   : > { %13497 = vmatpush1.bf16.msra.mxu0 %v17577_v35  ;;  %v18292_v35 = vld [vmem:[#allocation13 + $0x88] ss:$16 sps:$4 sm:$0xff]  }
 0x815   : > { %13498 = vmatprep.subr.bf16.mxu0 %v17586_v49  ;;  %v18300_v49 = vld [vmem:[#allocation13 + $0xac] ss:$16 sps:$4 sm:$0xff]  }
 0x816   : > { %13538 = vmatpush1.bf16.msra.mxu1 %v17705_v21  ;;  %v18297_v21 = vld [vmem:[#allocation13 + $0xa4] ss:$16 sps:$4 sm:$0xff]  }
 0x817   : > { %13539 = vmatprep.subr.bf16.mxu1 %v17714_v60  ;;  %v18295_v60 = vld [vmem:[#allocation13 + $0xa0] ss:$16 sps:$4 sm:$0xff]  }
 0x818   : > { %13499 = vmatpush1.bf16.msra.mxu0 %v17585_v8 }
 0x819   : > { %13500 = vmatprep.subr.bf16.mxu0 %v17594_v43 }
 0x81a   : > { %13540 = vmatpush1.bf16.msra.mxu1 %v17713_v22 }
 0x81b   : > { %13541 = vmatprep.subr.bf16.mxu1 %v17722_v45 }
 0x81c   : > { %13501 = vmatpush1.bf16.msra.mxu0 %v17593_v24 }
 0x81d   : > { %13502 = vmatprep.subr.bf16.mxu0 %v17602_v29  ;;  %v18309_v29 = vld [vmem:[#allocation13 + $0xe4] ss:$16 sps:$4 sm:$0xff]  }
 0x81e   : > { %13542 = vmatpush1.bf16.msra.mxu1 %v17721_v55  ;;  %v18304_v55 = vld [vmem:[#allocation13 + $0xc8] ss:$16 sps:$4 sm:$0xff]  }
 0x81f   : > { %13543 = vmatprep.subr.bf16.mxu1 %v17730_v23 }
 0x820   : > { %13503 = vmatpush1.bf16.msra.mxu0 %v17601_v44  ;;  %v18316_v44 = vld [vmem:[#allocation13 + $0x108] ss:$16 sps:$4 sm:$0xff]  }
 0x821   : > { %13504 = vmatprep.subr.bf16.mxu0 %v17610_v26  ;;  %v18324_v26 = vld [vmem:[#allocation13 + $0x12c] ss:$16 sps:$4 sm:$0xff]  }
 0x822   : > { %13544 = vmatpush1.bf16.msra.mxu1 %v17729_v58  ;;  %v18321_v58 = vld [vmem:[#allocation13 + $0x124] ss:$16 sps:$4 sm:$0xff]  }
 0x823   : > { %13545 = vmatprep.subr.bf16.mxu1 %v17738_v42  ;;  %v18319_v42 = vld [vmem:[#allocation13 + $0x120] ss:$16 sps:$4 sm:$0xff]  }
 0x824   : > { %13505 = vmatpush1.bf16.msra.mxu0 %v17609_v3  ;;  %v18327_v3 = vld [vmem:[#allocation13 + $0x144] ss:$16 sps:$4 sm:$0xff]  }
 0x825   : > { %15196 = vmatprep.subr.bf16.mxu0 %v18267_v31  ;;  %v18325_v31 = vld [vmem:[#allocation13 + $0x140] ss:$16 sps:$4 sm:$0xff]  }
 0x826   : > { %13546 = vmatpush1.bf16.msra.mxu1 %v17737_v14  ;;  %v18330_v14 = vld [vmem:[#allocation13 + $0x14c] ss:$16 sps:$4 sm:$0xff]  }
 0x827   : > { %15360 = vmatprep.subr.bf16.mxu1 %v18270_v46  ;;  %13507 = vmatmul.mubr.bf16.vlgmr.msra.gmra.mrb[100].mxu0 %v20168_v25  ;;  %v18285_v25 = vld [vmem:[#allocation13 + $0x64] ss:$16 sps:$4 sm:$0xff]   ;;  %v18328_v46 = vld [vmem:[#allocation13 + $0x148] ss:$16 sps:$4 sm:$0xff]  }
 0x828   : > { %15197 = vmatpush1.bf16.msra.mxu0 %v18265_v61  ;;  %15228 = vmatprep.mubr.bf16.mxu0 %v13631_v27  ;;  %v18333_v61 = vld [vmem:[#allocation13 + $0x164] ss:$16 sps:$4 sm:$0xff]  }
 0x829   : > { %13548 = vmatmul.mubr.bf16.vlgmr.msra.gmra.mrb[100].mxu1 %v20184_v36  ;;  %15198 = vmatprep.subr.bf16.mxu0 %v18273_v50  ;;  %v18283_v36 = vld [vmem:[#allocation13 + $0x60] ss:$16 sps:$4 sm:$0xff]   ;;  %v18334_v50 = vld [vmem:[#allocation13 + $0x168] ss:$16 sps:$4 sm:$0xff]  }
 0x82a   : > { %15361 = vmatpush1.bf16.msra.mxu1 %v18268_v1  ;;  %15392 = vmatprep.mubr.bf16.mxu1 %v13631_v27  ;;  %v18331_v1 = vld [vmem:[#allocation13 + $0x160] ss:$16 sps:$4 sm:$0xff]   ;;  %v18339_v27 = vld [vmem:[#allocation13 + $0x184] ss:$16 sps:$4 sm:$0xff]  }
 0x82b   : > { %15362 = vmatprep.subr.bf16.mxu1 %v18276_v18  ;;  %v13560_v18 = vsub.s32 0, %v20437_v47 }
 0x82c   : > { %15199 = vmatpush1.bf16.msra.mxu0 %v18271_v32  ;;  %v18342_v32 = vld [vmem:[#allocation13 + $0x18c] ss:$16 sps:$4 sm:$0xff]  }
 0x82d   : > { %15200 = vmatprep.subr.bf16.mxu0 %v18279_v63  ;;  %v18337_v63 = vld [vmem:[#allocation13 + $0x180] ss:$16 sps:$4 sm:$0xff]  }
 0x82e   : > { %15363 = vmatpush1.bf16.msra.mxu1 %v18274_v59  ;;  %v13572_v59 = vsub.s32 3, %v20437_v47 }
 0x82f   : > { %15364 = vmatprep.subr.bf16.mxu1 %v18282_v52  ;;  %v18340_v52 = vld [vmem:[#allocation13 + $0x188] ss:$16 sps:$4 sm:$0xff]  }
 0x830   : > { %15201 = vmatpush1.bf16.msra.mxu0 %v18277_v12  ;;  %v18345_v12 = vld [vmem:[#allocation13 + $0x1a4] ss:$16 sps:$4 sm:$0xff]  }
 0x831   : > { %15202 = vmatprep.subr.bf16.mxu0 %v18285_v25  ;;  %v18348_v25 = vld [vmem:[#allocation13 + $0x1ac] ss:$16 sps:$4 sm:$0xff]  }
 0x832   : > { %15365 = vmatpush1.bf16.msra.mxu1 %v18280_v41  ;;  %v13561_v41 = vrot.slane %v20263_v40, %v13560_v18 }
 0x833   : > { %15366 = vmatprep.subr.bf16.mxu1 %v18288_v7  ;;  %v13573_v7 = vrot.slane %v20263_v40, %v13572_v59 }
 0x834   : > { %15203 = vmatpush1.bf16.msra.mxu0 %v18283_v36  ;;  %v18343_v36 = vld [vmem:[#allocation13 + $0x1a0] ss:$16 sps:$4 sm:$0xff]  }
 0x835   : > { %15204 = vmatprep.subr.bf16.mxu0 %v18291_v54  ;;  %v18351_v54 = vld [vmem:[#allocation13 + $0x1c4] ss:$16 sps:$4 sm:$0xff]  }
 0x836   : > { %15367 = vmatpush1.bf16.msra.mxu1 %v18286_v62  ;;  %v18346_v62 = vld [vmem:[#allocation13 + $0x1a8] ss:$16 sps:$4 sm:$0xff]  }
 0x837   : > { %15368 = vmatprep.subr.bf16.mxu1 %v18294_v11  ;;  %v13598_v11 = vadd.f32 %v13561_v41, %v20221_v0  ;;  %v18358_v0 = vld [vmem:[#allocation13 + $0x1e8] ss:$16 sps:$4 sm:$0xff]  }
 0x838   : > { %15205 = vmatpush1.bf16.msra.mxu0 %v18289_v6  ;;  %v18354_v6 = vld [vmem:[#allocation13 + $0x1cc] ss:$16 sps:$4 sm:$0xff]  }
 0x839   : > { %15206 = vmatprep.subr.bf16.mxu0 %v18297_v21  ;;  %v18349_v21 = vld [vmem:[#allocation13 + $0x1c0] ss:$16 sps:$4 sm:$0xff]   ;;  %vm13606_vm5 = vcmp.gt.f32.partialorder %v13598_v11, 0.0 }
 0x83a   : > { %15369 = vmatpush1.bf16.msra.mxu1 %v18292_v35  ;;  %v13262_v28 = vpop.f32.mrb[88].mxu0  ;;  %v13601_v35 = vadd.f32 %v13573_v7, %v20250_v33  ;;  %v18366_v33 = vld [vmem:[#allocation13 + $0x20c] ss:$16 sps:$4 sm:$0xff]  }
 0x83b   : > { %15370 = vmatprep.subr.bf16.mxu1 %v18300_v49  ;;  %v13263_v8 = vadd.f32 %v13262_v28, %v20258_v30  ;;  %v13264_v43 = vpop.f32.mrb[89].mxu0  ;;  %v18312_v30 = vld [vmem:[#allocation13 + $0xec] ss:$16 sps:$4 sm:$0xff]   ;;  %v18352_v49 = vld [vmem:[#allocation13 + $0x1c8] ss:$16 sps:$4 sm:$0xff]  }
 0x83c   : > { %v13303_v22 = vpop.f32.mrb[88].mxu1  ;;  %v13265_v45 = vadd.f32 %v13264_v43, %v20260_v56  ;;  %v13266_v19 = vpop.f32.mrb[90].mxu0  ;;  %15207 = vmatpush1.bf16.msra.mxu0 %v18295_v60  ;;  %v18310_v56 = vld [vmem:[#allocation13 + $0xe8] ss:$16 sps:$4 sm:$0xff]   ;;  %v18357_v60 = vld [vmem:[#allocation13 + $0x1e4] ss:$16 sps:$4 sm:$0xff]  }
 0x83d   : > { %v13305_v20 = vpop.f32.mrb[89].mxu1  ;;  %v20273_v13 = vadd.f32 %v13303_v22, %v13263_v8  ;;  %v13267_v24 = vpop.f32.mrb[91].mxu0  ;;  %15208 = vmatprep.subr.bf16.mxu0 %v18303_v38  ;;  %v18360_v38 = vld [vmem:[#allocation13 + $0x1ec] ss:$16 sps:$4 sm:$0xff]   ;;  %v13617_v28 = vmul.f32 0.01, %v13601_v35 }
 0x83e   : > { %v13307_v17 = vpop.f32.mrb[90].mxu1  ;;  %15371 = vmatpush1.bf16.msra.mxu1 %v18298_v4  ;;  %v20275_v23 = vadd.f32 %v13305_v20, %v13265_v45  ;;  %v13614_v4 = vmul.f32 0.01, %v13598_v11  ;;  %v18363_v8 = vld [vmem:[#allocation13 + $0x204] ss:$16 sps:$4 sm:$0xff]   ;;  %vm13609_vm6 = vcmp.gt.f32.partialorder %v13601_v35, 0.0 }
 0x83f   : > { %v13308_v15 = vpop.f32.mrb[91].mxu1  ;;  %15372 = vmatprep.subr.bf16.mxu1 %v18306_v10  ;;  %v18355_v10 = vld [vmem:[#allocation13 + $0x1e0] ss:$16 sps:$4 sm:$0xff]   ;;  %v13625_v45 = vsel %vm13609_vm6, %v13601_v35, %v13617_v28  ;;  %v18364_v19 = vld [vmem:[#allocation13 + $0x208] ss:$16 sps:$4 sm:$0xff]  }
 0x840   : > { %15209 = vmatpush1.bf16.msra.mxu0 %v18301_v53  ;;  %v13622_v22 = vsel %vm13606_vm5, %v13598_v11, %v13614_v4  ;;  %v18361_v43 = vld [vmem:[#allocation13 + $0x200] ss:$16 sps:$4 sm:$0xff]   ;;  %v18369_v53 = vld [vmem:[#allocation13 + $0x224] ss:$16 sps:$4 sm:$0xff]   ;;  %v13633_v17 = vpack.c.bf16 %v13625_v45, %v13625_v45  ;;  %v18372_v24 = vld [vmem:[#allocation13 + $0x22c] ss:$16 sps:$4 sm:$0xff]  }
 0x841   : > { %15210 = vmatprep.subr.bf16.mxu0 %v18309_v29  ;;  %v13630_v20 = vpack.c.bf16 %v13622_v22, %v13622_v22  ;;  %v18370_v29 = vld [vmem:[#allocation13 + $0x228] ss:$16 sps:$4 sm:$0xff]   ;;  %v18375_v15 = vld [vmem:[#allocation13 + $0x244] ss:$16 sps:$4 sm:$0xff]   ;;  %v18420_v4 = vld [vmem:[#allocation13 + $0x32c] ss:$16 sps:$4 sm:$0xff]  }
 0x842   : > { %15373 = vmatpush1.bf16.msra.mxu1 %v18304_v55  ;;  %v18367_v55 = vld [vmem:[#allocation13 + $0x220] ss:$16 sps:$4 sm:$0xff]   ;;  %v18411_v35 = vld [vmem:[#allocation13 + $0x304] ss:$16 sps:$4 sm:$0xff]   ;;  %v18418_v28 = vld [vmem:[#allocation13 + $0x328] ss:$16 sps:$4 sm:$0xff]  }
 0x843   : > { %15374 = vmatprep.subr.bf16.mxu1 %v18312_v30  ;;  %v18378_v30 = vld [vmem:[#allocation13 + $0x24c] ss:$16 sps:$4 sm:$0xff]   ;;  %v18424_v22 = vld [vmem:[#allocation13 + $0x348] ss:$16 sps:$4 sm:$0xff]   ;;  %v18427_v45 = vld [vmem:[#allocation13 + $0x360] ss:$16 sps:$4 sm:$0xff]  }
 0x844   : > { %15211 = vmatpush1.bf16.msra.mxu0 %v18307_v51  ;;  %v18373_v51 = vld [vmem:[#allocation13 + $0x240] ss:$16 sps:$4 sm:$0xff]  }
 0x845   : > { %15212 = vmatprep.subr.bf16.mxu0 %v18315_v34  ;;  %v18381_v34 = vld [vmem:[#allocation13 + $0x264] ss:$16 sps:$4 sm:$0xff]  }
 0x846   : > { %15375 = vmatpush1.bf16.msra.mxu1 %v18310_v56  ;;  %v18376_v56 = vld [vmem:[#allocation13 + $0x248] ss:$16 sps:$4 sm:$0xff]  }
 0x847   : > { %15376 = vmatprep.subr.bf16.mxu1 %v18318_v37  ;;  %v18384_v37 = vld [vmem:[#allocation13 + $0x26c] ss:$16 sps:$4 sm:$0xff]  }
 0x848   : > { %15213 = vmatpush1.bf16.msra.mxu0 %v18313_v9  ;;  %v18379_v9 = vld [vmem:[#allocation13 + $0x260] ss:$16 sps:$4 sm:$0xff]  }
 0x849   : > { %15214 = vmatprep.subr.bf16.mxu0 %v18321_v58  ;;  %v18387_v58 = vld [vmem:[#allocation13 + $0x284] ss:$16 sps:$4 sm:$0xff]  }
 0x84a   : > { %15377 = vmatpush1.bf16.msra.mxu1 %v18316_v44  ;;  %v18382_v44 = vld [vmem:[#allocation13 + $0x268] ss:$16 sps:$4 sm:$0xff]  }
 0x84b   : > { %15378 = vmatprep.subr.bf16.mxu1 %v18324_v26  ;;  %v18390_v26 = vld [vmem:[#allocation13 + $0x28c] ss:$16 sps:$4 sm:$0xff]  }
 0x84c   : > { %15215 = vmatpush1.bf16.msra.mxu0 %v18319_v42  ;;  %v18385_v42 = vld [vmem:[#allocation13 + $0x280] ss:$16 sps:$4 sm:$0xff]  }
 0x84d   : > { %15216 = vmatprep.subr.bf16.mxu0 %v18327_v3  ;;  %v18393_v3 = vld [vmem:[#allocation13 + $0x2a4] ss:$16 sps:$4 sm:$0xff]  }
 0x84e   : > { %15379 = vmatpush1.bf16.msra.mxu1 %v18322_v16  ;;  %v18388_v16 = vld [vmem:[#allocation13 + $0x288] ss:$16 sps:$4 sm:$0xff]  }
 0x84f   : > { %15380 = vmatprep.subr.bf16.mxu1 %v18330_v14  ;;  %v18396_v14 = vld [vmem:[#allocation13 + $0x2ac] ss:$16 sps:$4 sm:$0xff]  }
 0x850   : > { %15217 = vmatpush1.bf16.msra.mxu0 %v18325_v31  ;;  %v18391_v31 = vld [vmem:[#allocation13 + $0x2a0] ss:$16 sps:$4 sm:$0xff]  }
 0x851   : > { %15218 = vmatprep.subr.bf16.mxu0 %v18333_v61  ;;  %v18399_v61 = vld [vmem:[#allocation13 + $0x2c4] ss:$16 sps:$4 sm:$0xff]  }
 0x852   : > { %15381 = vmatpush1.bf16.msra.mxu1 %v18328_v46  ;;  %v18394_v46 = vld [vmem:[#allocation13 + $0x2a8] ss:$16 sps:$4 sm:$0xff]  }
 0x853   : > { %15382 = vmatprep.subr.bf16.mxu1 %v18336_v48 }
 0x854   : > { %15219 = vmatpush1.bf16.msra.mxu0 %v18331_v1  ;;  %v18402_v1 = vld [vmem:[#allocation13 + $0x2cc] ss:$16 sps:$4 sm:$0xff]  }
 0x855   : > { %15220 = vmatprep.subr.bf16.mxu0 %v18339_v27 }
 0x856   : > { %15383 = vmatpush1.bf16.msra.mxu1 %v18334_v50 }
 0x857   : > { %15384 = vmatprep.subr.bf16.mxu1 %v18342_v32 }
 0x858   : > { %15221 = vmatpush1.bf16.msra.mxu0 %v18337_v63 }
 0x859   : > { %15222 = vmatprep.subr.bf16.mxu0 %v18345_v12 }
 0x85a   : > { %15385 = vmatpush1.bf16.msra.mxu1 %v18340_v52 }
 0x85b   : > { %15386 = vmatprep.subr.bf16.mxu1 %v18348_v25  ;;  %v18397_v25 = vld [vmem:[#allocation13 + $0x2c0] ss:$16 sps:$4 sm:$0xff]  }
 0x85c   : > { %15223 = vmatpush1.bf16.msra.mxu0 %v18343_v36 }
 0x85d   : > { %15224 = vmatprep.subr.bf16.mxu0 %v18351_v54  ;;  %v18405_v54 = vld [vmem:[#allocation13 + $0x2e4] ss:$16 sps:$4 sm:$0xff]  }
 0x85e   : > { %15387 = vmatpush1.bf16.msra.mxu1 %v18346_v62 }
 0x85f   : > { %15388 = vmatprep.subr.bf16.mxu1 %v18354_v6  ;;  %v18403_v6 = vld [vmem:[#allocation13 + $0x2e0] ss:$16 sps:$4 sm:$0xff]  }
 0x860   : > { %15225 = vmatpush1.bf16.msra.mxu0 %v18349_v21  ;;  %v18414_v21 = vld [vmem:[#allocation13 + $0x30c] ss:$16 sps:$4 sm:$0xff]  }
 0x861   : > { %15226 = vmatprep.subr.bf16.mxu0 %v18357_v60  ;;  %v18417_v60 = vld [vmem:[#allocation13 + $0x324] ss:$16 sps:$4 sm:$0xff]  }
 0x862   : > { %15389 = vmatpush1.bf16.msra.mxu1 %v18352_v49  ;;  %v18412_v49 = vld [vmem:[#allocation13 + $0x308] ss:$16 sps:$4 sm:$0xff]  }
 0x863   : > { %15390 = vmatprep.subr.bf16.mxu1 %v18360_v38  ;;  %v18415_v38 = vld [vmem:[#allocation13 + $0x320] ss:$16 sps:$4 sm:$0xff]  }
 0x864   : > { %15227 = vmatpush1.bf16.msra.mxu0 %v18355_v10  ;;  %v18423_v10 = vld [vmem:[#allocation13 + $0x344] ss:$16 sps:$4 sm:$0xff]  }
 0x865   : > { %15237 = vmatprep.subr.bf16.mxu0 %v18363_v8  ;;  %v18421_v8 = vld [vmem:[#allocation13 + $0x340] ss:$16 sps:$4 sm:$0xff]  }
 0x866   : > { %15391 = vmatpush1.bf16.msra.mxu1 %v18358_v0  ;;  %v18426_v0 = vld [vmem:[#allocation13 + $0x34c] ss:$16 sps:$4 sm:$0xff]  }
 0x867   : > { %15401 = vmatprep.subr.bf16.mxu1 %v18366_v33  ;;  %15229 = vmatmul.mubr.bf16.vlgmr.msra.gmra.mrb[104].mxu0 %v13630_v20  ;;  %v18429_v33 = vld [vmem:[#allocation13 + $0x364] ss:$16 sps:$4 sm:$0xff]  }
 0x868   : > { %15238 = vmatpush1.bf16.msra.mxu0 %v18361_v43  ;;  %15269 = vmatprep.mubr.bf16.mxu0 %v13633_v17  ;;  %v18432_v43 = vld [vmem:[#allocation13 + $0x36c] ss:$16 sps:$4 sm:$0xff]  }
 0x869   : > { %15393 = vmatmul.mubr.bf16.vlgmr.msra.gmra.mrb[104].mxu1 %v13630_v20  ;;  %15239 = vmatprep.subr.bf16.mxu0 %v18369_v53  ;;  %v18430_v20 = vld [vmem:[#allocation13 + $0x368] ss:$16 sps:$4 sm:$0xff]   ;;  %v13568_v53 = vsub.s32 2, %v20437_v47 }
 0x86a   : > { %15402 = vmatpush1.bf16.msra.mxu1 %v18364_v19  ;;  %15433 = vmatprep.mubr.bf16.mxu1 %v13633_v17  ;;  %v18435_v19 = vld [vmem:[#allocation13 + $0x384] ss:$16 sps:$4 sm:$0xff]   ;;  %v18438_v17 = vld [vmem:[#allocation13 + $0x38c] ss:$16 sps:$4 sm:$0xff]  }
 0x86b   : > { %15403 = vmatprep.subr.bf16.mxu1 %v18372_v24  ;;  %v13580_v24 = vsub.s32 5, %v20437_v47 }
 0x86c   : > { %15240 = vmatpush1.bf16.msra.mxu0 %v18367_v55  ;;  %v18433_v55 = vld [vmem:[#allocation13 + $0x380] ss:$16 sps:$4 sm:$0xff]  }
 0x86d   : > { %15241 = vmatprep.subr.bf16.mxu0 %v18375_v15  ;;  %v18441_v15 = vld [vmem:[#allocation13 + $0x3a4] ss:$16 sps:$4 sm:$0xff]  }
 0x86e   : > { %15404 = vmatpush1.bf16.msra.mxu1 %v18370_v29  ;;  %v18436_v29 = vld [vmem:[#allocation13 + $0x388] ss:$16 sps:$4 sm:$0xff]  }
 0x86f   : > { %15405 = vmatprep.subr.bf16.mxu1 %v18378_v30  ;;  %v13569_v30 = vrot.slane %v20263_v40, %v13568_v53 }
 0x870   : > { %15242 = vmatpush1.bf16.msra.mxu0 %v18373_v51  ;;  %v18444_v51 = vld [vmem:[#allocation13 + $0x3ac] ss:$16 sps:$4 sm:$0xff]  }
 0x871   : > { %15243 = vmatprep.subr.bf16.mxu0 %v18381_v34  ;;  %v18439_v34 = vld [vmem:[#allocation13 + $0x3a0] ss:$16 sps:$4 sm:$0xff]  }
 0x872   : > { %15406 = vmatpush1.bf16.msra.mxu1 %v18376_v56  ;;  %v13581_v56 = vrot.slane %v20263_v40, %v13580_v24 }
 0x873   : > { %15407 = vmatprep.subr.bf16.mxu1 %v18384_v37  ;;  %v18442_v37 = vld [vmem:[#allocation13 + $0x3a8] ss:$16 sps:$4 sm:$0xff]  }
 0x874   : > { %15244 = vmatpush1.bf16.msra.mxu0 %v18379_v9  ;;  %v18447_v9 = vld [vmem:[#allocation13 + $0x3c4] ss:$16 sps:$4 sm:$0xff]  }
 0x875   : > { %15245 = vmatprep.subr.bf16.mxu0 %v18387_v58  ;;  %v18450_v58 = vld [vmem:[#allocation13 + $0x3cc] ss:$16 sps:$4 sm:$0xff]  }
 0x876   : > { %15408 = vmatpush1.bf16.msra.mxu1 %v18382_v44  ;;  %v13600_v44 = vadd.f32 %v13569_v30, %v20248_v57  ;;  %v18454_v57 = vld [vmem:[#allocation13 + $0x3e8] ss:$16 sps:$4 sm:$0xff]  }
 0x877   : > { %15409 = vmatprep.subr.bf16.mxu1 %v18390_v26 }
 0x878   : > { %15246 = vmatpush1.bf16.msra.mxu0 %v18385_v42  ;;  %v18445_v42 = vld [vmem:[#allocation13 + $0x3c0] ss:$16 sps:$4 sm:$0xff]   ;;  %vm13608_vm7 = vcmp.gt.f32.partialorder %v13600_v44, 0.0 }
 0x879   : > { %15247 = vmatprep.subr.bf16.mxu0 %v18393_v3  ;;  %v18453_v3 = vld [vmem:[#allocation13 + $0x3e4] ss:$16 sps:$4 sm:$0xff]  }
 0x87a   : > { %15410 = vmatpush1.bf16.msra.mxu1 %v18388_v16  ;;  %v13344_v48 = vpop.f32.mrb[92].mxu0  ;;  %v18448_v16 = vld [vmem:[#allocation13 + $0x3c8] ss:$16 sps:$4 sm:$0xff]  }
 0x87b   : > { %15411 = vmatprep.subr.bf16.mxu1 %v18396_v14  ;;  %v20288_v50 = vadd.f32 %v13344_v48, %v20273_v13  ;;  %v13346_v32 = vpop.f32.mrb[93].mxu0  ;;  %v18400_v13 = vld [vmem:[#allocation13 + $0x2c8] ss:$16 sps:$4 sm:$0xff]   ;;  %v13616_v14 = vmul.f32 0.01, %v13600_v44 }
 0x87c   : > { %v13385_v27 = vpop.f32.mrb[92].mxu1  ;;  %v20294_v52 = vadd.f32 %v13346_v32, %v20275_v23  ;;  %v13348_v41 = vpop.f32.mrb[94].mxu0  ;;  %15248 = vmatpush1.bf16.msra.mxu0 %v18391_v31  ;;  %v18406_v23 = vld [vmem:[#allocation13 + $0x2e8] ss:$16 sps:$4 sm:$0xff]   ;;  %v18456_v31 = vld [vmem:[#allocation13 + $0x3ec] ss:$16 sps:$4 sm:$0xff]  }
 0x87d   : > { %v20291_v63 = vadd.f32 %v13385_v27, %v20192_v39  ;;  %v13387_v12 = vpop.f32.mrb[93].mxu1  ;;  %v13349_v62 = vpop.f32.mrb[95].mxu0  ;;  %15249 = vmatprep.subr.bf16.mxu0 %v18399_v61  ;;  %v18408_v39 = vld [vmem:[#allocation13 + $0x2ec] ss:$16 sps:$4 sm:$0xff]   ;;  %v18451_v61 = vld [vmem:[#allocation13 + $0x3e0] ss:$16 sps:$4 sm:$0xff]  }
 0x87e   : > { %v20297_v7 = vadd.f32 %v13387_v12, %v20194_v2  ;;  %v13389_v36 = vpop.f32.mrb[94].mxu1  ;;  %15412 = vmatpush1.bf16.msra.mxu1 %v18394_v46  ;;  %v18409_v2 = vld [vmem:[#allocation13 + $0x300] ss:$16 sps:$4 sm:$0xff]   ;;  %v13603_v26 = vadd.f32 %v13581_v56, %v20294_v52  ;;  %v18459_v48 = vld [vmem:[#allocation13 + $0x404] ss:$16 sps:$4 sm:$0xff]  }
 0x87f   : > { %v13390_v11 = vpop.f32.mrb[95].mxu1  ;;  %15413 = vmatprep.subr.bf16.mxu1 %v18402_v1  ;;  %v13624_v1 = vsel %vm13608_vm7, %v13600_v44, %v13616_v14  ;;  %v18462_v27 = vld [vmem:[#allocation13 + $0x40c] ss:$16 sps:$4 sm:$0xff]   ;;  %v18457_v32 = vld [vmem:[#allocation13 + $0x400] ss:$16 sps:$4 sm:$0xff]  }
 0x880   : > { %15250 = vmatpush1.bf16.msra.mxu0 %v18397_v25  ;;  %v13619_v46 = vmul.f32 0.01, %v13603_v26  ;;  %vm13611_vm8 = vcmp.gt.f32.partialorder %v13603_v26, 0.0  ;;  %v13632_v12 = vpack.c.bf16 %v13624_v1, %v13624_v1  ;;  %v18460_v41 = vld [vmem:[#allocation13 + $0x408] ss:$16 sps:$4 sm:$0xff]  }
 0x881   : > { %15251 = vmatprep.subr.bf16.mxu0 %v18405_v54  ;;  %v18465_v25 = vld [vmem:[#allocation13 + $0x424] ss:$16 sps:$4 sm:$0xff]   ;;  %v18468_v62 = vld [vmem:[#allocation13 + $0x42c] ss:$16 sps:$4 sm:$0xff]   ;;  %v18466_v54 = vld [vmem:[#allocation13 + $0x428] ss:$16 sps:$4 sm:$0xff]  }
 0x882   : > { %15414 = vmatpush1.bf16.msra.mxu1 %v18400_v13  ;;  %v13627_v52 = vsel %vm13611_vm8, %v13603_v26, %v13619_v46  ;;  %v18463_v13 = vld [vmem:[#allocation13 + $0x420] ss:$16 sps:$4 sm:$0xff]   ;;  %v18471_v11 = vld [vmem:[#allocation13 + $0x444] ss:$16 sps:$4 sm:$0xff]  }
 0x883   : > { %15415 = vmatprep.subr.bf16.mxu1 %v18408_v39  ;;  %v13635_v36 = vpack.c.bf16 %v13627_v52, %v13627_v52  ;;  %v18474_v39 = vld [vmem:[#allocation13 + $0x44c] ss:$16 sps:$4 sm:$0xff]   ;;  %v18507_v26 = vld [vmem:[#allocation13 + $0x504] ss:$16 sps:$4 sm:$0xff]   ;;  %v18511_v46 = vld [vmem:[#allocation13 + $0x520] ss:$16 sps:$4 sm:$0xff]  }
 0x884   : > { %15252 = vmatpush1.bf16.msra.mxu0 %v18403_v6  ;;  %v18469_v6 = vld [vmem:[#allocation13 + $0x440] ss:$16 sps:$4 sm:$0xff]   ;;  %v18513_v14 = vld [vmem:[#allocation13 + $0x524] ss:$16 sps:$4 sm:$0xff]   ;;  %v18528_v52 = vld [vmem:[#allocation13 + $0x56c] ss:$16 sps:$4 sm:$0xff]  }
 0x885   : > { %15253 = vmatprep.subr.bf16.mxu0 %v18411_v35  ;;  %v18477_v35 = vld [vmem:[#allocation13 + $0x464] ss:$16 sps:$4 sm:$0xff]   ;;  %v18517_v1 = vld [vmem:[#allocation13 + $0x540] ss:$16 sps:$4 sm:$0xff]  }
 0x886   : > { %15416 = vmatpush1.bf16.msra.mxu1 %v18406_v23  ;;  %v18472_v23 = vld [vmem:[#allocation13 + $0x448] ss:$16 sps:$4 sm:$0xff]  }
 0x887   : > { %15417 = vmatprep.subr.bf16.mxu1 %v18414_v21  ;;  %v18480_v21 = vld [vmem:[#allocation13 + $0x46c] ss:$16 sps:$4 sm:$0xff]  }
 0x888   : > { %15254 = vmatpush1.bf16.msra.mxu0 %v18409_v2  ;;  %v18475_v2 = vld [vmem:[#allocation13 + $0x460] ss:$16 sps:$4 sm:$0xff]  }
 0x889   : > { %15255 = vmatprep.subr.bf16.mxu0 %v18417_v60  ;;  %v18483_v60 = vld [vmem:[#allocation13 + $0x484] ss:$16 sps:$4 sm:$0xff]  }
 0x88a   : > { %15418 = vmatpush1.bf16.msra.mxu1 %v18412_v49  ;;  %v18478_v49 = vld [vmem:[#allocation13 + $0x468] ss:$16 sps:$4 sm:$0xff]  }
 0x88b   : > { %15419 = vmatprep.subr.bf16.mxu1 %v18420_v4  ;;  %v18486_v4 = vld [vmem:[#allocation13 + $0x48c] ss:$16 sps:$4 sm:$0xff]  }
 0x88c   : > { %15256 = vmatpush1.bf16.msra.mxu0 %v18415_v38  ;;  %v18481_v38 = vld [vmem:[#allocation13 + $0x480] ss:$16 sps:$4 sm:$0xff]  }
 0x88d   : > { %15257 = vmatprep.subr.bf16.mxu0 %v18423_v10  ;;  %v18489_v10 = vld [vmem:[#allocation13 + $0x4a4] ss:$16 sps:$4 sm:$0xff]  }
 0x88e   : > { %15420 = vmatpush1.bf16.msra.mxu1 %v18418_v28  ;;  %v18484_v28 = vld [vmem:[#allocation13 + $0x488] ss:$16 sps:$4 sm:$0xff]  }
 0x88f   : > { %15421 = vmatprep.subr.bf16.mxu1 %v18426_v0  ;;  %v18492_v0 = vld [vmem:[#allocation13 + $0x4ac] ss:$16 sps:$4 sm:$0xff]  }
 0x890   : > { %15258 = vmatpush1.bf16.msra.mxu0 %v18421_v8  ;;  %v18487_v8 = vld [vmem:[#allocation13 + $0x4a0] ss:$16 sps:$4 sm:$0xff]  }
 0x891   : > { %15259 = vmatprep.subr.bf16.mxu0 %v18429_v33  ;;  %v18495_v33 = vld [vmem:[#allocation13 + $0x4c4] ss:$16 sps:$4 sm:$0xff]  }
 0x892   : > { %15422 = vmatpush1.bf16.msra.mxu1 %v18424_v22  ;;  %v18490_v22 = vld [vmem:[#allocation13 + $0x4a8] ss:$16 sps:$4 sm:$0xff]  }
 0x893   : > { %15423 = vmatprep.subr.bf16.mxu1 %v18432_v43 }
 0x894   : > { %15260 = vmatpush1.bf16.msra.mxu0 %v18427_v45  ;;  %v18498_v45 = vld [vmem:[#allocation13 + $0x4cc] ss:$16 sps:$4 sm:$0xff]  }
 0x895   : > { %15261 = vmatprep.subr.bf16.mxu0 %v18435_v19 }
 0x896   : > { %15424 = vmatpush1.bf16.msra.mxu1 %v18430_v20 }
 0x897   : > { %15425 = vmatprep.subr.bf16.mxu1 %v18438_v17 }
 0x898   : > { %15262 = vmatpush1.bf16.msra.mxu0 %v18433_v55 }
 0x899   : > { %15263 = vmatprep.subr.bf16.mxu0 %v18441_v15  ;;  %v18493_v15 = vld [vmem:[#allocation13 + $0x4c0] ss:$16 sps:$4 sm:$0xff]  }
 0x89a   : > { %15426 = vmatpush1.bf16.msra.mxu1 %v18436_v29 }
 0x89b   : > { %15427 = vmatprep.subr.bf16.mxu1 %v18444_v51 }
 0x89c   : > { %15264 = vmatpush1.bf16.msra.mxu0 %v18439_v34  ;;  %v18496_v34 = vld [vmem:[#allocation13 + $0x4c8] ss:$16 sps:$4 sm:$0xff]  }
 0x89d   : > { %15265 = vmatprep.subr.bf16.mxu0 %v18447_v9 }
 0x89e   : > { %15428 = vmatpush1.bf16.msra.mxu1 %v18442_v37  ;;  %v18501_v37 = vld [vmem:[#allocation13 + $0x4e4] ss:$16 sps:$4 sm:$0xff]  }
 0x89f   : > { %15429 = vmatprep.subr.bf16.mxu1 %v18450_v58  ;;  %v18499_v58 = vld [vmem:[#allocation13 + $0x4e0] ss:$16 sps:$4 sm:$0xff]  }
 0x8a0   : > { %15266 = vmatpush1.bf16.msra.mxu0 %v18445_v42  ;;  %v18510_v42 = vld [vmem:[#allocation13 + $0x50c] ss:$16 sps:$4 sm:$0xff]  }
 0x8a1   : > { %15267 = vmatprep.subr.bf16.mxu0 %v18453_v3  ;;  %v18508_v3 = vld [vmem:[#allocation13 + $0x508] ss:$16 sps:$4 sm:$0xff]  }
 0x8a2   : > { %15430 = vmatpush1.bf16.msra.mxu1 %v18448_v16  ;;  %v18505_v16 = vld [vmem:[#allocation13 + $0x500] ss:$16 sps:$4 sm:$0xff]  }
 0x8a3   : > { %15431 = vmatprep.subr.bf16.mxu1 %v18456_v31  ;;  %v18516_v31 = vld [vmem:[#allocation13 + $0x52c] ss:$16 sps:$4 sm:$0xff]  }
 0x8a4   : > { %15268 = vmatpush1.bf16.msra.mxu0 %v18451_v61  ;;  %v18514_v61 = vld [vmem:[#allocation13 + $0x528] ss:$16 sps:$4 sm:$0xff]  }
 0x8a5   : > { %15278 = vmatprep.subr.bf16.mxu0 %v18459_v48  ;;  %v18522_v48 = vld [vmem:[#allocation13 + $0x54c] ss:$16 sps:$4 sm:$0xff]  }
 0x8a6   : > { %15432 = vmatpush1.bf16.msra.mxu1 %v18454_v57  ;;  %v18519_v57 = vld [vmem:[#allocation13 + $0x544] ss:$16 sps:$4 sm:$0xff]  }
 0x8a7   : > { %15442 = vmatprep.subr.bf16.mxu1 %v18462_v27  ;;  %15270 = vmatmul.mubr.bf16.vlgmr.msra.gmra.mrb[104].mxu0 %v13632_v12  ;;  %v18520_v27 = vld [vmem:[#allocation13 + $0x548] ss:$16 sps:$4 sm:$0xff]  }
 0x8a8   : > { %15279 = vmatpush1.bf16.msra.mxu0 %v18457_v32  ;;  %15310 = vmatprep.mubr.bf16.mxu0 %v13635_v36  ;;  %v18525_v32 = vld [vmem:[#allocation13 + $0x564] ss:$16 sps:$4 sm:$0xff]  }
 0x8a9   : > { %15434 = vmatmul.mubr.bf16.vlgmr.msra.gmra.mrb[104].mxu1 %v13632_v12  ;;  %15280 = vmatprep.subr.bf16.mxu0 %v18465_v25  ;;  %v18523_v12 = vld [vmem:[#allocation13 + $0x560] ss:$16 sps:$4 sm:$0xff]   ;;  %v18531_v25 = vld [vmem:[#allocation13 + $0x584] ss:$16 sps:$4 sm:$0xff]  }
 0x8aa   : > { %15443 = vmatpush1.bf16.msra.mxu1 %v18460_v41  ;;  %15474 = vmatprep.mubr.bf16.mxu1 %v13635_v36  ;;  %v18526_v41 = vld [vmem:[#allocation13 + $0x568] ss:$16 sps:$4 sm:$0xff]   ;;  %v13576_v36 = vsub.s32 4, %v20437_v47 }
 0x8ab   : > { %15444 = vmatprep.subr.bf16.mxu1 %v18468_v62  ;;  %v18534_v62 = vld [vmem:[#allocation13 + $0x58c] ss:$16 sps:$4 sm:$0xff]  }
 0x8ac   : > { %15281 = vmatpush1.bf16.msra.mxu0 %v18463_v13  ;;  %v18529_v13 = vld [vmem:[#allocation13 + $0x580] ss:$16 sps:$4 sm:$0xff]  }
 0x8ad   : > { %15282 = vmatprep.subr.bf16.mxu0 %v18471_v11  ;;  %v18537_v11 = vld [vmem:[#allocation13 + $0x5a4] ss:$16 sps:$4 sm:$0xff]  }
 0x8ae   : > { %15445 = vmatpush1.bf16.msra.mxu1 %v18466_v54  ;;  %v18532_v54 = vld [vmem:[#allocation13 + $0x588] ss:$16 sps:$4 sm:$0xff]  }
 0x8af   : > { %15446 = vmatprep.subr.bf16.mxu1 %v18474_v39  ;;  %v13577_v39 = vrot.slane %v20263_v40, %v13576_v36  ;;  %v18552_v40 = vld [vmem:[#allocation13 + $0x5ec] ss:$16 sps:$4 sm:$0xff]   ;;  %v18589_v36 = vld [vmem:[#allocation13 + $0x6c0] ss:$16 sps:$4 sm:$0xff]  }
 0x8b0   : > { %15283 = vmatpush1.bf16.msra.mxu0 %v18469_v6  ;;  %v18540_v6 = vld [vmem:[#allocation13 + $0x5ac] ss:$16 sps:$4 sm:$0xff]  }
 0x8b1   : > { %15284 = vmatprep.subr.bf16.mxu0 %v18477_v35  ;;  %v18538_v35 = vld [vmem:[#allocation13 + $0x5a8] ss:$16 sps:$4 sm:$0xff]  }
 0x8b2   : > { %15447 = vmatpush1.bf16.msra.mxu1 %v18472_v23  ;;  %v18535_v23 = vld [vmem:[#allocation13 + $0x5a0] ss:$16 sps:$4 sm:$0xff]  }
 0x8b3   : > { %15448 = vmatprep.subr.bf16.mxu1 %v18480_v21  ;;  %v18543_v21 = vld [vmem:[#allocation13 + $0x5c4] ss:$16 sps:$4 sm:$0xff]  }
 0x8b4   : > { %15285 = vmatpush1.bf16.msra.mxu0 %v18475_v2  ;;  %v13602_v2 = vadd.f32 %v13577_v39, %v20288_v50  ;;  %v18558_v50 = vld [vmem:[#allocation13 + $0x60c] ss:$16 sps:$4 sm:$0xff]  }
 0x8b5   : > { %15286 = vmatprep.subr.bf16.mxu0 %v18483_v60  ;;  %v18541_v60 = vld [vmem:[#allocation13 + $0x5c0] ss:$16 sps:$4 sm:$0xff]  }
 0x8b6   : > { %15449 = vmatpush1.bf16.msra.mxu1 %v18478_v49  ;;  %v18546_v49 = vld [vmem:[#allocation13 + $0x5cc] ss:$16 sps:$4 sm:$0xff]   ;;  %vm13610_vm9 = vcmp.gt.f32.partialorder %v13602_v2, 0.0 }
 0x8b7   : > { %15450 = vmatprep.subr.bf16.mxu1 %v18486_v4  ;;  %v18544_v4 = vld [vmem:[#allocation13 + $0x5c8] ss:$16 sps:$4 sm:$0xff]  }
 0x8b8   : > { %15287 = vmatpush1.bf16.msra.mxu0 %v18481_v38  ;;  %v18549_v38 = vld [vmem:[#allocation13 + $0x5e4] ss:$16 sps:$4 sm:$0xff]  }
 0x8b9   : > { %15288 = vmatprep.subr.bf16.mxu0 %v18489_v10  ;;  %v18547_v10 = vld [vmem:[#allocation13 + $0x5e0] ss:$16 sps:$4 sm:$0xff]  }
 0x8ba   : > { %15451 = vmatpush1.bf16.msra.mxu1 %v18484_v28  ;;  %v13426_v43 = vpop.f32.mrb[96].mxu0  ;;  %v13618_v28 = vmul.f32 0.01, %v13602_v2 }
 0x8bb   : > { %15452 = vmatprep.subr.bf16.mxu1 %v18492_v0  ;;  %v13427_v20 = vadd.f32 %v13426_v43, %v20291_v63  ;;  %v13428_v17 = vpop.f32.mrb[97].mxu0  ;;  %v18504_v63 = vld [vmem:[#allocation13 + $0x4ec] ss:$16 sps:$4 sm:$0xff]   ;;  %v18550_v0 = vld [vmem:[#allocation13 + $0x5e8] ss:$16 sps:$4 sm:$0xff]  }
 0x8bc   : > { %v13467_v19 = vpop.f32.mrb[96].mxu1  ;;  %v13429_v24 = vadd.f32 %v13428_v17, %v20297_v7  ;;  %v13430_v29 = vpop.f32.mrb[98].mxu0  ;;  %15289 = vmatpush1.bf16.msra.mxu0 %v18487_v8  ;;  %v18502_v7 = vld [vmem:[#allocation13 + $0x4e8] ss:$16 sps:$4 sm:$0xff]   ;;  %v18555_v8 = vld [vmem:[#allocation13 + $0x604] ss:$16 sps:$4 sm:$0xff]  }
 0x8bd   : > { %v13469_v55 = vpop.f32.mrb[97].mxu1  ;;  %v20309_v30 = vadd.f32 %v13467_v19, %v13427_v20  ;;  %v13431_v56 = vpop.f32.mrb[99].mxu0  ;;  %15290 = vmatprep.subr.bf16.mxu0 %v18495_v33  ;;  %v18553_v33 = vld [vmem:[#allocation13 + $0x600] ss:$16 sps:$4 sm:$0xff]   ;;  %v18561_v20 = vld [vmem:[#allocation13 + $0x624] ss:$16 sps:$4 sm:$0xff]  }
 0x8be   : > { %v13471_v51 = vpop.f32.mrb[98].mxu1  ;;  %15453 = vmatpush1.bf16.msra.mxu1 %v18490_v22  ;;  %v20311_v9 = vadd.f32 %v13469_v55, %v13429_v24  ;;  %v13626_v22 = vsel %vm13610_vm9, %v13602_v2, %v13618_v28  ;;  %v18564_v19 = vld [vmem:[#allocation13 + $0x62c] ss:$16 sps:$4 sm:$0xff]   ;;  %v18559_v17 = vld [vmem:[#allocation13 + $0x620] ss:$16 sps:$4 sm:$0xff]  }
 0x8bf   : > { %v13472_v44 = vpop.f32.mrb[99].mxu1  ;;  %15454 = vmatprep.subr.bf16.mxu1 %v18498_v45  ;;  %v13634_v43 = vpack.c.bf16 %v13626_v22, %v13626_v22  ;;  %v18556_v45 = vld [vmem:[#allocation13 + $0x608] ss:$16 sps:$4 sm:$0xff]   ;;  %v18567_v55 = vld [vmem:[#allocation13 + $0x644] ss:$16 sps:$4 sm:$0xff]  }
 0x8c0   : > { %15291 = vmatpush1.bf16.msra.mxu0 %v18493_v15  ;;  %v18562_v24 = vld [vmem:[#allocation13 + $0x628] ss:$16 sps:$4 sm:$0xff]   ;;  %v18570_v29 = vld [vmem:[#allocation13 + $0x64c] ss:$16 sps:$4 sm:$0xff]   ;;  %v18565_v15 = vld [vmem:[#allocation13 + $0x640] ss:$16 sps:$4 sm:$0xff]  }
 0x8c1   : > { %15292 = vmatprep.subr.bf16.mxu0 %v18501_v37  ;;  %v18568_v51 = vld [vmem:[#allocation13 + $0x648] ss:$16 sps:$4 sm:$0xff]   ;;  %v18573_v56 = vld [vmem:[#allocation13 + $0x664] ss:$16 sps:$4 sm:$0xff]   ;;  %v18571_v37 = vld [vmem:[#allocation13 + $0x660] ss:$16 sps:$4 sm:$0xff]  }
 0x8c2   : > { %15455 = vmatpush1.bf16.msra.mxu1 %v18496_v34  ;;  %v18576_v34 = vld [vmem:[#allocation13 + $0x66c] ss:$16 sps:$4 sm:$0xff]   ;;  %v18574_v44 = vld [vmem:[#allocation13 + $0x668] ss:$16 sps:$4 sm:$0xff]   ;;  %v18603_v2 = vld [vmem:[#allocation13 + $0x704] ss:$16 sps:$4 sm:$0xff]  }
 0x8c3   : > { %15456 = vmatprep.subr.bf16.mxu1 %v18504_v63  ;;  %v18579_v63 = vld [vmem:[#allocation13 + $0x684] ss:$16 sps:$4 sm:$0xff]   ;;  %v18610_v22 = vld [vmem:[#allocation13 + $0x728] ss:$16 sps:$4 sm:$0xff]  }
 0x8c4   : > { %15293 = vmatpush1.bf16.msra.mxu0 %v18499_v58  ;;  %v18582_v58 = vld [vmem:[#allocation13 + $0x68c] ss:$16 sps:$4 sm:$0xff]  }
 0x8c5   : > { %15294 = vmatprep.subr.bf16.mxu0 %v18507_v26  ;;  %v18580_v26 = vld [vmem:[#allocation13 + $0x688] ss:$16 sps:$4 sm:$0xff]  }
 0x8c6   : > { %15457 = vmatpush1.bf16.msra.mxu1 %v18502_v7  ;;  %v18577_v7 = vld [vmem:[#allocation13 + $0x680] ss:$16 sps:$4 sm:$0xff]  }
 0x8c7   : > { %15458 = vmatprep.subr.bf16.mxu1 %v18510_v42  ;;  %v18585_v42 = vld [vmem:[#allocation13 + $0x6a4] ss:$16 sps:$4 sm:$0xff]  }
 0x8c8   : > { %15295 = vmatpush1.bf16.msra.mxu0 %v18505_v16  ;;  %v18588_v16 = vld [vmem:[#allocation13 + $0x6ac] ss:$16 sps:$4 sm:$0xff]  }
 0x8c9   : > { %15296 = vmatprep.subr.bf16.mxu0 %v18513_v14  ;;  %v18583_v14 = vld [vmem:[#allocation13 + $0x6a0] ss:$16 sps:$4 sm:$0xff]  }
 0x8ca   : > { %15459 = vmatpush1.bf16.msra.mxu1 %v18508_v3  ;;  %v13588_v3 = vsub.s32 7, %v20437_v47 }
 0x8cb   : > { %15460 = vmatprep.subr.bf16.mxu1 %v18516_v31  ;;  %v18586_v31 = vld [vmem:[#allocation13 + $0x6a8] ss:$16 sps:$4 sm:$0xff]  }
 0x8cc   : > { %15297 = vmatpush1.bf16.msra.mxu0 %v18511_v46  ;;  %v18591_v46 = vld [vmem:[#allocation13 + $0x6c4] ss:$16 sps:$4 sm:$0xff]  }
 0x8cd   : > { %15298 = vmatprep.subr.bf16.mxu0 %v18519_v57  ;;  %v18594_v57 = vld [vmem:[#allocation13 + $0x6cc] ss:$16 sps:$4 sm:$0xff]  }
 0x8ce   : > { %15461 = vmatpush1.bf16.msra.mxu1 %v18514_v61 }
 0x8cf   : > { %15462 = vmatprep.subr.bf16.mxu1 %v18522_v48 }
 0x8d0   : > { %15299 = vmatpush1.bf16.msra.mxu0 %v18517_v1 }
 0x8d1   : > { %15300 = vmatprep.subr.bf16.mxu0 %v18525_v32 }
 0x8d2   : > { %15463 = vmatpush1.bf16.msra.mxu1 %v18520_v27 }
 0x8d3   : > { %15464 = vmatprep.subr.bf16.mxu1 %v18528_v52 }
 0x8d4   : > { %15301 = vmatpush1.bf16.msra.mxu0 %v18523_v12  ;;  %v20319_v12 = vld [vmem:[#allocation12] sm:$0xff] }
 0x8d5   : > { %15302 = vmatprep.subr.bf16.mxu0 %v18531_v25 }
 0x8d6   : > { %15465 = vmatpush1.bf16.msra.mxu1 %v18526_v41  ;;  %v13589_v41 = vrot.slane %v20319_v12, %v13588_v3  ;;  %v18640_v3 = vld [vmem:[#allocation13 + $0x7c8] ss:$16 sps:$4 sm:$0xff]  }
 0x8d7   : > { %15466 = vmatprep.subr.bf16.mxu1 %v18534_v62 }
 0x8d8   : > { %15303 = vmatpush1.bf16.msra.mxu0 %v18529_v13 }
 0x8d9   : > { %15304 = vmatprep.subr.bf16.mxu0 %v18537_v11  ;;  %v18592_v11 = vld [vmem:[#allocation13 + $0x6c8] ss:$16 sps:$4 sm:$0xff]  }
 0x8da   : > { %15467 = vmatpush1.bf16.msra.mxu1 %v18532_v54 }
 0x8db   : > { %15468 = vmatprep.subr.bf16.mxu1 %v18540_v6 }
 0x8dc   : > { %15305 = vmatpush1.bf16.msra.mxu0 %v18535_v23 }
 0x8dd   : > { %15306 = vmatprep.subr.bf16.mxu0 %v18543_v21  ;;  %v18598_v21 = vld [vmem:[#allocation13 + $0x6e8] ss:$16 sps:$4 sm:$0xff]  }
 0x8de   : > { %15469 = vmatpush1.bf16.msra.mxu1 %v18538_v35  ;;  %v18595_v35 = vld [vmem:[#allocation13 + $0x6e0] ss:$16 sps:$4 sm:$0xff]  }
 0x8df   : > { %15470 = vmatprep.subr.bf16.mxu1 %v18546_v49 }
 0x8e0   : > { %15307 = vmatpush1.bf16.msra.mxu0 %v18541_v60  ;;  %v18606_v60 = vld [vmem:[#allocation13 + $0x70c] ss:$16 sps:$4 sm:$0xff]  }
 0x8e1   : > { %15308 = vmatprep.subr.bf16.mxu0 %v18549_v38 }
 0x8e2   : > { %15471 = vmatpush1.bf16.msra.mxu1 %v18544_v4  ;;  %v18601_v4 = vld [vmem:[#allocation13 + $0x700] ss:$16 sps:$4 sm:$0xff]  }
 0x8e3   : > { %15472 = vmatprep.subr.bf16.mxu1 %v18552_v40  ;;  %v18604_v40 = vld [vmem:[#allocation13 + $0x708] ss:$16 sps:$4 sm:$0xff]  }
 0x8e4   : > { %15309 = vmatpush1.bf16.msra.mxu0 %v18547_v10  ;;  %v18609_v10 = vld [vmem:[#allocation13 + $0x724] ss:$16 sps:$4 sm:$0xff]  }
 0x8e5   : > { %15319 = vmatprep.subr.bf16.mxu0 %v18555_v8  ;;  %v18607_v8 = vld [vmem:[#allocation13 + $0x720] ss:$16 sps:$4 sm:$0xff]  }
 0x8e6   : > { %15473 = vmatpush1.bf16.msra.mxu1 %v18550_v0  ;;  %v18612_v0 = vld [vmem:[#allocation13 + $0x72c] ss:$16 sps:$4 sm:$0xff]  }
 0x8e7   : > { %15483 = vmatprep.subr.bf16.mxu1 %v18558_v50  ;;  %15311 = vmatmul.mubr.bf16.vlgmr.msra.gmra.mrb[104].mxu0 %v13634_v43  ;;  %v18615_v50 = vld [vmem:[#allocation13 + $0x744] ss:$16 sps:$4 sm:$0xff]  }
 0x8e8   : > { %15320 = vmatpush1.bf16.msra.mxu0 %v18553_v33  ;;  %v18618_v33 = vld [vmem:[#allocation13 + $0x74c] ss:$16 sps:$4 sm:$0xff]  }
 0x8e9   : > { %15475 = vmatmul.mubr.bf16.vlgmr.msra.gmra.mrb[104].mxu1 %v13634_v43  ;;  %15321 = vmatprep.subr.bf16.mxu0 %v18561_v20  ;;  %v18613_v43 = vld [vmem:[#allocation13 + $0x740] ss:$16 sps:$4 sm:$0xff]   ;;  %v18621_v20 = vld [vmem:[#allocation13 + $0x764] ss:$16 sps:$4 sm:$0xff]  }
 0x8ea   : > { %15484 = vmatpush1.bf16.msra.mxu1 %v18556_v45  ;;  %v18616_v45 = vld [vmem:[#allocation13 + $0x748] ss:$16 sps:$4 sm:$0xff]  }
 0x8eb   : > { %15485 = vmatprep.subr.bf16.mxu1 %v18564_v19  ;;  %v18624_v19 = vld [vmem:[#allocation13 + $0x76c] ss:$16 sps:$4 sm:$0xff]  }
 0x8ec   : > { %15322 = vmatpush1.bf16.msra.mxu0 %v18559_v17  ;;  %v18619_v17 = vld [vmem:[#allocation13 + $0x760] ss:$16 sps:$4 sm:$0xff]  }
 0x8ed   : > { %15323 = vmatprep.subr.bf16.mxu0 %v18567_v55  ;;  %v18627_v55 = vld [vmem:[#allocation13 + $0x784] ss:$16 sps:$4 sm:$0xff]  }
 0x8ee   : > { %15486 = vmatpush1.bf16.msra.mxu1 %v18562_v24  ;;  %v18622_v24 = vld [vmem:[#allocation13 + $0x768] ss:$16 sps:$4 sm:$0xff]  }
 0x8ef   : > { %15487 = vmatprep.subr.bf16.mxu1 %v18570_v29  ;;  %v13584_v29 = vsub.s32 6, %v20437_v47 }
 0x8f0   : > { %15324 = vmatpush1.bf16.msra.mxu0 %v18565_v15  ;;  %v18630_v15 = vld [vmem:[#allocation13 + $0x78c] ss:$16 sps:$4 sm:$0xff]  }
 0x8f1   : > { %15325 = vmatprep.subr.bf16.mxu0 %v18573_v56  ;;  %v18628_v56 = vld [vmem:[#allocation13 + $0x788] ss:$16 sps:$4 sm:$0xff]  }
 0x8f2   : > { %15488 = vmatpush1.bf16.msra.mxu1 %v18568_v51  ;;  %v18625_v51 = vld [vmem:[#allocation13 + $0x780] ss:$16 sps:$4 sm:$0xff]  }
 0x8f3   : > { %15489 = vmatprep.subr.bf16.mxu1 %v18576_v34  ;;  %v18633_v34 = vld [vmem:[#allocation13 + $0x7a4] ss:$16 sps:$4 sm:$0xff]  }
 0x8f4   : > { %15326 = vmatpush1.bf16.msra.mxu0 %v18571_v37  ;;  %v13585_v37 = vrot.slane %v20319_v12, %v13584_v29  ;;  %v18652_v12 = vld [vmem:[#allocation16 + $0x80] sm:$0xff]  }
 0x8f5   : > { %15327 = vmatprep.subr.bf16.mxu0 %v18579_v63  ;;  %v18631_v63 = vld [vmem:[#allocation13 + $0x7a0] ss:$16 sps:$4 sm:$0xff]  }
 0x8f6   : > { %15490 = vmatpush1.bf16.msra.mxu1 %v18574_v44  ;;  %v18636_v44 = vld [vmem:[#allocation13 + $0x7ac] ss:$16 sps:$4 sm:$0xff]  }
 0x8f7   : > { %15491 = vmatprep.subr.bf16.mxu1 %v18582_v58  ;;  %v18634_v58 = vld [vmem:[#allocation13 + $0x7a8] ss:$16 sps:$4 sm:$0xff]  }
 0x8f8   : > { %15328 = vmatpush1.bf16.msra.mxu0 %v18577_v7  ;;  %v18639_v7 = vld [vmem:[#allocation13 + $0x7c4] ss:$16 sps:$4 sm:$0xff]  }
 0x8f9   : > { %15329 = vmatprep.subr.bf16.mxu0 %v18585_v42  ;;  %v18642_v42 = vld [vmem:[#allocation13 + $0x7cc] ss:$16 sps:$4 sm:$0xff]  }
 0x8fa   : > { %15492 = vmatpush1.bf16.msra.mxu1 %v18580_v26  ;;  %v13508_v61 = vpop.f32.mrb[100].mxu0 }
 0x8fb   : > { %15493 = vmatprep.subr.bf16.mxu1 %v18588_v16  ;;  %v13509_v48 = vadd.f32 %v13508_v61, %v20309_v30  ;;  %v13510_v27 = vpop.f32.mrb[101].mxu0  ;;  %v18597_v30 = vld [vmem:[#allocation13 + $0x6e4] ss:$16 sps:$4 sm:$0xff]   ;;  %v18637_v16 = vld [vmem:[#allocation13 + $0x7c0] ss:$16 sps:$4 sm:$0xff]  }
 0x8fc   : > { %v13549_v1 = vpop.f32.mrb[100].mxu1  ;;  %v13511_v32 = vadd.f32 %v13510_v27, %v20311_v9  ;;  %v13512_v25 = vpop.f32.mrb[102].mxu0  ;;  %15330 = vmatpush1.bf16.msra.mxu0 %v18583_v14  ;;  %v18600_v9 = vld [vmem:[#allocation13 + $0x6ec] ss:$16 sps:$4 sm:$0xff]   ;;  %v18645_v14 = vld [vmem:[#allocation13 + $0x7e4] ss:$16 sps:$4 sm:$0xff]  }
 0x8fd   : > { %v13551_v52 = vpop.f32.mrb[101].mxu1  ;;  %v20322_v62 = vadd.f32 %v13549_v1, %v13509_v48  ;;  %v13513_v54 = vpop.f32.mrb[103].mxu0  ;;  %15331 = vmatprep.subr.bf16.mxu0 %v18591_v46  ;;  %v18648_v46 = vld [vmem:[#allocation13 + $0x7ec] ss:$16 sps:$4 sm:$0xff]   ;;  %v18643_v61 = vld [vmem:[#allocation13 + $0x7e0] ss:$16 sps:$4 sm:$0xff]  }
 0x8fe   : > { %v13553_v13 = vpop.f32.mrb[102].mxu1  ;;  %15494 = vmatpush1.bf16.msra.mxu1 %v18586_v31  ;;  %v13552_v39 = vadd.f32 %v13551_v52, %v13511_v32  ;;  %v18649_v48 = vld [vmem:[#allocation16 + $0x40] sm:$0xff]   ;;  %v18654_v25 = vld [vmem:[#allocation16 + $0xc8] sm:$0xff]   ;;  %v18658_v54 = vld [vmem:[#allocation16 + $0xd0] sm:$0xff]  }
 0x8ff   : > { %v13554_v6 = vpop.f32.mrb[103].mxu1  ;;  %15495 = vmatprep.subr.bf16.mxu1 %v18594_v57  ;;  %v13604_v26 = vadd.f32 %v13585_v37, %v20322_v62  ;;  %v18646_v57 = vld [vmem:[#allocation13 + $0x7e8] ss:$16 sps:$4 sm:$0xff]   ;;  %v18656_v62 = vld [vmem:[#allocation16 + $0x88] sm:$0xff]  }
 0x900   : > { %v13605_v23 = vadd.f32 %v13589_v41, %v13552_v39  ;;  %15332 = vmatpush1.bf16.msra.mxu0 %v18589_v36  ;;  %v18650_v27 = vld [vmem:[#allocation16 + $0xc0] sm:$0xff]   ;;  %v18653_v41 = vld [vmem:[#allocation16 + $0x48] sm:$0xff]   ;;  %v18657_v13 = vld [vmem:[#allocation16 + $0x50] sm:$0xff]  }
 0x901   : > { %15333 = vmatprep.subr.bf16.mxu0 %v18597_v30  ;;  %v13620_v31 = vmul.f32 0.01, %v13604_v26  ;;  %vm13612_vm11 = vcmp.gt.f32.partialorder %v13604_v26, 0.0  ;;  %v18651_v32 = vld [vmem:[#allocation16] sm:$0xff]   ;;  %v18655_v36 = vld [vmem:[#allocation16 + $0x8] sm:$0xff]   ;;  %v18660_v30 = vld [vmem:[#allocation16 + $0x90] sm:$0xff]  }
 0x902   : > { %15496 = vmatpush1.bf16.msra.mxu1 %v18592_v11  ;;  %v13621_v49 = vmul.f32 0.01, %v13605_v23  ;;  %vm13613_vm10 = vcmp.gt.f32.partialorder %v13605_v23, 0.0  ;;  %v18659_v11 = vld [vmem:[#allocation16 + $0x10] sm:$0xff]   ;;  %v18661_v39 = vld [vmem:[#allocation16 + $0x58] sm:$0xff]  }
 0x903   : > { %15497 = vmatprep.subr.bf16.mxu1 %v18600_v9  ;;  %v13628_v1 = vsel %vm13612_vm11, %v13604_v26, %v13620_v31  ;;  %v18662_v6 = vld [vmem:[#allocation16 + $0xd8] sm:$0xff]  }
 0x904   : > { %15334 = vmatpush1.bf16.msra.mxu0 %v18595_v35  ;;  %v13629_v38 = vsel %vm13613_vm10, %v13605_v23, %v13621_v49  ;;  %v13636_v52 = vpack.c.bf16 %v13628_v1, %v13628_v1  ;;  %v18663_v9 = vld [vmem:[#allocation16 + $0x18] sm:$0xff]   ;;  %v18665_v35 = vld [vmem:[#allocation16 + $0x60] sm:$0xff]  }
 0x905   : > { %15335 = vmatprep.subr.bf16.mxu0 %v18603_v2  ;;  %v13637_v28 = vpack.c.bf16 %v13629_v38, %v13629_v38  ;;  %v18664_v23 = vld [vmem:[#allocation16 + $0x98] sm:$0xff]   ;;  %v18667_v2 = vld [vmem:[#allocation16 + $0x20] sm:$0xff]   ;;  %v18671_v38 = vld [vmem:[#allocation16 + $0x28] sm:$0xff]  }
 0x906   : > { %15498 = vmatpush1.bf16.msra.mxu1 %v18598_v21  ;;  %v18666_v21 = vld [vmem:[#allocation16 + $0xe0] sm:$0xff]  }
 0x907   : > { %15499 = vmatprep.subr.bf16.mxu1 %v18606_v60  ;;  %15351 = vmatprep.mubr.bf16.mxu0 %v13637_v28  ;;  %v18668_v49 = vld [vmem:[#allocation16 + $0xa0] sm:$0xff]   ;;  %v18669_v60 = vld [vmem:[#allocation16 + $0x68] sm:$0xff]  }
 0x908   : > { %15515 = vmatprep.mubr.bf16.mxu1 %v13637_v28  ;;  %15336 = vmatpush1.bf16.msra.mxu0 %v18601_v4  ;;  %v18670_v4 = vld [vmem:[#allocation16 + $0xe8] sm:$0xff]   ;;  %v17995_v1 = vld [vmem:[#allocation18] ss:$0 sm:$0xff] }
 0x909   : > { %15337 = vmatprep.subr.bf16.mxu0 %v18609_v10  ;;  %v18672_v28 = vld [vmem:[#allocation16 + $0xa8] sm:$0xff]   ;;  %v18674_v10 = vld [vmem:[#allocation16 + $0xf0] sm:$0xff]  }
 0x90a   : > { %15500 = vmatpush1.bf16.msra.mxu1 %v18604_v40  ;;  %v18673_v40 = vld [vmem:[#allocation16 + $0x70] sm:$0xff]  }
 0x90b   : > { %15501 = vmatprep.subr.bf16.mxu1 %v18612_v0  ;;  %v18675_v0 = vld [vmem:[#allocation16 + $0x30] sm:$0xff]  }
 0x90c   : > { %15338 = vmatpush1.bf16.msra.mxu0 %v18607_v8  ;;  %v18676_v8 = vld [vmem:[#allocation16 + $0xb0] sm:$0xff]  }
 0x90d   : > { %15339 = vmatprep.subr.bf16.mxu0 %v18615_v50  ;;  %v18678_v50 = vld [vmem:[#allocation16 + $0xf8] sm:$0xff]  }
 0x90e   : > { %15502 = vmatpush1.bf16.msra.mxu1 %v18610_v22  ;;  %v18677_v22 = vld [vmem:[#allocation16 + $0x78] sm:$0xff]  }
 0x90f   : > { %15503 = vmatprep.subr.bf16.mxu1 %v18618_v33  ;;  %v18679_v33 = vld [vmem:[#allocation16 + $0x38] sm:$0xff]  }
 0x910   : > { %15340 = vmatpush1.bf16.msra.mxu0 %v18613_v43  ;;  %v18680_v43 = vld [vmem:[#allocation16 + $0xb8] sm:$0xff]  }
 0x911   : > { %15341 = vmatprep.subr.bf16.mxu0 %v18621_v20 }
 0x912   : > { %15504 = vmatpush1.bf16.msra.mxu1 %v18616_v45  ;;  %v13894_v45 = vld [vmem:[#allocation15] sm:$0xf] }
 0x913   : > { %15505 = vmatprep.subr.bf16.mxu1 %v18624_v19  ;;  %v13899_v20 = vrot.slane %v13894_v45, %v13560_v18  ;;  %v13907_v19 = vrot.slane %v13894_v45, %v13568_v53 }
 0x914   : > { %15342 = vmatpush1.bf16.msra.mxu0 %v18619_v17  ;;  %v13903_v17 = vrot.slane %v13894_v45, %v13564_v5 }
 0x915   : > { %15343 = vmatprep.subr.bf16.mxu0 %v18627_v55 }
 0x916   : > { %15506 = vmatpush1.bf16.msra.mxu1 %v18622_v24  ;;  %v13911_v24 = vrot.slane %v13894_v45, %v13572_v59 }
 0x917   : > { %15507 = vmatprep.subr.bf16.mxu1 %v18630_v15 }
 0x918   : > { %15344 = vmatpush1.bf16.msra.mxu0 %v18625_v51 }
 0x919   : > { %15345 = vmatprep.subr.bf16.mxu0 %v18633_v34 }
 0x91a   : > { %15508 = vmatpush1.bf16.msra.mxu1 %v18628_v56 }
 0x91b   : > { %15509 = vmatprep.subr.bf16.mxu1 %v18636_v44 }
 0x91c   : > { %15346 = vmatpush1.bf16.msra.mxu0 %v18631_v63 }
 0x91d   : > { %15347 = vmatprep.subr.bf16.mxu0 %v18639_v7 }
 0x91e   : > { %15510 = vmatpush1.bf16.msra.mxu1 %v18634_v58 }
 0x91f   : > { %15511 = vmatprep.subr.bf16.mxu1 %v18642_v42 }
 0x920   : > { %15348 = vmatpush1.bf16.msra.mxu0 %v18637_v16 }
 0x921   : > { %15349 = vmatprep.subr.bf16.mxu0 %v18645_v14 }
 0x922   : > { %15512 = vmatpush1.bf16.msra.mxu1 %v18640_v3 }
 0x923   : > { %15513 = vmatprep.subr.bf16.mxu1 %v18648_v46 }
 0x924   : > { %15350 = vmatpush1.bf16.msra.mxu0 %v18643_v61 }
 0x925   : > { %18033 = vmatprep.subr.bf16.mxu0 %v18649_v48 }
 0x926   : > { %15514 = vmatpush1.bf16.msra.mxu1 %v18646_v57 }
 0x927   : > { %18055 = vmatprep.subr.bf16.mxu1 %v18650_v27  ;;  %15352 = vmatmul.mubr.bf16.vlgmr.msra.gmra.mrb[104].mxu0 %v13636_v52 }
 0x928   : > { %18034 = vmatpush3.bf16.msra.mxu0 %v18651_v32 }
 0x929   : > { %15516 = vmatmul.mubr.bf16.vlgmr.msra.gmra.mrb[104].mxu1 %v13636_v52  ;;  %18035 = vmatprep.subr.bf16.mxu0 %v18653_v41 }
 0x92a   : > { %18056 = vmatpush3.bf16.msra.mxu1 %v18652_v12 }
 0x92b   : > { %18057 = vmatprep.subr.bf16.mxu1 %v18654_v25 }
 0x92c   : > { %18036 = vmatpush3.bf16.msra.mxu0 %v18655_v36 }
 0x92d   : > { %18037 = vmatprep.subr.bf16.mxu0 %v18657_v13 }
 0x92e   : > { %18058 = vmatpush3.bf16.msra.mxu1 %v18656_v62 }
 0x92f   : > { %18059 = vmatprep.subr.bf16.mxu1 %v18658_v54 }
 0x930   : > { %18038 = vmatpush3.bf16.msra.mxu0 %v18659_v11 }
 0x931   : > { %18039 = vmatprep.subr.bf16.mxu0 %v18661_v39 }
 0x932   : > { %18060 = vmatpush3.bf16.msra.mxu1 %v18660_v30 }
 0x933   : > { %18061 = vmatprep.subr.bf16.mxu1 %v18662_v6 }
 0x934   : > { %18040 = vmatpush3.bf16.msra.mxu0 %v18663_v9 }
 0x935   : > { %18041 = vmatprep.subr.bf16.mxu0 %v18665_v35 }
 0x936   : > { %18062 = vmatpush3.bf16.msra.mxu1 %v18664_v23 }
 0x937   : > { %18063 = vmatprep.subr.bf16.mxu1 %v18666_v21 }
 0x938   : > { %18042 = vmatpush3.bf16.msra.mxu0 %v18667_v2 }
 0x939   : > { %18043 = vmatprep.subr.bf16.mxu0 %v18669_v60 }
 0x93a   : > { %18064 = vmatpush3.bf16.msra.mxu1 %v18668_v49 }
 0x93b   : > { %18065 = vmatprep.subr.bf16.mxu1 %v18670_v4 }
 0x93c   : > { %18044 = vmatpush3.bf16.msra.mxu0 %v18671_v38 }
 0x93d   : > { %18045 = vmatprep.subr.bf16.mxu0 %v18673_v40 }
 0x93e   : > { %18066 = vmatpush3.bf16.msra.mxu1 %v18672_v28 }
 0x93f   : > { %18067 = vmatprep.subr.bf16.mxu1 %v18674_v10 }
 0x940   : > { %18046 = vmatpush3.bf16.msra.mxu0 %v18675_v0 }
 0x941   : > { %18047 = vmatprep.subr.bf16.mxu0 %v18677_v22 }
 0x942   : > { %18068 = vmatpush3.bf16.msra.mxu1 %v18676_v8 }
 0x943   : > { %18069 = vmatprep.subr.bf16.mxu1 %v18678_v50 }
 0x944   : > { %18048 = vmatpush3.bf16.msra.mxu0 %v18679_v33 }
 0x946   : > { %18070 = vmatpush3.bf16.msra.mxu1 %v18680_v43 }
 0x9fa   : > { %v15353_v55 = vpop.f32.mrb[104].mxu0 }
 0x9fb   : > { %v18077_v29 = vadd.f32 %v15353_v55, %v13899_v20  ;;  %v15355_v51 = vpop.f32.mrb[105].mxu0 }
 0x9fc   : > { %v15517_v15 = vpop.f32.mrb[104].mxu1  ;;  %v18078_v34 = vadd.f32 %v15355_v51, %v13903_v17  ;;  %v15357_v44 = vpop.f32.mrb[106].mxu0 }
 0x9fd   : > { %v18079_v56 = vadd.f32 %v15517_v15, %v13907_v19  ;;  %v15519_v37 = vpop.f32.mrb[105].mxu1  ;;  %vm15524_vm12 = vcmp.gt.f32.partialorder %v18077_v29, 0.0  ;;  %v15528_v63 = vmul.f32 0.01, %v18077_v29  ;;  %v15358_v7 = vpop.f32.mrb[107].mxu0 }
 0x9fe   : > { %v18080_v18 = vadd.f32 %v15519_v37, %v13911_v24  ;;  %v15521_v58 = vpop.f32.mrb[106].mxu1  ;;  %vm15525_vm14 = vcmp.gt.f32.partialorder %v18078_v34, 0.0  ;;  %v15529_v5 = vmul.f32 0.01, %v18078_v34 }
 0x9ff   : > { %vm15526_vm13 = vcmp.gt.f32.partialorder %v18079_v56, 0.0  ;;  %v15530_v53 = vmul.f32 0.01, %v18079_v56  ;;  %v15532_v26 = vsel %vm15524_vm12, %v18077_v29, %v15528_v63  ;;  %v15522_v59 = vpop.f32.mrb[107].mxu1 }
 0xa00   : > { %vm15527_vm15 = vcmp.gt.f32.partialorder %v18080_v18, 0.0  ;;  %v15531_v47 = vmul.f32 0.01, %v18080_v18  ;;  %v15533_v16 = vsel %vm15525_vm14, %v18078_v34, %v15529_v5  ;;  %v15536_v31 = vpack.c.bf16 %v15532_v26, %v15532_v26 }
 0xa01   : > { %v15534_v42 = vsel %vm15526_vm13, %v18079_v56, %v15530_v53  ;;  %v15537_v3 = vpack.c.bf16 %v15533_v16, %v15533_v16 }
 0xa02   : > { %v15535_v14 = vsel %vm15527_vm15, %v18080_v18, %v15531_v47  ;;  %v15538_v61 = vpack.c.bf16 %v15534_v42, %v15534_v42 }
 0xa03   : > { %v15539_v46 = vpack.c.bf16 %v15535_v14, %v15535_v14  ;;  %15835 = vmatprep.mubr.bf16.mxu0 %v15537_v3 }
 0xa04   : > { %15836 = vmatmul.mubr.bf16.vlgmr.msra.gmra.mrb[108].mxu0 %v15536_v31 }
 0xa05   : > { %15875 = vmatprep.mubr.bf16.mxu1 %v15539_v46 }
 0xa06   : > { %15876 = vmatmul.mubr.bf16.vlgmr.msra.gmra.mrb[108].mxu1 %v15538_v61 }
 0xad7   : > { %v18049_v57 = vpop.f32.mrb[108].mxu0 }
 0xad8   : > { %v18050_v27 = vpop.f32.mrb[109].mxu0 }
 0xad9   : > { %v18071_v48 = vpop.f32.mrb[108].mxu1  ;;  %v18051_v32 = vadd.f32 %v18050_v27, %v18049_v57  ;;  %v18052_v12 = vpop.f32.mrb[110].mxu0 }
 0xada   : > { %v18072_v52 = vpop.f32.mrb[109].mxu1  ;;  %v18053_v36 = vpop.f32.mrb[111].mxu0 }
 0xadb   : > { %v18073_v41 = vadd.f32 %v18072_v52, %v18071_v48  ;;  %v18074_v25 = vpop.f32.mrb[110].mxu1  ;;  %v15838_v62 = vadd.f32 %v18051_v32, %v17995_v1 }
 0xadc   : > { %v18075_v13 = vpop.f32.mrb[111].mxu1 }
 0xadd   : > { %v15878_v54 = vadd.f32 %v18073_v41, %v15838_v62 }
 0xadf   : > { %15883 = vst [vmem:[#allocation19] sm:$0x3] %v15878_v54 }
 0xae0 PF: > { %p18188_p13 = scmp.eq.s32.totalorder %s19144_s15, 1  ;;  %s19062_s19 = smov [#allocation19]  }
 0xae1   : > { %s15893_s2 = sshll.u32 %s19062_s19, 4  ;;  %s15894_s2 = int_to_ptr.vmem [resolvable:$true] %s15893_s2 }
 0xae2   : > { %s18938_s16 = scalar_lea.vmem %s15894_s2, 32  ;;  %p18945_p5 = scmp.lt.s32.totalorder %s15894_s2, %s15894_s2 }
 0xae3   : > { %p18939_p0 = scmp.ne.s32.totalorder %s15894_s2, %s18938_s16  ;;  %p18946_p12 = scmp.lt.s32.totalorder %s18938_s16, %s18938_s16 }
 0xae5   : > { %p18940_p2 = pnand %p18939_p0, %p18188_p13  ;;  %p18947_p6 = por %p18946_p12, %p18945_p5 }
 0xae7   : > { %p18941_p8 = pneg %p18940_p2 }
 0xae9   : > { %p18948_p9 = pnand %p18947_p6, %p18941_p8 }
 0xaeb   : > { %18951 = shalt.err (!%p18948_p9)
}
 0xaec   : > { %s20438_s4 = sld [smem:[#allocation34_spill]] }
 0xaf2   : > { %s18952_s23 = scalar_lea.hbm %s20438_s4, 32 }
 0xaf3   : > { %p18953_p7 = scmp.ne.s32.totalorder %s20438_s4, %s18952_s23  ;;  %p18958_p3 = scmp.lt.u32.totalorder %s18952_s23, %s20438_s4 }
 0xaf5   : > { %p18954_p1 = pnand %p18953_p7, %p18188_p13 }
 0xaf7   : > { %p18955_p4 = pneg %p18954_p1 }
 0xaf9   : > { %p18960_p10 = pnand %p18958_p3, %p18955_p4 }
 0xafb   : > { %18963 = shalt.err (!%p18960_p10)
}
 0xafc   : > { %18141 = dma.vmem_to_hbm [thread:$0]  (%p18188_p13), %s15894_s2, 32, %s20438_s4, [#allocation6]  }
 0xafd   : > { %19013 = dma.done.wait (%p18188_p13), [#allocation6], 32  }
 0xafe   : > { %19015 = vsyncadd (%p18188_p13), [#allocation6], 4294967264 }
 0xaff PF: > { %s29_s14 = sadd.s32 1, %s19038_s14   ;;  %s20439_s30 = smov %s19022_s10 }
 0xb00   : > { %p26_p11 = scmp.ge.s32.totalorder %s29_s14, 4   ;;  %s20440_s10 = smov %s19026_s11 }
 0xb01   : > { %s20441_s11 = smov %s19342_s20  ;;  %s20442_s12 = smov %s19034_s13 }
 0xb02   : > { %s20443_s13 = smov %s20445_s29  ;;  %28 = sbr.rel (!%p26_p11) target bundleno = 16 (0x10), region = 143 }
 0xb09   :  { %15906 = vsyncpa [#allocation5], 1 }
 0xb0a   :  { %15908 = vsyncpa [#allocation5 + $0x1], 1 }
 0xb0b   :  { %15909 = vsyncpa [#allocation8], 1 }
 0xb0c   :  { %15911 = vsyncpa [#allocation8 + $0x1], 1 }
 0xb0d   :  { %15912 = vsyncpa [#allocation11], 1 }
 0xb0e   :  { %15913 = vsyncpa [#allocation14], 1 }
 0xb0f   :  { %15914 = vsyncpa [#allocation17], 1 }
 0xb10   :  { %15915 = vsyncpa [#allocation6], 1 }
 0xb11   :  { %15917 = vsyncpa [#allocation6 + $0x1], 1 }

</bundles_post_ra>
